<compile_context>
chip_gen: v7x
topology: tpu7x:2x2x1
jax: 0.10.0
libtpu: 0.0.40
codegen_flags: <defaults>
</compile_context>

<pallas_src>
import math
import numpy as np
import jax
import jax.numpy as jnp
from jax.experimental import pallas as pl
from jax.experimental.pallas import tpu as pltpu

BN_EPS = 1e-5


# ----------------------------------------------------------------------------
# pad_hodge_unsqueeze — JAX port of the reference helper
# ----------------------------------------------------------------------------
def pad_hodge_unsqueeze(x, padlen):
    x = x + 1.0
    xlen = x.shape[0]
    if xlen < padlen:
        new_x = jnp.zeros((padlen, padlen), dtype=x.dtype).at[:xlen, :xlen].set(x)
        mask = jnp.zeros((padlen,), dtype=bool).at[:xlen].set(True)
        x = new_x
    else:
        mask = jnp.ones((padlen,), dtype=bool)
    return x[None], mask


# ----------------------------------------------------------------------------
# Pallas kernel: IGN2to1(1 -> H -> H), 4x(2to2 + folded-BN + ReLU) + 2to1.
# Activations are channels-last; a single fused carry hc = [h | h^T] of shape
# (Bt, E, E, 2H) is maintained so no spatial transpose is ever needed.
# ----------------------------------------------------------------------------
def _ign2to1_kernel(x_ref, xt_ref, w0f_ref, w0b_ref, w0s_ref,
                    wmf_ref, wmb_ref, wms_ref, cvec_ref,
                    wfb_ref, wfs_ref, bf_ref, o_ref):
    Bt, E, H = o_ref.shape
    H2, H4, H6 = 2 * H, 4 * H, 6 * H
    f32 = jnp.float32

    eye_f = (jax.lax.broadcasted_iota(jnp.int32, (E, E), 0)
             == jax.lax.broadcasted_iota(jnp.int32, (E, E), 1)).astype(f32)
    eye4 = eye_f[None, :, :, None]                       # hoisted, reused everywhere

    def make_ops(hc):
        # hc: (Bt, E, E, 2H) = [h | h^T].  One sublane reduce of hc gives both
        # row-sums and column-sums of h; a masked reduce gives the diagonal.
        rows = jnp.sum(hc, axis=2)                       # (Bt, E, 2H) = [rows_h | cols_h]
        diag = jnp.sum(hc * eye4, axis=2)                # (Bt, E, 2H) = [diag_h | diag_h]
        op = jnp.concatenate([rows, diag], axis=-1)      # (Bt, E, 4H), K = 128 lanes
        op_small = jnp.sum(op, axis=1)                   # (Bt, 4H) = [sa, sa, sd, sd]
        return op, op_small

    def assemble(fused, rcd):
        # fused: (Bt, E, E, 2H).  rcd: (Bt, E, 6H), column blocks
        # [row-bcast(h,ht) | col-bcast(h,ht) | diag-inject(h,ht)].
        add_i = rcd[:, :, None, :H2]                     # broadcast over j
        add_j = rcd[:, None, :, H2:2 * H2]               # broadcast over i
        add_d = rcd[:, :, None, 2 * H2:]                 # injected on the diagonal
        return jnp.maximum(fused + add_i + add_j + eye4 * add_d, 0.0)   # BN folded

    cvec = cvec_ref[...]                                 # (4, 6H)

    # ---- layer 0 (input channel dim == 1): dense term via broadcast FMA ----
    x = x_ref[...]                                       # (Bt, E, E)
    xT = xt_ref[...]                                     # (Bt, E, E) == x transposed
    w0f = w0f_ref[...]                                   # (2, 2H)
    fused0 = x[..., None] * w0f[0] + xT[..., None] * w0f[1]      # (Bt, E, E, 2H)

    rows0 = jnp.sum(x, axis=2)                           # (Bt, E)
    cols0 = jnp.sum(xT, axis=2)                          # (Bt, E)
    diag0 = jnp.sum(x * eye_f, axis=2)                   # (Bt, E)
    op0 = jnp.stack([rows0, cols0, diag0], axis=-1)      # (Bt, E, 3)
    op0s = jnp.sum(op0, axis=1)                          # (Bt, 3) = [sa, sa, sd]
    rcd0 = jnp.dot(op0.reshape(Bt * E, 3), w0b_ref[...],
                   preferred_element_type=f32).reshape(Bt, E, H6)
    rcd0 = rcd0 + (jnp.dot(op0s, w0s_ref[...], preferred_element_type=f32)
                   + cvec[0])[:, None, :]
    hc = assemble(fused0, rcd0)                          # (Bt, E, E, 2H)

    # ---- 3 mid layers (H -> H), statically unrolled ----
    for l in range(3):
        op, op_s = make_ops(hc)
        fused = jnp.dot(hc.reshape(Bt * E * E, H2), wmf_ref[l],
                        preferred_element_type=f32).reshape(Bt, E, E, H2)
        rcd = jnp.dot(op.reshape(Bt * E, H4), wmb_ref[l],
                      preferred_element_type=f32).reshape(Bt, E, H6)
        rcd = rcd + (jnp.dot(op_s, wms_ref[l], preferred_element_type=f32)
                     + cvec[l + 1])[:, None, :]
        hc = assemble(fused, rcd)

    # ---- final layer 2 -> 1 (bias added via the small path) ----
    op, op_s = make_ops(hc)
    out = jnp.dot(op.reshape(Bt * E, H4), wfb_ref[...],
                  preferred_element_type=f32).reshape(Bt, E, H)
    out = out + (jnp.dot(op_s, wfs_ref[...], preferred_element_type=f32)
                 + bf_ref[0])[:, None, :]
    o_ref[...] = out                                     # (Bt, E, H)


# ----------------------------------------------------------------------------
# VMEM-aware batching / grid selection
# ----------------------------------------------------------------------------
def _vmem_capacity_bytes():
    try:
        info = pltpu.get_tpu_info()
        for attr in ("vmem_capacity_bytes", "vmem_bytes", "vmem_size_bytes"):
            v = getattr(info, attr, None)
            if v:
                return int(v)
    except Exception:
        pass
    return 64 * 1024 * 1024            # conservative v7x floor


def _pick_grid(B, E, H):
    vmem = _vmem_capacity_bytes()
    # ~10 live (E, E, 2H) f32 activation-sized temporaries per graph in flight;
    # keep within ~55% of physical VMEM (headroom for double-buffered I/O
    # blocks, weights and compiler scratch).
    per_graph = 10 * E * E * 2 * H * 4
    cap = max(1, int(vmem * 0.55) // max(per_graph, 1))
    cap = min(cap, 8)
    bt = max(1, min(cap, B))
    if B > 1:                          # keep >= 2 grid steps (v7x megacore)
        bt = min(bt, (B + 1) // 2)
    g = -(-B // bt)                    # ceil; batch is zero-padded to g*bt
    return bt, g


def ign2to1_pallas(L1_2d, packed):
    # L1_2d: (B, E, E) float32; returns (B, E, H) == embedding_hodge_1(L1).transpose(1, 2)
    B, E, _ = L1_2d.shape
    H = packed["wf_big"].shape[-1]
    Bt, G = _pick_grid(B, E, H)
    B_pad = Bt * G
    if B_pad != B:
        L1_2d = jnp.concatenate(
            [L1_2d, jnp.zeros((B_pad - B, E, E), jnp.float32)], axis=0)
    L1T = jnp.swapaxes(L1_2d, 1, 2)    # spatial transpose computed once by XLA

    H2, H4, H6 = 2 * H, 4 * H, 6 * H
    vmem_limit = int(min(_vmem_capacity_bytes() * 3 // 4, 96 * 1024 * 1024))

    out = pl.pallas_call(
        _ign2to1_kernel,
        out_shape=jax.ShapeDtypeStruct((B_pad, E, H), jnp.float32),
        grid=(G,),
        in_specs=[
            pl.BlockSpec((Bt, E, E), lambda g: (g, 0, 0)),       # x
            pl.BlockSpec((Bt, E, E), lambda g: (g, 0, 0)),       # x^T
            pl.BlockSpec((2, H2), lambda g: (0, 0)),             # w0 dense
            pl.BlockSpec((3, H6), lambda g: (0, 0)),             # w0 big op
            pl.BlockSpec((3, H6), lambda g: (0, 0)),             # w0 small op
            pl.BlockSpec((3, H2, H2), lambda g: (0, 0, 0)),      # mid dense
            pl.BlockSpec((3, H4, H6), lambda g: (0, 0, 0)),      # mid big op
            pl.BlockSpec((3, H4, H6), lambda g: (0, 0, 0)),      # mid small op
            pl.BlockSpec((4, H6), lambda g: (0, 0)),             # folded const vecs
            pl.BlockSpec((H4, H), lambda g: (0, 0)),             # final big op
            pl.BlockSpec((H4, H), lambda g: (0, 0)),             # final small op
            pl.BlockSpec((1, H), lambda g: (0, 0)),              # final bias
        ],
        out_specs=pl.BlockSpec((Bt, E, H), lambda g: (g, 0, 0)),
        compiler_params=pltpu.CompilerParams(
            dimension_semantics=("parallel",),
            vmem_limit_bytes=vmem_limit),
    )(L1_2d, L1T, packed["w0f"], packed["w0b"], packed["w0s"],
      packed["wmf"], packed["wmb"], packed["wms"], packed["cvec"],
      packed["wf_big"], packed["wf_small"], packed["bf"])
    return out[:B]


# ----------------------------------------------------------------------------
# Parameter packing: fold eval-BN, biases, 1/n and 1/n^2 into fused matrices.
# coeffs stored as (basis, D, S) = transpose of torch (D, S, basis).
# Column blocks of the 6S-wide "rcd" matrices:
#   [row-bcast->h, row-bcast->ht, col-bcast->h, col-bcast->ht, diag->h, diag->ht]
# ----------------------------------------------------------------------------
def _pack_layer22(W, all_bias, diag_bias, inv, shift, n, dup):
    D, S = W.shape[1], W.shape[2]
    Wi = W * inv[None, None, :]
    inv_n = 1.0 / float(n)
    zDS = jnp.zeros((D, S), jnp.float32)
    zS = jnp.zeros((S,), jnp.float32)

    # dense term: fused_[h|ht] = [h|ht] @ w_full
    w_full = jnp.concatenate(
        [jnp.concatenate([Wi[9], Wi[10]], axis=1),
         jnp.concatenate([Wi[10], Wi[9]], axis=1)], axis=0)          # (2D, 2S)

    def cat6(a, b, c, d, e, f):
        return jnp.concatenate([a, b, c, d, e, f], axis=1)           # (D, 6S)

    rows_blk = cat6(Wi[6], Wi[8], Wi[8], Wi[6], Wi[2], Wi[2]) * inv_n
    cols_blk = cat6(Wi[5], Wi[7], Wi[7], Wi[5], Wi[3], Wi[3]) * inv_n
    diag_blk = cat6(Wi[11], Wi[12], Wi[12], Wi[11], Wi[0], Wi[0])
    sa_blk = cat6(Wi[14], Wi[14], zDS, zDS, Wi[4], Wi[4]) * (inv_n * inv_n)
    sd_blk = cat6(Wi[13], Wi[13], zDS, zDS, Wi[1], Wi[1]) * inv_n
    zero_blk = jnp.zeros((D, 6 * S), jnp.float32)

    big_rows = [rows_blk, cols_blk, diag_blk] + ([zero_blk] if dup else [])
    small_rows = [sa_blk, zero_blk, sd_blk] + ([zero_blk] if dup else [])
    w_big = jnp.concatenate(big_rows, axis=0)
    w_small = jnp.concatenate(small_rows, axis=0)

    ab = all_bias * inv + shift
    db = diag_bias * inv
    cvec = jnp.concatenate([ab, ab, zS, zS, db, db], axis=0)         # (6S,)
    return w_full, w_big, w_small, cvec


def pack_params(raw, n_edge):
    def fold(layer, dup):
        inv = layer["gamma"] * jax.lax.rsqrt(layer["var"] + BN_EPS)
        shift = layer["beta"] - layer["mean"] * inv
        return _pack_layer22(layer["coef"], layer["all_bias"], layer["diag_bias"],
                             inv, shift, n_edge, dup)

    layers = raw["layers"]
    w0f, w0b, w0s, c0 = fold(layers[0], dup=False)
    mids = [fold(l, dup=True) for l in layers[1:]]
    wmf = jnp.stack([m[0] for m in mids])                 # (3, 2H, 2H)
    wmb = jnp.stack([m[1] for m in mids])                 # (3, 4H, 6H)
    wms = jnp.stack([m[2] for m in mids])                 # (3, 4H, 6H)
    cvec = jnp.stack([c0] + [m[3] for m in mids])         # (4, 6H)

    n = float(n_edge)
    Wf = raw["final"]["coef"]                              # (5, H, H)
    H = Wf.shape[1]
    zHH = jnp.zeros((H, H), jnp.float32)
    # op rows: [rows_h, cols_h, diag, diag_dup]; small rows: [sa, sa, sd, sd]
    wf_big = jnp.concatenate([Wf[2] / n, Wf[3] / n, Wf[0], zHH], axis=0)
    wf_small = jnp.concatenate([Wf[4] / (n * n), zHH, Wf[1] / n, zHH], axis=0)
    bf = raw["final"]["bias"].reshape(1, H)
    return dict(w0f=w0f, w0b=w0b, w0s=w0s, wmf=wmf, wmb=wmb, wms=wms,
                cvec=cvec, wf_big=wf_big, wf_small=wf_small, bf=bf)


def init_params(key, n_hid):
    H = n_hid
    keys = jax.random.split(key, 5)

    def coeff(k, basis, d, s):
        return jax.random.normal(k, (basis, d, s), jnp.float32) * (math.sqrt(2.0) / (d + s))

    layers = []
    for D, k in zip([1, H, H, H], keys[:4]):
        sub = jax.random.split(k, 7)
        layers.append(dict(
            coef=coeff(sub[0], 15, D, H),
            all_bias=0.1 * jax.random.normal(sub[1], (H,), jnp.float32),
            diag_bias=0.1 * jax.random.normal(sub[2], (H,), jnp.float32),
            gamma=jax.random.uniform(sub[3], (H,), jnp.float32, 0.5, 1.5),
            beta=0.1 * jax.random.normal(sub[4], (H,), jnp.float32),
            mean=0.1 * jax.random.normal(sub[5], (H,), jnp.float32),
            var=jax.random.uniform(sub[6], (H,), jnp.float32, 0.5, 1.5),
        ))
    subf = jax.random.split(keys[4], 2)
    final = dict(coef=coeff(subf[0], 5, H, H),
                 bias=0.1 * jax.random.normal(subf[1], (H,), jnp.float32))
    return dict(layers=layers, final=final)


# ----------------------------------------------------------------------------
# Forward of CycleNet_Hodge_original (hodge_emb branch)
# ----------------------------------------------------------------------------
def cyclenet_hodge_forward(hodge_emb, raw_params):
    max_beta, max_edge = 0, 0
    for he in hodge_emb:
        max_edge = max(max_edge, he[1].shape[0])
        max_beta = max(max_beta, he[2].shape[0])     # computed for fidelity; unused
    L1_list, mask_list = [], []
    for he in hodge_emb:
        he_cycle = he[0].astype(jnp.float32)
        pad_emb, pad_mask = pad_hodge_unsqueeze(he_cycle, max_edge)
        L1_list.append(pad_emb)
        mask_list.append(pad_mask)
    L1 = jnp.concatenate(L1_list, axis=0)[:, None]   # (B, 1, E, E)  (as in torch)
    pad_masks = jnp.concatenate(mask_list)           # (B*E,)

    packed = pack_params(raw_params, max_edge)       # 1/n folding depends on E
    emb = ign2to1_pallas(L1[:, 0], packed)           # (B, E, H)
    B, E, H = emb.shape
    emb = emb.reshape(B * E, H)
    L1_out = emb[pad_masks]                          # eager boolean mask (not jitted)
    # TODO(synk): self.gnn(data, None, L1) — GNN submodule source not provided;
    # returning the masked per-edge Hodge embeddings L1 instead.
    return L1_out, L1, pad_masks


# ----------------------------------------------------------------------------
# Pure-JAX reference (faithful ops_2_to_2 / ops_2_to_1 path) for validation
# ----------------------------------------------------------------------------
def _ops_2_to_2_ref(x, dim):
    diag = jnp.diagonal(x, axis1=2, axis2=3)
    sum_diag = jnp.sum(diag, axis=2, keepdims=True)
    rows = jnp.sum(x, axis=3)
    cols = jnp.sum(x, axis=2)
    tot = jnp.sum(rows, axis=2)
    eye = jnp.eye(dim, dtype=x.dtype)
    de = lambda v: v[..., None] * eye
    d = float(dim)
    ops = [
        de(diag),
        de(jnp.broadcast_to(sum_diag, diag.shape)) / d,
        de(rows) / d,
        de(cols) / d,
        de(jnp.broadcast_to(tot[..., None], diag.shape)) / (d * d),
        jnp.broadcast_to(cols[..., None], x.shape) / d,
        jnp.broadcast_to(rows[..., None], x.shape) / d,
        jnp.broadcast_to(cols[:, :, None, :], x.shape) / d,
        jnp.broadcast_to(rows[:, :, None, :], x.shape) / d,
        x,
        jnp.swapaxes(x, 2, 3),
        jnp.broadcast_to(diag[..., None], x.shape),
        jnp.broadcast_to(diag[:, :, None, :], x.shape),
        jnp.broadcast_to(sum_diag[..., None], x.shape) / d,
        jnp.broadcast_to(tot[:, :, None, None], x.shape) / (d * d),
    ]
    return jnp.stack(ops, axis=2)


def _ops_2_to_1_ref(x, dim):
    diag = jnp.diagonal(x, axis1=2, axis2=3)
    sum_diag = jnp.sum(diag, axis=2, keepdims=True)
    rows = jnp.sum(x, axis=3)
    cols = jnp.sum(x, axis=2)
    tot = jnp.sum(rows, axis=2, keepdims=True)
    d = float(dim)
    ops = [diag, jnp.broadcast_to(sum_diag, diag.shape) / d, rows / d, cols / d,
           jnp.broadcast_to(tot, diag.shape) / (d * d)]
    return jnp.stack(ops, axis=2)


def ign2to1_ref(L1, raw):
    E = L1.shape[-1]
    hi = jax.lax.Precision.HIGHEST

    def layer22(x, layer):
        ops = _ops_2_to_2_ref(x, E)
        Wt = jnp.transpose(layer["coef"], (1, 2, 0))
        out = jnp.einsum("dsb,ndbij->nsij", Wt, ops, precision=hi)
        out = out + layer["all_bias"][None, :, None, None] \
            + jnp.eye(E)[None, None] * layer["diag_bias"][None, :, None, None]
        inv = layer["gamma"] * jax.lax.rsqrt(layer["var"] + BN_EPS)
        shift = layer["beta"] - layer["mean"] * inv
        return jnp.maximum(out * inv[None, :, None, None]
                           + shift[None, :, None, None], 0.0)

    h = L1
    for layer in raw["layers"]:
        h = layer22(h, layer)
    ops = _ops_2_to_1_ref(h, E)
    Wt = jnp.transpose(raw["final"]["coef"], (1, 2, 0))
    out = jnp.einsum("dsb,ndbi->nsi", Wt, ops, precision=hi) \
        + raw["final"]["bias"].reshape(1, -1, 1)
    return jnp.swapaxes(out, 1, 2)        # (B, E, H)


if __name__ == "__main__":
    root = jax.random.PRNGKey(0)
    kp, kd = jax.random.split(root)
    n_hid = 32
    raw = init_params(kp, n_hid)

    # Synthetic hodge_emb: (cycle Hodge block, non-cycle Hodge block, betti vec)
    hodge_emb = []
    for i, ne in enumerate([12, 16]):
        k1, k2, kd = jax.random.split(kd, 3)
        a = 0.1 * jax.random.normal(k1, (ne, ne), jnp.float32)
        he_cycle = 0.5 * (a + a.T)
        he_noncycle = jax.random.normal(k2, (ne, ne), jnp.float32)  # only shape used
        he_betti = jnp.zeros((i + 1,), jnp.float32)                 # only shape used
        hodge_emb.append((he_cycle, he_noncycle, he_betti))

    out, L1_padded, pad_masks = cyclenet_hodge_forward(hodge_emb, raw)
    out = jax.block_until_ready(out)

    ref = ign2to1_ref(L1_padded, raw)                               # (B, E, H)
    ref = ref.reshape(-1, n_hid)[pad_masks]
    np.testing.assert_allclose(np.asarray(out), np.asarray(ref), rtol=2e-3, atol=2e-3)
    assert out.shape == (12 + 16, n_hid)
    print("KERNEL_OK")
</pallas_src>

<mosaic_0001>
module attributes {stable_mosaic.version = 11 : i64} {
  func.func @_ign2to1_kernel(%arg0: i32, %arg1: memref<1x16x16xf32, #tpu.memory_space<vmem>>, %arg2: memref<1x16x16xf32, #tpu.memory_space<vmem>>, %arg3: memref<2x64xf32, #tpu.memory_space<vmem>>, %arg4: memref<3x192xf32, #tpu.memory_space<vmem>>, %arg5: memref<3x192xf32, #tpu.memory_space<vmem>>, %arg6: memref<3x64x64xf32, #tpu.memory_space<vmem>>, %arg7: memref<3x128x192xf32, #tpu.memory_space<vmem>>, %arg8: memref<3x128x192xf32, #tpu.memory_space<vmem>>, %arg9: memref<4x192xf32, #tpu.memory_space<vmem>>, %arg10: memref<128x32xf32, #tpu.memory_space<vmem>>, %arg11: memref<128x32xf32, #tpu.memory_space<vmem>>, %arg12: memref<1x32xf32, #tpu.memory_space<vmem>>, %arg13: memref<1x16x32xf32, #tpu.memory_space<vmem>>) attributes {dimension_semantics = [#tpu.dimension_semantics<parallel>], iteration_bounds = array<i64: 2>, scalar_prefetch = 0 : i64, scratch_operands = 0 : i64, tpu.core_type = #tpu.core_type<tc>, window_params = [{transform_indices = @transform_0, window_bounds = array<i64: 1, 16, 16>}, {transform_indices = @transform_1, window_bounds = array<i64: 1, 16, 16>}, {pipeline_mode = #tpu.pipeline_mode<synchronous>, transform_indices = @transform_2, window_bounds = array<i64: 2, 64>}, {pipeline_mode = #tpu.pipeline_mode<synchronous>, transform_indices = @transform_3, window_bounds = array<i64: 3, 192>}, {pipeline_mode = #tpu.pipeline_mode<synchronous>, transform_indices = @transform_4, window_bounds = array<i64: 3, 192>}, {pipeline_mode = #tpu.pipeline_mode<synchronous>, transform_indices = @transform_5, window_bounds = array<i64: 3, 64, 64>}, {pipeline_mode = #tpu.pipeline_mode<synchronous>, transform_indices = @transform_6, window_bounds = array<i64: 3, 128, 192>}, {pipeline_mode = #tpu.pipeline_mode<synchronous>, transform_indices = @transform_7, window_bounds = array<i64: 3, 128, 192>}, {pipeline_mode = #tpu.pipeline_mode<synchronous>, transform_indices = @transform_8, window_bounds = array<i64: 4, 192>}, {pipeline_mode = #tpu.pipeline_mode<synchronous>, transform_indices = @transform_9, window_bounds = array<i64: 128, 32>}, {pipeline_mode = #tpu.pipeline_mode<synchronous>, transform_indices = @transform_10, window_bounds = array<i64: 128, 32>}, {pipeline_mode = #tpu.pipeline_mode<synchronous>, transform_indices = @transform_11, window_bounds = array<i64: 1, 32>}, {transform_indices = @transform_12, window_bounds = array<i64: 1, 16, 32>}]} {
    %0 = tpu.iota {dimensions = array<i32: 0>} : vector<16x16xi32>
    %1 = tpu.iota {dimensions = array<i32: 1>} : vector<16x16xi32>
    %2 = arith.cmpi eq, %0, %1 : vector<16x16xi32>
    %3 = arith.extui %2 : vector<16x16xi1> to vector<16x16xi32>
    %4 = arith.sitofp %3 : vector<16x16xi32> to vector<16x16xf32>
    %5 = vector.shape_cast %4 : vector<16x16xf32> to vector<1x16x16x1xf32>
    %c0 = arith.constant 0 : index
    %c0_0 = arith.constant 0 : index
    %6 = vector.load %arg9[%c0, %c0_0] : memref<4x192xf32, #tpu.memory_space<vmem>>, vector<4x192xf32>
    %c0_1 = arith.constant 0 : index
    %c0_2 = arith.constant 0 : index
    %c0_3 = arith.constant 0 : index
    %7 = vector.load %arg1[%c0_1, %c0_2, %c0_3] : memref<1x16x16xf32, #tpu.memory_space<vmem>>, vector<1x16x16xf32>
    %c0_4 = arith.constant 0 : index
    %c0_5 = arith.constant 0 : index
    %c0_6 = arith.constant 0 : index
    %8 = vector.load %arg2[%c0_4, %c0_5, %c0_6] : memref<1x16x16xf32, #tpu.memory_space<vmem>>, vector<1x16x16xf32>
    %c0_7 = arith.constant 0 : index
    %c0_8 = arith.constant 0 : index
    %9 = vector.load %arg3[%c0_7, %c0_8] : memref<2x64xf32, #tpu.memory_space<vmem>>, vector<2x64xf32>
    %10 = vector.shape_cast %7 : vector<1x16x16xf32> to vector<1x16x16x1xf32>
    %11 = vector.extract_strided_slice %9 {offsets = [0, 0], sizes = [1, 64], strides = [1, 1]} : vector<2x64xf32> to vector<1x64xf32>
    %12 = vector.shape_cast %11 : vector<1x64xf32> to vector<64xf32>
    %13 = vector.shape_cast %12 : vector<64xf32> to vector<1x1x1x64xf32>
    %14 = vector.broadcast %10 : vector<1x16x16x1xf32> to vector<1x16x16x64xf32>
    %15 = vector.broadcast %13 : vector<1x1x1x64xf32> to vector<1x16x16x64xf32>
    %16 = arith.mulf %14, %15 : vector<1x16x16x64xf32>
    %17 = vector.shape_cast %8 : vector<1x16x16xf32> to vector<1x16x16x1xf32>
    %18 = vector.extract_strided_slice %9 {offsets = [1, 0], sizes = [1, 64], strides = [1, 1]} : vector<2x64xf32> to vector<1x64xf32>
    %19 = vector.shape_cast %18 : vector<1x64xf32> to vector<64xf32>
    %20 = vector.shape_cast %19 : vector<64xf32> to vector<1x1x1x64xf32>
    %21 = vector.broadcast %17 : vector<1x16x16x1xf32> to vector<1x16x16x64xf32>
    %22 = vector.broadcast %20 : vector<1x1x1x64xf32> to vector<1x16x16x64xf32>
    %23 = arith.mulf %21, %22 : vector<1x16x16x64xf32>
    %24 = arith.addf %16, %23 : vector<1x16x16x64xf32>
    %cst = arith.constant dense<0.000000e+00> : vector<1x16xf32>
    %25 = vector.multi_reduction <add>, %7, %cst [2] : vector<1x16x16xf32> to vector<1x16xf32>
    %cst_9 = arith.constant dense<0.000000e+00> : vector<1x16xf32>
    %26 = vector.multi_reduction <add>, %8, %cst_9 [2] : vector<1x16x16xf32> to vector<1x16xf32>
    %27 = vector.shape_cast %4 : vector<16x16xf32> to vector<1x16x16xf32>
    %28 = arith.mulf %7, %27 : vector<1x16x16xf32>
    %cst_10 = arith.constant dense<0.000000e+00> : vector<1x16xf32>
    %29 = vector.multi_reduction <add>, %28, %cst_10 [2] : vector<1x16x16xf32> to vector<1x16xf32>
    %30 = vector.shape_cast %25 : vector<1x16xf32> to vector<1x16x1xf32>
    %31 = vector.shape_cast %26 : vector<1x16xf32> to vector<1x16x1xf32>
    %32 = vector.shape_cast %29 : vector<1x16xf32> to vector<1x16x1xf32>
    %33 = tpu.concatenate %30, %31, %32 in 2 : vector<1x16x1xf32>, vector<1x16x1xf32>, vector<1x16x1xf32> -> vector<1x16x3xf32>
    %cst_11 = arith.constant dense<0.000000e+00> : vector<1x3xf32>
    %34 = vector.multi_reduction <add>, %33, %cst_11 [1] : vector<1x16x3xf32> to vector<1x3xf32>
    %35 = vector.shape_cast %33 : vector<1x16x3xf32> to vector<16x3xf32>
    %c0_12 = arith.constant 0 : index
    %c0_13 = arith.constant 0 : index
    %36 = vector.load %arg4[%c0_12, %c0_13] : memref<3x192xf32, #tpu.memory_space<vmem>>, vector<3x192xf32>
    %cst_14 = arith.constant dense<0.000000e+00> : vector<16x192xf32>
    %37 = tpu.matmul %35, %36, %cst_14 {dimension_numbers = #tpu.dot_dimension_numbers<[1], [0], [0], [1], [0, 0, 1, 1], [], []>} : vector<16x3xf32>, vector<3x192xf32>, vector<16x192xf32> -> vector<16x192xf32>
    %38 = vector.shape_cast %37 : vector<16x192xf32> to vector<1x16x192xf32>
    %c0_15 = arith.constant 0 : index
    %c0_16 = arith.constant 0 : index
    %39 = vector.load %arg5[%c0_15, %c0_16] : memref<3x192xf32, #tpu.memory_space<vmem>>, vector<3x192xf32>
    %cst_17 = arith.constant dense<0.000000e+00> : vector<1x192xf32>
    %40 = tpu.matmul %34, %39, %cst_17 {dimension_numbers = #tpu.dot_dimension_numbers<[1], [0], [0], [1], [0, 0, 1, 1], [], []>} : vector<1x3xf32>, vector<3x192xf32>, vector<1x192xf32> -> vector<1x192xf32>
    %41 = vector.extract_strided_slice %6 {offsets = [0, 0], sizes = [1, 192], strides = [1, 1]} : vector<4x192xf32> to vector<1x192xf32>
    %42 = vector.shape_cast %41 : vector<1x192xf32> to vector<192xf32>
    %43 = vector.shape_cast %42 : vector<192xf32> to vector<1x192xf32>
    %44 = arith.addf %40, %43 : vector<1x192xf32>
    %45 = vector.shape_cast %44 : vector<1x192xf32> to vector<1x1x192xf32>
    %46 = vector.broadcast %45 : vector<1x1x192xf32> to vector<1x16x192xf32>
    %47 = arith.addf %38, %46 : vector<1x16x192xf32>
    %48 = vector.extract_strided_slice %47 {offsets = [0, 0, 0], sizes = [1, 16, 64], strides = [1, 1, 1]} : vector<1x16x192xf32> to vector<1x16x64xf32>
    %49 = vector.shape_cast %48 : vector<1x16x64xf32> to vector<1x16x1x64xf32>
    %50 = vector.extract_strided_slice %47 {offsets = [0, 0, 64], sizes = [1, 16, 64], strides = [1, 1, 1]} : vector<1x16x192xf32> to vector<1x16x64xf32>
    %51 = vector.shape_cast %50 : vector<1x16x64xf32> to vector<1x1x16x64xf32>
    %52 = vector.extract_strided_slice %47 {offsets = [0, 0, 128], sizes = [1, 16, 64], strides = [1, 1, 1]} : vector<1x16x192xf32> to vector<1x16x64xf32>
    %53 = vector.shape_cast %52 : vector<1x16x64xf32> to vector<1x16x1x64xf32>
    %54 = vector.broadcast %49 : vector<1x16x1x64xf32> to vector<1x16x16x64xf32>
    %55 = arith.addf %24, %54 : vector<1x16x16x64xf32>
    %56 = vector.broadcast %51 : vector<1x1x16x64xf32> to vector<1x16x16x64xf32>
    %57 = arith.addf %55, %56 : vector<1x16x16x64xf32>
    %58 = vector.broadcast %5 : vector<1x16x16x1xf32> to vector<1x16x16x64xf32>
    %59 = vector.broadcast %53 : vector<1x16x1x64xf32> to vector<1x16x16x64xf32>
    %60 = arith.mulf %58, %59 : vector<1x16x16x64xf32>
    %61 = arith.addf %57, %60 : vector<1x16x16x64xf32>
    %cst_18 = arith.constant 0.000000e+00 : f32
    %62 = vector.broadcast %cst_18 : f32 to vector<1x16x16x64xf32>
    %63 = arith.maximumf %61, %62 : vector<1x16x16x64xf32>
    %cst_19 = arith.constant dense<0.000000e+00> : vector<1x16x64xf32>
    %64 = vector.multi_reduction <add>, %63, %cst_19 [2] : vector<1x16x16x64xf32> to vector<1x16x64xf32>
    %65 = vector.broadcast %5 : vector<1x16x16x1xf32> to vector<1x16x16x64xf32>
    %66 = arith.mulf %63, %65 : vector<1x16x16x64xf32>
    %cst_20 = arith.constant dense<0.000000e+00> : vector<1x16x64xf32>
    %67 = vector.multi_reduction <add>, %66, %cst_20 [2] : vector<1x16x16x64xf32> to vector<1x16x64xf32>
    %68 = tpu.concatenate %64, %67 in 2 : vector<1x16x64xf32>, vector<1x16x64xf32> -> vector<1x16x128xf32>
    %cst_21 = arith.constant dense<0.000000e+00> : vector<1x128xf32>
    %69 = vector.multi_reduction <add>, %68, %cst_21 [1] : vector<1x16x128xf32> to vector<1x128xf32>
    %70 = vector.shape_cast %63 : vector<1x16x16x64xf32> to vector<256x64xf32>
    %c0_22 = arith.constant 0 : index
    %c0_23 = arith.constant 0 : index
    %c0_24 = arith.constant 0 : index
    %71 = vector.load %arg6[%c0_22, %c0_23, %c0_24] : memref<3x64x64xf32, #tpu.memory_space<vmem>>, vector<1x64x64xf32>
    %72 = vector.shape_cast %71 : vector<1x64x64xf32> to vector<64x64xf32>
    %cst_25 = arith.constant dense<0.000000e+00> : vector<256x64xf32>
    %73 = tpu.matmul %70, %72, %cst_25 {dimension_numbers = #tpu.dot_dimension_numbers<[1], [0], [0], [1], [0, 0, 1, 1], [], []>} : vector<256x64xf32>, vector<64x64xf32>, vector<256x64xf32> -> vector<256x64xf32>
    %74 = vector.shape_cast %73 : vector<256x64xf32> to vector<1x16x16x64xf32>
    %75 = vector.shape_cast %68 : vector<1x16x128xf32> to vector<16x128xf32>
    %c0_26 = arith.constant 0 : index
    %c0_27 = arith.constant 0 : index
    %c0_28 = arith.constant 0 : index
    %76 = vector.load %arg7[%c0_26, %c0_27, %c0_28] : memref<3x128x192xf32, #tpu.memory_space<vmem>>, vector<1x128x192xf32>
    %77 = vector.shape_cast %76 : vector<1x128x192xf32> to vector<128x192xf32>
    %cst_29 = arith.constant dense<0.000000e+00> : vector<16x192xf32>
    %78 = tpu.matmul %75, %77, %cst_29 {dimension_numbers = #tpu.dot_dimension_numbers<[1], [0], [0], [1], [0, 0, 1, 1], [], []>} : vector<16x128xf32>, vector<128x192xf32>, vector<16x192xf32> -> vector<16x192xf32>
    %79 = vector.shape_cast %78 : vector<16x192xf32> to vector<1x16x192xf32>
    %c0_30 = arith.constant 0 : index
    %c0_31 = arith.constant 0 : index
    %c0_32 = arith.constant 0 : index
    %80 = vector.load %arg8[%c0_30, %c0_31, %c0_32] : memref<3x128x192xf32, #tpu.memory_space<vmem>>, vector<1x128x192xf32>
    %81 = vector.shape_cast %80 : vector<1x128x192xf32> to vector<128x192xf32>
    %cst_33 = arith.constant dense<0.000000e+00> : vector<1x192xf32>
    %82 = tpu.matmul %69, %81, %cst_33 {dimension_numbers = #tpu.dot_dimension_numbers<[1], [0], [0], [1], [0, 0, 1, 1], [], []>} : vector<1x128xf32>, vector<128x192xf32>, vector<1x192xf32> -> vector<1x192xf32>
    %83 = vector.extract_strided_slice %6 {offsets = [1, 0], sizes = [1, 192], strides = [1, 1]} : vector<4x192xf32> to vector<1x192xf32>
    %84 = vector.shape_cast %83 : vector<1x192xf32> to vector<192xf32>
    %85 = vector.shape_cast %84 : vector<192xf32> to vector<1x192xf32>
    %86 = arith.addf %82, %85 : vector<1x192xf32>
    %87 = vector.shape_cast %86 : vector<1x192xf32> to vector<1x1x192xf32>
    %88 = vector.broadcast %87 : vector<1x1x192xf32> to vector<1x16x192xf32>
    %89 = arith.addf %79, %88 : vector<1x16x192xf32>
    %90 = vector.extract_strided_slice %89 {offsets = [0, 0, 0], sizes = [1, 16, 64], strides = [1, 1, 1]} : vector<1x16x192xf32> to vector<1x16x64xf32>
    %91 = vector.shape_cast %90 : vector<1x16x64xf32> to vector<1x16x1x64xf32>
    %92 = vector.extract_strided_slice %89 {offsets = [0, 0, 64], sizes = [1, 16, 64], strides = [1, 1, 1]} : vector<1x16x192xf32> to vector<1x16x64xf32>
    %93 = vector.shape_cast %92 : vector<1x16x64xf32> to vector<1x1x16x64xf32>
    %94 = vector.extract_strided_slice %89 {offsets = [0, 0, 128], sizes = [1, 16, 64], strides = [1, 1, 1]} : vector<1x16x192xf32> to vector<1x16x64xf32>
    %95 = vector.shape_cast %94 : vector<1x16x64xf32> to vector<1x16x1x64xf32>
    %96 = vector.broadcast %91 : vector<1x16x1x64xf32> to vector<1x16x16x64xf32>
    %97 = arith.addf %74, %96 : vector<1x16x16x64xf32>
    %98 = vector.broadcast %93 : vector<1x1x16x64xf32> to vector<1x16x16x64xf32>
    %99 = arith.addf %97, %98 : vector<1x16x16x64xf32>
    %100 = vector.broadcast %5 : vector<1x16x16x1xf32> to vector<1x16x16x64xf32>
    %101 = vector.broadcast %95 : vector<1x16x1x64xf32> to vector<1x16x16x64xf32>
    %102 = arith.mulf %100, %101 : vector<1x16x16x64xf32>
    %103 = arith.addf %99, %102 : vector<1x16x16x64xf32>
    %cst_34 = arith.constant 0.000000e+00 : f32
    %104 = vector.broadcast %cst_34 : f32 to vector<1x16x16x64xf32>
    %105 = arith.maximumf %103, %104 : vector<1x16x16x64xf32>
    %cst_35 = arith.constant dense<0.000000e+00> : vector<1x16x64xf32>
    %106 = vector.multi_reduction <add>, %105, %cst_35 [2] : vector<1x16x16x64xf32> to vector<1x16x64xf32>
    %107 = vector.broadcast %5 : vector<1x16x16x1xf32> to vector<1x16x16x64xf32>
    %108 = arith.mulf %105, %107 : vector<1x16x16x64xf32>
    %cst_36 = arith.constant dense<0.000000e+00> : vector<1x16x64xf32>
    %109 = vector.multi_reduction <add>, %108, %cst_36 [2] : vector<1x16x16x64xf32> to vector<1x16x64xf32>
    %110 = tpu.concatenate %106, %109 in 2 : vector<1x16x64xf32>, vector<1x16x64xf32> -> vector<1x16x128xf32>
    %cst_37 = arith.constant dense<0.000000e+00> : vector<1x128xf32>
    %111 = vector.multi_reduction <add>, %110, %cst_37 [1] : vector<1x16x128xf32> to vector<1x128xf32>
    %112 = vector.shape_cast %105 : vector<1x16x16x64xf32> to vector<256x64xf32>
    %c1 = arith.constant 1 : index
    %c0_38 = arith.constant 0 : index
    %c0_39 = arith.constant 0 : index
    %113 = vector.load %arg6[%c1, %c0_38, %c0_39] : memref<3x64x64xf32, #tpu.memory_space<vmem>>, vector<1x64x64xf32>
    %114 = vector.shape_cast %113 : vector<1x64x64xf32> to vector<64x64xf32>
    %cst_40 = arith.constant dense<0.000000e+00> : vector<256x64xf32>
    %115 = tpu.matmul %112, %114, %cst_40 {dimension_numbers = #tpu.dot_dimension_numbers<[1], [0], [0], [1], [0, 0, 1, 1], [], []>} : vector<256x64xf32>, vector<64x64xf32>, vector<256x64xf32> -> vector<256x64xf32>
    %116 = vector.shape_cast %115 : vector<256x64xf32> to vector<1x16x16x64xf32>
    %117 = vector.shape_cast %110 : vector<1x16x128xf32> to vector<16x128xf32>
    %c1_41 = arith.constant 1 : index
    %c0_42 = arith.constant 0 : index
    %c0_43 = arith.constant 0 : index
    %118 = vector.load %arg7[%c1_41, %c0_42, %c0_43] : memref<3x128x192xf32, #tpu.memory_space<vmem>>, vector<1x128x192xf32>
    %119 = vector.shape_cast %118 : vector<1x128x192xf32> to vector<128x192xf32>
    %cst_44 = arith.constant dense<0.000000e+00> : vector<16x192xf32>
    %120 = tpu.matmul %117, %119, %cst_44 {dimension_numbers = #tpu.dot_dimension_numbers<[1], [0], [0], [1], [0, 0, 1, 1], [], []>} : vector<16x128xf32>, vector<128x192xf32>, vector<16x192xf32> -> vector<16x192xf32>
    %121 = vector.shape_cast %120 : vector<16x192xf32> to vector<1x16x192xf32>
    %c1_45 = arith.constant 1 : index
    %c0_46 = arith.constant 0 : index
    %c0_47 = arith.constant 0 : index
    %122 = vector.load %arg8[%c1_45, %c0_46, %c0_47] : memref<3x128x192xf32, #tpu.memory_space<vmem>>, vector<1x128x192xf32>
    %123 = vector.shape_cast %122 : vector<1x128x192xf32> to vector<128x192xf32>
    %cst_48 = arith.constant dense<0.000000e+00> : vector<1x192xf32>
    %124 = tpu.matmul %111, %123, %cst_48 {dimension_numbers = #tpu.dot_dimension_numbers<[1], [0], [0], [1], [0, 0, 1, 1], [], []>} : vector<1x128xf32>, vector<128x192xf32>, vector<1x192xf32> -> vector<1x192xf32>
    %125 = vector.extract_strided_slice %6 {offsets = [2, 0], sizes = [1, 192], strides = [1, 1]} : vector<4x192xf32> to vector<1x192xf32>
    %126 = vector.shape_cast %125 : vector<1x192xf32> to vector<192xf32>
    %127 = vector.shape_cast %126 : vector<192xf32> to vector<1x192xf32>
    %128 = arith.addf %124, %127 : vector<1x192xf32>
    %129 = vector.shape_cast %128 : vector<1x192xf32> to vector<1x1x192xf32>
    %130 = vector.broadcast %129 : vector<1x1x192xf32> to vector<1x16x192xf32>
    %131 = arith.addf %121, %130 : vector<1x16x192xf32>
    %132 = vector.extract_strided_slice %131 {offsets = [0, 0, 0], sizes = [1, 16, 64], strides = [1, 1, 1]} : vector<1x16x192xf32> to vector<1x16x64xf32>
    %133 = vector.shape_cast %132 : vector<1x16x64xf32> to vector<1x16x1x64xf32>
    %134 = vector.extract_strided_slice %131 {offsets = [0, 0, 64], sizes = [1, 16, 64], strides = [1, 1, 1]} : vector<1x16x192xf32> to vector<1x16x64xf32>
    %135 = vector.shape_cast %134 : vector<1x16x64xf32> to vector<1x1x16x64xf32>
    %136 = vector.extract_strided_slice %131 {offsets = [0, 0, 128], sizes = [1, 16, 64], strides = [1, 1, 1]} : vector<1x16x192xf32> to vector<1x16x64xf32>
    %137 = vector.shape_cast %136 : vector<1x16x64xf32> to vector<1x16x1x64xf32>
    %138 = vector.broadcast %133 : vector<1x16x1x64xf32> to vector<1x16x16x64xf32>
    %139 = arith.addf %116, %138 : vector<1x16x16x64xf32>
    %140 = vector.broadcast %135 : vector<1x1x16x64xf32> to vector<1x16x16x64xf32>
    %141 = arith.addf %139, %140 : vector<1x16x16x64xf32>
    %142 = vector.broadcast %5 : vector<1x16x16x1xf32> to vector<1x16x16x64xf32>
    %143 = vector.broadcast %137 : vector<1x16x1x64xf32> to vector<1x16x16x64xf32>
    %144 = arith.mulf %142, %143 : vector<1x16x16x64xf32>
    %145 = arith.addf %141, %144 : vector<1x16x16x64xf32>
    %cst_49 = arith.constant 0.000000e+00 : f32
    %146 = vector.broadcast %cst_49 : f32 to vector<1x16x16x64xf32>
    %147 = arith.maximumf %145, %146 : vector<1x16x16x64xf32>
    %cst_50 = arith.constant dense<0.000000e+00> : vector<1x16x64xf32>
    %148 = vector.multi_reduction <add>, %147, %cst_50 [2] : vector<1x16x16x64xf32> to vector<1x16x64xf32>
    %149 = vector.broadcast %5 : vector<1x16x16x1xf32> to vector<1x16x16x64xf32>
    %150 = arith.mulf %147, %149 : vector<1x16x16x64xf32>
    %cst_51 = arith.constant dense<0.000000e+00> : vector<1x16x64xf32>
    %151 = vector.multi_reduction <add>, %150, %cst_51 [2] : vector<1x16x16x64xf32> to vector<1x16x64xf32>
    %152 = tpu.concatenate %148, %151 in 2 : vector<1x16x64xf32>, vector<1x16x64xf32> -> vector<1x16x128xf32>
    %cst_52 = arith.constant dense<0.000000e+00> : vector<1x128xf32>
    %153 = vector.multi_reduction <add>, %152, %cst_52 [1] : vector<1x16x128xf32> to vector<1x128xf32>
    %154 = vector.shape_cast %147 : vector<1x16x16x64xf32> to vector<256x64xf32>
    %c2 = arith.constant 2 : index
    %c0_53 = arith.constant 0 : index
    %c0_54 = arith.constant 0 : index
    %155 = vector.load %arg6[%c2, %c0_53, %c0_54] : memref<3x64x64xf32, #tpu.memory_space<vmem>>, vector<1x64x64xf32>
    %156 = vector.shape_cast %155 : vector<1x64x64xf32> to vector<64x64xf32>
    %cst_55 = arith.constant dense<0.000000e+00> : vector<256x64xf32>
    %157 = tpu.matmul %154, %156, %cst_55 {dimension_numbers = #tpu.dot_dimension_numbers<[1], [0], [0], [1], [0, 0, 1, 1], [], []>} : vector<256x64xf32>, vector<64x64xf32>, vector<256x64xf32> -> vector<256x64xf32>
    %158 = vector.shape_cast %157 : vector<256x64xf32> to vector<1x16x16x64xf32>
    %159 = vector.shape_cast %152 : vector<1x16x128xf32> to vector<16x128xf32>
    %c2_56 = arith.constant 2 : index
    %c0_57 = arith.constant 0 : index
    %c0_58 = arith.constant 0 : index
    %160 = vector.load %arg7[%c2_56, %c0_57, %c0_58] : memref<3x128x192xf32, #tpu.memory_space<vmem>>, vector<1x128x192xf32>
    %161 = vector.shape_cast %160 : vector<1x128x192xf32> to vector<128x192xf32>
    %cst_59 = arith.constant dense<0.000000e+00> : vector<16x192xf32>
    %162 = tpu.matmul %159, %161, %cst_59 {dimension_numbers = #tpu.dot_dimension_numbers<[1], [0], [0], [1], [0, 0, 1, 1], [], []>} : vector<16x128xf32>, vector<128x192xf32>, vector<16x192xf32> -> vector<16x192xf32>
    %163 = vector.shape_cast %162 : vector<16x192xf32> to vector<1x16x192xf32>
    %c2_60 = arith.constant 2 : index
    %c0_61 = arith.constant 0 : index
    %c0_62 = arith.constant 0 : index
    %164 = vector.load %arg8[%c2_60, %c0_61, %c0_62] : memref<3x128x192xf32, #tpu.memory_space<vmem>>, vector<1x128x192xf32>
    %165 = vector.shape_cast %164 : vector<1x128x192xf32> to vector<128x192xf32>
    %cst_63 = arith.constant dense<0.000000e+00> : vector<1x192xf32>
    %166 = tpu.matmul %153, %165, %cst_63 {dimension_numbers = #tpu.dot_dimension_numbers<[1], [0], [0], [1], [0, 0, 1, 1], [], []>} : vector<1x128xf32>, vector<128x192xf32>, vector<1x192xf32> -> vector<1x192xf32>
    %167 = vector.extract_strided_slice %6 {offsets = [3, 0], sizes = [1, 192], strides = [1, 1]} : vector<4x192xf32> to vector<1x192xf32>
    %168 = vector.shape_cast %167 : vector<1x192xf32> to vector<192xf32>
    %169 = vector.shape_cast %168 : vector<192xf32> to vector<1x192xf32>
    %170 = arith.addf %166, %169 : vector<1x192xf32>
    %171 = vector.shape_cast %170 : vector<1x192xf32> to vector<1x1x192xf32>
    %172 = vector.broadcast %171 : vector<1x1x192xf32> to vector<1x16x192xf32>
    %173 = arith.addf %163, %172 : vector<1x16x192xf32>
    %174 = vector.extract_strided_slice %173 {offsets = [0, 0, 0], sizes = [1, 16, 64], strides = [1, 1, 1]} : vector<1x16x192xf32> to vector<1x16x64xf32>
    %175 = vector.shape_cast %174 : vector<1x16x64xf32> to vector<1x16x1x64xf32>
    %176 = vector.extract_strided_slice %173 {offsets = [0, 0, 64], sizes = [1, 16, 64], strides = [1, 1, 1]} : vector<1x16x192xf32> to vector<1x16x64xf32>
    %177 = vector.shape_cast %176 : vector<1x16x64xf32> to vector<1x1x16x64xf32>
    %178 = vector.extract_strided_slice %173 {offsets = [0, 0, 128], sizes = [1, 16, 64], strides = [1, 1, 1]} : vector<1x16x192xf32> to vector<1x16x64xf32>
    %179 = vector.shape_cast %178 : vector<1x16x64xf32> to vector<1x16x1x64xf32>
    %180 = vector.broadcast %175 : vector<1x16x1x64xf32> to vector<1x16x16x64xf32>
    %181 = arith.addf %158, %180 : vector<1x16x16x64xf32>
    %182 = vector.broadcast %177 : vector<1x1x16x64xf32> to vector<1x16x16x64xf32>
    %183 = arith.addf %181, %182 : vector<1x16x16x64xf32>
    %184 = vector.broadcast %5 : vector<1x16x16x1xf32> to vector<1x16x16x64xf32>
    %185 = vector.broadcast %179 : vector<1x16x1x64xf32> to vector<1x16x16x64xf32>
    %186 = arith.mulf %184, %185 : vector<1x16x16x64xf32>
    %187 = arith.addf %183, %186 : vector<1x16x16x64xf32>
    %cst_64 = arith.constant 0.000000e+00 : f32
    %188 = vector.broadcast %cst_64 : f32 to vector<1x16x16x64xf32>
    %189 = arith.maximumf %187, %188 : vector<1x16x16x64xf32>
    %cst_65 = arith.constant dense<0.000000e+00> : vector<1x16x64xf32>
    %190 = vector.multi_reduction <add>, %189, %cst_65 [2] : vector<1x16x16x64xf32> to vector<1x16x64xf32>
    %191 = vector.broadcast %5 : vector<1x16x16x1xf32> to vector<1x16x16x64xf32>
    %192 = arith.mulf %189, %191 : vector<1x16x16x64xf32>
    %cst_66 = arith.constant dense<0.000000e+00> : vector<1x16x64xf32>
    %193 = vector.multi_reduction <add>, %192, %cst_66 [2] : vector<1x16x16x64xf32> to vector<1x16x64xf32>
    %194 = tpu.concatenate %190, %193 in 2 : vector<1x16x64xf32>, vector<1x16x64xf32> -> vector<1x16x128xf32>
    %cst_67 = arith.constant dense<0.000000e+00> : vector<1x128xf32>
    %195 = vector.multi_reduction <add>, %194, %cst_67 [1] : vector<1x16x128xf32> to vector<1x128xf32>
    %196 = vector.shape_cast %194 : vector<1x16x128xf32> to vector<16x128xf32>
    %c0_68 = arith.constant 0 : index
    %c0_69 = arith.constant 0 : index
    %197 = vector.load %arg10[%c0_68, %c0_69] : memref<128x32xf32, #tpu.memory_space<vmem>>, vector<128x32xf32>
    %cst_70 = arith.constant dense<0.000000e+00> : vector<16x32xf32>
    %198 = tpu.matmul %196, %197, %cst_70 {dimension_numbers = #tpu.dot_dimension_numbers<[1], [0], [0], [1], [0, 0, 1, 1], [], []>} : vector<16x128xf32>, vector<128x32xf32>, vector<16x32xf32> -> vector<16x32xf32>
    %199 = vector.shape_cast %198 : vector<16x32xf32> to vector<1x16x32xf32>
    %c0_71 = arith.constant 0 : index
    %c0_72 = arith.constant 0 : index
    %200 = vector.load %arg11[%c0_71, %c0_72] : memref<128x32xf32, #tpu.memory_space<vmem>>, vector<128x32xf32>
    %cst_73 = arith.constant dense<0.000000e+00> : vector<1x32xf32>
    %201 = tpu.matmul %195, %200, %cst_73 {dimension_numbers = #tpu.dot_dimension_numbers<[1], [0], [0], [1], [0, 0, 1, 1], [], []>} : vector<1x128xf32>, vector<128x32xf32>, vector<1x32xf32> -> vector<1x32xf32>
    %c0_74 = arith.constant 0 : index
    %c0_75 = arith.constant 0 : index
    %202 = vector.load %arg12[%c0_74, %c0_75] : memref<1x32xf32, #tpu.memory_space<vmem>>, vector<1x32xf32>
    %203 = vector.shape_cast %202 : vector<1x32xf32> to vector<32xf32>
    %204 = vector.shape_cast %203 : vector<32xf32> to vector<1x32xf32>
    %205 = arith.addf %201, %204 : vector<1x32xf32>
    %206 = vector.shape_cast %205 : vector<1x32xf32> to vector<1x1x32xf32>
    %207 = vector.broadcast %206 : vector<1x1x32xf32> to vector<1x16x32xf32>
    %208 = arith.addf %199, %207 : vector<1x16x32xf32>
    %c0_76 = arith.constant 0 : index
    %c0_77 = arith.constant 0 : index
    %c0_78 = arith.constant 0 : index
    %209 = vector.load %arg13[%c0_76, %c0_77, %c0_78] : memref<1x16x32xf32, #tpu.memory_space<vmem>>, vector<1x16x32xf32>
    tpu.vector_store %arg13[%c0_76, %c0_77, %c0_78], %208 {strides = array<i32>} : memref<1x16x32xf32, #tpu.memory_space<vmem>>, vector<1x16x32xf32>,
    return
  }
  func.func @transform_0(%arg0: i32) -> (i32, i32, i32) {
    %c0_i32 = arith.constant 0 : i32
    %c0_i32_0 = arith.constant 0 : i32
    %c0_i32_1 = arith.constant 0 : i32
    return %arg0, %c0_i32, %c0_i32_0 : i32, i32, i32
  }
  func.func @transform_1(%arg0: i32) -> (i32, i32, i32) {
    %c0_i32 = arith.constant 0 : i32
    %c0_i32_0 = arith.constant 0 : i32
    %c0_i32_1 = arith.constant 0 : i32
    return %arg0, %c0_i32, %c0_i32_0 : i32, i32, i32
  }
  func.func @transform_2(%arg0: i32) -> (i32, i32) {
    %c0_i32 = arith.constant 0 : i32
    %c0_i32_0 = arith.constant 0 : i32
    %c0_i32_1 = arith.constant 0 : i32
    return %c0_i32, %c0_i32_0 : i32, i32
  }
  func.func @transform_3(%arg0: i32) -> (i32, i32) {
    %c0_i32 = arith.constant 0 : i32
    %c0_i32_0 = arith.constant 0 : i32
    %c0_i32_1 = arith.constant 0 : i32
    return %c0_i32, %c0_i32_0 : i32, i32
  }
  func.func @transform_4(%arg0: i32) -> (i32, i32) {
    %c0_i32 = arith.constant 0 : i32
    %c0_i32_0 = arith.constant 0 : i32
    %c0_i32_1 = arith.constant 0 : i32
    return %c0_i32, %c0_i32_0 : i32, i32
  }
  func.func @transform_5(%arg0: i32) -> (i32, i32, i32) {
    %c0_i32 = arith.constant 0 : i32
    %c0_i32_0 = arith.constant 0 : i32
    %c0_i32_1 = arith.constant 0 : i32
    %c0_i32_2 = arith.constant 0 : i32
    return %c0_i32, %c0_i32_0, %c0_i32_1 : i32, i32, i32
  }
  func.func @transform_6(%arg0: i32) -> (i32, i32, i32) {
    %c0_i32 = arith.constant 0 : i32
    %c0_i32_0 = arith.constant 0 : i32
    %c0_i32_1 = arith.constant 0 : i32
    %c0_i32_2 = arith.constant 0 : i32
    return %c0_i32, %c0_i32_0, %c0_i32_1 : i32, i32, i32
  }
  func.func @transform_7(%arg0: i32) -> (i32, i32, i32) {
    %c0_i32 = arith.constant 0 : i32
    %c0_i32_0 = arith.constant 0 : i32
    %c0_i32_1 = arith.constant 0 : i32
    %c0_i32_2 = arith.constant 0 : i32
    return %c0_i32, %c0_i32_0, %c0_i32_1 : i32, i32, i32
  }
  func.func @transform_8(%arg0: i32) -> (i32, i32) {
    %c0_i32 = arith.constant 0 : i32
    %c0_i32_0 = arith.constant 0 : i32
    %c0_i32_1 = arith.constant 0 : i32
    return %c0_i32, %c0_i32_0 : i32, i32
  }
  func.func @transform_9(%arg0: i32) -> (i32, i32) {
    %c0_i32 = arith.constant 0 : i32
    %c0_i32_0 = arith.constant 0 : i32
    %c0_i32_1 = arith.constant 0 : i32
    return %c0_i32, %c0_i32_0 : i32, i32
  }
  func.func @transform_10(%arg0: i32) -> (i32, i32) {
    %c0_i32 = arith.constant 0 : i32
    %c0_i32_0 = arith.constant 0 : i32
    %c0_i32_1 = arith.constant 0 : i32
    return %c0_i32, %c0_i32_0 : i32, i32
  }
  func.func @transform_11(%arg0: i32) -> (i32, i32) {
    %c0_i32 = arith.constant 0 : i32
    %c0_i32_0 = arith.constant 0 : i32
    %c0_i32_1 = arith.constant 0 : i32
    return %c0_i32, %c0_i32_0 : i32, i32
  }
  func.func @transform_12(%arg0: i32) -> (i32, i32, i32) {
    %c0_i32 = arith.constant 0 : i32
    %c0_i32_0 = arith.constant 0 : i32
    %c0_i32_1 = arith.constant 0 : i32
    return %arg0, %c0_i32, %c0_i32_0 : i32, i32, i32
  }
}

</mosaic_0001>

<bundles_post_ra>
// kernel: tpu_custom_call.1
= control target key start
LH: loop header
LB: loop body
LE: loop exit
PB: predicated region body
PF: predicated region fallthrough
CT: control target
= control target key end

     0   :  { %s12366_s0 = inlined_call_operand.vmem [shape: f32[2,16,16], index: 0, kind: input, shape index: {}]   ;;  %s12367_s1 = inlined_call_operand.vmem [shape: f32[2,16,16], index: 1, kind: input, shape index: {}]   ;;  %s12368_s2 = inlined_call_operand.vmem [shape: f32[2,64], index: 2, kind: input, shape index: {}]   ;;  %s12369_s3 = inlined_call_operand.vmem [shape: f32[3,192], index: 3, kind: input, shape index: {}]   ;;  %s12370_s4 = inlined_call_operand.vmem [shape: f32[3,192], index: 4, kind: input, shape index: {}]   ;;  %s12371_s5 = inlined_call_operand.vmem [shape: f32[3,64,64], index: 5, kind: input, shape index: {}]   ;;  %s12372_s6 = inlined_call_operand.vmem [shape: f32[3,128,192], index: 6, kind: input, shape index: {}]   ;;  %s12373_s7 = inlined_call_operand.vmem [shape: f32[3,128,192], index: 7, kind: input, shape index: {}]   ;;  %s12374_s8 = inlined_call_operand.vmem [shape: f32[4,192], index: 8, kind: input, shape index: {}]   ;;  %s12375_s9 = inlined_call_operand.vmem [shape: f32[128,32], index: 9, kind: input, shape index: {}]   ;;  %s12376_s10 = inlined_call_operand.vmem [shape: f32[128,32], index: 10, kind: input, shape index: {}]   ;;  %s12377_s11 = inlined_call_operand.vmem [shape: f32[1,32], index: 11, kind: input, shape index: {}]   ;;  %s12378_s12 = inlined_call_operand.hbm [shape: f32[2,16,32], index: 12, kind: output, shape index: {}]  }
   0x1   :  { %12520 = sst [smem:[#allocation78_spill]] %s12366_s0 }
   0x2   :  { %12521 = sst [smem:[#allocation79_spill]] %s12367_s1 }
   0x3   :  { %17 = vsyncpa [#allocation3], 0 }
   0x4   :  { %19 = vsyncpa [#allocation3 + $0x1], 0  ;;  %s8150_s21 = smov 0   ;;  %s8152_s22 = smov 0  }
   0x5   :  { %s8154_s23 = smov 0   ;;  %s8156_s24 = smov 0  }
   0x6 LB: > { %s8171_s25 = sadd.s32 4294967295, %s8075_s24   ;;  %s6983_s26 = sadd.s32 4294967294, %s8075_s24   ;;  %s8075_s24 = sphi %s8156_s24, %s13077_s24   ;;  %s8071_s23 = sphi %s8154_s23, %s13076_s23   ;;  %s8067_s22 = sphi %s8152_s22, %s13075_s22   ;;  %s8063_s21 = sphi %s8150_s21, %s13074_s21  }
   0x7   : > { %s8175_s27 = sadd.s32 1, %s8075_s24   ;;  %s294_s28 = sadd.s32 1, %s8071_s23 }
   0x8   : > { %s291_s29 = ssub.s32 %s8075_s24, %s8175_s27  ;;  %p304_p0 = scmp.ne.s32.totalorder %s8071_s23, %s8067_s22 }
   0x9   : > { %p292_p1 = scmp.eq.s32.totalorder %s291_s29, 0  ;;  %p305_p2 = scmp.eq.s32.totalorder %s8171_s25, 1 }
   0xa   : > { %p310_p3 = scmp.ne.s32.totalorder %s8067_s22, %s8063_s21  ;;  %p311_p4 = scmp.eq.s32.totalorder %s6983_s26, 1 }
   0xb   : > { %s8186_s30 = scalar_select %p292_p1, %s8071_s23, %s294_s28  }
   0xc   : > { %p8188_p5 = por %p305_p2, %p304_p0  ;;  %p8192_p6 = por %p311_p4, %p310_p3 }
   0xd   : > { %p6986_p7 = scmp.ge.s32.totalorder %s8075_s24, 1  ;;  %p375_p8 = scmp.lt.s32.totalorder %s8075_s24, 3 }
   0xf   : > { %p376_p9 = pnand %p6986_p7, %p375_p8 }
  0x11   : > { %379 = sbr.rel (%p376_p9) target bundleno = 2692 (0xa84), region = 68 }
  0x18   : > { %p422_p10 = scmp.lt.s32.totalorder %s8171_s25, 1  ;;  %v432_v0 = vlaneseq  ;;  %v12379_v1 = vmov 0.0   ;;  %vm1081_vm0 = vcmask 130048   ;;  %s12524_s1 = sld [smem:[#allocation79_spill]]  ;;  %v1118_v20 = vld [vmem:[%s12369_s3] sm:$0x77] }
  0x19   : > { %1196 = vmatprep.mubr.f32.mxu0 %v12379_v1  ;;  %2669 = vmatprep.mubr.f32.mxu1 %v12379_v1  ;;  %s12525_s0 = sld [smem:[#allocation78_spill]]  ;;  %vm1127_vm3 = vcmask 1042432   ;;  %v1120_v21 = vcombine.high %v1118_v20, %v1118_v20  ;;  %v8260_v26 = vld [vmem:[%s12370_s4] sm:$0x77]  ;;  %vm1102_vm4 = vcmask 7168   ;;  %vm1105_vm5 = vcmask 15360  }
  0x1a   : > { %s423_s15 = scalar_select %p422_p10, %s8171_s25, 1  ;;  %v8202_v2 = vshrl.u32 %v432_v0, 7  ;;  %v436_v3 = vand.u32 127, %v432_v0  ;;  %v1211_v29 = vcombine.high %v8260_v26, %v8260_v26  ;;  %vm1108_vm6 = vcmask 23552  }
  0x1b   : > { %6994 = vmatprep.subr.msk.mxu0 %vm1127_vm3, %v1120_v21  ;;  %s12405_s20 = smov 64   ;;  %vm1839_vm7 = vcmask 523264   ;;  %vm2176_vm8 = vcmask 1041409   ;;  %vm2178_vm9 = vcmask 1042434   ;;  %vm2180_vm10 = vcmask 1043459   ;;  %s12654_s29 = smov 64  }
  0x1c   : > { %s7246_s16 = sshll.u32 %s423_s15, 4  ;;  %v434_v4 = vadd.s32 8, %v8202_v2  ;;  %vm437_vm1 = vcmp.eq.s32.totalorder %v8202_v2, %v436_v3  ;;  %v8241_v19 = vsub.s32 0, %v8202_v2  ;;  %v8249_v23 = vsub.s32 1, %v8202_v2  ;;  %6995 = vmatpush1.msk.msra.mxu0 %vm1127_vm3, %v1118_v20  ;;  %s7248_s18 = sshll.u32 %s8171_s25, 8 }
  0x1d   : > { %v8219_v8 = vsel %vm437_vm1, 1.0, %v12379_v1  ;;  %v8265_v28 = vsub.s32 2, %v8202_v2  ;;  %6998 = vmatprep.subr.msk.mxu0 %vm1127_vm3, %v1211_v29  ;;  %v8275_v32 = vsub.s32 3, %v8202_v2  ;;  %v8282_v35 = vsub.s32 4, %v8202_v2 }
  0x1e   : > { %s431_s19 = scalar_lea.vmem %s12524_s1, %s7246_s16  ;;  %vm438_vm2 = vcmp.eq.s32.totalorder %v434_v4, %v436_v3  ;;  %12526 = vst [vmem:[#allocation5_spill] sm:$0xff] %v8241_v19  ;;  %12527 = vst [vmem:[#allocation6_spill] sm:$0xff] %v8249_v23  ;;  %v8289_v38 = vsub.s32 5, %v8202_v2  ;;  %v8296_v41 = vsub.s32 6, %v8202_v2  ;;  %v446_v44 = vrot.slane %v8219_v8, %v8241_v19 }
  0x1f   : > { %s426_s28 = scalar_lea.vmem %s12525_s0, %s7246_s16  ;;  %v8212_v5 = vld [vmem:[%s431_s19] sm:$0xff]  ;;  %v8225_v11 = vld [vmem:[%s431_s19 + $0x8] sm:$0xff]  ;;  %v8228_v12 = vsel %vm438_vm2, 1.0, %v12379_v1  ;;  %12528 = vst [vmem:[#allocation7_spill] sm:$0xff] %v8265_v28  ;;  %12529 = vst [vmem:[#allocation8_spill] sm:$0xff] %v8275_v32  ;;  %v457_v45 = vrot.slane %v8219_v8, %v8249_v23  ;;  %v8307_v46 = vsub.s32 7, %v8202_v2  ;;  %v468_v49 = vrot.slane %v8219_v8, %v8265_v28 }
  0x20   : > { %v8214_v6 = vld [vmem:[%s426_s28] sm:$0xff]  ;;  %v8216_v7 = vld [vmem:[%s426_s28 + $0x8] sm:$0xff]  ;;  %v1088_v9 = vsel %vm1081_vm0, %v8212_v5, 0.0  ;;  %v1091_v13 = vsel %vm1081_vm0, %v8225_v11, 0.0  ;;  %v840_v25 = vrot.slane %v8212_v5, %v8241_v19  ;;  %v851_v27 = vrot.slane %v8212_v5, %v8249_v23  ;;  %12530 = vst [vmem:[#allocation9_spill] sm:$0xff] %v8289_v38  ;;  %12531 = vst [vmem:[#allocation10_spill] sm:$0xff] %v8296_v41 }
  0x21   : > { %v1082_v10 = vsel %vm1081_vm0, %v8214_v6, 0.0  ;;  %1089 = vadd.xlane.f32.xlu1 %v1088_v9  ;;  %v1085_v14 = vsel %vm1081_vm0, %v8216_v7, 0.0  ;;  %v1095_v15 = vmul.f32 %v8228_v12, %v8216_v7  ;;  %v1094_v16 = vmul.f32 %v8219_v8, %v8214_v6  ;;  %12532 = vst [vmem:[#allocation11_spill] sm:$0xff] %v8307_v46  ;;  %s419_s0 = sand.u32 1, %s8067_s22  }
  0x22   : > { %1083 = vadd.xlane.f32.xlu0 %v1082_v10  ;;  %v628_v22 = vrot.slane %v8214_v6, %v8241_v19  ;;  %v639_v24 = vrot.slane %v8214_v6, %v8249_v23  ;;  %v650_v30 = vrot.slane %v8214_v6, %v8265_v28  ;;  %v862_v31 = vrot.slane %v8212_v5, %v8265_v28  ;;  %s6987_s1 = sshll.u32 %s419_s0, 4  ;;  %s12325_s25 = scalar_lea.sflag [#allocation3], %s419_s0 }
  0x23   : > { %v1099_v17 = vsel %vm1081_vm0, %v1095_v15, 0.0  ;;  %v1096_v18 = vsel %vm1081_vm0, %v1094_v16, 0.0  ;;  %v661_v33 = vrot.slane %v8214_v6, %v8275_v32  ;;  %v873_v34 = vrot.slane %v8212_v5, %v8275_v32  ;;  %s421_s19 = scalar_lea.vmem [#allocation2], %s6987_s1  ;;  %s8082_s1 = smov [#allocation2]  }
  0x24   : > { %v672_v36 = vrot.slane %v8214_v6, %v8282_v35  ;;  %v884_v37 = vrot.slane %v8212_v5, %v8282_v35  ;;  %v683_v39 = vrot.slane %v8214_v6, %v8289_v38  ;;  %v895_v40 = vrot.slane %v8212_v5, %v8289_v38  ;;  %s8017_s16 = sshll.u32 %s8082_s1, 4  ;;  %s8018_s16 = int_to_ptr.vmem [resolvable:$false] %s8017_s16 }
  0x25   : > { %1092 = vadd.xlane.f32.xlu1 %v1091_v13  ;;  %v694_v42 = vrot.slane %v8214_v6, %v8296_v41  ;;  %v906_v43 = vrot.slane %v8212_v5, %v8296_v41  ;;  %v705_v47 = vrot.slane %v8214_v6, %v8307_v46  ;;  %v917_v48 = vrot.slane %v8212_v5, %v8307_v46  ;;  %s8019_s17 = scalar_lea.vmem %s8018_s16, 512 }
  0x26   : > { %1086 = vadd.xlane.f32.xlu0 %v1085_v14  ;;  %v479_v50 = vrot.slane %v8219_v8, %v8275_v32  ;;  %v490_v51 = vrot.slane %v8219_v8, %v8282_v35  ;;  %v501_v52 = vrot.slane %v8219_v8, %v8289_v38  ;;  %v512_v53 = vrot.slane %v8219_v8, %v8296_v41 }
  0x27   : > { %v523_v54 = vrot.slane %v8219_v8, %v8307_v46  ;;  %v716_v55 = vrot.slane %v8216_v7, %v8241_v19  ;;  %v727_v56 = vrot.slane %v8216_v7, %v8249_v23  ;;  %v928_v57 = vrot.slane %v8225_v11, %v8241_v19 }
  0x28   : > { %v939_v58 = vrot.slane %v8225_v11, %v8249_v23  ;;  %v738_v59 = vrot.slane %v8216_v7, %v8265_v28  ;;  %v950_v60 = vrot.slane %v8225_v11, %v8265_v28  ;;  %v749_v63 = vrot.slane %v8216_v7, %v8275_v32 }
  0x29   : > { %1100 = vadd.xlane.f32.xlu1 %v1099_v17  ;;  %v961_v4 = vrot.slane %v8225_v11, %v8275_v32  ;;  %v760_v14 = vrot.slane %v8216_v7, %v8282_v35  ;;  %v771_v29 = vrot.slane %v8216_v7, %v8289_v38  ;;  %vm2182_vm11 = vcmask 1044484  }
  0x2a   : > { %1097 = vadd.xlane.f32.xlu0 %v1096_v18  ;;  %vm2184_vm12 = vcmask 1045509   ;;  %vm2186_vm13 = vcmask 1046534   ;;  %vm2188_vm14 = vcmask 1047559   ;;  %vm8081_vm15 = vmmov 0  }
  0x2b   : > { %vm6892_vm0 = vcmask 261120  }
  0x3a   : > { %634 = vbcast.lane.b32.xlu1 %v628_v22, 264 }
  0x3e   : > { %641 = vbcast.lane.b32.xlu1 %v639_v24, 256 }
  0x40   : > { %630 = vbcast.lane.b32.xlu0 %v628_v22, 256  ;;  %v972_v22 = vrot.slane %v8225_v11, %v8282_v35 }
  0x42   : > { %645 = vbcast.lane.b32.xlu1 %v639_v24, 264 }
  0x44   : > { %842 = vbcast.lane.b32.xlu0 %v840_v25, 256 }
  0x46   : > { %846 = vbcast.lane.b32.xlu1 %v840_v25, 264 }
  0x48   : > { %853 = vbcast.lane.b32.xlu0 %v851_v27, 256 }
  0x4a   : > { %857 = vbcast.lane.b32.xlu1 %v851_v27, 264 }
  0x4c   : > { %652 = vbcast.lane.b32.xlu0 %v650_v30, 256 }
  0x4e   : > { %656 = vbcast.lane.b32.xlu1 %v650_v30, 264 }
  0x50   : > { %864 = vbcast.lane.b32.xlu0 %v862_v31, 256 }
  0x52   : > { %868 = vbcast.lane.b32.xlu1 %v862_v31, 264 }
  0x54   : > { %663 = vbcast.lane.b32.xlu0 %v661_v33, 256 }
  0x56   : > { %667 = vbcast.lane.b32.xlu1 %v661_v33, 264 }
  0x58   : > { %875 = vbcast.lane.b32.xlu0 %v873_v34, 256 }
  0x5a   : > { %879 = vbcast.lane.b32.xlu1 %v873_v34, 264 }
  0x5c   : > { %674 = vbcast.lane.b32.xlu0 %v672_v36, 256 }
  0x5e   : > { %678 = vbcast.lane.b32.xlu1 %v672_v36, 264  ;;  %v983_v36 = vrot.slane %v8225_v11, %v8289_v38 }
  0x60   : > { %886 = vbcast.lane.b32.xlu0 %v884_v37, 256 }
  0x62   : > { %890 = vbcast.lane.b32.xlu1 %v884_v37, 264 }
  0x64   : > { %685 = vbcast.lane.b32.xlu0 %v683_v39, 256 }
  0x66   : > { %689 = vbcast.lane.b32.xlu1 %v683_v39, 264 }
  0x68   : > { %897 = vbcast.lane.b32.xlu0 %v895_v40, 256 }
  0x6a   : > { %901 = vbcast.lane.b32.xlu1 %v895_v40, 264 }
  0x6c   : > { %696 = vbcast.lane.b32.xlu0 %v694_v42, 256 }
  0x6e   : > { %700 = vbcast.lane.b32.xlu1 %v694_v42, 264  ;;  %v782_v42 = vrot.slane %v8216_v7, %v8296_v41 }
  0x70   : > { %908 = vbcast.lane.b32.xlu0 %v906_v43, 256 }
  0x72   : > { %912 = vbcast.lane.b32.xlu1 %v906_v43, 264 }
  0x74   : > { %448 = vbcast.lane.b32.xlu0 %v446_v44, 256 }
  0x76   : > { %452 = vbcast.lane.b32.xlu1 %v446_v44, 264 }
  0x78   : > { %459 = vbcast.lane.b32.xlu0 %v457_v45, 256 }
  0x7a   : > { %463 = vbcast.lane.b32.xlu1 %v457_v45, 264  ;;  %v994_v45 = vrot.slane %v8225_v11, %v8296_v41 }
  0x7c   : > { %707 = vbcast.lane.b32.xlu0 %v705_v47, 256 }
  0x7e   : > { %711 = vbcast.lane.b32.xlu1 %v705_v47, 264 }
  0x80   : > { %919 = vbcast.lane.b32.xlu0 %v917_v48, 256 }
  0x82   : > { %923 = vbcast.lane.b32.xlu1 %v917_v48, 264 }
  0x84   : > { %470 = vbcast.lane.b32.xlu0 %v468_v49, 256 }
  0x86   : > { %474 = vbcast.lane.b32.xlu1 %v468_v49, 264  ;;  %v534_v49 = vrot.slane %v8228_v12, %v8241_v19 }
  0x88   : > { %481 = vbcast.lane.b32.xlu0 %v479_v50, 256 }
  0x8a   : > { %485 = vbcast.lane.b32.xlu1 %v479_v50, 264 }
  0x8c   : > { %492 = vbcast.lane.b32.xlu0 %v490_v51, 256 }
  0x8e   : > { %496 = vbcast.lane.b32.xlu1 %v490_v51, 264 }
  0x90   : > { %503 = vbcast.lane.b32.xlu0 %v501_v52, 256 }
  0x92   : > { %507 = vbcast.lane.b32.xlu1 %v501_v52, 264  ;;  %v545_v52 = vrot.slane %v8228_v12, %v8249_v23 }
  0x94   : > { %514 = vbcast.lane.b32.xlu0 %v512_v53, 256 }
  0x96   : > { %518 = vbcast.lane.b32.xlu1 %v512_v53, 264  ;;  %v624_v53 = vld [vmem:[%s12368_s2] sm:$0x3] }
  0x98   : > { %525 = vbcast.lane.b32.xlu0 %v523_v54, 256 }
  0x9a   : > { %529 = vbcast.lane.b32.xlu1 %v523_v54, 264 }
  0x9c   : > { %718 = vbcast.lane.b32.xlu0 %v716_v55, 256 }
  0x9e   : > { %722 = vbcast.lane.b32.xlu1 %v716_v55, 264 }
  0xa0   : > { %729 = vbcast.lane.b32.xlu0 %v727_v56, 256 }
  0xa2   : > { %733 = vbcast.lane.b32.xlu1 %v727_v56, 264  ;;  %v8400_v56 = vrot.slane %v624_v53, %v8241_v19 }
  0xa4   : > { %930 = vbcast.lane.b32.xlu0 %v928_v57, 256 }
  0xa6   : > { %934 = vbcast.lane.b32.xlu1 %v928_v57, 264  ;;  %v793_v57 = vrot.slane %v8216_v7, %v8307_v46 }
  0xa8   : > { %941 = vbcast.lane.b32.xlu0 %v939_v58, 256 }
  0xaa   : > { %945 = vbcast.lane.b32.xlu1 %v939_v58, 264  ;;  %v8405_v58 = vrot.slane %v624_v53, %v8249_v23 }
  0xac   : > { %740 = vbcast.lane.b32.xlu0 %v738_v59, 256 }
  0xae   : > { %v1090_v61 = vpop.xlane.xlu1 %1089  ;;  %744 = vbcast.lane.b32.xlu1 %v738_v59, 264 }
  0xaf   : > { %v1084_v62 = vpop.xlane.xlu0 %1083 }
  0xb0   : > { %952 = vbcast.lane.b32.xlu0 %v950_v60, 256  ;;  %v1103_v5 = vsel %vm1102_vm4, %v1084_v62, %v1090_v61 }
  0xb2   : > { %v1093_v0 = vpop.xlane.xlu1 %1092  ;;  %956 = vbcast.lane.b32.xlu1 %v950_v60, 264 }
  0xb3   : > { %v1087_v3 = vpop.xlane.xlu0 %1086 }
  0xb4   : > { %751 = vbcast.lane.b32.xlu0 %v749_v63, 256  ;;  %v1104_v6 = vsel %vm1102_vm4, %v1087_v3, %v1093_v0 }
  0xb6   : > { %v1101_v8 = vpop.xlane.xlu1 %1100  ;;  %755 = vbcast.lane.b32.xlu1 %v749_v63, 264  ;;  %v1005_v63 = vrot.slane %v8225_v11, %v8307_v46 }
  0xb7   : > { %v1098_v9 = vpop.xlane.xlu0 %1097  ;;  %v1107_v10 = vsel %vm1105_vm5, %v1104_v6, %v1101_v8 }
  0xb8   : > { %v1106_v13 = vsel %vm1105_vm5, %v1103_v5, %v1098_v9  ;;  %963 = vbcast.lane.b32.xlu0 %v961_v4, 256  ;;  %v1110_v15 = vsel %vm1108_vm6, %v1107_v10, 0.0 }
  0xb9   : > { %v1109_v16 = vsel %vm1108_vm6, %v1106_v13, 0.0  ;;  %6996 = vmatmul.mubr.msk.f32.vlgmr.msra.gmra.mrb[0].mxu0 %vm1108_vm6, %v1106_v13 }
  0xba   : > { %v1111_v17 = vadd.f32 %v1110_v15, %v1109_v16  ;;  %1202 = vmatprep.mubr.f32.mxu0 %v12379_v1  ;;  %6999 = vmatpush1.msk.msra.mxu0 %vm1127_vm3, %v8260_v26  ;;  %v8349_v18 = vpop.permute.xlu1 %634 }
  0xbb   : > { %v8351_v20 = vpop.permute.xlu0 %630  ;;  %967 = vbcast.lane.b32.xlu1 %v961_v4, 264 }
  0xbc   : > { %v1112_v21 = vrot.slane %v1111_v17, 4  ;;  %762 = vbcast.lane.b32.xlu0 %v760_v14, 256 }
  0xbd   : > { %6997 = vmatmul.mubr.msk.f32.gmra.mrb[2].mxu0 %vm1108_vm6, %v1107_v10 }
  0xbe   : > { %v1113_v24 = vadd.f32 %v1112_v21, %v1111_v17  ;;  %1294 = vmatprep.mubr.f32.mxu0 %v12379_v1  ;;  %v8357_v25 = vpop.permute.xlu1 %641 }
  0xbf   : > { %v8359_v27 = vpop.permute.xlu0 %842  ;;  %766 = vbcast.lane.b32.xlu1 %v760_v14, 264 }
  0xc0   : > { %v1114_v26 = vrot.slane %v1113_v24, 2  ;;  %974 = vbcast.lane.b32.xlu0 %v972_v22, 256 }
  0xc2   : > { %v1115_v30 = vadd.f32 %v1114_v26, %v1113_v24  ;;  %v8363_v31 = vpop.permute.xlu1 %645 }
  0xc3   : > { %v8365_v33 = vpop.permute.xlu0 %853  ;;  %978 = vbcast.lane.b32.xlu1 %v972_v22, 264 }
  0xc4   : > { %v1116_v34 = vrot.slane %v1115_v30, 1  ;;  %773 = vbcast.lane.b32.xlu0 %v771_v29, 256 }
  0xc6   : > { %v1117_v37 = vadd.f32 %v1116_v34, %v1115_v30  ;;  %v8369_v39 = vpop.permute.xlu1 %846 }
  0xc7   : > { %12533 = vst [vmem:[#allocation12_spill] sm:$0xff] %v8369_v39  ;;  %v8371_v40 = vpop.permute.xlu0 %652  ;;  %777 = vbcast.lane.b32.xlu1 %v771_v29, 264 }
  0xc8   : > { %12534 = vst [vmem:[#allocation13_spill] sm:$0xff] %v8371_v40  ;;  %7000 = vmatmul.mubr.msk.f32.vlgmr.msra.gmra.mrb[4].mxu0 %vm1108_vm6, %v1117_v37  ;;  %985 = vbcast.lane.b32.xlu0 %v983_v36, 256 }
  0xca   : > { %v8376_v43 = vpop.permute.xlu1 %857 }
  0xcb   : > { %12535 = vst [vmem:[#allocation14_spill] sm:$0xff] %v8376_v43  ;;  %v8378_v44 = vpop.permute.xlu0 %864  ;;  %989 = vbcast.lane.b32.xlu1 %v983_v36, 264 }
  0xcc   : > { %12536 = vst [vmem:[#allocation15_spill] sm:$0xff] %v8378_v44  ;;  %784 = vbcast.lane.b32.xlu0 %v782_v42, 256 }
  0xce   : > { %v8382_v47 = vpop.permute.xlu1 %656 }
  0xcf   : > { %12537 = vst [vmem:[#allocation16_spill] sm:$0xff] %v8382_v47  ;;  %v8384_v48 = vpop.permute.xlu0 %663  ;;  %788 = vbcast.lane.b32.xlu1 %v782_v42, 264 }
  0xd0   : > { %996 = vbcast.lane.b32.xlu0 %v994_v45, 256 }
  0xd2   : > { %v8388_v50 = vpop.permute.xlu1 %868 }
  0xd3   : > { %12538 = vst [vmem:[#allocation17_spill] sm:$0xff] %v8388_v50  ;;  %v8390_v51 = vpop.permute.xlu0 %875  ;;  %1000 = vbcast.lane.b32.xlu1 %v994_v45, 264 }
  0xd4   : > { %536 = vbcast.lane.b32.xlu0 %v534_v49, 256 }
  0xd6   : > { %v8397_v54 = vpop.permute.xlu1 %667 }
  0xd7   : > { %v675_v55 = vpop.permute.xlu0 %674  ;;  %540 = vbcast.lane.b32.xlu1 %v534_v49, 264 }
  0xd8   : > { %547 = vbcast.lane.b32.xlu0 %v545_v52, 256  ;;  %v813_v59 = vmul.f32 %v8400_v56, %v675_v55 }
  0xda   : > { %v8408_v60 = vpop.permute.xlu1 %879 }
  0xdb   : > { %v887_v61 = vpop.permute.xlu0 %886  ;;  %551 = vbcast.lane.b32.xlu1 %v545_v52, 264 }
  0xdc   : > { %v1025_v62 = vmul.f32 %v8405_v58, %v887_v61  ;;  %795 = vbcast.lane.b32.xlu0 %v793_v57, 256 }
  0xde   : > { %v8413_v0 = vadd.f32 %v1025_v62, %v813_v59  ;;  %v679_v3 = vpop.permute.xlu1 %678 }
  0xdf   : > { %v686_v4 = vpop.permute.xlu0 %685  ;;  %799 = vbcast.lane.b32.xlu1 %v793_v57, 264  ;;  %v814_v7 = vmul.f32 %v8400_v56, %v679_v3 }
  0xe0   : > { %1007 = vbcast.lane.b32.xlu0 %v1005_v63, 256  ;;  %v815_v5 = vmul.f32 %v8400_v56, %v686_v4 }
  0xe2   : > { %v891_v6 = vpop.permute.xlu1 %890 }
  0xe3   : > { %v898_v8 = vpop.permute.xlu0 %897  ;;  %1011 = vbcast.lane.b32.xlu1 %v1005_v63, 264  ;;  %v1026_v9 = vmul.f32 %v8405_v58, %v891_v6 }
  0xe4   : > { %v1027_v10 = vmul.f32 %v8405_v58, %v898_v8 }
  0xe5   : > { %v8419_v13 = vadd.f32 %v1026_v9, %v814_v7 }
  0xe6   : > { %v8421_v11 = vadd.f32 %v1027_v10, %v815_v5  ;;  %v690_v14 = vpop.permute.xlu1 %689 }
  0xe7   : > { %v697_v15 = vpop.permute.xlu0 %696  ;;  %v816_v16 = vmul.f32 %v8400_v56, %v690_v14 }
  0xe8   : > { %v817_v17 = vmul.f32 %v8400_v56, %v697_v15 }
  0xea   : > { %v902_v21 = vpop.permute.xlu1 %901 }
  0xeb   : > { %v909_v22 = vpop.permute.xlu0 %908  ;;  %v1028_v24 = vmul.f32 %v8405_v58, %v902_v21 }
  0xec   : > { %v1029_v26 = vmul.f32 %v8405_v58, %v909_v22 }
  0xed   : > { %v8427_v29 = vadd.f32 %v1028_v24, %v816_v16 }
  0xee   : > { %v8429_v30 = vadd.f32 %v1029_v26, %v817_v17  ;;  %v701_v34 = vpop.permute.xlu1 %700 }
  0xef   : > { %v8431_v36 = vpop.permute.xlu0 %448  ;;  %v818_v37 = vmul.f32 %v8400_v56, %v701_v34 }
  0xf0   : > { %12539 = vst [vmem:[#allocation18_spill] sm:$0xff] %v8431_v36 }
  0xf2   : > { %v913_v42 = vpop.permute.xlu1 %912 }
  0xf3   : > { %v8434_v45 = vpop.permute.xlu0 %459  ;;  %v1030_v49 = vmul.f32 %v8405_v58, %v913_v42 }
  0xf4   : > { %12540 = vst [vmem:[#allocation19_spill] sm:$0xff] %v8434_v45 }
  0xf5   : > { %v8437_v52 = vadd.f32 %v1030_v49, %v818_v37 }
  0xf6   : > { %v8439_v53 = vpop.permute.xlu1 %452 }
  0xf7   : > { %12541 = vst [vmem:[#allocation20_spill] sm:$0xff] %v8439_v53  ;;  %v708_v55 = vpop.permute.xlu0 %707 }
  0xf8   : > { %v819_v57 = vmul.f32 %v8400_v56, %v708_v55 }
  0xfa   : > { %v8442_v59 = vpop.permute.xlu1 %463 }
  0xfb   : > { %12542 = vst [vmem:[#allocation21_spill] sm:$0xff] %v8442_v59  ;;  %v920_v61 = vpop.permute.xlu0 %919 }
  0xfc   : > { %v1031_v62 = vmul.f32 %v8405_v58, %v920_v61 }
  0xfe   : > { %v8445_v63 = vadd.f32 %v1031_v62, %v819_v57  ;;  %v712_v3 = vpop.permute.xlu1 %711 }
  0xff   : > { %v8447_v4 = vpop.permute.xlu0 %470  ;;  %v820_v7 = vmul.f32 %v8400_v56, %v712_v3 }
 0x100   : > { %12543 = vst [vmem:[#allocation22_spill] sm:$0xff] %v8447_v4 }
 0x102   : > { %v924_v5 = vpop.permute.xlu1 %923 }
 0x103   : > { %v8450_v6 = vpop.permute.xlu0 %481  ;;  %v1032_v8 = vmul.f32 %v8405_v58, %v924_v5 }
 0x104   : > { %12544 = vst [vmem:[#allocation23_spill] sm:$0xff] %v8450_v6  ;;  %v2249_v6 = vld [vmem:[%s12371_s5 + $0x28] sm:$0xff] }
 0x105   : > { %v8453_v9 = vadd.f32 %v1032_v8, %v820_v7 }
 0x106   : > { %v8455_v10 = vpop.permute.xlu1 %474 }
 0x107   : > { %12545 = vst [vmem:[#allocation24_spill] sm:$0xff] %v8455_v10  ;;  %v8457_v14 = vpop.permute.xlu0 %492 }
 0x108   : > { %12546 = vst [vmem:[#allocation25_spill] sm:$0xff] %v8457_v14 }
 0x10a   : > { %v8459_v15 = vpop.permute.xlu1 %485 }
 0x10b   : > { %12547 = vst [vmem:[#allocation26_spill] sm:$0xff] %v8459_v15  ;;  %v8461_v16 = vpop.permute.xlu0 %503 }
 0x10c   : > { %12548 = vst [vmem:[#allocation27_spill] sm:$0xff] %v8461_v16 }
 0x10e   : > { %v8463_v17 = vpop.permute.xlu1 %496 }
 0x10f   : > { %12549 = vst [vmem:[#allocation28_spill] sm:$0xff] %v8463_v17  ;;  %v8465_v21 = vpop.permute.xlu0 %514 }
 0x110   : > { %12550 = vst [vmem:[#allocation29_spill] sm:$0xff] %v8465_v21 }
 0x112   : > { %v8467_v22 = vpop.permute.xlu1 %507 }
 0x113   : > { %12551 = vst [vmem:[#allocation30_spill] sm:$0xff] %v8467_v22  ;;  %v8469_v24 = vpop.permute.xlu0 %525 }
 0x114   : > { %12552 = vst [vmem:[#allocation31_spill] sm:$0xff] %v8469_v24 }
 0x116   : > { %v8471_v26 = vpop.permute.xlu1 %518 }
 0x117   : > { %12553 = vst [vmem:[#allocation32_spill] sm:$0xff] %v8471_v26  ;;  %v719_v34 = vpop.permute.xlu0 %718 }
 0x118   : > { %v821_v49 = vmul.f32 %v8400_v56, %v719_v34 }
 0x11a   : > { %v8473_v37 = vpop.permute.xlu1 %529 }
 0x11b   : > { %12554 = vst [vmem:[#allocation33_spill] sm:$0xff] %v8473_v37  ;;  %v730_v42 = vpop.permute.xlu0 %729 }
 0x11c   : > { %v823_v62 = vmul.f32 %v8400_v56, %v730_v42 }
 0x11e   : > { %v723_v55 = vpop.permute.xlu1 %722 }
 0x11f   : > { %v931_v57 = vpop.permute.xlu0 %930  ;;  %v822_v1 = vmul.f32 %v8400_v56, %v723_v55 }
 0x120   : > { %v1033_v61 = vmul.f32 %v8405_v58, %v931_v57 }
 0x122   : > { %v8478_v3 = vadd.f32 %v1033_v61, %v821_v49  ;;  %v734_v7 = vpop.permute.xlu1 %733 }
 0x123   : > { %v942_v5 = vpop.permute.xlu0 %941  ;;  %v824_v22 = vmul.f32 %v8400_v56, %v734_v7 }
 0x124   : > { %v1035_v8 = vmul.f32 %v8405_v58, %v942_v5 }
 0x126   : > { %v8482_v23 = vadd.f32 %v1035_v8, %v823_v62  ;;  %v935_v26 = vpop.permute.xlu1 %934 }
 0x127   : > { %v741_v21 = vpop.permute.xlu0 %740  ;;  %v1034_v34 = vmul.f32 %v8405_v58, %v935_v26 }
 0x128   : > { %v825_v42 = vmul.f32 %v8400_v56, %v741_v21 }
 0x129   : > { %v8486_v16 = vadd.f32 %v1034_v34, %v822_v1 }
 0x12a   : > { %v946_v49 = vpop.permute.xlu1 %945 }
 0x12b   : > { %v953_v57 = vpop.permute.xlu0 %952  ;;  %v1036_v61 = vmul.f32 %v8405_v58, %v946_v49 }
 0x12c   : > { %v1037_v5 = vmul.f32 %v8405_v58, %v953_v57 }
 0x12d   : > { %v8491_v17 = vadd.f32 %v1036_v61, %v824_v22 }
 0x12e   : > { %v8493_v55 = vadd.f32 %v1037_v5, %v825_v42  ;;  %v745_v62 = vpop.permute.xlu1 %744 }
 0x12f   : > { %v752_v8 = vpop.permute.xlu0 %751  ;;  %v826_v26 = vmul.f32 %v8400_v56, %v745_v62 }
 0x130   : > { %v827_v7 = vmul.f32 %v8400_v56, %v752_v8  ;;  %v2244_v8 = vld [vmem:[%s12371_s5] sm:$0xff] }
 0x132   : > { %v957_v1 = vpop.permute.xlu1 %956 }
 0x133   : > { %v964_v34 = vpop.permute.xlu0 %963  ;;  %v1038_v21 = vmul.f32 %v8405_v58, %v957_v1  ;;  %v2245_v1 = vld [vmem:[%s12371_s5 + $0x8] sm:$0xff] }
 0x134   : > { %v1039_v14 = vmul.f32 %v8405_v58, %v964_v34  ;;  %v7666_v34 = vpack.c.bf16 %v2245_v1, %v2244_v8 }
 0x135   : > { %v8499_v15 = vadd.f32 %v1038_v21, %v826_v26  ;;  %v2247_v21 = vld [vmem:[%s12371_s5 + $0x18] sm:$0xff] }
 0x136   : > { %v8501_v49 = vadd.f32 %v1039_v14, %v827_v7  ;;  %v756_v22 = vpop.permute.xlu1 %755  ;;  %v2246_v14 = vld [vmem:[%s12371_s5 + $0x10] sm:$0xff]  ;;  %7667 = vmatprep.subr.bf16.mxu0 %v7666_v34 }
 0x137   : > { %v763_v57 = vpop.permute.xlu0 %762  ;;  %v828_v42 = vmul.f32 %v8400_v56, %v756_v22  ;;  %v7670_v22 = vpack.c.bf16 %v2247_v21, %v2246_v14  ;;  %7669 = vmatpush3.bf16.msra.mxu0 %v7666_v34 }
 0x138   : > { %v829_v61 = vmul.f32 %v8400_v56, %v763_v57  ;;  %v2248_v57 = vld [vmem:[%s12371_s5 + $0x20] sm:$0xff] }
 0x139   : > { %7671 = vmatprep.subr.bf16.mxu0 %v7670_v22  ;;  %v7674_v8 = vpack.c.bf16 %v2249_v6, %v2248_v57 }
 0x13a   : > { %v968_v5 = vpop.permute.xlu1 %967 }
 0x13b   : > { %v975_v62 = vpop.permute.xlu0 %974  ;;  %v1040_v26 = vmul.f32 %v8405_v58, %v968_v5  ;;  %7673 = vmatpush3.bf16.msra.mxu0 %v7670_v22 }
 0x13c   : > { %v1041_v7 = vmul.f32 %v8405_v58, %v975_v62  ;;  %7675 = vmatprep.subr.bf16.mxu0 %v7674_v8 }
 0x13d   : > { %v8525_v10 = vadd.f32 %v1040_v26, %v828_v42 }
 0x13e   : > { %v8527_v4 = vadd.f32 %v1041_v7, %v829_v61  ;;  %v767_v5 = vpop.permute.xlu1 %766 }
 0x13f   : > { %v774_v62 = vpop.permute.xlu0 %773  ;;  %v830_v1 = vmul.f32 %v8400_v56, %v767_v5  ;;  %7677 = vmatpush3.bf16.msra.mxu0 %v7674_v8 }
 0x140   : > { %v831_v14 = vmul.f32 %v8400_v56, %v774_v62 }
 0x142   : > { %v979_v21 = vpop.permute.xlu1 %978 }
 0x143   : > { %v986_v59 = vpop.permute.xlu0 %985  ;;  %v1042_v45 = vmul.f32 %v8405_v58, %v979_v21 }
 0x144   : > { %v1043_v42 = vmul.f32 %v8405_v58, %v986_v59 }
 0x145   : > { %v8533_v61 = vadd.f32 %v1042_v45, %v830_v1 }
 0x146   : > { %v8535_v26 = vadd.f32 %v1043_v42, %v831_v14  ;;  %v778_v7 = vpop.permute.xlu1 %777 }
 0x147   : > { %v785_v34 = vpop.permute.xlu0 %784  ;;  %v832_v6 = vmul.f32 %v8400_v56, %v778_v7 }
 0x148   : > { %v833_v57 = vmul.f32 %v8400_v56, %v785_v34 }
 0x14a   : > { %v990_v5 = vpop.permute.xlu1 %989 }
 0x14b   : > { %v997_v62 = vpop.permute.xlu0 %996  ;;  %v1044_v22 = vmul.f32 %v8405_v58, %v990_v5  ;;  %v619_v5 = vld [vmem:[%s12374_s8] sm:$0xff] }
 0x14c   : > { %v1045_v21 = vmul.f32 %v8405_v58, %v997_v62 }
 0x14d   : > { %v8541_v36 = vadd.f32 %v1044_v22, %v832_v6  ;;  %v2250_v6 = vld [vmem:[%s12371_s5 + $0x30] sm:$0xff]  ;;  %v1216_v22 = vrot.slane %v619_v5, %v8241_v19 }
 0x14e   : > { %v8543_v59 = vadd.f32 %v1045_v21, %v833_v57  ;;  %v789_v45 = vpop.permute.xlu1 %788  ;;  %v2251_v57 = vld [vmem:[%s12371_s5 + $0x38] sm:$0xff]  ;;  %v1220_v21 = vrot.slane %v619_v5, %v8282_v35 }
 0x14f   : > { %v834_v1 = vmul.f32 %v8400_v56, %v789_v45  ;;  %v7678_v62 = vpack.c.bf16 %v2251_v57, %v2250_v6  ;;  %v8078_v45 = vmov 1966171168  }
 0x151   : > { %7679 = vmatprep.subr.bf16.mxu0 %v7678_v62 }
 0x152   : > { %v1001_v14 = vpop.permute.xlu1 %1000  ;;  %7681 = vmatpush3.bf16.msra.mxu0 %v7678_v62 }
 0x153   : > { %v1046_v8 = vmul.f32 %v8405_v58, %v1001_v14  ;;  %v8560_v14 = vpop.permute.xlu0 %536 }
 0x154   : > { %12555 = vst [vmem:[#allocation34_spill] sm:$0xff] %v8560_v14 }
 0x155   : > { %v8547_v42 = vadd.f32 %v1046_v8, %v834_v1  ;;  %v1317_v1 = vunpack.c.l.s4 %v8078_v45 }
 0x156   : > { %v8562_v53 = vpop.permute.xlu1 %540 }
 0x157   : > { %12556 = vst [vmem:[#allocation35_spill] sm:$0xff] %v8562_v53  ;;  %v1318_v40 = vunpack.c.0.s8 %v1317_v1  ;;  %v8566_v57 = vpop.permute.xlu0 %547 }
 0x158   : > { %12557 = vst [vmem:[#allocation36_spill] sm:$0xff] %v8566_v57 }
 0x159   : > { %v8575_v53 = vsub.s32 %v1318_v40, %v8202_v2 }
 0x15a   : > { %v8572_v14 = vpop.permute.xlu1 %551 }
 0x15b   : > { %12558 = vst [vmem:[#allocation37_spill] sm:$0xff] %v8572_v14  ;;  %12559 = vst [vmem:[#allocation38_spill] sm:$0xff] %v8575_v53 }
 0x18c   : > { %v1198_v7 = vpop.f32.mrb[0].mxu0 }
 0x18d   : > { %v1200_v34 = vpop.f32.mrb[1].mxu0 }
 0x190   : > { %v1204_v37 = vpop.f32.mrb[2].mxu0 }
 0x191   : > { %v1206_v24 = vpop.f32.mrb[3].mxu0 }
 0x19b   : > { %v1296_v8 = vpop.f32.mrb[4].mxu0 }
 0x19c   : > { %v1297_v50 = vadd.f32 %v1296_v8, %v1216_v22  ;;  %v1298_v47 = vpop.f32.mrb[5].mxu0  ;;  %v811_v8 = vmul.f32 %v8400_v56, %v8384_v48 }
 0x19d   : > { %v1299_v44 = vadd.f32 %v1298_v47, %v1220_v21 }
 0x19e   : > { %v1304_v43 = vrot.slane %v1297_v50, %v8241_v19  ;;  %v796_v50 = vpop.permute.xlu0 %795 }
 0x19f   : > { %v1308_v6 = vrot.slane %v1299_v44, %v8241_v19  ;;  %v556_v44 = vrot.slane %v8228_v12, %v8265_v28 }
 0x1a0   : > { %v1311_v39 = vadd.f32 %v1304_v43, %v1204_v37  ;;  %v1309_v5 = vadd.f32 %v1304_v43, %v1198_v7  ;;  %v800_v37 = vpop.permute.xlu1 %799 }
 0x1a1   : > { %v8568_v62 = vadd.f32 %v1308_v6, %v1200_v34  ;;  %v8570_v45 = vadd.f32 %v1308_v6, %v1206_v24  ;;  %v567_v24 = vrot.slane %v8228_v12, %v8275_v32  ;;  %v578_v34 = vrot.slane %v8228_v12, %v8282_v35 }
 0x1a2   : > { %v1364_v22 = vcombine.high %v1311_v39, %v1311_v39  ;;  %1627 = vrot.lane.b32.xlu1 %v1311_v39, %s12405_s20  ;;  %1625 = vrot.lane.b32.xlu0 %v1309_v5, %s12405_s20  ;;  %v1315_v47 = vcombine.high %v1309_v5, %v1309_v5  ;;  %v8586_v40 = vrot.slane %v1309_v5, %v8575_v53  ;;  %v1008_v1 = vpop.permute.xlu0 %1007  ;;  %s12321_s20 = scalar_lea.hbm %s12378_s12, %s7248_s18 }
 0x1a3   : > { %v1023_v6 = vmul.f32 %v8405_v58, %v8390_v51  ;;  %v589_v35 = vrot.slane %v8228_v12, %v8289_v38  ;;  %v835_v51 = vmul.f32 %v8400_v56, %v796_v50  ;;  %v836_v14 = vmul.f32 %v8400_v56, %v800_v37 }
 0x1a4   : > { %v1378_v43 = vrot.slane %v1364_v22, %v8575_v53  ;;  %v1329_v7 = vrot.slane %v1315_v47, %v8575_v53  ;;  %v1330_v47 = vcombine.high %v8586_v40, %v8586_v40 }
 0x1a6   : > { %562 = vbcast.lane.b32.xlu1 %v556_v44, 264  ;;  %558 = vbcast.lane.b32.xlu0 %v556_v44, 256  ;;  %v1394_v2 = vrot.slane %v1378_v43, %v8575_v53  ;;  %v1012_v44 = vpop.permute.xlu1 %1011  ;;  %v1331_v32 = vcombine.high %v1329_v7, %v1329_v7 }
 0x1a7   : > { %v1048_v38 = vmul.f32 %v8405_v58, %v1012_v44 }
 0x1a8   : > { %v1410_v21 = vcombine.high %v1394_v2, %v1394_v2  ;;  %v1564_v22 = vrot.slane %v1394_v2, %v8241_v19  ;;  %v1047_v2 = vmul.f32 %v8405_v58, %v1008_v1  ;;  %v1359_v50 = vrot.slane %v1331_v32, %v8575_v53 }
 0x1a9   : > { %v1024_v32 = vmul.f32 %v8405_v58, %v8408_v60 }
 0x1aa   : > { %573 = vbcast.lane.b32.xlu1 %v567_v24, 264  ;;  %569 = vbcast.lane.b32.xlu0 %v567_v24, 256  ;;  %v1572_v5 = vrot.slane %v1410_v21, %v8241_v19  ;;  %v8602_v24 = vadd.f32 %v1564_v22, %v8527_v4  ;;  %v8605_v48 = vadd.f32 %v1564_v22, %v8533_v61 }
 0x1ab   : > { %v1371_v4 = vrot.slane %v1311_v39, %v8575_v53  ;;  %v8619_v61 = vrot.slane %v1330_v47, %v8575_v53  ;;  %v1380_v22 = vcombine.high %v1378_v43, %v1378_v43  ;;  %v1363_v1 = vcombine.high %v1359_v50, %v1359_v50 }
 0x1ac   : > { %v8610_v21 = vadd.f32 %v1572_v5, %v8543_v59  ;;  %v8613_v28 = vadd.f32 %v1572_v5, %v8547_v42  ;;  %v600_v59 = vrot.slane %v8228_v12, %v8296_v41  ;;  %v1055_v42 = vadd.f32 %v1023_v6, %v811_v8 }
 0x1ad   : > { %v1362_v37 = vcombine.high %v8619_v61, %v8619_v61  ;;  %v1408_v44 = vrot.slane %v1380_v22, %v8575_v53  ;;  %v812_v39 = vmul.f32 %v8400_v56, %v8397_v54  ;;  %v1080_v43 = vadd.f32 %v1048_v38, %v836_v14 }
 0x1ae   : > { %584 = vbcast.lane.b32.xlu1 %v578_v34, 264  ;;  %580 = vbcast.lane.b32.xlu0 %v578_v34, 256  ;;  %12560 = vst [vmem:[#allocation39_spill] sm:$0xff] %v8610_v21  ;;  %v1345_v34 = vrot.slane %v1329_v7, %v8575_v53  ;;  %v1079_v7 = vadd.f32 %v1047_v2, %v835_v51 }
 0x1af   : > { %v1379_v5 = vcombine.high %v1371_v4, %v1371_v4  ;;  %v1544_v47 = vrot.slane %v1363_v1, %v8241_v19  ;;  %v1412_v41 = vcombine.high %v1408_v44, %v1408_v44  ;;  %v1568_v8 = vrot.slane %v1408_v44, %v8241_v19 }
 0x1b0   : > { %v1387_v6 = vrot.slane %v1371_v4, %v8575_v53  ;;  %v1361_v21 = vcombine.high %v1345_v34, %v1345_v34  ;;  %v1528_v54 = vrot.slane %v1362_v37, %v8241_v19  ;;  %v1056_v51 = vadd.f32 %v1024_v32, %v812_v39 }
 0x1b1   : > { %v8639_v22 = vadd.f32 %v1544_v47, %v8453_v9  ;;  %v8642_v38 = vadd.f32 %v1544_v47, %v8445_v63  ;;  %v1576_v60 = vrot.slane %v1412_v41, %v8241_v19  ;;  %v8646_v14 = vadd.f32 %v1568_v8, %v8541_v36 }
 0x1b2   : > { %595 = vbcast.lane.b32.xlu1 %v589_v35, 264  ;;  %591 = vbcast.lane.b32.xlu0 %v589_v35, 256  ;;  %v611_v35 = vrot.slane %v8228_v12, %v8307_v46  ;;  %v8649_v2 = vadd.f32 %v1568_v8, %v8535_v26  ;;  %v1401_v12 = vrot.slane %v1379_v5, %v8575_v53 }
 0x1b3   : > { %12561 = vst [vmem:[#allocation40_spill] sm:$0xff] %v8639_v22  ;;  %12562 = vst [vmem:[#allocation41_spill] sm:$0xff] %v8642_v38  ;;  %v8652_v4 = vadd.f32 %v1576_v60, %v1080_v43  ;;  %v8654_v37 = vadd.f32 %v1576_v60, %v1079_v7  ;;  %v8656_v9 = vadd.f32 %v1528_v54, %v1055_v42  ;;  %v12599_v22 = vld [vmem:[#allocation30_spill] sm:$0xff] }
 0x1b4   : > { %v8658_v63 = vadd.f32 %v1528_v54, %v1056_v51  ;;  %v1532_v41 = vrot.slane %v1345_v34, %v8241_v19  ;;  %v1548_v36 = vrot.slane %v1387_v6, %v8241_v19  ;;  %v1540_v26 = vrot.slane %v1361_v21, %v8241_v19  ;;  %v2575_v51 = vld [vmem:[%s12372_s6 + $0x10] sm:$0xff] }
 0x1b5   : > { %12563 = vst [vmem:[#allocation42_spill] sm:$0xff] %v8654_v37  ;;  %v1409_v44 = vcombine.high %v1387_v6, %v1387_v6  ;;  %v1411_v39 = vcombine.high %v1401_v12, %v1401_v12  ;;  %v1415_v47 = vcombine.high %v8568_v62, %v8568_v62  ;;  %v2576_v6 = vld [vmem:[%s12372_s6 + $0x18] sm:$0xff]  ;;  %v1422_v54 = vrot.slane %v8568_v62, %v8575_v53  ;;  %v2577_v62 = vld [vmem:[%s12372_s6 + $0x20] sm:$0xff] }
 0x1b6   : > { %606 = vbcast.lane.b32.xlu1 %v600_v59, 264  ;;  %602 = vbcast.lane.b32.xlu0 %v600_v59, 256  ;;  %v1536_v59 = vrot.slane %v1359_v50, %v8241_v19  ;;  %v8665_v1 = vadd.f32 %v1532_v41, %v8413_v0  ;;  %v8668_v42 = vadd.f32 %v1532_v41, %v8419_v13  ;;  %v2580_v41 = vld [vmem:[%s12372_s6 + $0x38] sm:$0xff] }
 0x1b7   : > { %v8677_v43 = vadd.f32 %v1540_v26, %v8429_v30  ;;  %v8680_v50 = vadd.f32 %v1540_v26, %v8437_v52  ;;  %v8683_v0 = vadd.f32 %v1548_v36, %v8478_v3  ;;  %v8686_v21 = vadd.f32 %v1548_v36, %v8486_v16  ;;  %v2582_v26 = vld [vmem:[%s12372_s6 + $0x48] sm:$0xff] }
 0x1b8   : > { %v8671_v32 = vadd.f32 %v1536_v59, %v8421_v11  ;;  %v8674_v34 = vadd.f32 %v1536_v59, %v8427_v29  ;;  %v1552_v13 = vrot.slane %v1401_v12, %v8241_v19  ;;  %v1556_v11 = vrot.slane %v1409_v44, %v8241_v19  ;;  %v2578_v12 = vld [vmem:[%s12372_s6 + $0x28] sm:$0xff]  ;;  %v2579_v59 = vld [vmem:[%s12372_s6 + $0x30] sm:$0xff] }
 0x1b9   : > { %12566 = vst [vmem:[#allocation45_spill] sm:$0xff] %v8677_v43  ;;  %12567 = vst [vmem:[#allocation46_spill] sm:$0xff] %v8680_v50  ;;  %v1560_v7 = vrot.slane %v1411_v39, %v8241_v19  ;;  %v7686_v36 = vpack.c.bf16 %v2580_v41, %v2578_v12  ;;  %v806_v44 = vmul.f32 %v8400_v56, %v8349_v18  ;;  %v12579_v12 = vld [vmem:[#allocation15_spill] sm:$0xff]  ;;  %v2586_v41 = vld [vmem:[%s12372_s6 + $0x68] sm:$0xff] }
 0x1ba   : > { %617 = vbcast.lane.b32.xlu1 %v611_v35, 264  ;;  %613 = vbcast.lane.b32.xlu0 %v611_v35, 256  ;;  %12564 = vst [vmem:[#allocation43_spill] sm:$0xff] %v8671_v32  ;;  %12565 = vst [vmem:[#allocation44_spill] sm:$0xff] %v8674_v34  ;;  %v8692_v29 = vadd.f32 %v1552_v13, %v8482_v23  ;;  %v8695_v30 = vadd.f32 %v1552_v13, %v8491_v17  ;;  %v2573_v35 = vld [vmem:[%s12372_s6] sm:$0xff]  ;;  %v2603_v43 = vld [vmem:[%s12372_s6 + $0xf0] sm:$0xff] }
 0x1bb   : > { %12568 = vst [vmem:[#allocation47_spill] sm:$0xff] %v8683_v0  ;;  %12569 = vst [vmem:[#allocation48_spill] sm:$0xff] %v8686_v21  ;;  %v8698_v52 = vadd.f32 %v1556_v11, %v8493_v55  ;;  %v8701_v3 = vadd.f32 %v1556_v11, %v8499_v15  ;;  %v8704_v16 = vadd.f32 %v1560_v7, %v8501_v49  ;;  %v2601_v50 = vld [vmem:[%s12372_s6 + $0xe0] sm:$0xff]  ;;  %v12602_v32 = vld [vmem:[#allocation32_spill] sm:$0xff] }
 0x1bc   : > { %12570 = vst [vmem:[#allocation49_spill] sm:$0xff] %v8692_v29  ;;  %12571 = vst [vmem:[#allocation50_spill] sm:$0xff] %v8695_v30  ;;  %v8707_v5 = vadd.f32 %v1560_v7, %v8525_v10  ;;  %v1429_v23 = vrot.slane %v1415_v47, %v8575_v53  ;;  %v1464_v17 = vcombine.high %v8570_v45, %v8570_v45  ;;  %v2574_v10 = vld [vmem:[%s12372_s6 + $0x8] sm:$0xff]  ;;  %v2595_v29 = vld [vmem:[%s12372_s6 + $0xb0] sm:$0xff] }
 0x1bd   : > { %12572 = vst [vmem:[#allocation51_spill] sm:$0xff] %v8698_v52  ;;  %12573 = vst [vmem:[#allocation52_spill] sm:$0xff] %v8701_v3  ;;  %v805_v55 = vmul.f32 %v8400_v56, %v8351_v20  ;;  %v1017_v15 = vmul.f32 %v8405_v58, %v8359_v27  ;;  %v807_v20 = vmul.f32 %v8400_v56, %v8357_v25  ;;  %v12585_v3 = vld [vmem:[#allocation33_spill] sm:$0xff] }
 0x1be   : > { %12574 = vst [vmem:[#allocation53_spill] sm:$0xff] %v8704_v16  ;;  %12575 = vst [vmem:[#allocation54_spill] sm:$0xff] %v8707_v5  ;;  %v1431_v8 = vcombine.high %v1429_v23, %v1429_v23  ;;  %v1478_v49 = vrot.slane %v1464_v17, %v8575_v53  ;;  %v1019_v27 = vmul.f32 %v8405_v58, %v8365_v33  ;;  %v12576_v17 = vld [vmem:[#allocation12_spill] sm:$0xff]  ;;  %v12601_v34 = vld [vmem:[#allocation29_spill] sm:$0xff] }
 0x1bf   : > { %v7682_v60 = vpack.c.bf16 %v2576_v6, %v2574_v10  ;;  %v1471_v25 = vrot.slane %v8570_v45, %v8575_v53  ;;  %v7684_v33 = vpack.c.bf16 %v2575_v51, %v2573_v35  ;;  %v8756_v39 = vadd.f32 %v1017_v15, %v805_v55  ;;  %v2584_v45 = vld [vmem:[%s12372_s6 + $0x58] sm:$0xff]  ;;  %v2581_v6 = vld [vmem:[%s12372_s6 + $0x40] sm:$0xff] }
 0x1c0   : > { %v808_v13 = vmul.f32 %v8400_v56, %v8363_v31  ;;  %v8764_v11 = vrot.slane %v1431_v8, %v8575_v53  ;;  %v1480_v7 = vcombine.high %v1478_v49, %v1478_v49  ;;  %v7688_v47 = vpack.c.bf16 %v2579_v59, %v2577_v62  ;;  %v2583_v31 = vld [vmem:[%s12372_s6 + $0x50] sm:$0xff]  ;;  %v12577_v8 = vld [vmem:[#allocation14_spill] sm:$0xff]  ;;  %v12581_v59 = vld [vmem:[#allocation17_spill] sm:$0xff] }
 0x1c1   : > { %7683 = vmatprep.subr.bf16.mxu1 %v7682_v60  ;;  %v1018_v10 = vmul.f32 %v8405_v58, %v12576_v17  ;;  %v8768_v18 = vadd.f32 %v1019_v27, %v807_v20  ;;  %v1430_v55 = vcombine.high %v1422_v54, %v1422_v54  ;;  %v7690_v15 = vpack.c.bf16 %v2584_v45, %v2582_v26  ;;  %v12578_v60 = vld [vmem:[#allocation13_spill] sm:$0xff] }
 0x1c2   : > { %7685 = vmatpush1.bf16.msra.mxu1 %v7684_v33  ;;  %v1020_v35 = vmul.f32 %v8405_v58, %v12577_v8  ;;  %v809_v51 = vmul.f32 %v8400_v56, %v12578_v60  ;;  %v1021_v20 = vmul.f32 %v8405_v58, %v12579_v12  ;;  %v1479_v27 = vcombine.high %v1471_v25, %v1471_v25  ;;  %v2588_v33 = vld [vmem:[%s12372_s6 + $0x78] sm:$0xff] }
 0x1c3   : > { %7687 = vmatprep.subr.bf16.mxu1 %v7686_v36  ;;  %v12580_v36 = vld [vmem:[#allocation16_spill] sm:$0xff]  ;;  %v1022_v26 = vmul.f32 %v8405_v58, %v12581_v59  ;;  %v1438_v45 = vrot.slane %v1422_v54, %v8575_v53  ;;  %v1494_v17 = vrot.slane %v1478_v49, %v8575_v53  ;;  %v1463_v8 = vcombine.high %v8764_v11, %v8764_v11  ;;  %v2585_v54 = vld [vmem:[%s12372_s6 + $0x60] sm:$0xff]  ;;  %v2591_v59 = vld [vmem:[%s12372_s6 + $0x90] sm:$0xff] }
 0x1c4   : > { %v810_v62 = vmul.f32 %v8400_v56, %v12580_v36  ;;  %v8797_v60 = vrot.slane %v1471_v25, %v8575_v53  ;;  %v1508_v12 = vrot.slane %v1480_v7, %v8575_v53  ;;  %v7692_v46 = vpack.c.bf16 %v2583_v31, %v2581_v6  ;;  %v2587_v25 = vld [vmem:[%s12372_s6 + $0x70] sm:$0xff] }
 0x1c5   : > { %v8801_v5 = vrot.slane %v1429_v23, %v8575_v53  ;;  %v1452_v56 = vrot.slane %v1430_v55, %v8575_v53  ;;  %v1338_v58 = vrot.slane %v8586_v40, %v8575_v53  ;;  %v7694_v49 = vpack.c.bf16 %v2588_v33, %v2586_v41  ;;  %v2590_v40 = vld [vmem:[%s12372_s6 + $0x88] sm:$0xff]  ;;  %v2592_v55 = vld [vmem:[%s12372_s6 + $0x98] sm:$0xff] }
 0x1c6   : > { %7689 = vmatpush1.bf16.msra.mxu1 %v7688_v47  ;;  %v1050_v7 = vadd.f32 %v1018_v10, %v806_v44  ;;  %v1052_v47 = vadd.f32 %v1020_v35, %v808_v13  ;;  %v1053_v6 = vadd.f32 %v1021_v20, %v809_v51  ;;  %v8813_v23 = vrot.slane %v1479_v27, %v8575_v53  ;;  %v12583_v44 = vld [vmem:[#allocation31_spill] sm:$0xff] }
 0x1c7   : > { %7691 = vmatprep.subr.bf16.mxu1 %v7690_v15  ;;  %v1054_v15 = vadd.f32 %v1022_v26, %v810_v62  ;;  %v1460_v31 = vcombine.high %v1438_v45, %v1438_v45  ;;  %v1510_v41 = vcombine.high %v1494_v17, %v1494_v17  ;;  %v1666_v33 = vrot.slane %v1438_v45, %v8241_v19  ;;  %v2589_v62 = vld [vmem:[%s12372_s6 + $0x80] sm:$0xff] }
 0x1c8   : > { %v1512_v13 = vcombine.high %v1508_v12, %v1508_v12  ;;  %v1694_v10 = vrot.slane %v1463_v8, %v8241_v19  ;;  %v7696_v35 = vpack.c.bf16 %v2587_v25, %v2585_v54  ;;  %v1461_v51 = vcombine.high %v8801_v5, %v8801_v5  ;;  %v2596_v54 = vld [vmem:[%s12372_s6 + $0xb8] sm:$0xff] }
 0x1c9   : > { %v1462_v20 = vcombine.high %v1452_v56, %v1452_v56  ;;  %v1360_v27 = vcombine.high %v1338_v58, %v1338_v58  ;;  %v7698_v36 = vpack.c.bf16 %v2592_v55, %v2590_v40  ;;  %v8838_v45 = vrot.slane %v1494_v17, %v8241_v19  ;;  %v12582_v55 = vld [vmem:[#allocation20_spill] sm:$0xff] }
 0x1ca   : > { %7693 = vmatpush1.bf16.msra.mxu1 %v7692_v46  ;;  %v1698_v46 = vrot.slane %v8797_v60, %v8241_v19  ;;  %v1516_v8 = vrot.slane %v1338_v58, %v8241_v19  ;;  %v8848_v25 = vrot.slane %v1508_v12, %v8241_v19  ;;  %v8851_v40 = vrot.slane %v1510_v41, %v8241_v19 }
 0x1cb   : > { %7695 = vmatprep.subr.bf16.mxu1 %v7694_v49  ;;  %v2594_v49 = vld [vmem:[%s12372_s6 + $0xa8] sm:$0xff]  ;;  %v8854_v26 = vmul.f32 %v1666_v33, %v12582_v55  ;;  %v1670_v17 = vrot.slane %v1452_v56, %v8241_v19  ;;  %v8858_v58 = vrot.slane %v1512_v13, %v8241_v19  ;;  %v8861_v53 = vmul.f32 %v1694_v10, %v12583_v44  ;;  %v2593_v13 = vld [vmem:[%s12372_s6 + $0xa0] sm:$0xff] }
 0x1cc   : > { %v1520_v16 = vrot.slane %v8619_v61, %v8241_v19  ;;  %v7700_v12 = vpack.c.bf16 %v2591_v59, %v2589_v62  ;;  %v8866_v52 = vmul.f32 %v1694_v10, %v12585_v3  ;;  %v1524_v41 = vrot.slane %v1360_v27, %v8241_v19  ;;  %v12587_v62 = vld [vmem:[#allocation18_spill] sm:$0xff]  ;;  %v2600_v27 = vld [vmem:[%s12372_s6 + $0xd8] sm:$0xff] }
 0x1cd   : > { %12584 = vst [vmem:[#allocation12_spill] sm:$0xff] %v8861_v53  ;;  %v1674_v30 = vrot.slane %v1460_v31, %v8241_v19  ;;  %v7702_v56 = vpack.c.bf16 %v2596_v54, %v2594_v49  ;;  %v1594_v61 = vadd.f32 %v1516_v8, %v1050_v7  ;;  %v1743_v10 = vmul.f32 %v1666_v33, %v12587_v62  ;;  %v2598_v31 = vld [vmem:[%s12372_s6 + $0xc8] sm:$0xff]  ;;  %v12589_v54 = vld [vmem:[#allocation21_spill] sm:$0xff] }
 0x1ce   : > { %7697 = vmatpush1.bf16.msra.mxu1 %v7696_v35  ;;  %12586 = vst [vmem:[#allocation14_spill] sm:$0xff] %v8866_v52  ;;  %v1593_v35 = vadd.f32 %v1516_v8, %v8756_v39  ;;  %v1678_v59 = vrot.slane %v1462_v20, %v8241_v19  ;;  %v1746_v21 = vmul.f32 %v1670_v17, %v12589_v54  ;;  %v12590_v44 = vld [vmem:[#allocation22_spill] sm:$0xff] }
 0x1cf   : > { %7699 = vmatprep.subr.bf16.mxu1 %v7698_v36  ;;  %v12588_v36 = vld [vmem:[#allocation19_spill] sm:$0xff]  ;;  %v1682_v7 = vrot.slane %v8801_v5, %v8241_v19  ;;  %v1686_v39 = vrot.slane %v8764_v11, %v8241_v19  ;;  %v1595_v33 = vadd.f32 %v1520_v16, %v8768_v18  ;;  %v1596_v20 = vadd.f32 %v1520_v16, %v1052_v47  ;;  %v2597_v5 = vld [vmem:[%s12372_s6 + $0xc0] sm:$0xff]  ;;  %v12591_v16 = vld [vmem:[#allocation24_spill] sm:$0xff] }
 0x1d0   : > { %v1745_v49 = vmul.f32 %v1670_v17, %v12588_v36  ;;  %v1690_v8 = vrot.slane %v1461_v51, %v8241_v19  ;;  %v7704_v3 = vpack.c.bf16 %v2595_v29, %v2593_v13  ;;  %v1597_v0 = vadd.f32 %v1524_v41, %v1053_v6  ;;  %v2599_v11 = vld [vmem:[%s12372_s6 + $0xd0] sm:$0xff]  ;;  %v12593_v29 = vld [vmem:[#allocation26_spill] sm:$0xff] }
 0x1d1   : > { %v1747_v52 = vmul.f32 %v1674_v30, %v12590_v44  ;;  %v1598_v53 = vadd.f32 %v1524_v41, %v1054_v15  ;;  %v7706_v17 = vpack.c.bf16 %v2600_v27, %v2598_v31  ;;  %v1748_v18 = vmul.f32 %v1674_v30, %v12591_v16  ;;  %v12592_v47 = vld [vmem:[#allocation23_spill] sm:$0xff]  ;;  %v2602_v15 = vld [vmem:[%s12372_s6 + $0xe8] sm:$0xff]  ;;  %v2604_v41 = vld [vmem:[%s12372_s6 + $0xf8] sm:$0xff] }
 0x1d2   : > { %7701 = vmatpush1.bf16.msra.mxu1 %v7700_v12  ;;  %v1749_v51 = vmul.f32 %v1678_v59, %v12592_v47  ;;  %v8903_v12 = vmul.f32 %v1678_v59, %v12593_v29  ;;  %v1702_v6 = vrot.slane %v8813_v23, %v8241_v19  ;;  %v12595_v30 = vld [vmem:[#allocation28_spill] sm:$0xff]  ;;  %v12597_v27 = vld [vmem:[#allocation27_spill] sm:$0xff]  ;;  %v8923_v38 = vmul.f32 %v1686_v39, %v12599_v22 }
 0x1d3   : > { %7703 = vmatprep.subr.bf16.mxu1 %v7702_v56  ;;  %v12594_v56 = vld [vmem:[#allocation25_spill] sm:$0xff]  ;;  %v8917_v31 = vmul.f32 %v1682_v7, %v12595_v30  ;;  %v8920_v59 = vmul.f32 %v1686_v39, %v12597_v27  ;;  %v12603_v30 = vld [vmem:[#allocation34_spill] sm:$0xff]  ;;  %v7708_v39 = vpack.c.bf16 %v2599_v11, %v2597_v5 }
 0x1d4   : > { %v8914_v13 = vmul.f32 %v1682_v7, %v12594_v56  ;;  %12600 = vst [vmem:[#allocation16_spill] sm:$0xff] %v8923_v38  ;;  %v8932_v56 = vmul.f32 %v1690_v8, %v12601_v34  ;;  %v8935_v7 = vmul.f32 %v1690_v8, %v12602_v32  ;;  %v8938_v27 = vmul.f32 %v1698_v46, %v12603_v30  ;;  %v12604_v38 = vld [vmem:[#allocation35_spill] sm:$0xff] }
 0x1d5   : > { %12596 = vst [vmem:[#allocation13_spill] sm:$0xff] %v8917_v31  ;;  %12598 = vst [vmem:[#allocation15_spill] sm:$0xff] %v8920_v59  ;;  %v8943_v59 = vmul.f32 %v1698_v46, %v12604_v38  ;;  %v12605_v31 = vcombine.high %v8797_v60, %v8797_v60  ;;  %v12607_v8 = vcombine.high %v8813_v23, %v8813_v23 }
 0x1d6   : > { %7705 = vmatpush1.bf16.msra.mxu1 %v7704_v3  ;;  %v7710_v3 = vpack.c.bf16 %v2604_v41, %v2602_v15  ;;  %v8962_v38 = vmul.f32 %v1702_v6, %v8566_v57  ;;  %v7712_v60 = vpack.c.bf16 %v2603_v43, %v2601_v50 }
 0x1d7   : > { %v8949_v37 = vrot.slane %v12605_v31, %v8241_v19  ;;  %v8955_v32 = vrot.slane %v12607_v8, %v8241_v19  ;;  %7707 = vmatprep.subr.bf16.mxu1 %v7706_v17 }
 0x1d9   : > { %12606 = vst [vmem:[#allocation17_spill] sm:$0xff] %v8949_v37 }
 0x1da   : > { %7709 = vmatpush1.bf16.msra.mxu1 %v7708_v39 }
 0x1db   : > { %7711 = vmatprep.subr.bf16.mxu1 %v7710_v3 }
 0x1de   : > { %7713 = vmatpush1.bf16.msra.mxu1 %v7712_v60 }
 0x214   : > { %v8940_v22 = vpop.permute.xlu1 %1627  ;;  %v8957_v5 = vpop.permute.xlu0 %1625 }
 0x215   : > { %v1632_v11 = vadd.f32 %v8940_v22, %v1594_v61  ;;  %v1634_v46 = vadd.f32 %v8940_v22, %v1596_v20  ;;  %v1631_v31 = vadd.f32 %v8957_v5, %v1593_v35  ;;  %v1633_v37 = vadd.f32 %v8957_v5, %v1595_v33 }
 0x216   : > { %v8968_v23 = vadd.f32 %v8957_v5, %v8602_v24  ;;  %v1635_v17 = vadd.f32 %v8957_v5, %v1597_v0  ;;  %v1636_v61 = vadd.f32 %v8940_v22, %v1598_v53  ;;  %v8975_v20 = vadd.f32 %v8957_v5, %v8649_v2  ;;  %v12610_v53 = vld [vmem:[#allocation37_spill] sm:$0xff] }
 0x217   : > { %v1776_v15 = vadd.f32 %v8854_v26, %v1632_v11  ;;  %v1778_v41 = vadd.f32 %v1746_v21, %v1634_v46  ;;  %v1775_v50 = vadd.f32 %v1743_v10, %v1631_v31  ;;  %v1777_v35 = vadd.f32 %v1745_v49, %v1633_v37 }
 0x218   : > { %v8977_v43 = vpop.permute.xlu1 %562  ;;  %v1779_v33 = vadd.f32 %v1747_v52, %v1635_v17  ;;  %v1637_v24 = vadd.f32 %v8957_v5, %v8656_v9  ;;  %v8981_v0 = vpop.permute.xlu0 %558  ;;  %v1780_v8 = vadd.f32 %v1748_v18, %v1636_v61  ;;  %v8984_v11 = vmul.f32 %v1702_v6, %v12610_v53 }
 0x219   : > { %12608 = vst [vmem:[#allocation55_spill] sm:$0xff] %v8977_v43  ;;  %12609 = vst [vmem:[#allocation56_spill] sm:$0xff] %v8981_v0  ;;  %v1808_v26 = vmax.f32 %v1776_v15, 0.0  ;;  %v1810_v21 = vmax.f32 %v1778_v41, 0.0  ;;  %v1807_v2 = vmax.f32 %v1775_v50, 0.0  ;;  %v1809_v46 = vmax.f32 %v1777_v35, 0.0 }
 0x21a   : > { %v1811_v39 = vmax.f32 %v1779_v33, 0.0  ;;  %v1781_v19 = vadd.f32 %v1749_v51, %v1637_v24  ;;  %v1656_v35 = vadd.f32 %v8940_v22, %v8605_v48 }
 0x21b   : > { %v1841_v10 = vsel %vm1839_vm7, %v1808_v26, 0.0  ;;  %v1985_v37 = vmul.f32 %v1808_v26, %v12582_v55  ;;  %v1850_v52 = vsel %vm1839_vm7, %v1810_v21, 0.0  ;;  %v1987_v9 = vmul.f32 %v1810_v21, %v12589_v54  ;;  %7420 = vmatprep.mubr.msk.f32.mxu0 %vm1839_vm7, %v1807_v2 }
 0x21c   : > { %v1840_v49 = vsel %vm1839_vm7, %v1807_v2, 0.0  ;;  %v1984_v18 = vmul.f32 %v1807_v2, %v12587_v62  ;;  %v8993_v6 = vpop.permute.xlu1 %573  ;;  %v1849_v3 = vsel %vm1839_vm7, %v1809_v46, 0.0  ;;  %v1986_v51 = vmul.f32 %v1809_v46, %v12588_v36  ;;  %7421 = vmatmul.mubr.msk.f32.vlgmr.msra.gmra.mrb[6].mxu0 %vm1839_vm7, %v1808_v26  ;;  %v8999_v15 = vpop.permute.xlu0 %569  ;;  %v12624_v62 = vld [vmem:[#allocation43_spill] sm:$0xff] }
 0x21d   : > { %12611 = vst [vmem:[#allocation57_spill] sm:$0xff] %v8993_v6  ;;  %v1842_v31 = vadd.f32 %v1841_v10, %v1840_v49  ;;  %v2017_v17 = vsel %vm1839_vm7, %v1985_v37, 0.0  ;;  %12612 = vst [vmem:[#allocation58_spill] sm:$0xff] %v8999_v15  ;;  %v1851_v60 = vadd.f32 %v1850_v52, %v1849_v3  ;;  %v2026_v41 = vsel %vm1839_vm7, %v1987_v9, 0.0  ;;  %7423 = vmatprep.mubr.msk.f32.mxu0 %vm1839_vm7, %v1809_v46 }
 0x21e   : > { %v2016_v61 = vsel %vm1839_vm7, %v1984_v18, 0.0  ;;  %v2025_v50 = vsel %vm1839_vm7, %v1986_v51, 0.0  ;;  %v1988_v33 = vmul.f32 %v1811_v39, %v12590_v44  ;;  %v1858_v52 = vsel %vm1839_vm7, %v1811_v39, 0.0 }
 0x21f   : > { %v1843_v24 = vrot.slane %v1842_v31, 4  ;;  %v2018_v2 = vadd.f32 %v2017_v17, %v2016_v61  ;;  %v1852_v10 = vrot.slane %v1851_v60, 4  ;;  %v2027_v26 = vadd.f32 %v2026_v41, %v2025_v50 }
 0x220   : > { %v9008_v37 = vpop.permute.xlu1 %584  ;;  %v2034_v9 = vsel %vm1839_vm7, %v1988_v33, 0.0  ;;  %v1812_v49 = vmax.f32 %v1780_v8, 0.0  ;;  %v1813_v18 = vmax.f32 %v1781_v19, 0.0  ;;  %7424 = vmatmul.mubr.msk.f32.gmra.mrb[8].mxu0 %vm1839_vm7, %v1810_v21  ;;  %v9015_v44 = vpop.permute.xlu0 %580 }
 0x221   : > { %12613 = vst [vmem:[#allocation59_spill] sm:$0xff] %v9008_v37  ;;  %v1844_v3 = vadd.f32 %v1843_v24, %v1842_v31  ;;  %v2019_v51 = vrot.slane %v2018_v2, 4  ;;  %v1768_v46 = vmul.f32 %v8838_v45, %v9008_v37  ;;  %v1853_v48 = vadd.f32 %v1852_v10, %v1851_v60  ;;  %12614 = vst [vmem:[#allocation60_spill] sm:$0xff] %v9015_v44 }
 0x222   : > { %v2028_v17 = vrot.slane %v2027_v26, 4  ;;  %v1767_v41 = vmul.f32 %v8838_v45, %v9015_v44  ;;  %7426 = vmatprep.mubr.msk.f32.mxu0 %vm1839_vm7, %v1811_v39  ;;  %v1859_v61 = vsel %vm1839_vm7, %v1812_v49, 0.0  ;;  %v1989_v19 = vmul.f32 %v1812_v49, %v12591_v16 }
 0x223   : > { %v1845_v8 = vrot.slane %v1844_v3, 2  ;;  %v9022_v31 = vadd.f32 %v2019_v51, %v2018_v2  ;;  %v1800_v50 = vadd.f32 %v1768_v46, %v1656_v35  ;;  %v1854_v33 = vrot.slane %v1853_v48, 2 }
 0x224   : > { %v2029_v60 = vadd.f32 %v2028_v17, %v2027_v26  ;;  %v1799_v21 = vadd.f32 %v1767_v41, %v8968_v23  ;;  %v9025_v24 = vpop.permute.xlu1 %595  ;;  %v1860_v10 = vadd.f32 %v1859_v61, %v1858_v52  ;;  %v2035_v54 = vsel %vm1839_vm7, %v1989_v19, 0.0  ;;  %7427 = vmatmul.mubr.msk.f32.gmra.mrb[10].mxu0 %vm1839_vm7, %v1812_v49  ;;  %v9035_v35 = vpop.permute.xlu0 %591 }
 0x225   : > { %12615 = vst [vmem:[#allocation61_spill] sm:$0xff] %v9025_v24  ;;  %v9028_v45 = vadd.f32 %v1845_v8, %v1844_v3  ;;  %v9030_v39 = vmax.f32 %v1800_v50, 0.0  ;;  %v1855_v36 = vadd.f32 %v1854_v33, %v1853_v48  ;;  %v1658_v16 = vadd.f32 %v8940_v22, %v8646_v14  ;;  %12616 = vst [vmem:[#allocation62_spill] sm:$0xff] %v9035_v35  ;;  %v12619_v3 = vld [vmem:[#allocation39_spill] sm:$0xff] }
 0x226   : > { %v2030_v2 = vrot.slane %v2029_v60, 2  ;;  %v1770_v23 = vmul.f32 %v8848_v25, %v9025_v24  ;;  %v1861_v26 = vrot.slane %v1860_v10, 4  ;;  %7429 = vmatprep.mubr.msk.f32.mxu0 %vm1839_vm7, %v1813_v18  ;;  %v1660_v52 = vadd.f32 %v8940_v22, %v8613_v28 }
 0x227   : > { %v9043_v51 = vmax.f32 %v1799_v21, 0.0  ;;  %v2036_v46 = vadd.f32 %v2035_v54, %v2034_v9  ;;  %v1638_v14 = vadd.f32 %v8940_v22, %v8658_v63  ;;  %v1856_v49 = vrot.slane %v1855_v36, 1 }
 0x228   : > { %v2031_v48 = vadd.f32 %v2030_v2, %v2029_v60  ;;  %v1802_v17 = vadd.f32 %v1770_v23, %v1658_v16  ;;  %v1862_v41 = vadd.f32 %v1861_v26, %v1860_v10  ;;  %v9047_v61 = vpop.permute.xlu1 %606  ;;  %v9052_v8 = vmul.f32 %v9030_v39, %v9008_v37  ;;  %v9063_v2 = vpop.permute.xlu0 %602 }
 0x229   : > { %12617 = vst [vmem:[#allocation63_spill] sm:$0xff] %v9047_v61  ;;  %v2037_v28 = vrot.slane %v2036_v46, 4  ;;  %v1769_v50 = vmul.f32 %v8848_v25, %v9035_v35  ;;  %v1990_v33 = vmul.f32 %v1813_v18, %v12592_v47  ;;  %v1772_v21 = vmul.f32 %v8851_v40, %v9047_v61  ;;  %12618 = vst [vmem:[#allocation64_spill] sm:$0xff] %v9063_v2 }
 0x22a   : > { %v2032_v54 = vrot.slane %v2031_v48, 1  ;;  %v9056_v9 = vmax.f32 %v1802_v17, 0.0  ;;  %v1863_v63 = vrot.slane %v1862_v41, 2  ;;  %v1782_v10 = vadd.f32 %v8903_v12, %v1638_v14 }
 0x22b   : > { %v2038_v16 = vadd.f32 %v2037_v28, %v2036_v46  ;;  %v1801_v60 = vadd.f32 %v1769_v50, %v8975_v20  ;;  %v9065_v23 = vadd.f32 %v1856_v49, %v1855_v36  ;;  %v9069_v25 = vmul.f32 %v9043_v51, %v9015_v44 }
 0x22c   : > { %v1864_v26 = vadd.f32 %v1863_v63, %v1862_v41  ;;  %v1867_v17 = vsel %vm1839_vm7, %v1813_v18, 0.0  ;;  %v1804_v20 = vadd.f32 %v1772_v21, %v1660_v52  ;;  %v1814_v28 = vmax.f32 %v1782_v10, 0.0  ;;  %v9082_v49 = vpop.permute.xlu1 %617  ;;  %v9103_v10 = vpop.permute.xlu0 %613 }
 0x22d   : > { %v2039_v19 = vrot.slane %v2038_v16, 2  ;;  %v9072_v46 = vmax.f32 %v1801_v60, 0.0  ;;  %v9074_v50 = vadd.f32 %v2032_v54, %v2031_v48  ;;  %v1659_v12 = vadd.f32 %v8957_v5, %v12619_v3  ;;  %12620 = vst [vmem:[#allocation39_spill] sm:$0xff] %v9082_v49  ;;  %12621 = vst [vmem:[#allocation65_spill] sm:$0xff] %v9103_v10 }
 0x22e   : > { %v1771_v36 = vmul.f32 %v8851_v40, %v9063_v2  ;;  %v1639_v14 = vadd.f32 %v8957_v5, %v8665_v1  ;;  %v9086_v18 = vmul.f32 %v9056_v9, %v9025_v24  ;;  %v1865_v41 = vrot.slane %v1864_v26, 1  ;;  %7430 = vmatmul.mubr.msk.f32.gmra.mrb[12].mxu0 %vm1839_vm7, %v1814_v28 }
 0x22f   : > { %v2043_v52 = vsel %vm1839_vm7, %v1990_v33, 0.0  ;;  %v1868_v48 = vsel %vm1839_vm7, %v1814_v28, 0.0  ;;  %v9091_v3 = vadd.f32 %v2039_v19, %v2038_v16  ;;  %v1991_v40 = vmul.f32 %v1814_v28, %v12593_v29  ;;  %v12623_v29 = vld [vmem:[#allocation13_spill] sm:$0xff] }
 0x230   : > { %v1869_v54 = vadd.f32 %v1868_v48, %v1867_v17  ;;  %v1803_v63 = vadd.f32 %v1771_v36, %v1659_v12  ;;  %v9096_v1 = vmul.f32 %v9072_v46, %v9035_v35  ;;  %v1783_v60 = vadd.f32 %v8914_v13, %v1639_v14  ;;  %v12622_v13 = vld [vmem:[#allocation42_spill] sm:$0xff] }
 0x231   : > { %v1662_v21 = vadd.f32 %v8940_v22, %v8652_v4  ;;  %v1774_v33 = vmul.f32 %v8858_v58, %v9082_v49  ;;  %v9105_v19 = vmax.f32 %v1804_v20, 0.0  ;;  %v2044_v17 = vsel %vm1839_vm7, %v1991_v40, 0.0 }
 0x232   : > { %v1870_v16 = vrot.slane %v1869_v54, 4  ;;  %v1640_v28 = vadd.f32 %v8940_v22, %v8668_v42  ;;  %v2045_v12 = vadd.f32 %v2044_v17, %v2043_v52  ;;  %v1815_v36 = vmax.f32 %v1783_v60, 0.0  ;;  %v12625_v42 = vld [vmem:[#allocation25_spill] sm:$0xff]  ;;  %v12626_v60 = vld [vmem:[#allocation44_spill] sm:$0xff] }
 0x233   : > { %v9110_v48 = vadd.f32 %v1774_v33, %v1662_v21  ;;  %v1661_v4 = vadd.f32 %v8957_v5, %v12622_v13  ;;  %v1773_v20 = vmul.f32 %v8858_v58, %v9103_v10  ;;  %v1641_v24 = vadd.f32 %v8957_v5, %v12624_v62  ;;  %v12629_v13 = vld [vmem:[#allocation16_spill] sm:$0xff] }
 0x234   : > { %v1871_v14 = vadd.f32 %v1870_v16, %v1869_v54  ;;  %v1784_v47 = vadd.f32 %v12623_v29, %v1640_v28  ;;  %v2046_v40 = vrot.slane %v2045_v12, 4  ;;  %v1876_v35 = vsel %vm1839_vm7, %v1815_v36, 0.0  ;;  %7432 = vmatprep.mubr.msk.f32.mxu0 %vm1839_vm7, %v1815_v36  ;;  %v12627_v29 = vld [vmem:[#allocation15_spill] sm:$0xff] }
 0x235   : > { %v1992_v52 = vmul.f32 %v1815_v36, %v12625_v42  ;;  %v1642_v21 = vadd.f32 %v8940_v22, %v12626_v60  ;;  %v9124_v16 = vadd.f32 %v1773_v20, %v1661_v4  ;;  %v1785_v17 = vadd.f32 %v12627_v29, %v1641_v24  ;;  %v12630_v36 = vld [vmem:[#allocation28_spill] sm:$0xff] }
 0x236   : > { %v1872_v33 = vrot.slane %v1871_v14, 2  ;;  %v1816_v54 = vmax.f32 %v1784_v47, 0.0  ;;  %v9127_v58 = vadd.f32 %v1865_v41, %v1864_v26  ;;  %v2041_v62 = vrot.slane %v9091_v3, 1  ;;  %v12631_v47 = vld [vmem:[#allocation45_spill] sm:$0xff]  ;;  %v12632_v41 = vld [vmem:[#allocation46_spill] sm:$0xff] }
 0x237   : > { %v2052_v28 = vsel %vm1839_vm7, %v1992_v52, 0.0  ;;  %v1786_v37 = vadd.f32 %v12629_v13, %v1642_v21  ;;  %v1817_v60 = vmax.f32 %v1785_v17, 0.0  ;;  %v1643_v4 = vadd.f32 %v8957_v5, %v12631_v47  ;;  %v12633_v13 = vld [vmem:[#allocation27_spill] sm:$0xff] }
 0x238   : > { %12628 = vst [vmem:[#allocation42_spill] sm:$0xff] %v9127_v58  ;;  %v1877_v42 = vsel %vm1839_vm7, %v1816_v54, 0.0  ;;  %v1993_v44 = vmul.f32 %v1816_v54, %v12630_v36  ;;  %7433 = vmatmul.mubr.msk.f32.gmra.mrb[14].mxu0 %vm1839_vm7, %v1816_v54  ;;  %v2047_v20 = vadd.f32 %v2046_v40, %v2045_v12  ;;  %v1644_v29 = vadd.f32 %v8940_v22, %v12632_v41  ;;  %v12634_v12 = vld [vmem:[#allocation30_spill] sm:$0xff] }
 0x239   : > { %v1878_v24 = vadd.f32 %v1877_v42, %v1876_v35  ;;  %v1818_v26 = vmax.f32 %v1786_v37, 0.0  ;;  %v9139_v55 = vadd.f32 %v1872_v33, %v1871_v14  ;;  %v1885_v21 = vsel %vm1839_vm7, %v1817_v60, 0.0  ;;  %7435 = vmatprep.mubr.msk.f32.mxu0 %vm1839_vm7, %v1817_v60 }
 0x23a   : > { %v2053_v52 = vsel %vm1839_vm7, %v1993_v44, 0.0  ;;  %v1994_v36 = vmul.f32 %v1817_v60, %v12633_v13  ;;  %v1787_v44 = vadd.f32 %v8932_v56, %v1643_v4  ;;  %v1788_v14 = vadd.f32 %v8935_v7, %v1644_v29  ;;  %v12636_v13 = vld [vmem:[#allocation40_spill] sm:$0xff] }
 0x23b   : > { %v1879_v54 = vrot.slane %v1878_v24, 4  ;;  %v2054_v17 = vadd.f32 %v2053_v52, %v2052_v28  ;;  %v1886_v47 = vsel %vm1839_vm7, %v1818_v26, 0.0  ;;  %v1995_v35 = vmul.f32 %v1818_v26, %v12634_v12  ;;  %v12635_v28 = vld [vmem:[#allocation41_spill] sm:$0xff]  ;;  %v12637_v7 = vld [vmem:[#allocation12_spill] sm:$0xff] }
 0x23c   : > { %v2061_v37 = vsel %vm1839_vm7, %v1994_v36, 0.0  ;;  %v9148_v40 = vadd.f32 %v1886_v47, %v1885_v21  ;;  %7436 = vmatmul.mubr.msk.f32.gmra.mrb[16].mxu0 %vm1839_vm7, %v1818_v26  ;;  %v9153_v42 = vmax.f32 %v1803_v63, 0.0  ;;  %v1645_v41 = vadd.f32 %v8957_v5, %v12635_v28 }
 0x23d   : > { %v2055_v33 = vrot.slane %v2054_v17, 4  ;;  %v2062_v60 = vsel %vm1839_vm7, %v1995_v35, 0.0  ;;  %v9158_v52 = vadd.f32 %v1879_v54, %v1878_v24  ;;  %v1819_v36 = vmax.f32 %v1787_v44, 0.0 }
 0x23e   : > { %v2063_v12 = vadd.f32 %v2062_v60, %v2061_v37  ;;  %v1820_v21 = vmax.f32 %v1788_v14, 0.0  ;;  %v2048_v26 = vrot.slane %v2047_v20, 2  ;;  %v1646_v56 = vadd.f32 %v8940_v22, %v12636_v13  ;;  %v12638_v14 = vld [vmem:[#allocation32_spill] sm:$0xff] }
 0x23f   : > { %v1789_v63 = vadd.f32 %v12637_v7, %v1645_v41  ;;  %v2056_v4 = vadd.f32 %v2055_v33, %v2054_v17  ;;  %v1894_v35 = vsel %vm1839_vm7, %v1819_v36, 0.0  ;;  %7438 = vmatprep.mubr.msk.f32.mxu0 %vm1839_vm7, %v1819_v36  ;;  %v1996_v44 = vmul.f32 %v1819_v36, %v12601_v34  ;;  %v12639_v33 = vld [vmem:[#allocation14_spill] sm:$0xff] }
 0x240   : > { %v1895_v24 = vsel %vm1839_vm7, %v1820_v21, 0.0  ;;  %v2064_v54 = vrot.slane %v2063_v12, 4  ;;  %v1997_v13 = vmul.f32 %v1820_v21, %v12638_v14  ;;  %7439 = vmatmul.mubr.msk.f32.gmra.mrb[18].mxu0 %vm1839_vm7, %v1820_v21  ;;  %v1790_v60 = vadd.f32 %v12639_v33, %v1646_v56  ;;  %v12641_v21 = vld [vmem:[#allocation31_spill] sm:$0xff] }
 0x241   : > { %v9168_v37 = vadd.f32 %v1895_v24, %v1894_v35  ;;  %v9175_v28 = vmax.f32 %v1789_v63, 0.0  ;;  %v12640_v41 = vrot.slane %v9022_v31, 2  ;;  %v2070_v35 = vsel %vm1839_vm7, %v1996_v44, 0.0  ;;  %v12642_v44 = vld [vmem:[#allocation47_spill] sm:$0xff] }
 0x242   : > { %v2071_v24 = vsel %vm1839_vm7, %v1997_v13, 0.0  ;;  %v2042_v36 = vadd.f32 %v2041_v62, %v9091_v3  ;;  %v2049_v47 = vadd.f32 %v2048_v26, %v2047_v20  ;;  %v9183_v14 = vmax.f32 %v1790_v60, 0.0 }
 0x243   : > { %v2022_v7 = vadd.f32 %v12640_v41, %v9022_v31  ;;  %v2072_v29 = vadd.f32 %v2071_v24, %v2070_v35  ;;  %v1998_v17 = vmul.f32 %v9175_v28, %v12641_v21  ;;  %7441 = vmatprep.mubr.msk.f32.mxu0 %vm1839_vm7, %v9175_v28  ;;  %v2057_v31 = vrot.slane %v2056_v4, 2  ;;  %v12643_v41 = vld [vmem:[#allocation33_spill] sm:$0xff] }
 0x244   : > { %v2050_v63 = vrot.slane %v2049_v47, 1  ;;  %v2065_v33 = vadd.f32 %v2064_v54, %v2063_v12  ;;  %v1647_v13 = vadd.f32 %v8957_v5, %v12642_v44  ;;  %v1999_v3 = vmul.f32 %v9183_v14, %v12643_v41  ;;  %7442 = vmatmul.mubr.msk.f32.gmra.mrb[20].mxu0 %vm1839_vm7, %v9183_v14  ;;  %v12644_v41 = vld [vmem:[#allocation48_spill] sm:$0xff] }
 0x245   : > { %v2023_v56 = vrot.slane %v2022_v7, 1  ;;  %v2073_v20 = vrot.slane %v2072_v29, 4  ;;  %v2079_v26 = vsel %vm1839_vm7, %v1998_v17, 0.0  ;;  %v2058_v35 = vadd.f32 %v2057_v31, %v2056_v4 }
 0x246   : > { %v2051_v60 = vadd.f32 %v2050_v63, %v2049_v47  ;;  %v2066_v24 = vrot.slane %v2065_v33, 2  ;;  %v1791_v34 = vadd.f32 %v8938_v27, %v1647_v13  ;;  %v2080_v54 = vsel %vm1839_vm7, %v1999_v3, 0.0  ;;  %v12645_v3 = vld [vmem:[#allocation49_spill] sm:$0xff] }
 0x247   : > { %v2024_v62 = vadd.f32 %v2023_v56, %v2022_v7  ;;  %v2074_v12 = vadd.f32 %v2073_v20, %v2072_v29  ;;  %v1648_v7 = vadd.f32 %v8940_v22, %v12644_v41  ;;  %v2059_v56 = vrot.slane %v2058_v35, 1 }
 0x248   : > { %v2067_v17 = vadd.f32 %v2066_v24, %v2065_v33  ;;  %v2081_v21 = vadd.f32 %v2080_v54, %v2079_v26  ;;  %v1823_v63 = vmax.f32 %v1791_v34, 0.0  ;;  %v12646_v24 = vld [vmem:[#allocation35_spill] sm:$0xff] }
 0x249   : > { %v2215_v44 = vsel %vm2176_vm8, %v9074_v50, %v2024_v62  ;;  %v2075_v47 = vrot.slane %v2074_v12, 2  ;;  %v1792_v27 = vadd.f32 %v8943_v59, %v1648_v7  ;;  %v2060_v29 = vadd.f32 %v2059_v56, %v2058_v35 }
 0x24a   : > { %v2216_v58 = vsel %vm2178_vm9, %v2042_v36, %v2215_v44  ;;  %v2068_v31 = vrot.slane %v2067_v17, 1  ;;  %v2082_v13 = vrot.slane %v2081_v21, 4  ;;  %v1649_v50 = vadd.f32 %v8957_v5, %v12645_v3  ;;  %7444 = vmatprep.mubr.msk.f32.mxu0 %vm1839_vm7, %v1823_v63 }
 0x24b   : > { %v2217_v4 = vsel %vm2180_vm10, %v2051_v60, %v2216_v58  ;;  %v2076_v62 = vadd.f32 %v2075_v47, %v2074_v12  ;;  %v1912_v41 = vsel %vm1839_vm7, %v1823_v63, 0.0  ;;  %v2000_v33 = vmul.f32 %v1823_v63, %v12603_v30  ;;  %v12647_v47 = vld [vmem:[#allocation50_spill] sm:$0xff] }
 0x24c   : > { %v1824_v36 = vmax.f32 %v1792_v27, 0.0  ;;  %v2069_v20 = vadd.f32 %v2068_v31, %v2067_v17  ;;  %v2083_v26 = vadd.f32 %v2082_v13, %v2081_v21  ;;  %v2218_v34 = vsel %vm2182_vm11, %v2060_v29, %v2217_v4  ;;  %v12648_v4 = vld [vmem:[#allocation51_spill] sm:$0xff] }
 0x24d   : > { %v1793_v59 = vadd.f32 %v8962_v38, %v1649_v50  ;;  %v2077_v58 = vrot.slane %v2076_v62, 1  ;;  %v2088_v60 = vsel %vm1839_vm7, %v2000_v33, 0.0  ;;  %v1650_v38 = vadd.f32 %v8940_v22, %v12647_v47 }
 0x24e   : > { %v1913_v35 = vsel %vm1839_vm7, %v1824_v36, 0.0  ;;  %v2001_v12 = vmul.f32 %v1824_v36, %v12646_v24  ;;  %7445 = vmatmul.mubr.msk.f32.gmra.mrb[22].mxu0 %vm1839_vm7, %v1824_v36  ;;  %v2084_v54 = vrot.slane %v2083_v26, 2  ;;  %v2219_v44 = vsel %vm2184_vm12, %v2069_v20, %v2218_v34 }
 0x24f   : > { %v1914_v7 = vadd.f32 %v1913_v35, %v1912_v41  ;;  %v1825_v56 = vmax.f32 %v1793_v59, 0.0  ;;  %v2078_v21 = vadd.f32 %v2077_v58, %v2076_v62  ;;  %v1651_v63 = vadd.f32 %v8957_v5, %v12648_v4  ;;  %v12649_v41 = vld [vmem:[#allocation17_spill] sm:$0xff]  ;;  %v12650_v59 = vld [vmem:[#allocation52_spill] sm:$0xff] }
 0x250   : > { %v2089_v17 = vsel %vm1839_vm7, %v2001_v12, 0.0  ;;  %v2085_v27 = vadd.f32 %v2084_v54, %v2083_v26  ;;  %v1794_v62 = vadd.f32 %v8984_v11, %v1650_v38  ;;  %v1763_v33 = vmul.f32 %v12649_v41, %v8981_v0  ;;  %v12651_v11 = vld [vmem:[#allocation53_spill] sm:$0xff] }
 0x251   : > { %v1915_v29 = vrot.slane %v1914_v7, 4  ;;  %v2090_v31 = vadd.f32 %v2089_v17, %v2088_v60  ;;  %v1921_v13 = vsel %vm1839_vm7, %v1825_v56, 0.0  ;;  %7447 = vmatprep.mubr.msk.f32.mxu0 %vm1839_vm7, %v1825_v56  ;;  %v2220_v3 = vsel %vm2186_vm13, %v2078_v21, %v2219_v44 }
 0x252   : > { %v2002_v50 = vmul.f32 %v1825_v56, %v8566_v57  ;;  %v2086_v36 = vrot.slane %v2085_v27, 1  ;;  %v1652_v26 = vadd.f32 %v8940_v22, %v12650_v59  ;;  %v1826_v60 = vmax.f32 %v1794_v62, 0.0 }
 0x253   : > { %v1916_v20 = vadd.f32 %v1915_v29, %v1914_v7  ;;  %v2091_v34 = vrot.slane %v2090_v31, 4  ;;  %v1795_v35 = vadd.f32 %v1763_v33, %v1651_v63  ;;  %v1764_v12 = vmul.f32 %v12649_v41, %v8977_v43 }
 0x254   : > { %v2097_v58 = vsel %vm1839_vm7, %v2002_v50, 0.0  ;;  %v2087_v54 = vadd.f32 %v2086_v36, %v2085_v27  ;;  %v1653_v21 = vadd.f32 %v8957_v5, %v12651_v11  ;;  %v1922_v17 = vsel %vm1839_vm7, %v1826_v60, 0.0  ;;  %7448 = vmatmul.mubr.msk.f32.gmra.mrb[24].mxu0 %vm1839_vm7, %v1826_v60 }
 0x255   : > { %v1917_v44 = vrot.slane %v1916_v20, 2  ;;  %v2092_v56 = vadd.f32 %v2091_v34, %v2090_v31  ;;  %v2003_v7 = vmul.f32 %v1826_v60, %v12610_v53  ;;  %v1827_v47 = vmax.f32 %v1795_v35, 0.0 }
 0x256   : > { %v1796_v38 = vadd.f32 %v1764_v12, %v1652_v26  ;;  %v12652_v4 = vrot.slane %v9148_v40, 4  ;;  %v2221_v27 = vsel %vm2188_vm14, %v2087_v54, %v2220_v3  ;;  %v1923_v31 = vadd.f32 %v1922_v17, %v1921_v13  ;;  %v12655_v54 = vld [vmem:[#allocation54_spill] sm:$0xff] }
 0x257   : > { %v2093_v29 = vrot.slane %v2092_v56, 2  ;;  %v12653_v5 = vrot.slane %v9158_v52, 2  ;;  %2229 = vrot.lane.b32.xlu0 %v2221_v27, %s12654_s29  ;;  %v2098_v62 = vsel %vm1839_vm7, %v2003_v7, 0.0  ;;  %v2004_v41 = vmul.f32 %v1827_v47, %v8981_v0  ;;  %7450 = vmatprep.mubr.msk.f32.mxu0 %vm1839_vm7, %v1827_v47 }
 0x258   : > { %v9242_v63 = vadd.f32 %v12652_v4, %v9148_v40  ;;  %v1828_v33 = vmax.f32 %v1796_v38, 0.0  ;;  %v1924_v36 = vrot.slane %v1923_v31, 4  ;;  %v2099_v34 = vadd.f32 %v2098_v62, %v2097_v58 }
 0x259   : > { %v9248_v50 = vadd.f32 %v12653_v5, %v9158_v52  ;;  %v2094_v40 = vadd.f32 %v2093_v29, %v2092_v56  ;;  %v1930_v3 = vsel %vm1839_vm7, %v1827_v47, 0.0  ;;  %v9255_v13 = vadd.f32 %v1917_v44, %v1916_v20 }
 0x25a   : > { %v2106_v59 = vsel %vm1839_vm7, %v2004_v41, 0.0  ;;  %v1931_v52 = vsel %vm1839_vm7, %v1828_v33, 0.0  ;;  %v2005_v26 = vmul.f32 %v1828_v33, %v8977_v43  ;;  %7451 = vmatmul.mubr.msk.f32.gmra.mrb[26].mxu0 %vm1839_vm7, %v1828_v33  ;;  %v1925_v35 = vadd.f32 %v1924_v36, %v1923_v31 }
 0x25b   : > { %v2095_v60 = vrot.slane %v2094_v40, 1  ;;  %v2100_v12 = vrot.slane %v2099_v34, 4  ;;  %v1654_v56 = vadd.f32 %v8940_v22, %v12655_v54  ;;  %v1932_v11 = vadd.f32 %v1931_v52, %v1930_v3 }
 0x25c   : > { %v2107_v58 = vsel %vm1839_vm7, %v2005_v26, 0.0  ;;  %v1765_v20 = vmul.f32 %v8955_v32, %v8999_v15  ;;  %v1766_v44 = vmul.f32 %v8955_v32, %v8993_v6  ;;  %v1897_v17 = vrot.slane %v9168_v37, 4 }
 0x25d   : > { %v1926_v7 = vrot.slane %v1925_v35, 2  ;;  %v2101_v47 = vadd.f32 %v2100_v12, %v2099_v34  ;;  %v2108_v38 = vadd.f32 %v2107_v58, %v2106_v59  ;;  %v1919_v4 = vrot.slane %v9255_v13, 1 }
 0x25e   : > { %v1933_v27 = vrot.slane %v1932_v11, 4  ;;  %v1797_v29 = vadd.f32 %v1765_v20, %v1653_v21  ;;  %v1798_v31 = vadd.f32 %v1766_v44, %v1654_v56  ;;  %v2096_v22 = vadd.f32 %v2095_v60, %v2094_v40 }
 0x25f   : > { %v9270_v5 = vadd.f32 %v1926_v7, %v1925_v35  ;;  %v2102_v62 = vrot.slane %v2101_v47, 2  ;;  %v2109_v41 = vrot.slane %v2108_v38, 4  ;;  %v9273_v32 = vmax.f32 %v9124_v16, 0.0 }
 0x260   : > { %v1934_v33 = vadd.f32 %v1933_v27, %v1932_v11  ;;  %v1829_v36 = vmax.f32 %v1797_v29, 0.0  ;;  %v1830_v3 = vmax.f32 %v1798_v31, 0.0  ;;  %v9276_v34 = vmax.f32 %v9110_v48, 0.0 }
 0x261   : > { %v2103_v52 = vadd.f32 %v2102_v62, %v2101_v47  ;;  %v2110_v26 = vadd.f32 %v2109_v41, %v2108_v38  ;;  %v2012_v21 = vmul.f32 %v9153_v42, %v9063_v2  ;;  %v1928_v16 = vrot.slane %v9270_v5, 1 }
 0x262   : > { %v1935_v59 = vrot.slane %v1934_v33, 2  ;;  %v1939_v40 = vsel %vm1839_vm7, %v1829_v36, 0.0  ;;  %v1940_v60 = vsel %vm1839_vm7, %v1830_v3, 0.0  ;;  %v2006_v35 = vmul.f32 %v1829_v36, %v8999_v15  ;;  %7453 = vmatprep.mubr.msk.f32.mxu0 %vm1839_vm7, %v1829_v36 }
 0x263   : > { %v2104_v12 = vrot.slane %v2103_v52, 1  ;;  %v2111_v54 = vrot.slane %v2110_v26, 2  ;;  %v1941_v56 = vadd.f32 %v1940_v60, %v1939_v40  ;;  %7454 = vmatmul.mubr.msk.f32.gmra.mrb[28].mxu0 %vm1839_vm7, %v1830_v3  ;;  %v2007_v11 = vmul.f32 %v1830_v3, %v8993_v6 }
 0x264   : > { %v9286_v48 = vadd.f32 %v1935_v59, %v1934_v33  ;;  %v2115_v58 = vsel %vm1839_vm7, %v2006_v35, 0.0  ;;  %v2013_v20 = vmul.f32 %v9105_v19, %v9047_v61  ;;  %7456 = vmatprep.mubr.msk.f32.mxu0 %vm1839_vm7, %v9043_v51  ;;  %v2014_v38 = vmul.f32 %v9273_v32, %v9103_v10 }
 0x265   : > { %v2105_v44 = vadd.f32 %v2104_v12, %v2103_v52  ;;  %v2112_v7 = vadd.f32 %v2111_v54, %v2110_v26  ;;  %v1942_v47 = vrot.slane %v1941_v56, 4  ;;  %v2116_v27 = vsel %vm1839_vm7, %v2007_v11, 0.0 }
 0x266   : > { %v2015_v29 = vmul.f32 %v9276_v34, %v9082_v49  ;;  %v2124_v31 = vsel %vm1839_vm7, %v9069_v25, 0.0  ;;  %v2125_v62 = vsel %vm1839_vm7, %v9052_v8, 0.0  ;;  %v2117_v36 = vadd.f32 %v2116_v27, %v2115_v58 }
 0x267   : > { %v2113_v41 = vrot.slane %v2112_v7, 1  ;;  %v1943_v33 = vadd.f32 %v1942_v47, %v1941_v56  ;;  %v2126_v3 = vadd.f32 %v2125_v62, %v2124_v31  ;;  %7457 = vmatmul.mubr.msk.f32.gmra.mrb[30].mxu0 %vm1839_vm7, %v9030_v39  ;;  %v1937_v52 = vrot.slane %v9286_v48, 1 }
 0x268   : > { %v2133_v26 = vsel %vm1839_vm7, %v9096_v1, 0.0  ;;  %v2134_v59 = vsel %vm1839_vm7, %v9086_v18, 0.0  ;;  %v2142_v25 = vsel %vm1839_vm7, %v2012_v21, 0.0  ;;  %7459 = vmatprep.mubr.msk.f32.mxu0 %vm1839_vm7, %v9072_v46  ;;  %v2118_v40 = vrot.slane %v2117_v36, 4 }
 0x269   : > { %v1944_v8 = vrot.slane %v1943_v33, 2  ;;  %v2114_v60 = vadd.f32 %v2113_v41, %v2112_v7  ;;  %v2127_v35 = vrot.slane %v2126_v3, 4  ;;  %v2135_v12 = vadd.f32 %v2134_v59, %v2133_v26 }
 0x26a   : > { %v2143_v54 = vsel %vm1839_vm7, %v2013_v20, 0.0  ;;  %v2151_v56 = vsel %vm1839_vm7, %v2014_v38, 0.0  ;;  %v2152_v11 = vsel %vm1839_vm7, %v2015_v29, 0.0  ;;  %v2119_v58 = vadd.f32 %v2118_v40, %v2117_v36 }
 0x26b   : > { %v9316_v1 = vadd.f32 %v1944_v8, %v1943_v33  ;;  %v2128_v18 = vadd.f32 %v2127_v35, %v2126_v3  ;;  %v2144_v47 = vadd.f32 %v2143_v54, %v2142_v25  ;;  %7460 = vmatmul.mubr.msk.f32.gmra.mrb[32].mxu0 %vm1839_vm7, %v9056_v9  ;;  %v2136_v21 = vrot.slane %v2135_v12, 4 }
 0x26c   : > { %v2153_v27 = vadd.f32 %v2152_v11, %v2151_v56  ;;  %v2222_v7 = vsel %vm2176_vm8, %v2105_v44, %v2096_v22  ;;  %7462 = vmatprep.mubr.msk.f32.mxu0 %vm1839_vm7, %v9153_v42  ;;  %v12656_v20 = vrot.slane %v9028_v45, 1  ;;  %v2120_v31 = vrot.slane %v2119_v58, 2 }
 0x26d   : > { %v1946_v29 = vrot.slane %v9316_v1, 1  ;;  %v2129_v62 = vrot.slane %v2128_v18, 2  ;;  %v2145_v41 = vrot.slane %v2144_v47, 4  ;;  %v2137_v33 = vadd.f32 %v2136_v21, %v2135_v12 }
 0x26e   : > { %v1848_v38 = vadd.f32 %v12656_v20, %v9028_v45  ;;  %v2154_v36 = vrot.slane %v2153_v27, 4  ;;  %v2223_v3 = vsel %vm2178_vm9, %v2114_v60, %v2222_v7  ;;  %v12657_v26 = vrot.slane %v9139_v55, 1 }
 0x26f   : > { %v2121_v44 = vadd.f32 %v2120_v31, %v2119_v58  ;;  %v2130_v59 = vadd.f32 %v2129_v62, %v2128_v18  ;;  %v2146_v25 = vadd.f32 %v2145_v41, %v2144_v47  ;;  %7463 = vmatmul.mubr.msk.f32.gmra.mrb[34].mxu0 %vm1839_vm7, %v9105_v19  ;;  %v1883_v45 = vrot.slane %v9248_v50, 1 }
 0x270   : > { %v1875_v22 = vadd.f32 %v12657_v26, %v9139_v55  ;;  %v2138_v8 = vrot.slane %v2137_v33, 2  ;;  %v2155_v40 = vadd.f32 %v2154_v36, %v2153_v27  ;;  %7465 = vmatprep.mubr.msk.f32.mxu0 %vm1839_vm7, %v9273_v32  ;;  %v1890_v35 = vrot.slane %v9242_v63, 2  ;;  %v2683_v36 = vld [vmem:[%s12373_s7 + $0x8] sm:$0xff] }
 0x271   : > { %v1898_v60 = vadd.f32 %v1897_v17, %v9168_v37  ;;  %v2122_v55 = vrot.slane %v2121_v44, 1  ;;  %v2131_v12 = vrot.slane %v2130_v59, 1  ;;  %v2147_v54 = vrot.slane %v2146_v25, 2 }
 0x272   : > { %v1884_v56 = vadd.f32 %v1883_v45, %v9248_v50  ;;  %v2139_v11 = vadd.f32 %v2138_v8, %v2137_v33  ;;  %v2156_v58 = vrot.slane %v2155_v40, 2  ;;  %v1891_v18 = vadd.f32 %v1890_v35, %v9242_v63 }
 0x273   : > { %v1899_v47 = vrot.slane %v1898_v60, 2  ;;  %v2123_v21 = vadd.f32 %v2122_v55, %v2121_v44  ;;  %v2132_v27 = vadd.f32 %v2131_v12, %v2130_v59  ;;  %v2148_v7 = vadd.f32 %v2147_v54, %v2146_v25  ;;  %7466 = vmatmul.mubr.msk.f32.gmra.mrb[36].mxu0 %vm1839_vm7, %v9276_v34 }
 0x274   : > { %v1903_v20 = vsel %vm1839_vm7, %v9175_v28, 0.0  ;;  %v2140_v37 = vrot.slane %v2139_v11, 1  ;;  %v2157_v17 = vadd.f32 %v2156_v58, %v2155_v40  ;;  %v1892_v31 = vrot.slane %v1891_v18, 1  ;;  %v2685_v28 = vld [vmem:[%s12373_s7 + $0x18] sm:$0xff] }
 0x275   : > { %v1900_v62 = vadd.f32 %v1899_v47, %v1898_v60  ;;  %v2149_v41 = vrot.slane %v2148_v7, 1  ;;  %v2224_v50 = vsel %vm2180_vm10, %v2123_v21, %v2223_v3  ;;  %v1904_v63 = vsel %vm1839_vm7, %v9183_v14, 0.0  ;;  %v12658_v14 = vld [vmem:[#allocation42_spill] sm:$0xff] }
 0x276   : > { %v2177_v33 = vsel %vm2176_vm8, %v9065_v23, %v1848_v38  ;;  %v2141_v26 = vadd.f32 %v2140_v37, %v2139_v11  ;;  %v2158_v44 = vrot.slane %v2157_v17, 1  ;;  %v2225_v59 = vsel %vm2182_vm11, %v2132_v27, %v2224_v50 }
 0x277   : > { %v1893_v25 = vadd.f32 %v1892_v31, %v1891_v18  ;;  %v2150_v3 = vadd.f32 %v2149_v41, %v2148_v7  ;;  %v1901_v45 = vrot.slane %v1900_v62, 1  ;;  %v1905_v8 = vadd.f32 %v1904_v63, %v1903_v20 }
 0x278   : > { %v2179_v40 = vsel %vm2178_vm9, %v12658_v14, %v2177_v33  ;;  %v2159_v23 = vadd.f32 %v2158_v44, %v2157_v17  ;;  %v2226_v38 = vsel %vm2184_vm12, %v2141_v26, %v2225_v59  ;;  %v7714_v60 = vpack.c.bf16 %v2685_v28, %v2683_v36 }
 0x279   : > { %v2181_v35 = vsel %vm2180_vm10, %v1875_v22, %v2179_v40  ;;  %v2227_v55 = vsel %vm2186_vm13, %v2150_v3, %v2226_v38  ;;  %v1902_v12 = vadd.f32 %v1901_v45, %v1900_v62  ;;  %v1906_v54 = vrot.slane %v1905_v8, 4 }
 0x27a   : > { %v2183_v11 = vsel %vm2182_vm11, %v1884_v56, %v2181_v35  ;;  %v2228_v58 = vsel %vm2188_vm14, %v2159_v23, %v2227_v55  ;;  %7715 = vmatprep.subr.bf16.mxu1 %v7714_v60  ;;  %v1920_v22 = vadd.f32 %v1919_v4, %v9255_v13  ;;  %v1929_v27 = vadd.f32 %v1928_v16, %v9270_v5 }
 0x27b   : > { %v2185_v18 = vsel %vm2184_vm12, %v1893_v25, %v2183_v11  ;;  %2231 = vrot.lane.b32.xlu1 %v2228_v58, %s12654_s29  ;;  %v1907_v47 = vadd.f32 %v1906_v54, %v1905_v8  ;;  %v1938_v56 = vadd.f32 %v1937_v52, %v9286_v48  ;;  %v1947_v20 = vadd.f32 %v1946_v29, %v9316_v1 }
 0x27c   : > { %v2187_v21 = vsel %vm2186_vm13, %v1902_v12, %v2185_v18  ;;  %v1948_v37 = vsel %vm1839_vm7, %v9043_v51, 0.0  ;;  %v1949_v17 = vsel %vm1839_vm7, %v9030_v39, 0.0  ;;  %v1957_v13 = vsel %vm1839_vm7, %v9072_v46, 0.0 }
 0x27d   : > { %v1908_v7 = vrot.slane %v1907_v47, 2  ;;  %v1958_v4 = vsel %vm1839_vm7, %v9056_v9, 0.0  ;;  %v1966_v5 = vsel %vm1839_vm7, %v9153_v42, 0.0  ;;  %v1950_v48 = vadd.f32 %v1949_v17, %v1948_v37 }
 0x27e   : > { %v1959_v52 = vadd.f32 %v1958_v4, %v1957_v13  ;;  %v1967_v1 = vsel %vm1839_vm7, %v9105_v19, 0.0  ;;  %v1975_v51 = vsel %vm1839_vm7, %v9273_v32, 0.0  ;;  %v1976_v39 = vsel %vm1839_vm7, %v9276_v34, 0.0  ;;  %v2686_v13 = vld [vmem:[%s12373_s7 + $0x20] sm:$0xff]  ;;  %v2688_v4 = vld [vmem:[%s12373_s7 + $0x30] sm:$0xff] }
 0x27f   : > { %v1909_v16 = vadd.f32 %v1908_v7, %v1907_v47  ;;  %v1968_v29 = vadd.f32 %v1967_v1, %v1966_v5  ;;  %v2190_v46 = vsel %vm2176_vm8, %v1929_v27, %v1920_v22  ;;  %v1951_v9 = vrot.slane %v1950_v48, 4  ;;  %v2682_v22 = vld [vmem:[%s12373_s7] sm:$0xff]  ;;  %v2684_v27 = vld [vmem:[%s12373_s7 + $0x10] sm:$0xff]  ;;  %v2689_v7 = vld [vmem:[%s12373_s7 + $0x38] sm:$0xff] }
 0x280   : > { %v1960_v62 = vrot.slane %v1959_v52, 4  ;;  %v1977_v41 = vadd.f32 %v1976_v39, %v1975_v51  ;;  %v2191_v50 = vsel %vm2178_vm9, %v1938_v56, %v2190_v46  ;;  %v2687_v56 = vld [vmem:[%s12373_s7 + $0x28] sm:$0xff]  ;;  %v12659_v1 = vmov 0.0   ;;  %v2690_v51 = vld [vmem:[%s12373_s7 + $0x40] sm:$0xff]  ;;  %v2692_v39 = vld [vmem:[%s12373_s7 + $0x50] sm:$0xff] }
 0x281   : > { %v1910_v31 = vrot.slane %v1909_v16, 1  ;;  %v1969_v42 = vrot.slane %v1968_v29, 4  ;;  %v1952_v33 = vadd.f32 %v1951_v9, %v1950_v48  ;;  %v2192_v26 = vsel %vm2180_vm10, %v1947_v20, %v2191_v50  ;;  %v2693_v48 = vld [vmem:[%s12373_s7 + $0x58] sm:$0xff]  ;;  %v2695_v46 = vld [vmem:[%s12373_s7 + $0x68] sm:$0xff] }
 0x282   : > { %v1961_v36 = vadd.f32 %v1960_v62, %v1959_v52  ;;  %v1978_v19 = vrot.slane %v1977_v41, 4  ;;  %v7716_v20 = vpack.c.bf16 %v2684_v27, %v2682_v22  ;;  %v7718_v17 = vpack.c.bf16 %v2689_v7, %v2687_v56  ;;  %v2699_v50 = vld [vmem:[%s12373_s7 + $0x88] sm:$0xff] }
 0x283   : > { %v1911_v63 = vadd.f32 %v1910_v31, %v1909_v16  ;;  %v1970_v28 = vadd.f32 %v1969_v42, %v1968_v29  ;;  %v1953_v44 = vrot.slane %v1952_v33, 2  ;;  %v2691_v16 = vld [vmem:[%s12373_s7 + $0x48] sm:$0xff]  ;;  %v7720_v52 = vpack.c.bf16 %v2688_v4, %v2686_v13  ;;  %v2697_v31 = vld [vmem:[%s12373_s7 + $0x78] sm:$0xff]  ;;  %v2696_v42 = vld [vmem:[%s12373_s7 + $0x70] sm:$0xff] }
 0x284   : > { %v1962_v34 = vrot.slane %v1961_v36, 2  ;;  %v1979_v59 = vadd.f32 %v1978_v19, %v1977_v41  ;;  %v7722_v29 = vpack.c.bf16 %v2693_v48, %v2691_v16  ;;  %v7724_v9 = vpack.c.bf16 %v2692_v39, %v2690_v51  ;;  %v2694_v41 = vld [vmem:[%s12373_s7 + $0x60] sm:$0xff] }
 0x285   : > { %v2189_v32 = vsel %vm2188_vm14, %v1911_v63, %v2187_v21  ;;  %v1971_v25 = vrot.slane %v1970_v28, 2  ;;  %v1954_v3 = vadd.f32 %v1953_v44, %v1952_v33  ;;  %v7726_v62 = vpack.c.bf16 %v2697_v31, %v2695_v46  ;;  %v2701_v63 = vld [vmem:[%s12373_s7 + $0x98] sm:$0xff]  ;;  %v2698_v19 = vld [vmem:[%s12373_s7 + $0x80] sm:$0xff] }
 0x286   : > { %v1963_v45 = vadd.f32 %v1962_v34, %v1961_v36  ;;  %v1980_v8 = vrot.slane %v1979_v59, 2  ;;  %v7728_v33 = vpack.c.bf16 %v2696_v42, %v2694_v41  ;;  %v7730_v36 = vpack.c.bf16 %v2701_v63, %v2699_v50 }
 0x287   : > { %v1972_v14 = vadd.f32 %v1971_v25, %v1970_v28  ;;  %v1955_v40 = vrot.slane %v1954_v3, 1  ;;  %v2700_v28 = vld [vmem:[%s12373_s7 + $0x90] sm:$0xff] }
 0x288   : > { %v1964_v23 = vrot.slane %v1963_v45, 1  ;;  %v1981_v38 = vadd.f32 %v1980_v8, %v1979_v59  ;;  %v7732_v44 = vpack.c.bf16 %v2700_v28, %v2698_v19  ;;  %v2702_v59 = vld [vmem:[%s12373_s7 + $0xa0] sm:$0xff]  ;;  %v2704_v25 = vld [vmem:[%s12373_s7 + $0xb0] sm:$0xff] }
 0x289   : > { %v1973_v35 = vrot.slane %v1972_v14, 1  ;;  %v1956_v60 = vadd.f32 %v1955_v40, %v1954_v3  ;;  %v2707_v3 = vld [vmem:[%s12373_s7 + $0xc8] sm:$0xff]  ;;  %v7736_v8 = vpack.c.bf16 %v2704_v25, %v2702_v59  ;;  %v2706_v40 = vld [vmem:[%s12373_s7 + $0xc0] sm:$0xff] }
 0x28a   : > { %v1965_v55 = vadd.f32 %v1964_v23, %v1963_v45  ;;  %v1982_v12 = vrot.slane %v1981_v38, 1  ;;  %v2709_v45 = vld [vmem:[%s12373_s7 + $0xd8] sm:$0xff]  ;;  %v2708_v23 = vld [vmem:[%s12373_s7 + $0xd0] sm:$0xff] }
 0x28b   : > { %v1974_v54 = vadd.f32 %v1973_v35, %v1972_v14  ;;  %v2193_v58 = vsel %vm2182_vm11, %v1956_v60, %v2192_v26  ;;  %v2703_v26 = vld [vmem:[%s12373_s7 + $0xa8] sm:$0xff]  ;;  %v7738_v14 = vpack.c.bf16 %v2709_v45, %v2707_v3  ;;  %v2713_v35 = vld [vmem:[%s12373_s7 + $0xf8] sm:$0xff]  ;;  %v7740_v60 = vpack.c.bf16 %v2708_v23, %v2706_v40  ;;  %v7035_v23 = vld [vmem:[%s12371_s5 + $0x50] sm:$0xff] }
 0x28c   : > { %v1983_v11 = vadd.f32 %v1982_v12, %v1981_v38  ;;  %v2194_v18 = vsel %vm2184_vm12, %v1965_v55, %v2193_v58  ;;  %v2711_v38 = vld [vmem:[%s12373_s7 + $0xe8] sm:$0xff]  ;;  %v2710_v12 = vld [vmem:[%s12373_s7 + $0xe0] sm:$0xff] }
 0x28d   : > { %v2195_v47 = vsel %vm2186_vm13, %v1974_v54, %v2194_v18  ;;  %v7742_v55 = vpack.c.bf16 %v2713_v35, %v2711_v38  ;;  %v2712_v54 = vld [vmem:[%s12373_s7 + $0xf0] sm:$0xff]  ;;  %v7034_v40 = vld [vmem:[%s12371_s5 + $0x48] sm:$0xff]  ;;  %v7036_v35 = vld [vmem:[%s12371_s5 + $0x58] sm:$0xff] }
 0x28e   : > { %v9404_v21 = vsel %vm2188_vm14, %v1983_v11, %v2195_v47  ;;  %v7744_v11 = vpack.c.bf16 %v2712_v54, %v2710_v12  ;;  %v7038_v12 = vld [vmem:[%s12371_s5 + $0x68] sm:$0xff] }
 0x2c9   : > { %v2230_v37 = vpop.permute.xlu0 %2229 }
 0x2ca   : > { %v2235_v5 = vsel %vm1839_vm7, %v2189_v32, %v2230_v37  ;;  %v2705_v32 = vld [vmem:[%s12373_s7 + $0xb8] sm:$0xff] }
 0x2cb   : > { %2670 = vmatmul.mubr.f32.vlgmr.msra.gmra.mrb[0].mxu1 %v2235_v5  ;;  %v7734_v34 = vpack.c.bf16 %v2705_v32, %v2703_v26 }
 0x2cc   : > { %7717 = vmatpush1.bf16.msra.mxu1 %v7716_v20  ;;  %2675 = vmatprep.mubr.f32.mxu1 %v12659_v1 }
 0x2cd   : > { %7719 = vmatprep.subr.bf16.mxu1 %v7718_v17 }
 0x2d0   : > { %7721 = vmatpush1.bf16.msra.mxu1 %v7720_v52 }
 0x2d1   : > { %7723 = vmatprep.subr.bf16.mxu1 %v7722_v29 }
 0x2d4   : > { %7725 = vmatpush1.bf16.msra.mxu1 %v7724_v9 }
 0x2d5   : > { %7727 = vmatprep.subr.bf16.mxu1 %v7726_v62 }
 0x2d8   : > { %7729 = vmatpush1.bf16.msra.mxu1 %v7728_v33 }
 0x2d9   : > { %7731 = vmatprep.subr.bf16.mxu1 %v7730_v36 }
 0x2dc   : > { %7733 = vmatpush1.bf16.msra.mxu1 %v7732_v44 }
 0x2dd   : > { %7735 = vmatprep.subr.bf16.mxu1 %v7734_v34 }
 0x2e0   : > { %7737 = vmatpush1.bf16.msra.mxu1 %v7736_v8 }
 0x2e1   : > { %7739 = vmatprep.subr.bf16.mxu1 %v7738_v14  ;;  %v7033_v14 = vld [vmem:[%s12371_s5 + $0x40] sm:$0xff] }
 0x2e2   : > { %v7746_v38 = vpack.c.bf16 %v7034_v40, %v7033_v14  ;;  %v12661_v14 = vld [vmem:[#allocation9_spill] sm:$0xff] }
 0x2e4   : > { %7741 = vmatpush1.bf16.msra.mxu1 %v7740_v60  ;;  %v7750_v60 = vpack.c.bf16 %v7036_v35, %v7035_v23  ;;  %7747 = vmatprep.subr.bf16.mxu0 %v7746_v38 }
 0x2e5   : > { %7743 = vmatprep.subr.bf16.mxu1 %v7742_v55  ;;  %v7037_v55 = vld [vmem:[%s12371_s5 + $0x60] sm:$0xff]  ;;  %7749 = vmatpush3.bf16.msra.mxu0 %v7746_v38 }
 0x2e6   : > { %7751 = vmatprep.subr.bf16.mxu0 %v7750_v60  ;;  %v7754_v54 = vpack.c.bf16 %v7038_v12, %v7037_v55  ;;  %v12662_v55 = vld [vmem:[#allocation5_spill] sm:$0xff] }
 0x2e8   : > { %7745 = vmatpush1.bf16.msra.mxu1 %v7744_v11 }
 0x2e9   : > { %7753 = vmatpush3.bf16.msra.mxu0 %v7750_v60 }
 0x2ea   : > { %7755 = vmatprep.subr.bf16.mxu0 %v7754_v54 }
 0x2ed   : > { %v2232_v58 = vpop.permute.xlu1 %2231  ;;  %7757 = vmatpush3.bf16.msra.mxu0 %v7754_v54 }
 0x2ee   : > { %v2236_v18 = vsel %vm1839_vm7, %v9404_v21, %v2232_v58 }
 0x2ef   : > { %v2237_v47 = vadd.f32 %v2236_v18, %v2235_v5  ;;  %2676 = vmatmul.mubr.f32.gmra.mrb[2].mxu1 %v2236_v18  ;;  %v9501_v22 = vpop.f32.mrb[6].mxu0 }
 0x2f0   : > { %2788 = vmatprep.mubr.f32.mxu1 %v12659_v1  ;;  %v9503_v56 = vpop.f32.mrb[7].mxu0 }
 0x2f1   : > { %v2238_v27 = vrot.slane %v2237_v47, 4 }
 0x2f3   : > { %v2239_v7 = vadd.f32 %v2238_v27, %v2237_v47  ;;  %v9505_v20 = vpop.f32.mrb[8].mxu0  ;;  %v7039_v27 = vld [vmem:[%s12371_s5 + $0x70] sm:$0xff] }
 0x2f4   : > { %v9507_v17 = vpop.f32.mrb[9].mxu0 }
 0x2f5   : > { %v2240_v37 = vrot.slane %v2239_v7, 2 }
 0x2f7   : > { %v2241_v13 = vadd.f32 %v2240_v37, %v2239_v7  ;;  %v9509_v4 = vpop.f32.mrb[10].mxu0  ;;  %v7040_v7 = vld [vmem:[%s12371_s5 + $0x78] sm:$0xff] }
 0x2f8   : > { %v9511_v21 = vpop.f32.mrb[11].mxu0  ;;  %v7758_v37 = vpack.c.bf16 %v7040_v7, %v7039_v27 }
 0x2f9   : > { %v2242_v16 = vrot.slane %v2241_v13, 1 }
 0x2fa   : > { %7759 = vmatprep.subr.bf16.mxu0 %v7758_v37 }
 0x2fb   : > { %v2243_v5 = vadd.f32 %v2242_v16, %v2241_v13  ;;  %v8010_v13 = vld [vmem:[%s12374_s8] sm:$0xff]  ;;  %v12660_v16 = vld [vmem:[#allocation6_spill] sm:$0xff]  ;;  %7761 = vmatpush3.bf16.msra.mxu0 %v7758_v37 }
 0x2fc   : > { %v2721_v40 = vrot.slane %v8010_v13, %v12661_v14 }
 0x2fd   : > { %2789 = vmatmul.mubr.f32.vlgmr.msra.gmra.mrb[4].mxu1 %v2243_v5  ;;  %v2717_v5 = vrot.slane %v8010_v13, %v12660_v16  ;;  %v12663_v16 = vld [vmem:[#allocation38_spill] sm:$0xff] }
 0x2fe   : > { %4157 = vmatprep.mubr.f32.mxu1 %v12659_v1 }
 0x301   : > { %v9514_v48 = vpop.f32.mrb[12].mxu0 }
 0x302   : > { %v9516_v52 = vpop.f32.mrb[13].mxu0 }
 0x30b   : > { %v9518_v29 = vpop.f32.mrb[14].mxu0 }
 0x30c   : > { %v9520_v51 = vpop.f32.mrb[15].mxu0 }
 0x30f   : > { %v9522_v39 = vpop.f32.mrb[16].mxu0 }
 0x310   : > { %v9524_v46 = vpop.f32.mrb[17].mxu0 }
 0x313   : > { %v9526_v31 = vpop.f32.mrb[18].mxu0 }
 0x314   : > { %v9528_v9 = vpop.f32.mrb[19].mxu0 }
 0x317   : > { %v9530_v62 = vpop.f32.mrb[20].mxu0 }
 0x318   : > { %v9532_v41 = vpop.f32.mrb[21].mxu0 }
 0x321   : > { %v9534_v42 = vpop.f32.mrb[22].mxu0 }
 0x322   : > { %v9536_v50 = vpop.f32.mrb[23].mxu0 }
 0x327   : > { %v9538_v63 = vpop.f32.mrb[24].mxu0 }
 0x328   : > { %v9540_v33 = vpop.f32.mrb[25].mxu0 }
 0x32d   : > { %v9542_v36 = vpop.f32.mrb[26].mxu0 }
 0x32e   : > { %v9544_v19 = vpop.f32.mrb[27].mxu0 }
 0x336   : > { %v9546_v28 = vpop.f32.mrb[28].mxu0 }
 0x337   : > { %v9548_v26 = vpop.f32.mrb[29].mxu0 }
 0x33a   : > { %v9550_v32 = vpop.f32.mrb[30].mxu0 }
 0x33b   : > { %v9552_v44 = vpop.f32.mrb[31].mxu0 }
 0x33e   : > { %v9554_v34 = vpop.f32.mrb[32].mxu0 }
 0x33f   : > { %v9556_v59 = vpop.f32.mrb[33].mxu0 }
 0x342   : > { %v9558_v25 = vpop.f32.mrb[34].mxu0 }
 0x343   : > { %v9560_v3 = vpop.f32.mrb[35].mxu0 }
 0x346   : > { %v9562_v45 = vpop.f32.mrb[36].mxu0 }
 0x347   : > { %v9564_v8 = vpop.f32.mrb[37].mxu0 }
 0x39e   : > { %v2671_v11 = vpop.f32.mrb[0].mxu1 }
 0x39f   : > { %v2673_v58 = vpop.f32.mrb[1].mxu1 }
 0x3c2   : > { %v2677_v18 = vpop.f32.mrb[2].mxu1 }
 0x3c3   : > { %v2679_v47 = vpop.f32.mrb[3].mxu1 }
 0x3d0   : > { %v2790_v23 = vpop.f32.mrb[4].mxu1 }
 0x3d1   : > { %v2791_v38 = vadd.f32 %v2790_v23, %v2717_v5  ;;  %v2792_v35 = vpop.f32.mrb[5].mxu1 }
 0x3d2   : > { %v2793_v60 = vadd.f32 %v2792_v35, %v2721_v40 }
 0x3d3   : > { %v2798_v12 = vrot.slane %v2791_v38, %v12662_v55 }
 0x3d4   : > { %v2802_v54 = vrot.slane %v2793_v60, %v12662_v55 }
 0x3d5   : > { %v2803_v1 = vadd.f32 %v2798_v12, %v2671_v11  ;;  %v2805_v27 = vadd.f32 %v2798_v12, %v2677_v18 }
 0x3d6   : > { %v9597_v7 = vadd.f32 %v2802_v54, %v2673_v58  ;;  %v9599_v49 = vadd.f32 %v2802_v54, %v2679_v47 }
 0x3d7   : > { %v2809_v10 = vcombine.high %v2803_v1, %v2803_v1  ;;  %v2816_v61 = vrot.slane %v2803_v1, %v12663_v16  ;;  %v2858_v2 = vcombine.high %v2805_v27, %v2805_v27  ;;  %v2865_v37 = vrot.slane %v2805_v27, %v12663_v16  ;;  %3121 = vrot.lane.b32.xlu1 %v2805_v27, %s12654_s29 }
 0x3d8   : > { %3119 = vrot.lane.b32.xlu0 %v2803_v1, %s12654_s29 }
 0x3d9   : > { %v2823_v13 = vrot.slane %v2809_v10, %v12663_v16  ;;  %v2832_v5 = vrot.slane %v2816_v61, %v12663_v16  ;;  %v2872_v11 = vrot.slane %v2858_v2, %v12663_v16  ;;  %v2873_v58 = vcombine.high %v2865_v37, %v2865_v37 }
 0x3da   : > { %v2881_v18 = vrot.slane %v2865_v37, %v12663_v16 }
 0x3db   : > { %v2825_v47 = vcombine.high %v2823_v13, %v2823_v13  ;;  %v2874_v14 = vcombine.high %v2872_v11, %v2872_v11  ;;  %v2888_v40 = vrot.slane %v2872_v11, %v12663_v16  ;;  %v2895_v23 = vrot.slane %v2873_v58, %v12663_v16 }
 0x3dc   : > { %v2903_v38 = vcombine.high %v2881_v18, %v2881_v18  ;;  %v3010_v1 = vrot.slane %v2832_v5, %v12662_v55  ;;  %v3042_v2 = vrot.slane %v2881_v18, %v12662_v55 }
 0x3dd   : > { %v2853_v35 = vrot.slane %v2825_v47, %v12663_v16  ;;  %v2902_v10 = vrot.slane %v2874_v14, %v12663_v16  ;;  %v2904_v60 = vcombine.high %v2888_v40, %v2888_v40  ;;  %v2905_v12 = vcombine.high %v2895_v23, %v2895_v23 }
 0x3de   : > { %v3046_v27 = vrot.slane %v2895_v23, %v12662_v55  ;;  %v3050_v37 = vrot.slane %v2903_v38, %v12662_v55  ;;  %v3058_v11 = vrot.slane %v2888_v40, %v12662_v55  ;;  %v9623_v43 = vadd.f32 %v9501_v22, %v3010_v1 }
 0x3df   : > { %v2857_v54 = vcombine.high %v2853_v35, %v2853_v35  ;;  %v2906_v6 = vcombine.high %v2902_v10, %v2902_v10  ;;  %v3054_v58 = vrot.slane %v2905_v12, %v12662_v55  ;;  %v3062_v47 = vrot.slane %v2902_v10, %v12662_v55 }
 0x3e0   : > { %v3066_v15 = vrot.slane %v2904_v60, %v12662_v55  ;;  %v9626_v18 = vadd.f32 %v3042_v2, %v9536_v50  ;;  %v9629_v23 = vadd.f32 %v9534_v42, %v3042_v2  ;;  %v9633_v38 = vadd.f32 %v3046_v27, %v9540_v33 }
 0x3e1   : > { %v3038_v14 = vrot.slane %v2857_v54, %v12662_v55  ;;  %v3070_v40 = vrot.slane %v2906_v6, %v12662_v55  ;;  %v9636_v10 = vadd.f32 %v9538_v63, %v3046_v27  ;;  %v9639_v60 = vadd.f32 %v3050_v37, %v9544_v19 }
 0x3e2   : > { %12664 = vst [vmem:[#allocation13_spill] sm:$0xff] %v9629_v23  ;;  %12665 = vst [vmem:[#allocation43_spill] sm:$0xff] %v9633_v38  ;;  %v9648_v42 = vadd.f32 %v9542_v36, %v3050_v37  ;;  %v9651_v6 = vadd.f32 %v3054_v58, %v9548_v26  ;;  %v9654_v33 = vadd.f32 %v9546_v28, %v3054_v58 }
 0x3e3   : > { %12666 = vst [vmem:[#allocation44_spill] sm:$0xff] %v9636_v10  ;;  %12667 = vst [vmem:[#allocation15_spill] sm:$0xff] %v9639_v60  ;;  %v9642_v22 = vadd.f32 %v3038_v14, %v9532_v41  ;;  %v9645_v50 = vadd.f32 %v9530_v62, %v3038_v14  ;;  %v9657_v63 = vadd.f32 %v3058_v11, %v9552_v44  ;;  %v12725_v10 = vld [vmem:[#allocation32_spill] sm:$0xff] }
 0x3e4   : > { %12670 = vst [vmem:[#allocation46_spill] sm:$0xff] %v9648_v42  ;;  %12671 = vst [vmem:[#allocation41_spill] sm:$0xff] %v9651_v6  ;;  %v9660_v19 = vadd.f32 %v9550_v32, %v3058_v11  ;;  %v9663_v41 = vadd.f32 %v3062_v47, %v9556_v59  ;;  %v9666_v62 = vadd.f32 %v9554_v34, %v3062_v47  ;;  %v12724_v42 = vld [vmem:[#allocation29_spill] sm:$0xff] }
 0x3e5   : > { %12668 = vst [vmem:[#allocation16_spill] sm:$0xff] %v9642_v22  ;;  %12669 = vst [vmem:[#allocation45_spill] sm:$0xff] %v9645_v50  ;;  %v9669_v36 = vadd.f32 %v3066_v15, %v9560_v3  ;;  %v9672_v26 = vadd.f32 %v9558_v25, %v3066_v15  ;;  %v9675_v28 = vadd.f32 %v3070_v40, %v9564_v8 }
 0x3e6   : > { %12672 = vst [vmem:[#allocation40_spill] sm:$0xff] %v9654_v33  ;;  %12673 = vst [vmem:[#allocation12_spill] sm:$0xff] %v9657_v63  ;;  %v9678_v44 = vadd.f32 %v9562_v45, %v3070_v40  ;;  %v2824_v32 = vcombine.high %v2816_v61, %v2816_v61  ;;  %v2854_v59 = vcombine.high %v2832_v5, %v2832_v5  ;;  %v12723_v63 = vld [vmem:[#allocation30_spill] sm:$0xff] }
 0x3e7   : > { %12674 = vst [vmem:[#allocation14_spill] sm:$0xff] %v9660_v19  ;;  %12675 = vst [vmem:[#allocation47_spill] sm:$0xff] %v9663_v41  ;;  %v2839_v2 = vrot.slane %v2823_v13, %v12663_v16  ;;  %v9683_v54 = vadd.f32 %v3010_v1, %v9503_v56  ;;  %v12722_v41 = vld [vmem:[#allocation27_spill] sm:$0xff] }
 0x3e8   : > { %12676 = vst [vmem:[#allocation48_spill] sm:$0xff] %v9666_v62  ;;  %12677 = vst [vmem:[#allocation49_spill] sm:$0xff] %v9669_v36  ;;  %v2846_v12 = vrot.slane %v2824_v32, %v12663_v16  ;;  %v3018_v15 = vrot.slane %v2854_v59, %v12662_v55 }
 0x3e9   : > { %12678 = vst [vmem:[#allocation50_spill] sm:$0xff] %v9672_v26  ;;  %12679 = vst [vmem:[#allocation51_spill] sm:$0xff] %v9675_v28  ;;  %v3026_v8 = vrot.slane %v2839_v2, %v12662_v55  ;;  %v2855_v45 = vcombine.high %v2839_v2, %v2839_v2  ;;  %v7083_v28 = vld [vmem:[%s12372_s6 + $0x150] sm:$0xff]  ;;  %v12685_v26 = vld [vmem:[#allocation33_spill] sm:$0xff] }
 0x3ea   : > { %12680 = vst [vmem:[#allocation17_spill] sm:$0xff] %v9678_v44  ;;  %v2856_v34 = vcombine.high %v2846_v12, %v2846_v12  ;;  %v3014_v3 = vrot.slane %v2846_v12, %v12662_v55  ;;  %v9696_v13 = vadd.f32 %v3018_v15, %v9511_v21  ;;  %v9699_v56 = vadd.f32 %v9509_v4, %v3018_v15  ;;  %v7074_v15 = vld [vmem:[%s12372_s6 + $0x108] sm:$0xff]  ;;  %v12681_v44 = vld [vmem:[#allocation20_spill] sm:$0xff] }
 0x3eb   : > { %v9708_v37 = vadd.f32 %v3026_v8, %v9520_v51  ;;  %v3034_v21 = vrot.slane %v2855_v45, %v12662_v55 }
 0x3ec   : > { %v3022_v25 = vrot.slane %v2856_v34, %v12662_v55  ;;  %v9690_v61 = vadd.f32 %v3014_v3, %v9507_v17  ;;  %v9693_v5 = vadd.f32 %v9505_v20, %v3014_v3  ;;  %v9711_v17 = vadd.f32 %v9518_v29, %v3026_v8  ;;  %v7073_v8 = vld [vmem:[%s12372_s6 + $0x100] sm:$0xff] }
 0x3ed   : > { %v3030_v20 = vrot.slane %v2853_v35, %v12662_v55  ;;  %v2909_v29 = vcombine.high %v9597_v7, %v9597_v7  ;;  %v2958_v35 = vcombine.high %v9599_v49, %v9599_v49 }
 0x3ee   : > { %v9702_v1 = vadd.f32 %v3022_v25, %v9516_v52  ;;  %v9705_v27 = vadd.f32 %v9514_v48, %v3022_v25  ;;  %v9722_v52 = vadd.f32 %v3034_v21, %v9528_v9  ;;  %v9725_v48 = vadd.f32 %v9526_v31, %v3034_v21  ;;  %v7076_v25 = vld [vmem:[%s12372_s6 + $0x118] sm:$0xff] }
 0x3ef   : > { %v9716_v11 = vadd.f32 %v3030_v20, %v9524_v46  ;;  %v9719_v4 = vadd.f32 %v9522_v39, %v3030_v20  ;;  %v2923_v51 = vrot.slane %v2909_v29, %v12663_v16  ;;  %v2965_v46 = vrot.slane %v9599_v49, %v12663_v16 }
 0x3f0   : > { %v2972_v39 = vrot.slane %v2958_v35, %v12663_v16  ;;  %v2916_v9 = vrot.slane %v9597_v7, %v12663_v16  ;;  %v7762_v29 = vpack.c.bf16 %v7076_v25, %v7074_v15  ;;  %v7078_v35 = vld [vmem:[%s12372_s6 + $0x128] sm:$0xff] }
 0x3f1   : > { %v2925_v58 = vcombine.high %v2923_v51, %v2923_v51  ;;  %v2973_v47 = vcombine.high %v2965_v46, %v2965_v46  ;;  %v2981_v40 = vrot.slane %v2965_v46, %v12663_v16  ;;  %v9749_v7 = vrot.slane %v2923_v51, %v12663_v16  ;;  %v7075_v51 = vld [vmem:[%s12372_s6 + $0x110] sm:$0xff]  ;;  %v7080_v46 = vld [vmem:[%s12372_s6 + $0x138] sm:$0xff]  ;;  %v7082_v15 = vld [vmem:[%s12372_s6 + $0x148] sm:$0xff] }
 0x3f2   : > { %v2974_v14 = vcombine.high %v2972_v39, %v2972_v39  ;;  %v2924_v32 = vcombine.high %v2916_v9, %v2916_v9  ;;  %v9742_v12 = vrot.slane %v2916_v9, %v12663_v16  ;;  %v2988_v49 = vrot.slane %v2972_v39, %v12663_v16  ;;  %7763 = vmatprep.subr.bf16.mxu1 %v7762_v29  ;;  %v7081_v29 = vld [vmem:[%s12372_s6 + $0x140] sm:$0xff] }
 0x3f3   : > { %v9738_v31 = vrot.slane %v2925_v58, %v12663_v16  ;;  %v2995_v59 = vrot.slane %v2973_v47, %v12663_v16  ;;  %v3003_v3 = vcombine.high %v2981_v40, %v2981_v40  ;;  %v3192_v39 = vrot.slane %v2981_v40, %v12662_v55 }
 0x3f4   : > { %v3002_v34 = vrot.slane %v2974_v14, %v12663_v16  ;;  %v2946_v45 = vrot.slane %v2924_v32, %v12663_v16  ;;  %v9764_v21 = vrot.slane %v9742_v12, %v12662_v55  ;;  %v3004_v58 = vcombine.high %v2988_v49, %v2988_v49  ;;  %v7077_v14 = vld [vmem:[%s12372_s6 + $0x120] sm:$0xff]  ;;  %v7079_v32 = vld [vmem:[%s12372_s6 + $0x130] sm:$0xff] }
 0x3f5   : > { %v2957_v2 = vcombine.high %v9738_v31, %v9738_v31  ;;  %v3005_v20 = vcombine.high %v2995_v59, %v2995_v59  ;;  %v7764_v9 = vpack.c.bf16 %v7075_v51, %v7073_v8  ;;  %v7766_v47 = vpack.c.bf16 %v7080_v46, %v7078_v35  ;;  %v7084_v8 = vld [vmem:[%s12372_s6 + $0x158] sm:$0xff] }
 0x3f6   : > { %v2954_v25 = vcombine.high %v9742_v12, %v9742_v12  ;;  %v3196_v40 = vrot.slane %v2995_v59, %v12662_v55  ;;  %v2955_v51 = vcombine.high %v9749_v7, %v9749_v7  ;;  %v3006_v35 = vcombine.high %v3002_v34, %v3002_v34 }
 0x3f7   : > { %v3188_v16 = vrot.slane %v2957_v2, %v12662_v55  ;;  %v3200_v46 = vrot.slane %v3003_v3, %v12662_v55  ;;  %7765 = vmatpush1.bf16.msra.mxu1 %v7764_v9  ;;  %v7768_v50 = vpack.c.bf16 %v7079_v32, %v7077_v14  ;;  %v2956_v22 = vcombine.high %v2946_v45, %v2946_v45  ;;  %v7088_v32 = vld [vmem:[%s12372_s6 + $0x178] sm:$0xff] }
 0x3f8   : > { %v3204_v12 = vrot.slane %v3005_v20, %v12662_v55  ;;  %v9798_v2 = vmul.f32 %v9764_v21, %v12681_v44  ;;  %7767 = vmatprep.subr.bf16.mxu1 %v7766_v47  ;;  %v7770_v59 = vpack.c.bf16 %v7084_v8, %v7082_v15  ;;  %v3208_v3 = vrot.slane %v2988_v49, %v12662_v55  ;;  %v7086_v47 = vld [vmem:[%s12372_s6 + $0x168] sm:$0xff]  ;;  %v12683_v15 = vld [vmem:[#allocation31_spill] sm:$0xff] }
 0x3f9   : > { %v3212_v9 = vrot.slane %v3002_v34, %v12662_v55  ;;  %v3216_v20 = vrot.slane %v3004_v58, %v12662_v55  ;;  %v9810_v14 = vmul.f32 %v3192_v39, %v12603_v30  ;;  %v9819_v8 = vmul.f32 %v3188_v16, %v12683_v15 }
 0x3fa   : > { %v9822_v49 = vmul.f32 %v3188_v16, %v12685_v26  ;;  %v9825_v34 = vmul.f32 %v3192_v39, %v12646_v24  ;;  %v9828_v58 = vmul.f32 %v3196_v40, %v8566_v57  ;;  %v3220_v30 = vrot.slane %v3006_v35, %v12662_v55  ;;  %v12693_v16 = vld [vmem:[#allocation58_spill] sm:$0xff]  ;;  %v12695_v39 = vld [vmem:[#allocation57_spill] sm:$0xff] }
 0x3fb   : > { %12682 = vst [vmem:[#allocation52_spill] sm:$0xff] %v9810_v14  ;;  %12684 = vst [vmem:[#allocation53_spill] sm:$0xff] %v9819_v8  ;;  %v9832_v14 = vmul.f32 %v3196_v40, %v12610_v53  ;;  %v9835_v36 = vmul.f32 %v3200_v46, %v8981_v0  ;;  %7769 = vmatpush1.bf16.msra.mxu1 %v7768_v50  ;;  %v7772_v15 = vpack.c.bf16 %v7083_v28, %v7081_v29  ;;  %v12691_v8 = vld [vmem:[#allocation55_spill] sm:$0xff]  ;;  %v7085_v40 = vld [vmem:[%s12372_s6 + $0x160] sm:$0xff] }
 0x3fc   : > { %12686 = vst [vmem:[#allocation54_spill] sm:$0xff] %v9822_v49  ;;  %12687 = vst [vmem:[#allocation42_spill] sm:$0xff] %v9825_v34  ;;  %v9838_v62 = vmul.f32 %v3200_v46, %v12691_v8  ;;  %v9841_v26 = vmul.f32 %v3204_v12, %v12693_v16  ;;  %v9844_v49 = vmul.f32 %v3204_v12, %v12695_v39  ;;  %7771 = vmatprep.subr.bf16.mxu1 %v7770_v59  ;;  %v7087_v50 = vld [vmem:[%s12372_s6 + $0x170] sm:$0xff]  ;;  %v12697_v28 = vld [vmem:[#allocation60_spill] sm:$0xff] }
 0x3fd   : > { %12688 = vst [vmem:[#allocation6_spill] sm:$0xff] %v9828_v58  ;;  %12689 = vst [vmem:[#allocation9_spill] sm:$0xff] %v9832_v14  ;;  %v7774_v57 = vpack.c.bf16 %v7088_v32, %v7086_v47  ;;  %v9853_v35 = vmul.f32 %v3208_v3, %v12697_v28  ;;  %v12699_v46 = vld [vmem:[#allocation59_spill] sm:$0xff]  ;;  %v3164_v16 = vrot.slane %v2946_v45, %v12662_v55  ;;  %v7090_v59 = vld [vmem:[%s12372_s6 + $0x188] sm:$0xff] }
 0x3fe   : > { %12690 = vst [vmem:[#allocation66_spill] sm:$0xff] %v9835_v36  ;;  %12692 = vst [vmem:[#allocation67_spill] sm:$0xff] %v9838_v62  ;;  %v9856_v29 = vmul.f32 %v3208_v3, %v12699_v46  ;;  %v3168_v12 = vrot.slane %v2954_v25, %v12662_v55  ;;  %v7092_v47 = vld [vmem:[%s12372_s6 + $0x198] sm:$0xff]  ;;  %v12701_v32 = vld [vmem:[#allocation62_spill] sm:$0xff]  ;;  %v3172_v3 = vrot.slane %v2956_v22, %v12662_v55 }
 0x3ff   : > { %12694 = vst [vmem:[#allocation68_spill] sm:$0xff] %v9841_v26  ;;  %12696 = vst [vmem:[#allocation69_spill] sm:$0xff] %v9844_v49  ;;  %v9867_v39 = vmul.f32 %v3212_v9, %v12701_v32  ;;  %v12703_v28 = vld [vmem:[#allocation61_spill] sm:$0xff]  ;;  %v3176_v45 = vrot.slane %v9749_v7, %v12662_v55  ;;  %v7091_v46 = vld [vmem:[%s12372_s6 + $0x190] sm:$0xff]  ;;  %v3180_v22 = vrot.slane %v9738_v31, %v12662_v55  ;;  %7773 = vmatpush1.bf16.msra.mxu1 %v7772_v15 }
 0x400   : > { %12698 = vst [vmem:[#allocation70_spill] sm:$0xff] %v9853_v35  ;;  %12700 = vst [vmem:[#allocation71_spill] sm:$0xff] %v9856_v29  ;;  %v9870_v8 = vmul.f32 %v3212_v9, %v12703_v28  ;;  %v7089_v25 = vld [vmem:[%s12372_s6 + $0x180] sm:$0xff]  ;;  %v12705_v0 = vld [vmem:[#allocation64_spill] sm:$0xff]  ;;  %v7776_v9 = vpack.c.bf16 %v7087_v50, %v7085_v40  ;;  %v3184_v15 = vrot.slane %v2955_v51, %v12662_v55  ;;  %7775 = vmatprep.subr.bf16.mxu1 %v7774_v57 }
 0x401   : > { %12702 = vst [vmem:[#allocation72_spill] sm:$0xff] %v9867_v39  ;;  %v9882_v53 = vmul.f32 %v3216_v20, %v12705_v0  ;;  %v12707_v32 = vld [vmem:[#allocation63_spill] sm:$0xff]  ;;  %v7094_v7 = vld [vmem:[%s12372_s6 + $0x1a8] sm:$0xff]  ;;  %v7096_v28 = vld [vmem:[%s12372_s6 + $0x1b8] sm:$0xff]  ;;  %v7778_v40 = vpack.c.bf16 %v7092_v47, %v7090_v59  ;;  %v9963_v19 = vmul.f32 %v3180_v22, %v12722_v41  ;;  %v9966_v33 = vmul.f32 %v3180_v22, %v12723_v63 }
 0x402   : > { %12704 = vst [vmem:[#allocation73_spill] sm:$0xff] %v9870_v8  ;;  %v9885_v24 = vmul.f32 %v3216_v20, %v12707_v32  ;;  %v9898_v0 = vld [vmem:[%s12372_s6 + $0x1a0] sm:$0xff]  ;;  %v7095_v50 = vld [vmem:[%s12372_s6 + $0x1b0] sm:$0xff]  ;;  %v12716_v47 = vld [vmem:[#allocation22_spill] sm:$0xff]  ;;  %v7780_v6 = vpack.c.bf16 %v7091_v46, %v7089_v25  ;;  %v9969_v60 = vmul.f32 %v3184_v15, %v12724_v42  ;;  %v9972_v38 = vmul.f32 %v3184_v15, %v12725_v10 }
 0x403   : > { %12706 = vst [vmem:[#allocation74_spill] sm:$0xff] %v9882_v53  ;;  %v12709_v20 = vld [vmem:[#allocation65_spill] sm:$0xff]  ;;  %v9913_v53 = vld [vmem:[%s12372_s6 + $0x1c8] sm:$0xff]  ;;  %v3241_v55 = vmul.f32 %v3168_v12, %v12716_v47  ;;  %v9931_v8 = vld [vmem:[%s12372_s6 + $0x1d0] sm:$0xff]  ;;  %7777 = vmatpush1.bf16.msra.mxu1 %v7776_v9  ;;  %v7782_v23 = vpack.c.bf16 %v7096_v28, %v7094_v7 }
 0x404   : > { %12708 = vst [vmem:[#allocation75_spill] sm:$0xff] %v9885_v24  ;;  %v9901_v32 = vmul.f32 %v3220_v30, %v12709_v20  ;;  %v12711_v24 = vld [vmem:[#allocation39_spill] sm:$0xff]  ;;  %v7100_v20 = vld [vmem:[%s12372_s6 + $0x1d8] sm:$0xff]  ;;  %v12715_v57 = vld [vmem:[#allocation21_spill] sm:$0xff]  ;;  %7779 = vmatprep.subr.bf16.mxu1 %v7778_v40 }
 0x405   : > { %v9904_v31 = vmul.f32 %v3220_v30, %v12711_v24  ;;  %v12714_v24 = vld [vmem:[#allocation19_spill] sm:$0xff]  ;;  %v3240_v59 = vmul.f32 %v3164_v16, %v12715_v57  ;;  %v12717_v39 = vld [vmem:[#allocation24_spill] sm:$0xff]  ;;  %v12719_v49 = vld [vmem:[#allocation26_spill] sm:$0xff]  ;;  %v7786_v41 = vpack.c.bf16 %v7100_v20, %v9913_v53 }
 0x406   : > { %12710 = vst [vmem:[#allocation76_spill] sm:$0xff] %v9901_v32  ;;  %v12713_v32 = vld [vmem:[#allocation18_spill] sm:$0xff]  ;;  %v3239_v51 = vmul.f32 %v3164_v16, %v12714_v24  ;;  %v3242_v29 = vmul.f32 %v3168_v12, %v12717_v39  ;;  %v12718_v16 = vld [vmem:[#allocation23_spill] sm:$0xff]  ;;  %v3244_v26 = vmul.f32 %v3172_v3, %v12719_v49  ;;  %v12720_v62 = vld [vmem:[#allocation25_spill] sm:$0xff] }
 0x407   : > { %12712 = vst [vmem:[#allocation77_spill] sm:$0xff] %v9904_v31  ;;  %v3237_v30 = vmul.f32 %v9764_v21, %v12713_v32  ;;  %v9926_v31 = vld [vmem:[%s12372_s6 + $0x1c0] sm:$0xff]  ;;  %v9936_v21 = vld [vmem:[%s12372_s6 + $0x1e8] sm:$0xff]  ;;  %v3243_v35 = vmul.f32 %v3172_v3, %v12718_v16  ;;  %v9942_v36 = vmul.f32 %v3176_v45, %v12720_v62  ;;  %v9947_v14 = vld [vmem:[%s12372_s6 + $0x1f8] sm:$0xff]  ;;  %v7784_v62 = vpack.c.bf16 %v7095_v50, %v9898_v0 }
 0x408   : > { %v9952_v58 = vld [vmem:[%s12372_s6 + $0x1e0] sm:$0xff]  ;;  %v9957_v12 = vld [vmem:[%s12372_s6 + $0x1f0] sm:$0xff]  ;;  %v12721_v34 = vld [vmem:[#allocation28_spill] sm:$0xff]  ;;  %v7788_v22 = vpack.c.bf16 %v9931_v8, %v9926_v31  ;;  %v7790_v46 = vpack.c.bf16 %v9947_v14, %v9936_v21  ;;  %7781 = vmatpush1.bf16.msra.mxu1 %v7780_v6 }
 0x409   : > { %v9960_v3 = vmul.f32 %v3176_v45, %v12721_v34  ;;  %7783 = vmatprep.subr.bf16.mxu1 %v7782_v23 }
 0x40c   : > { %7785 = vmatpush1.bf16.msra.mxu1 %v7784_v62 }
 0x40d   : > { %7787 = vmatprep.subr.bf16.mxu1 %v7786_v41 }
 0x410   : > { %7789 = vmatpush1.bf16.msra.mxu1 %v7788_v22 }
 0x411   : > { %7791 = vmatprep.subr.bf16.mxu1 %v7790_v46 }
 0x449   : > { %v9975_v45 = vpop.permute.xlu1 %3121 }
 0x44a   : > { %v9984_v9 = vpop.permute.xlu0 %3119  ;;  %v3126_v28 = vadd.f32 %v9975_v45, %v9623_v43  ;;  %v3128_v0 = vadd.f32 %v9975_v45, %v9693_v5  ;;  %v3130_v53 = vadd.f32 %v9975_v45, %v9699_v56  ;;  %v3132_v8 = vadd.f32 %v9975_v45, %v9705_v27 }
 0x44b   : > { %v3125_v14 = vadd.f32 %v9984_v9, %v9683_v54  ;;  %v3127_v7 = vadd.f32 %v9984_v9, %v9690_v61  ;;  %v3129_v20 = vadd.f32 %v9984_v9, %v9696_v13  ;;  %v3131_v43 = vadd.f32 %v9984_v9, %v9702_v1 }
 0x44c   : > { %v3270_v5 = vadd.f32 %v9798_v2, %v3126_v28  ;;  %v3272_v31 = vadd.f32 %v3240_v59, %v3128_v0  ;;  %v3274_v56 = vadd.f32 %v3242_v29, %v3130_v53  ;;  %v3276_v15 = vadd.f32 %v3244_v26, %v3132_v8 }
 0x44d   : > { %v3269_v27 = vadd.f32 %v3237_v30, %v3125_v14  ;;  %v3271_v40 = vadd.f32 %v3239_v51, %v3127_v7  ;;  %v3273_v50 = vadd.f32 %v3241_v55, %v3129_v20  ;;  %v3275_v54 = vadd.f32 %v3243_v35, %v3131_v43 }
 0x44e   : > { %v3302_v21 = vmax.f32 %v3270_v5, 0.0  ;;  %v3304_v25 = vmax.f32 %v3272_v31, 0.0  ;;  %v3306_v61 = vmax.f32 %v3274_v56, 0.0  ;;  %v10003_v10 = vmax.f32 %v3276_v15, 0.0 }
 0x44f   : > { %v3301_v13 = vmax.f32 %v3269_v27, 0.0  ;;  %v3303_v42 = vmax.f32 %v3271_v40, 0.0  ;;  %v3305_v63 = vmax.f32 %v3273_v50, 0.0  ;;  %v3307_v1 = vmax.f32 %v3275_v54, 0.0 }
 0x450   : > { %v3334_v6 = vsel %vm1839_vm7, %v3302_v21, 0.0  ;;  %v3478_v2 = vmul.f32 %v3302_v21, %v12681_v44  ;;  %v3343_v23 = vsel %vm1839_vm7, %v3304_v25, 0.0  ;;  %v3480_v26 = vmul.f32 %v3304_v25, %v12715_v57  ;;  %v12778_v57 = vld [vmem:[#allocation65_spill] sm:$0xff] }
 0x451   : > { %v3333_v55 = vsel %vm1839_vm7, %v3301_v13, 0.0  ;;  %v3477_v35 = vmul.f32 %v3301_v13, %v12713_v32  ;;  %7484 = vmatprep.mubr.msk.f32.mxu0 %vm1839_vm7, %v3301_v13  ;;  %v3342_v29 = vsel %vm1839_vm7, %v3303_v42, 0.0  ;;  %v3479_v30 = vmul.f32 %v3303_v42, %v12714_v24  ;;  %v12779_v32 = vld [vmem:[#allocation39_spill] sm:$0xff] }
 0x452   : > { %v3335_v62 = vadd.f32 %v3334_v6, %v3333_v55  ;;  %v3510_v51 = vsel %vm1839_vm7, %v3478_v2, 0.0  ;;  %7485 = vmatmul.mubr.msk.f32.vlgmr.msra.gmra.mrb[38].mxu0 %vm1839_vm7, %v3302_v21  ;;  %v3344_v59 = vadd.f32 %v3343_v23, %v3342_v29  ;;  %v3519_v28 = vsel %vm1839_vm7, %v3480_v26, 0.0 }
 0x453   : > { %v3509_v41 = vsel %vm1839_vm7, %v3477_v35, 0.0  ;;  %v3518_v0 = vsel %vm1839_vm7, %v3479_v30, 0.0  ;;  %7487 = vmatprep.mubr.msk.f32.mxu0 %vm1839_vm7, %v3303_v42  ;;  %v3351_v53 = vsel %vm1839_vm7, %v3305_v63, 0.0  ;;  %v3481_v8 = vmul.f32 %v3305_v63, %v12716_v47 }
 0x454   : > { %v3336_v14 = vrot.slane %v3335_v62, 4  ;;  %v3511_v7 = vadd.f32 %v3510_v51, %v3509_v41  ;;  %v3345_v20 = vrot.slane %v3344_v59, 4  ;;  %v3520_v43 = vadd.f32 %v3519_v28, %v3518_v0 }
 0x455   : > { %v3527_v5 = vsel %vm1839_vm7, %v3481_v8, 0.0  ;;  %v3352_v31 = vsel %vm1839_vm7, %v3306_v61, 0.0  ;;  %v3482_v56 = vmul.f32 %v3306_v61, %v12717_v39  ;;  %v3360_v15 = vsel %vm1839_vm7, %v3307_v1, 0.0  ;;  %v12777_v39 = vld [vmem:[#allocation63_spill] sm:$0xff] }
 0x456   : > { %v3337_v27 = vadd.f32 %v3336_v14, %v3335_v62  ;;  %v3512_v42 = vrot.slane %v3511_v7, 4  ;;  %v3346_v40 = vadd.f32 %v3345_v20, %v3344_v59  ;;  %v3521_v50 = vrot.slane %v3520_v43, 4  ;;  %7488 = vmatmul.mubr.msk.f32.gmra.mrb[40].mxu0 %vm1839_vm7, %v3304_v25 }
 0x457   : > { %7490 = vmatprep.mubr.msk.f32.mxu0 %vm1839_vm7, %v3305_v63  ;;  %v3353_v22 = vadd.f32 %v3352_v31, %v3351_v53  ;;  %v3528_v54 = vsel %vm1839_vm7, %v3482_v56, 0.0  ;;  %v3483_v46 = vmul.f32 %v3307_v1, %v12718_v16  ;;  %v3361_v21 = vsel %vm1839_vm7, %v10003_v10, 0.0 }
 0x458   : > { %v12726_v13 = vpack.c.bf16 %v9957_v12, %v9952_v58  ;;  %v3338_v6 = vrot.slane %v3337_v27, 2  ;;  %v3513_v2 = vadd.f32 %v3512_v42, %v3511_v7  ;;  %v3347_v23 = vrot.slane %v3346_v40, 2 }
 0x459   : > { %v3522_v26 = vadd.f32 %v3521_v50, %v3520_v43  ;;  %v3354_v55 = vrot.slane %v3353_v22, 4  ;;  %v3529_v25 = vadd.f32 %v3528_v54, %v3527_v5  ;;  %v3536_v63 = vsel %vm1839_vm7, %v3483_v46, 0.0 }
 0x45a   : > { %7793 = vmatpush1.bf16.msra.mxu1 %v12726_v13  ;;  %v3362_v35 = vadd.f32 %v3361_v21, %v3360_v15  ;;  %v3339_v29 = vadd.f32 %v3338_v6, %v3337_v27  ;;  %v3514_v30 = vrot.slane %v3513_v2, 2  ;;  %v3348_v62 = vadd.f32 %v3347_v23, %v3346_v40  ;;  %7491 = vmatmul.mubr.msk.f32.gmra.mrb[42].mxu0 %vm1839_vm7, %v3306_v61 }
 0x45b   : > { %v3523_v51 = vrot.slane %v3522_v26, 2  ;;  %v3355_v59 = vadd.f32 %v3354_v55, %v3353_v22  ;;  %v3530_v28 = vrot.slane %v3529_v25, 4  ;;  %7493 = vmatprep.mubr.msk.f32.mxu0 %vm1839_vm7, %v3307_v1  ;;  %v3484_v12 = vmul.f32 %v10003_v10, %v12719_v49  ;;  %v12776_v49 = vld [vmem:[#allocation64_spill] sm:$0xff] }
 0x45c   : > { %v3363_v58 = vrot.slane %v3362_v35, 4  ;;  %v3340_v41 = vrot.slane %v3339_v29, 1  ;;  %v3515_v0 = vadd.f32 %v3514_v30, %v3513_v2  ;;  %v3349_v53 = vrot.slane %v3348_v62, 1 }
 0x45d   : > { %v3524_v8 = vadd.f32 %v3523_v51, %v3522_v26  ;;  %v3356_v14 = vrot.slane %v3355_v59, 2  ;;  %v3531_v7 = vadd.f32 %v3530_v28, %v3529_v25  ;;  %v3537_v43 = vsel %vm1839_vm7, %v3484_v12, 0.0  ;;  %v12727_v51 = vld [vmem:[#allocation25_spill] sm:$0xff] }
 0x45e   : > { %v3364_v20 = vadd.f32 %v3363_v58, %v3362_v35  ;;  %v10041_v5 = vadd.f32 %v3340_v41, %v3339_v29  ;;  %v3516_v61 = vrot.slane %v3515_v0, 1  ;;  %v10043_v31 = vadd.f32 %v3349_v53, %v3348_v62  ;;  %7494 = vmatmul.mubr.msk.f32.gmra.mrb[44].mxu0 %vm1839_vm7, %v10003_v10  ;;  %v12754_v29 = vld [vmem:[#allocation69_spill] sm:$0xff] }
 0x45f   : > { %v3525_v56 = vrot.slane %v3524_v8, 1  ;;  %v3357_v1 = vadd.f32 %v3356_v14, %v3355_v59  ;;  %v3532_v15 = vrot.slane %v3531_v7, 2  ;;  %v3538_v42 = vadd.f32 %v3537_v43, %v3536_v63 }
 0x460   : > { %v3365_v27 = vrot.slane %v3364_v20, 2  ;;  %v10047_v40 = vadd.f32 %v3516_v61, %v3515_v0  ;;  %v3133_v22 = vadd.f32 %v9984_v9, %v9708_v37  ;;  %v3134_v54 = vadd.f32 %v9975_v45, %v9711_v17  ;;  %v12728_v0 = vld [vmem:[#allocation13_spill] sm:$0xff] }
 0x461   : > { %v10049_v50 = vadd.f32 %v3525_v56, %v3524_v8  ;;  %v3358_v46 = vrot.slane %v3357_v1, 1  ;;  %v10055_v21 = vadd.f32 %v3532_v15, %v3531_v7  ;;  %v3539_v10 = vrot.slane %v3538_v42, 4 }
 0x462   : > { %v10057_v13 = vadd.f32 %v3365_v27, %v3364_v20  ;;  %v3277_v6 = vadd.f32 %v9942_v36, %v3133_v22  ;;  %v3278_v2 = vadd.f32 %v9960_v3, %v3134_v54  ;;  %v3135_v23 = vadd.f32 %v9984_v9, %v9716_v11  ;;  %v12729_v20 = vld [vmem:[#allocation27_spill] sm:$0xff] }
 0x463   : > { %v3136_v26 = vadd.f32 %v9975_v45, %v9719_v4  ;;  %v10065_v37 = vadd.f32 %v3358_v46, %v3357_v1  ;;  %v10069_v25 = vadd.f32 %v3539_v10, %v3538_v42  ;;  %v3137_v11 = vadd.f32 %v9984_v9, %v9722_v52 }
 0x464   : > { %v3309_v63 = vmax.f32 %v3277_v6, 0.0  ;;  %v3310_v35 = vmax.f32 %v3278_v2, 0.0  ;;  %v3279_v36 = vadd.f32 %v9963_v19, %v3135_v23  ;;  %v3138_v4 = vadd.f32 %v9975_v45, %v9725_v48  ;;  %v12731_v6 = vld [vmem:[#allocation29_spill] sm:$0xff] }
 0x465   : > { %v3280_v3 = vadd.f32 %v9966_v33, %v3136_v26  ;;  %v3141_v30 = vadd.f32 %v9984_v9, %v9626_v18  ;;  %v3281_v48 = vadd.f32 %v9969_v60, %v3137_v11  ;;  %v3142_v53 = vadd.f32 %v9975_v45, %v12728_v0  ;;  %v12730_v60 = vld [vmem:[#allocation30_spill] sm:$0xff] }
 0x466   : > { %v3369_v62 = vsel %vm1839_vm7, %v3309_v63, 0.0  ;;  %v3485_v59 = vmul.f32 %v3309_v63, %v12727_v51  ;;  %7496 = vmatprep.mubr.msk.f32.mxu0 %vm1839_vm7, %v3309_v63  ;;  %v3370_v19 = vsel %vm1839_vm7, %v3310_v35, 0.0  ;;  %v3486_v33 = vmul.f32 %v3310_v35, %v12721_v34  ;;  %v12736_v0 = vld [vmem:[#allocation46_spill] sm:$0xff]  ;;  %v12775_v34 = vld [vmem:[#allocation61_spill] sm:$0xff] }
 0x467   : > { %v3371_v28 = vadd.f32 %v3370_v19, %v3369_v62  ;;  %7497 = vmatmul.mubr.msk.f32.gmra.mrb[46].mxu0 %vm1839_vm7, %v3310_v35  ;;  %v3311_v52 = vmax.f32 %v3279_v36, 0.0  ;;  %v3312_v58 = vmax.f32 %v3280_v3, 0.0  ;;  %v3282_v41 = vadd.f32 %v9972_v38, %v3138_v4  ;;  %v12732_v3 = vld [vmem:[#allocation32_spill] sm:$0xff]  ;;  %v12733_v62 = vld [vmem:[#allocation43_spill] sm:$0xff] }
 0x468   : > { %v3545_v12 = vsel %vm1839_vm7, %v3485_v59, 0.0  ;;  %v3546_v18 = vsel %vm1839_vm7, %v3486_v33, 0.0  ;;  %v3313_v1 = vmax.f32 %v3281_v48, 0.0  ;;  %v3143_v59 = vadd.f32 %v9984_v9, %v12733_v62  ;;  %v12746_v62 = vld [vmem:[#allocation17_spill] sm:$0xff] }
 0x469   : > { %v3372_v8 = vrot.slane %v3371_v28, 4  ;;  %v3547_v14 = vadd.f32 %v3546_v18, %v3545_v12  ;;  %v3378_v7 = vsel %vm1839_vm7, %v3311_v52, 0.0  ;;  %v3487_v43 = vmul.f32 %v3311_v52, %v12729_v20  ;;  %7499 = vmatprep.mubr.msk.f32.mxu0 %vm1839_vm7, %v3311_v52  ;;  %v12734_v52 = vld [vmem:[#allocation44_spill] sm:$0xff]  ;;  %v12735_v18 = vld [vmem:[#allocation15_spill] sm:$0xff] }
 0x46a   : > { %v3379_v61 = vsel %vm1839_vm7, %v3312_v58, 0.0  ;;  %v3488_v56 = vmul.f32 %v3312_v58, %v12730_v60  ;;  %v3314_v15 = vmax.f32 %v3282_v41, 0.0  ;;  %v3387_v46 = vsel %vm1839_vm7, %v3313_v1, 0.0  ;;  %v12757_v60 = vld [vmem:[#allocation72_spill] sm:$0xff] }
 0x46b   : > { %v3373_v27 = vadd.f32 %v3372_v8, %v3371_v28  ;;  %v3548_v42 = vrot.slane %v3547_v14, 4  ;;  %v3554_v38 = vsel %vm1839_vm7, %v3487_v43, 0.0  ;;  %v3380_v22 = vadd.f32 %v3379_v61, %v3378_v7  ;;  %7500 = vmatmul.mubr.msk.f32.gmra.mrb[48].mxu0 %vm1839_vm7, %v3312_v58  ;;  %v12737_v7 = vld [vmem:[#allocation41_spill] sm:$0xff]  ;;  %v12738_v61 = vld [vmem:[#allocation40_spill] sm:$0xff] }
 0x46c   : > { %v3555_v54 = vsel %vm1839_vm7, %v3488_v56, 0.0  ;;  %v3388_v10 = vsel %vm1839_vm7, %v3314_v15, 0.0  ;;  %v3489_v2 = vmul.f32 %v3313_v1, %v12731_v6  ;;  %7502 = vmatprep.mubr.msk.f32.mxu0 %vm1839_vm7, %v3313_v1  ;;  %v3490_v11 = vmul.f32 %v3314_v15, %v12732_v3  ;;  %v12739_v1 = vld [vmem:[#allocation12_spill] sm:$0xff]  ;;  %v12756_v6 = vld [vmem:[#allocation71_spill] sm:$0xff] }
 0x46d   : > { %v3374_v23 = vrot.slane %v3373_v27, 2  ;;  %v10104_v26 = vadd.f32 %v3548_v42, %v3547_v14  ;;  %v3381_v63 = vrot.slane %v3380_v22, 4  ;;  %v10106_v35 = vadd.f32 %v3555_v54, %v3554_v38  ;;  %v12741_v38 = vld [vmem:[#allocation47_spill] sm:$0xff]  ;;  %v12742_v54 = vld [vmem:[#allocation48_spill] sm:$0xff] }
 0x46e   : > { %v10108_v36 = vadd.f32 %v3388_v10, %v3387_v46  ;;  %v3563_v4 = vsel %vm1839_vm7, %v3489_v2, 0.0  ;;  %v3144_v58 = vadd.f32 %v9975_v45, %v12734_v52  ;;  %v3564_v12 = vsel %vm1839_vm7, %v3490_v11, 0.0  ;;  %v12743_v10 = vld [vmem:[#allocation49_spill] sm:$0xff]  ;;  %v12745_v11 = vld [vmem:[#allocation51_spill] sm:$0xff]  ;;  %v12753_v28 = vld [vmem:[#allocation68_spill] sm:$0xff] }
 0x46f   : > { %v10114_v19 = vadd.f32 %v3374_v23, %v3373_v27  ;;  %v10116_v33 = vadd.f32 %v3381_v63, %v3380_v22  ;;  %7503 = vmatmul.mubr.msk.f32.gmra.mrb[50].mxu0 %vm1839_vm7, %v3314_v15  ;;  %v3145_v41 = vadd.f32 %v9984_v9, %v12735_v18  ;;  %v3146_v8 = vadd.f32 %v9975_v45, %v12736_v0  ;;  %v12740_v27 = vld [vmem:[#allocation14_spill] sm:$0xff] }
 0x470   : > { %v10128_v14 = vadd.f32 %v3564_v12, %v3563_v4  ;;  %v3147_v43 = vadd.f32 %v9984_v9, %v12737_v7  ;;  %v3148_v56 = vadd.f32 %v9975_v45, %v12738_v61  ;;  %v3149_v15 = vadd.f32 %v9984_v9, %v12739_v1  ;;  %v12744_v23 = vld [vmem:[#allocation50_spill] sm:$0xff]  ;;  %v12747_v12 = vld [vmem:[#allocation52_spill] sm:$0xff] }
 0x471   : > { %v3150_v42 = vadd.f32 %v9975_v45, %v12740_v27  ;;  %v3151_v22 = vadd.f32 %v9984_v9, %v12741_v38  ;;  %v3152_v46 = vadd.f32 %v9975_v45, %v12742_v54  ;;  %v3153_v2 = vadd.f32 %v9984_v9, %v12743_v10  ;;  %v12748_v0 = vld [vmem:[#allocation42_spill] sm:$0xff]  ;;  %v12750_v27 = vld [vmem:[#allocation9_spill] sm:$0xff]  ;;  %v12752_v10 = vld [vmem:[#allocation67_spill] sm:$0xff] }
 0x472   : > { %v3154_v63 = vadd.f32 %v9975_v45, %v12744_v23  ;;  %v3155_v4 = vadd.f32 %v9984_v9, %v12745_v11  ;;  %v3156_v52 = vadd.f32 %v9975_v45, %v12746_v62  ;;  %v3285_v18 = vadd.f32 %v12747_v12, %v3141_v30  ;;  %v12749_v61 = vld [vmem:[#allocation6_spill] sm:$0xff]  ;;  %v12758_v12 = vld [vmem:[#allocation73_spill] sm:$0xff] }
 0x473   : > { %v3286_v7 = vadd.f32 %v12748_v0, %v3142_v53  ;;  %v3287_v1 = vadd.f32 %v12749_v61, %v3143_v59  ;;  %v3288_v38 = vadd.f32 %v12750_v27, %v3144_v58  ;;  %v12751_v54 = vld [vmem:[#allocation66_spill] sm:$0xff]  ;;  %v3290_v55 = vadd.f32 %v12752_v10, %v3146_v8  ;;  %v12760_v61 = vld [vmem:[#allocation75_spill] sm:$0xff]  ;;  %v12761_v27 = vld [vmem:[#allocation76_spill] sm:$0xff] }
 0x474   : > { %v3289_v48 = vadd.f32 %v12751_v54, %v3145_v41  ;;  %v3291_v23 = vadd.f32 %v12753_v28, %v3147_v43  ;;  %v3292_v17 = vadd.f32 %v12754_v29, %v3148_v56  ;;  %v12755_v11 = vld [vmem:[#allocation70_spill] sm:$0xff]  ;;  %v3294_v62 = vadd.f32 %v12756_v6, %v3150_v42  ;;  %v12762_v54 = vld [vmem:[#allocation77_spill] sm:$0xff] }
 0x475   : > { %v3293_v3 = vadd.f32 %v12755_v11, %v3149_v15  ;;  %v3295_v30 = vadd.f32 %v12757_v60, %v3151_v22  ;;  %v3296_v53 = vadd.f32 %v12758_v12, %v3152_v46  ;;  %v12759_v0 = vld [vmem:[#allocation74_spill] sm:$0xff]  ;;  %v3298_v58 = vadd.f32 %v12760_v61, %v3154_v63  ;;  %v12768_v11 = vld [vmem:[#allocation56_spill] sm:$0xff] }
 0x476   : > { %v3297_v59 = vadd.f32 %v12759_v0, %v3153_v2  ;;  %v3299_v41 = vadd.f32 %v12761_v27, %v3155_v4  ;;  %v3300_v8 = vadd.f32 %v12762_v54, %v3156_v52  ;;  %v10166_v10 = vmax.f32 %v3285_v18, 0.0  ;;  %v12764_v52 = vld [vmem:[#allocation34_spill] sm:$0xff]  ;;  %v12765_v18 = vld [vmem:[#allocation35_spill] sm:$0xff] }
 0x477   : > { %v10168_v28 = vmax.f32 %v3286_v7, 0.0  ;;  %v10170_v29 = vmax.f32 %v3287_v1, 0.0  ;;  %v10172_v43 = vmax.f32 %v3288_v38, 0.0  ;;  %v10174_v6 = vmax.f32 %v3289_v48, 0.0  ;;  %v12766_v7 = vld [vmem:[#allocation36_spill] sm:$0xff]  ;;  %v12767_v38 = vld [vmem:[#allocation37_spill] sm:$0xff] }
 0x478   : > { %v10176_v60 = vmax.f32 %v3290_v55, 0.0  ;;  %v10178_v56 = vmax.f32 %v3291_v23, 0.0  ;;  %v10180_v15 = vmax.f32 %v3292_v17, 0.0  ;;  %v10182_v42 = vmax.f32 %v3293_v3, 0.0 }
 0x479   : > { %v10184_v22 = vmax.f32 %v3294_v62, 0.0  ;;  %v10186_v46 = vmax.f32 %v3295_v30, 0.0  ;;  %v10188_v2 = vmax.f32 %v3296_v53, 0.0  ;;  %v10190_v63 = vmax.f32 %v3297_v59, 0.0  ;;  %v12769_v30 = vld [vmem:[#allocation55_spill] sm:$0xff]  ;;  %v12770_v53 = vld [vmem:[#allocation58_spill] sm:$0xff] }
 0x47a   : > { %v10192_v4 = vmax.f32 %v3298_v58, 0.0  ;;  %v10194_v48 = vmax.f32 %v3299_v41, 0.0  ;;  %v10196_v55 = vmax.f32 %v3300_v8, 0.0  ;;  %v3493_v17 = vmul.f32 %v10166_v10, %v12764_v52  ;;  %v12771_v59 = vld [vmem:[#allocation57_spill] sm:$0xff]  ;;  %v12772_v58 = vld [vmem:[#allocation60_spill] sm:$0xff]  ;;  %v12773_v41 = vld [vmem:[#allocation59_spill] sm:$0xff] }
 0x47b   : > { %v3494_v3 = vmul.f32 %v10168_v28, %v12765_v18  ;;  %v3495_v1 = vmul.f32 %v10170_v29, %v12766_v7  ;;  %v3496_v23 = vmul.f32 %v10172_v43, %v12767_v38  ;;  %v3497_v62 = vmul.f32 %v10174_v6, %v12768_v11  ;;  %v12774_v8 = vld [vmem:[#allocation62_spill] sm:$0xff] }
 0x47c   : > { %12763 = vst [vmem:[#allocation13_spill] sm:$0xff] %v10196_v55  ;;  %v3498_v12 = vmul.f32 %v10176_v60, %v12769_v30  ;;  %v3499_v0 = vmul.f32 %v10178_v56, %v12770_v53  ;;  %v3500_v61 = vmul.f32 %v10180_v15, %v12771_v59  ;;  %v3501_v27 = vmul.f32 %v10182_v42, %v12772_v58 }
 0x47d   : > { %v3502_v54 = vmul.f32 %v10184_v22, %v12773_v41  ;;  %v3503_v20 = vmul.f32 %v10186_v46, %v12774_v8  ;;  %v3504_v51 = vmul.f32 %v10188_v2, %v12775_v34  ;;  %v3505_v16 = vmul.f32 %v10190_v63, %v12776_v49 }
 0x47e   : > { %v3506_v47 = vmul.f32 %v10192_v4, %v12777_v39  ;;  %v3507_v24 = vmul.f32 %v10194_v48, %v12778_v57  ;;  %v3508_v58 = vmul.f32 %v10196_v55, %v12779_v32  ;;  %v3581_v41 = vsel %vm1839_vm7, %v3493_v17, 0.0 }
 0x47f   : > { %v3582_v59 = vsel %vm1839_vm7, %v3494_v3, 0.0  ;;  %v3590_v8 = vsel %vm1839_vm7, %v3495_v1, 0.0  ;;  %v3591_v34 = vsel %vm1839_vm7, %v3496_v23, 0.0  ;;  %v3599_v53 = vsel %vm1839_vm7, %v3497_v62, 0.0 }
 0x480   : > { %v3583_v49 = vadd.f32 %v3582_v59, %v3581_v41  ;;  %v3592_v30 = vadd.f32 %v3591_v34, %v3590_v8  ;;  %v3600_v39 = vsel %vm1839_vm7, %v3498_v12, 0.0  ;;  %v3608_v11 = vsel %vm1839_vm7, %v3499_v0, 0.0 }
 0x481   : > { %v3601_v57 = vadd.f32 %v3600_v39, %v3599_v53  ;;  %v3609_v38 = vsel %vm1839_vm7, %v3500_v61, 0.0  ;;  %v3617_v32 = vsel %vm1839_vm7, %v3501_v27, 0.0  ;;  %v3618_v17 = vsel %vm1839_vm7, %v3502_v54, 0.0 }
 0x482   : > { %v3584_v3 = vrot.slane %v3583_v49, 4  ;;  %v3593_v7 = vrot.slane %v3592_v30, 4  ;;  %v3610_v1 = vadd.f32 %v3609_v38, %v3608_v11  ;;  %v3619_v18 = vadd.f32 %v3618_v17, %v3617_v32 }
 0x483   : > { %v3602_v23 = vrot.slane %v3601_v57, 4  ;;  %v3626_v62 = vsel %vm1839_vm7, %v3503_v20, 0.0  ;;  %v3627_v34 = vsel %vm1839_vm7, %v3504_v51, 0.0  ;;  %v3635_v12 = vsel %vm1839_vm7, %v3505_v16, 0.0 }
 0x484   : > { %v3585_v59 = vadd.f32 %v3584_v3, %v3583_v49  ;;  %v3594_v0 = vadd.f32 %v3593_v7, %v3592_v30  ;;  %v3611_v39 = vrot.slane %v3610_v1, 4  ;;  %v3620_v53 = vrot.slane %v3619_v18, 4 }
 0x485   : > { %v3603_v61 = vadd.f32 %v3602_v23, %v3601_v57  ;;  %v3628_v41 = vadd.f32 %v3627_v34, %v3626_v62  ;;  %v3636_v27 = vsel %vm1839_vm7, %v3506_v47, 0.0  ;;  %v3644_v54 = vsel %vm1839_vm7, %v3507_v24, 0.0 }
 0x486   : > { %v3586_v8 = vrot.slane %v3585_v59, 2  ;;  %v3595_v38 = vrot.slane %v3594_v0, 2  ;;  %v3612_v32 = vadd.f32 %v3611_v39, %v3610_v1  ;;  %v3621_v11 = vadd.f32 %v3620_v53, %v3619_v18 }
 0x487   : > { %v3604_v17 = vrot.slane %v3603_v61, 2  ;;  %v3629_v20 = vrot.slane %v3628_v41, 4  ;;  %v3637_v52 = vadd.f32 %v3636_v27, %v3635_v12  ;;  %v3645_v51 = vsel %vm1839_vm7, %v3508_v58, 0.0 }
 0x488   : > { %v3587_v16 = vadd.f32 %v3586_v8, %v3585_v59  ;;  %v3596_v49 = vadd.f32 %v3595_v38, %v3594_v0  ;;  %v3613_v7 = vrot.slane %v3612_v32, 2  ;;  %v3622_v30 = vrot.slane %v3621_v11, 2 }
 0x489   : > { %v3605_v3 = vadd.f32 %v3604_v17, %v3603_v61  ;;  %v3630_v57 = vadd.f32 %v3629_v20, %v3628_v41  ;;  %v3638_v23 = vrot.slane %v3637_v52, 4  ;;  %v3646_v62 = vadd.f32 %v3645_v51, %v3644_v54  ;;  %v12780_v17 = vld [vmem:[#allocation16_spill] sm:$0xff] }
 0x48a   : > { %v3588_v47 = vrot.slane %v3587_v16, 1  ;;  %v3597_v34 = vrot.slane %v3596_v49, 1  ;;  %v3614_v24 = vadd.f32 %v3613_v7, %v3612_v32  ;;  %v3623_v44 = vadd.f32 %v3622_v30, %v3621_v11  ;;  %v12782_v7 = vld [vmem:[#allocation53_spill] sm:$0xff] }
 0x48b   : > { %v3606_v55 = vrot.slane %v3605_v3, 1  ;;  %v3631_v1 = vrot.slane %v3630_v57, 2  ;;  %v3639_v18 = vadd.f32 %v3638_v23, %v3637_v52  ;;  %v3647_v39 = vrot.slane %v3646_v62, 4 }
 0x48c   : > { %v3589_v53 = vadd.f32 %v3588_v47, %v3587_v16  ;;  %v3598_v12 = vadd.f32 %v3597_v34, %v3596_v49  ;;  %v3615_v27 = vrot.slane %v3614_v24, 1  ;;  %v3624_v58 = vrot.slane %v3623_v44, 1  ;;  %v12781_v49 = vld [vmem:[#allocation45_spill] sm:$0xff]  ;;  %v12784_v47 = vld [vmem:[#allocation54_spill] sm:$0xff] }
 0x48d   : > { %v3607_v59 = vadd.f32 %v3606_v55, %v3605_v3  ;;  %v3632_v0 = vadd.f32 %v3631_v1, %v3630_v57  ;;  %v3640_v8 = vrot.slane %v3639_v18, 2  ;;  %v3648_v38 = vadd.f32 %v3647_v39, %v3646_v62 }
 0x48e   : > { %v3616_v61 = vadd.f32 %v3615_v27, %v3614_v24  ;;  %v3625_v41 = vadd.f32 %v3624_v58, %v3623_v44  ;;  %v3708_v54 = vsel %vm2176_vm8, %v3598_v12, %v3589_v53  ;;  %v3139_v32 = vadd.f32 %v9984_v9, %v12780_v17  ;;  %v12788_v17 = vld [vmem:[#allocation33_spill] sm:$0xff] }
 0x48f   : > { %v3633_v11 = vrot.slane %v3632_v0, 1  ;;  %v3641_v20 = vadd.f32 %v3640_v8, %v3639_v18  ;;  %v3649_v51 = vrot.slane %v3648_v38, 2  ;;  %v3709_v52 = vsel %vm2178_vm9, %v3607_v59, %v3708_v54  ;;  %v12787_v59 = vld [vmem:[#allocation31_spill] sm:$0xff] }
 0x490   : > { %v3710_v16 = vsel %vm2180_vm10, %v3616_v61, %v3709_v52  ;;  %v3140_v55 = vadd.f32 %v9975_v45, %v12781_v49  ;;  %v3283_v30 = vadd.f32 %v12782_v7, %v3139_v32  ;;  %v12783_v44 = vrot.slane %v10055_v21, 1 }
 0x491   : > { %v3634_v57 = vadd.f32 %v3633_v11, %v3632_v0  ;;  %v3642_v23 = vrot.slane %v3641_v20, 1  ;;  %v3650_v62 = vadd.f32 %v3649_v51, %v3648_v38  ;;  %v3711_v9 = vsel %vm2182_vm11, %v3625_v41, %v3710_v16 }
 0x492   : > { %v3535_v3 = vadd.f32 %v12783_v44, %v10055_v21  ;;  %v3284_v34 = vadd.f32 %v12784_v47, %v3140_v55  ;;  %v3315_v24 = vmax.f32 %v3283_v30, 0.0  ;;  %v12785_v1 = vrot.slane %v10069_v25, 2 }
 0x493   : > { %v3550_v45 = vrot.slane %v10104_v26, 2  ;;  %v3643_v39 = vadd.f32 %v3642_v23, %v3641_v20  ;;  %v3651_v53 = vrot.slane %v3650_v62, 1  ;;  %v3712_v12 = vsel %vm2184_vm12, %v3634_v57, %v3711_v9 }
 0x494   : > { %v3542_v18 = vadd.f32 %v12785_v1, %v10069_v25  ;;  %v12786_v21 = vrot.slane %v10106_v35, 4  ;;  %v3316_v58 = vmax.f32 %v3284_v34, 0.0  ;;  %v3491_v0 = vmul.f32 %v3315_v24, %v12787_v59  ;;  %7505 = vmatprep.mubr.msk.f32.mxu0 %vm1839_vm7, %v3315_v24 }
 0x495   : > { %v3551_v38 = vadd.f32 %v3550_v45, %v10104_v26  ;;  %v3652_v61 = vadd.f32 %v3651_v53, %v3650_v62  ;;  %v3713_v25 = vsel %vm2186_vm13, %v3643_v39, %v3712_v12  ;;  %v3566_v54 = vrot.slane %v10128_v14, 4 }
 0x496   : > { %v3558_v27 = vadd.f32 %v12786_v21, %v10106_v35  ;;  %v3543_v8 = vrot.slane %v3542_v18, 1  ;;  %v3492_v32 = vmul.f32 %v3316_v58, %v12788_v17  ;;  %v3572_v35 = vsel %vm1839_vm7, %v3491_v0, 0.0  ;;  %7506 = vmatmul.mubr.msk.f32.gmra.mrb[52].mxu0 %vm1839_vm7, %v3316_v58 }
 0x497   : > { %v3552_v20 = vrot.slane %v3551_v38, 1  ;;  %v3714_v51 = vsel %vm2188_vm14, %v3652_v61, %v3713_v25  ;;  %v3567_v26 = vadd.f32 %v3566_v54, %v10128_v14  ;;  %v3701_v16 = vsel %vm2176_vm8, %v10049_v50, %v10047_v40  ;;  %7508 = vmatprep.mubr.msk.f32.mxu0 %vm1839_vm7, %v10166_v10 }
 0x498   : > { %v3559_v41 = vrot.slane %v3558_v27, 2  ;;  %v3544_v11 = vadd.f32 %v3543_v8, %v3542_v18  ;;  %3717 = vrot.lane.b32.xlu1 %v3714_v51, %s12654_s29  ;;  %v3573_v55 = vsel %vm1839_vm7, %v3492_v32, 0.0  ;;  %v3702_v7 = vsel %vm2178_vm9, %v3535_v3, %v3701_v16 }
 0x499   : > { %v3553_v49 = vadd.f32 %v3552_v20, %v3551_v38  ;;  %v12789_v30 = vrot.slane %v10057_v13, 1  ;;  %v3568_v14 = vrot.slane %v3567_v26, 2  ;;  %v3574_v23 = vadd.f32 %v3573_v55, %v3572_v35 }
 0x49a   : > { %v3560_v52 = vadd.f32 %v3559_v41, %v3558_v27  ;;  %v3703_v62 = vsel %vm2180_vm10, %v3544_v11, %v3702_v7  ;;  %7509 = vmatmul.mubr.msk.f32.gmra.mrb[54].mxu0 %vm1839_vm7, %v10168_v28  ;;  %v3376_v50 = vrot.slane %v10114_v19, 1  ;;  %v3383_v9 = vrot.slane %v10116_v33, 2 }
 0x49b   : > { %v3368_v44 = vadd.f32 %v12789_v30, %v10057_v13  ;;  %v3704_v40 = vsel %vm2182_vm11, %v3553_v49, %v3703_v62  ;;  %v12790_v3 = vrot.slane %v10108_v36, 4  ;;  %v3569_v13 = vadd.f32 %v3568_v14, %v3567_v26  ;;  %7511 = vmatprep.mubr.msk.f32.mxu0 %vm1839_vm7, %v10170_v29 }
 0x49c   : > { %v3561_v57 = vrot.slane %v3560_v52, 1  ;;  %v3575_v1 = vrot.slane %v3574_v23, 4  ;;  %v3397_v18 = vsel %vm1839_vm7, %v3316_v58, 0.0  ;;  %v3377_v45 = vadd.f32 %v3376_v50, %v10114_v19  ;;  %v7106_v58 = vld [vmem:[%s12373_s7 + $0x108] sm:$0xff]  ;;  %v7108_v19 = vld [vmem:[%s12373_s7 + $0x118] sm:$0xff] }
 0x49d   : > { %v3391_v47 = vadd.f32 %v12790_v3, %v10108_v36  ;;  %v3384_v39 = vadd.f32 %v3383_v9, %v10116_v33  ;;  %v3669_v12 = vsel %vm2176_vm8, %v10043_v31, %v10041_v5  ;;  %v3570_v21 = vrot.slane %v3569_v13, 1 }
 0x49e   : > { %v3562_v34 = vadd.f32 %v3561_v57, %v3560_v52  ;;  %v3576_v27 = vadd.f32 %v3575_v1, %v3574_v23  ;;  %v3670_v0 = vsel %vm2178_vm9, %v10065_v37, %v3669_v12  ;;  %7512 = vmatmul.mubr.msk.f32.gmra.mrb[56].mxu0 %vm1839_vm7, %v10172_v43  ;;  %v3396_v8 = vsel %vm1839_vm7, %v3315_v24, 0.0 }
 0x49f   : > { %v3392_v53 = vrot.slane %v3391_v47, 2  ;;  %v3385_v33 = vrot.slane %v3384_v39, 1  ;;  %v3671_v31 = vsel %vm2180_vm10, %v3368_v44, %v3670_v0  ;;  %v3571_v38 = vadd.f32 %v3570_v21, %v3569_v13  ;;  %7514 = vmatprep.mubr.msk.f32.mxu0 %vm1839_vm7, %v10174_v6 }
 0x4a0   : > { %v3705_v36 = vsel %vm2184_vm12, %v3562_v34, %v3704_v40  ;;  %v3577_v61 = vrot.slane %v3576_v27, 2  ;;  %v3672_v37 = vsel %vm2182_vm11, %v3377_v45, %v3671_v31  ;;  %v3398_v25 = vadd.f32 %v3397_v18, %v3396_v8 }
 0x4a1   : > { %v3393_v5 = vadd.f32 %v3392_v53, %v3391_v47  ;;  %v3386_v41 = vadd.f32 %v3385_v33, %v3384_v39  ;;  %v7794_v32 = vpack.c.bf16 %v7108_v19, %v7106_v58  ;;  %v3706_v20 = vsel %vm2186_vm13, %v3571_v38, %v3705_v36 }
 0x4a2   : > { %v3578_v11 = vadd.f32 %v3577_v61, %v3576_v27  ;;  %v3399_v35 = vrot.slane %v3398_v25, 4  ;;  %7515 = vmatmul.mubr.msk.f32.gmra.mrb[58].mxu0 %vm1839_vm7, %v10176_v60  ;;  %v3405_v52 = vsel %vm1839_vm7, %v10166_v10, 0.0  ;;  %v3406_v26 = vsel %vm1839_vm7, %v10168_v28, 0.0 }
 0x4a3   : > { %v3394_v54 = vrot.slane %v3393_v5, 1  ;;  %v3673_v24 = vsel %vm2184_vm12, %v3386_v41, %v3672_v37  ;;  %7795 = vmatprep.subr.bf16.mxu1 %v7794_v32  ;;  %7517 = vmatprep.mubr.msk.f32.mxu0 %vm1839_vm7, %v10178_v56  ;;  %v3407_v55 = vadd.f32 %v3406_v26, %v3405_v52  ;;  %v3414_v7 = vsel %vm1839_vm7, %v10170_v29, 0.0 }
 0x4a4   : > { %v3579_v16 = vrot.slane %v3578_v11, 1  ;;  %v3400_v49 = vadd.f32 %v3399_v35, %v3398_v25  ;;  %v3415_v44 = vsel %vm1839_vm7, %v10172_v43, 0.0  ;;  %v3423_v10 = vsel %vm1839_vm7, %v10174_v6, 0.0 }
 0x4a5   : > { %v3395_v51 = vadd.f32 %v3394_v54, %v3393_v5  ;;  %v3424_v28 = vsel %vm1839_vm7, %v10176_v60, 0.0  ;;  %v3408_v23 = vrot.slane %v3407_v55, 4  ;;  %v3416_v62 = vadd.f32 %v3415_v44, %v3414_v7 }
 0x4a6   : > { %v3580_v57 = vadd.f32 %v3579_v16, %v3578_v11  ;;  %v3401_v14 = vrot.slane %v3400_v49, 2  ;;  %7518 = vmatmul.mubr.msk.f32.gmra.mrb[60].mxu0 %vm1839_vm7, %v10180_v15  ;;  %v3425_v40 = vadd.f32 %v3424_v28, %v3423_v10  ;;  %v3432_v29 = vsel %vm1839_vm7, %v10178_v56, 0.0 }
 0x4a7   : > { %v3674_v30 = vsel %vm2186_vm13, %v3395_v51, %v3673_v24  ;;  %v3433_v43 = vsel %vm1839_vm7, %v10180_v15, 0.0  ;;  %v3441_v6 = vsel %vm1839_vm7, %v10182_v42, 0.0  ;;  %7520 = vmatprep.mubr.msk.f32.mxu0 %vm1839_vm7, %v10182_v42  ;;  %v3409_v9 = vadd.f32 %v3408_v23, %v3407_v55 }
 0x4a8   : > { %v3707_v50 = vsel %vm2188_vm14, %v3580_v57, %v3706_v20  ;;  %v3402_v60 = vadd.f32 %v3401_v14, %v3400_v49  ;;  %v3417_v3 = vrot.slane %v3416_v62, 4  ;;  %v3426_v47 = vrot.slane %v3425_v40, 4 }
 0x4a9   : > { %3715 = vrot.lane.b32.xlu0 %v3707_v50, %s12654_s29  ;;  %v3434_v34 = vadd.f32 %v3433_v43, %v3432_v29  ;;  %v3442_v56 = vsel %vm1839_vm7, %v10184_v22, 0.0  ;;  %v3450_v15 = vsel %vm1839_vm7, %v10186_v46, 0.0  ;;  %v3410_v1 = vrot.slane %v3409_v9, 2 }
 0x4aa   : > { %v3403_v13 = vrot.slane %v3402_v60, 1  ;;  %v3418_v18 = vadd.f32 %v3417_v3, %v3416_v62  ;;  %v3443_v45 = vadd.f32 %v3442_v56, %v3441_v6  ;;  %7521 = vmatmul.mubr.msk.f32.gmra.mrb[62].mxu0 %vm1839_vm7, %v10184_v22  ;;  %v3427_v42 = vadd.f32 %v3426_v47, %v3425_v40 }
 0x4ab   : > { %v3435_v39 = vrot.slane %v3434_v34, 4  ;;  %v3451_v53 = vsel %vm1839_vm7, %v10188_v2, 0.0  ;;  %v3459_v12 = vsel %vm1839_vm7, %v10190_v63, 0.0  ;;  %7523 = vmatprep.mubr.msk.f32.mxu0 %vm1839_vm7, %v10186_v46  ;;  %v3411_v27 = vadd.f32 %v3410_v1, %v3409_v9 }
 0x4ac   : > { %v3404_v21 = vadd.f32 %v3403_v13, %v3402_v60  ;;  %v3419_v36 = vrot.slane %v3418_v18, 2  ;;  %v3444_v0 = vrot.slane %v3443_v45, 4  ;;  %v3428_v58 = vrot.slane %v3427_v42, 2 }
 0x4ad   : > { %v3436_v19 = vadd.f32 %v3435_v39, %v3434_v34  ;;  %v3452_v33 = vadd.f32 %v3451_v53, %v3450_v15  ;;  %v3460_v22 = vsel %vm1839_vm7, %v10192_v4, 0.0  ;;  %v3412_v31 = vrot.slane %v3411_v27, 1  ;;  %v7110_v39 = vld [vmem:[%s12373_s7 + $0x128] sm:$0xff]  ;;  %v7112_v53 = vld [vmem:[%s12373_s7 + $0x138] sm:$0xff] }
 0x4ae   : > { %v10367_v5 = vsel %vm2188_vm14, %v3404_v21, %v3674_v30  ;;  %v3420_v8 = vadd.f32 %v3419_v36, %v3418_v18  ;;  %v3445_v38 = vadd.f32 %v3444_v0, %v3443_v45  ;;  %7524 = vmatmul.mubr.msk.f32.gmra.mrb[64].mxu0 %vm1839_vm7, %v10188_v2  ;;  %v3429_v46 = vadd.f32 %v3428_v58, %v3427_v42  ;;  %v12791_v2 = vld [vmem:[#allocation13_spill] sm:$0xff]  ;;  %v7107_v42 = vld [vmem:[%s12373_s7 + $0x110] sm:$0xff] }
 0x4af   : > { %v3437_v61 = vrot.slane %v3436_v19, 2  ;;  %v3453_v37 = vrot.slane %v3452_v33, 4  ;;  %v3461_v25 = vadd.f32 %v3460_v22, %v3459_v12  ;;  %7526 = vmatprep.mubr.msk.f32.mxu0 %vm1839_vm7, %v10190_v63  ;;  %v3413_v41 = vadd.f32 %v3412_v31, %v3411_v27  ;;  %v7105_v45 = vld [vmem:[%s12373_s7 + $0x100] sm:$0xff]  ;;  %v7111_v58 = vld [vmem:[%s12373_s7 + $0x130] sm:$0xff]  ;;  %v7116_v22 = vld [vmem:[%s12373_s7 + $0x158] sm:$0xff] }
 0x4b0   : > { %v3421_v54 = vrot.slane %v3420_v8, 1  ;;  %v3446_v32 = vrot.slane %v3445_v38, 2  ;;  %v3468_v11 = vsel %vm1839_vm7, %v10194_v48, 0.0  ;;  %v3430_v20 = vrot.slane %v3429_v46, 1  ;;  %v7109_v0 = vld [vmem:[%s12373_s7 + $0x120] sm:$0xff] }
 0x4b1   : > { %v3438_v35 = vadd.f32 %v3437_v61, %v3436_v19  ;;  %v3454_v51 = vadd.f32 %v3453_v37, %v3452_v33  ;;  %v3462_v24 = vrot.slane %v3461_v25, 4  ;;  %v3469_v16 = vsel %vm1839_vm7, %v12791_v2, 0.0  ;;  %v7114_v33 = vld [vmem:[%s12373_s7 + $0x148] sm:$0xff]  ;;  %v7115_v61 = vld [vmem:[%s12373_s7 + $0x150] sm:$0xff] }
 0x4b2   : > { %v3422_v52 = vadd.f32 %v3421_v54, %v3420_v8  ;;  %v3447_v26 = vadd.f32 %v3446_v32, %v3445_v38  ;;  %7527 = vmatmul.mubr.msk.f32.gmra.mrb[66].mxu0 %vm1839_vm7, %v10192_v4  ;;  %v3431_v49 = vadd.f32 %v3430_v20, %v3429_v46  ;;  %v3470_v44 = vadd.f32 %v3469_v16, %v3468_v11  ;;  %v7118_v37 = vld [vmem:[%s12373_s7 + $0x168] sm:$0xff]  ;;  %v7117_v32 = vld [vmem:[%s12373_s7 + $0x160] sm:$0xff]  ;;  %v7119_v11 = vld [vmem:[%s12373_s7 + $0x170] sm:$0xff] }
 0x4b3   : > { %v3439_v63 = vrot.slane %v3438_v35, 1  ;;  %v3455_v55 = vrot.slane %v3454_v51, 2  ;;  %v3463_v7 = vadd.f32 %v3462_v24, %v3461_v25  ;;  %7529 = vmatprep.mubr.msk.f32.mxu0 %vm1839_vm7, %v10194_v48  ;;  %v7796_v12 = vpack.c.bf16 %v7107_v42, %v7105_v45  ;;  %v7120_v25 = vld [vmem:[%s12373_s7 + $0x178] sm:$0xff]  ;;  %v7122_v20 = vld [vmem:[%s12373_s7 + $0x188] sm:$0xff]  ;;  %v7121_v16 = vld [vmem:[%s12373_s7 + $0x180] sm:$0xff] }
 0x4b4   : > { %v3448_v30 = vrot.slane %v3447_v26, 1  ;;  %v3676_v10 = vsel %vm2176_vm8, %v3422_v52, %v3413_v41  ;;  %v3471_v40 = vrot.slane %v3470_v44, 4  ;;  %v7798_v36 = vpack.c.bf16 %v7112_v53, %v7110_v39 }
 0x4b5   : > { %v3440_v28 = vadd.f32 %v3439_v63, %v3438_v35  ;;  %v3456_v57 = vadd.f32 %v3455_v55, %v3454_v51  ;;  %v3464_v14 = vrot.slane %v3463_v7, 2  ;;  %v3677_v23 = vsel %vm2178_vm9, %v3431_v49, %v3676_v10  ;;  %v7124_v35 = vld [vmem:[%s12373_s7 + $0x198] sm:$0xff]  ;;  %v7123_v49 = vld [vmem:[%s12373_s7 + $0x190] sm:$0xff]  ;;  %v7126_v63 = vld [vmem:[%s12373_s7 + $0x1a8] sm:$0xff] }
 0x4b6   : > { %v3449_v62 = vadd.f32 %v3448_v30, %v3447_v26  ;;  %7530 = vmatmul.mubr.msk.f32.gmra.mrb[68].mxu0 %vm1839_vm7, %v12791_v2  ;;  %v3472_v6 = vadd.f32 %v3471_v40, %v3470_v44  ;;  %v12792_v8 = vmov 0.0   ;;  %v7800_v38 = vpack.c.bf16 %v7111_v58, %v7109_v0  ;;  %v7128_v55 = vld [vmem:[%s12373_s7 + $0x1b8] sm:$0xff] }
 0x4b7   : > { %v3457_v4 = vrot.slane %v3456_v57, 1  ;;  %v3465_v29 = vadd.f32 %v3464_v14, %v3463_v7  ;;  %v3678_v43 = vsel %vm2180_vm10, %v3440_v28, %v3677_v23  ;;  %v7802_v46 = vpack.c.bf16 %v7116_v22, %v7114_v33  ;;  %v7127_v14 = vld [vmem:[%s12373_s7 + $0x1b0] sm:$0xff]  ;;  %v7130_v23 = vld [vmem:[%s12373_s7 + $0x1c8] sm:$0xff] }
 0x4b8   : > { %v3679_v48 = vsel %vm2182_vm11, %v3449_v62, %v3678_v43  ;;  %v3473_v9 = vrot.slane %v3472_v6, 2  ;;  %v7806_v54 = vpack.c.bf16 %v7120_v25, %v7118_v37  ;;  %v7808_v24 = vpack.c.bf16 %v7119_v11, %v7117_v32  ;;  %v7132_v62 = vld [vmem:[%s12373_s7 + $0x1d8] sm:$0xff] }
 0x4b9   : > { %v3458_v50 = vadd.f32 %v3457_v4, %v3456_v57  ;;  %v3466_v60 = vrot.slane %v3465_v29, 1  ;;  %v7810_v2 = vpack.c.bf16 %v7124_v35, %v7122_v20  ;;  %v7812_v30 = vpack.c.bf16 %v7123_v49, %v7121_v16  ;;  %v7125_v57 = vld [vmem:[%s12373_s7 + $0x1a0] sm:$0xff]  ;;  %v7140_v49 = vld [vmem:[%s12371_s5 + $0x98] sm:$0xff] }
 0x4ba   : > { %v3474_v34 = vadd.f32 %v3473_v9, %v3472_v6  ;;  %v7814_v28 = vpack.c.bf16 %v7128_v55, %v7126_v63  ;;  %v7816_v4 = vpack.c.bf16 %v7127_v14, %v7125_v57  ;;  %v7818_v6 = vpack.c.bf16 %v7132_v62, %v7130_v23  ;;  %v7136_v9 = vld [vmem:[%s12373_s7 + $0x1f8] sm:$0xff]  ;;  %v7141_v55 = vld [vmem:[%s12371_s5 + $0xa0] sm:$0xff]  ;;  %v7143_v62 = vld [vmem:[%s12371_s5 + $0xb0] sm:$0xff] }
 0x4bb   : > { %v3467_v3 = vadd.f32 %v3466_v60, %v3465_v29  ;;  %v3680_v47 = vsel %vm2184_vm12, %v3458_v50, %v3679_v48  ;;  %v7129_v48 = vld [vmem:[%s12373_s7 + $0x1c0] sm:$0xff]  ;;  %v7131_v50 = vld [vmem:[%s12373_s7 + $0x1d0] sm:$0xff]  ;;  %v7134_v60 = vld [vmem:[%s12373_s7 + $0x1e8] sm:$0xff] }
 0x4bc   : > { %v3475_v15 = vrot.slane %v3474_v34, 1 }
 0x4bd   : > { %v3681_v56 = vsel %vm2186_vm13, %v3467_v3, %v3680_v47  ;;  %v7820_v47 = vpack.c.bf16 %v7131_v50, %v7129_v48  ;;  %v12793_v48 = vld [vmem:[#allocation7_spill] sm:$0xff] }
 0x4be   : > { %v3476_v13 = vadd.f32 %v3475_v15, %v3474_v34  ;;  %v7822_v15 = vpack.c.bf16 %v7136_v9, %v7134_v60  ;;  %v12794_v60 = vld [vmem:[#allocation10_spill] sm:$0xff] }
 0x4c0   : > { %v3682_v1 = vsel %vm2188_vm14, %v3476_v13, %v3681_v56  ;;  %v7133_v13 = vld [vmem:[%s12373_s7 + $0x1e0] sm:$0xff] }
 0x50a   : > { %v3718_v18 = vpop.permute.xlu1 %3717 }
 0x50b   : > { %v3722_v21 = vsel %vm1839_vm7, %v3682_v1, %v3718_v18  ;;  %v7135_v1 = vld [vmem:[%s12373_s7 + $0x1f0] sm:$0xff] }
 0x50c   : > { %v7824_v18 = vpack.c.bf16 %v7135_v1, %v7133_v13  ;;  %v12795_v1 = vld [vmem:[#allocation5_spill] sm:$0xff] }
 0x51b   : > { %v3716_v27 = vpop.permute.xlu0 %3715 }
 0x51c   : > { %v3721_v19 = vsel %vm1839_vm7, %v10367_v5, %v3716_v27  ;;  %v7113_v5 = vld [vmem:[%s12373_s7 + $0x140] sm:$0xff] }
 0x51d   : > { %4158 = vmatmul.mubr.f32.vlgmr.msra.gmra.mrb[6].mxu1 %v3721_v19  ;;  %v3723_v31 = vadd.f32 %v3722_v21, %v3721_v19  ;;  %v7804_v41 = vpack.c.bf16 %v7115_v61, %v7113_v5 }
 0x51e   : > { %7797 = vmatpush1.bf16.msra.mxu1 %v7796_v12  ;;  %4163 = vmatprep.mubr.f32.mxu1 %v12792_v8 }
 0x51f   : > { %7799 = vmatprep.subr.bf16.mxu1 %v7798_v36  ;;  %v3724_v26 = vrot.slane %v3723_v31, 4 }
 0x521   : > { %4164 = vmatmul.mubr.f32.gmra.mrb[8].mxu1 %v3722_v21  ;;  %v3725_v10 = vadd.f32 %v3724_v26, %v3723_v31  ;;  %v7138_v26 = vld [vmem:[%s12371_s5 + $0x88] sm:$0xff] }
 0x522   : > { %7801 = vmatpush1.bf16.msra.mxu1 %v7800_v38  ;;  %4277 = vmatprep.mubr.f32.mxu1 %v12792_v8 }
 0x523   : > { %7803 = vmatprep.subr.bf16.mxu1 %v7802_v46  ;;  %v3726_v43 = vrot.slane %v3725_v10, 2 }
 0x525   : > { %v10443_v51 = vpop.f32.mrb[38].mxu0  ;;  %v3727_v56 = vadd.f32 %v3726_v43, %v3725_v10 }
 0x526   : > { %7805 = vmatpush1.bf16.msra.mxu1 %v7804_v41  ;;  %v10445_v52 = vpop.f32.mrb[39].mxu0 }
 0x527   : > { %7807 = vmatprep.subr.bf16.mxu1 %v7806_v54  ;;  %v3728_v45 = vrot.slane %v3727_v56, 1 }
 0x529   : > { %v10459_v7 = vpop.f32.mrb[40].mxu0  ;;  %v3729_v39 = vadd.f32 %v3728_v45, %v3727_v56 }
 0x52a   : > { %7809 = vmatpush1.bf16.msra.mxu1 %v7808_v24  ;;  %v10461_v44 = vpop.f32.mrb[41].mxu0  ;;  %v7137_v24 = vld [vmem:[%s12371_s5 + $0x80] sm:$0xff] }
 0x52b   : > { %7811 = vmatprep.subr.bf16.mxu1 %v7810_v2  ;;  %v7139_v2 = vld [vmem:[%s12371_s5 + $0x90] sm:$0xff]  ;;  %v7826_v16 = vpack.c.bf16 %v7138_v26, %v7137_v24 }
 0x52c   : > { %v7830_v63 = vpack.c.bf16 %v7140_v49, %v7139_v2  ;;  %v12796_v49 = vld [vmem:[#allocation38_spill] sm:$0xff] }
 0x52d   : > { %v10475_v40 = vpop.f32.mrb[42].mxu0  ;;  %7827 = vmatprep.subr.bf16.mxu0 %v7826_v16 }
 0x52e   : > { %7813 = vmatpush1.bf16.msra.mxu1 %v7812_v30  ;;  %v10477_v29 = vpop.f32.mrb[43].mxu0  ;;  %v7142_v30 = vld [vmem:[%s12371_s5 + $0xa8] sm:$0xff]  ;;  %7829 = vmatpush3.bf16.msra.mxu0 %v7826_v16 }
 0x52f   : > { %7815 = vmatprep.subr.bf16.mxu1 %v7814_v28  ;;  %7831 = vmatprep.subr.bf16.mxu0 %v7830_v63  ;;  %v7834_v10 = vpack.c.bf16 %v7142_v30, %v7141_v55 }
 0x531   : > { %v10491_v3 = vpop.f32.mrb[44].mxu0 }
 0x532   : > { %7817 = vmatpush1.bf16.msra.mxu1 %v7816_v4  ;;  %v10493_v34 = vpop.f32.mrb[45].mxu0  ;;  %7833 = vmatpush3.bf16.msra.mxu0 %v7830_v63  ;;  %v7144_v4 = vld [vmem:[%s12371_s5 + $0xb8] sm:$0xff] }
 0x533   : > { %7819 = vmatprep.subr.bf16.mxu1 %v7818_v6  ;;  %7835 = vmatprep.subr.bf16.mxu0 %v7834_v10  ;;  %v7838_v43 = vpack.c.bf16 %v7144_v4, %v7143_v62  ;;  %v8011_v6 = vld [vmem:[%s12374_s8] sm:$0xff] }
 0x534   : > { %v4206_v50 = vrot.slane %v8011_v6, %v12793_v48  ;;  %v4210_v9 = vrot.slane %v8011_v6, %v12794_v60 }
 0x536   : > { %7821 = vmatpush1.bf16.msra.mxu1 %v7820_v47  ;;  %7837 = vmatpush3.bf16.msra.mxu0 %v7834_v10 }
 0x537   : > { %7823 = vmatprep.subr.bf16.mxu1 %v7822_v15  ;;  %7839 = vmatprep.subr.bf16.mxu0 %v7838_v43 }
 0x53a   : > { %7825 = vmatpush1.bf16.msra.mxu1 %v7824_v18  ;;  %v10501_v42 = vpop.f32.mrb[46].mxu0  ;;  %7841 = vmatpush3.bf16.msra.mxu0 %v7838_v43 }
 0x53b   : > { %v10503_v53 = vpop.f32.mrb[47].mxu0 }
 0x53d   : > { %4278 = vmatmul.mubr.f32.vlgmr.msra.gmra.mrb[10].mxu1 %v3729_v39 }
 0x53e   : > { %v10505_v12 = vpop.f32.mrb[48].mxu0  ;;  %5646 = vmatprep.mubr.f32.mxu1 %v12792_v8  ;;  %v12814_v8 = vld [vmem:[#allocation20_spill] sm:$0xff] }
 0x53f   : > { %v10508_v21 = vpop.f32.mrb[49].mxu0 }
 0x542   : > { %v10510_v27 = vpop.f32.mrb[50].mxu0 }
 0x543   : > { %v10512_v36 = vpop.f32.mrb[51].mxu0 }
 0x569   : > { %v10514_v0 = vpop.f32.mrb[52].mxu0 }
 0x56a   : > { %v10516_v58 = vpop.f32.mrb[53].mxu0 }
 0x56d   : > { %v10518_v19 = vpop.f32.mrb[54].mxu0 }
 0x56e   : > { %v10520_v33 = vpop.f32.mrb[55].mxu0 }
 0x571   : > { %v10522_v22 = vpop.f32.mrb[56].mxu0 }
 0x572   : > { %v10524_v31 = vpop.f32.mrb[57].mxu0 }
 0x575   : > { %v10526_v38 = vpop.f32.mrb[58].mxu0 }
 0x576   : > { %v10528_v46 = vpop.f32.mrb[59].mxu0 }
 0x579   : > { %v10530_v5 = vpop.f32.mrb[60].mxu0 }
 0x57a   : > { %v10532_v61 = vpop.f32.mrb[61].mxu0 }
 0x57d   : > { %v10534_v37 = vpop.f32.mrb[62].mxu0 }
 0x57e   : > { %v10536_v25 = vpop.f32.mrb[63].mxu0 }
 0x581   : > { %v10538_v41 = vpop.f32.mrb[64].mxu0 }
 0x582   : > { %v10540_v54 = vpop.f32.mrb[65].mxu0 }
 0x585   : > { %v10542_v32 = vpop.f32.mrb[66].mxu0 }
 0x586   : > { %v10544_v11 = vpop.f32.mrb[67].mxu0 }
 0x589   : > { %v10546_v20 = vpop.f32.mrb[68].mxu0 }
 0x58a   : > { %v10548_v35 = vpop.f32.mrb[69].mxu0 }
 0x5f0   : > { %v4159_v28 = vpop.f32.mrb[6].mxu1 }
 0x5f1   : > { %v4161_v57 = vpop.f32.mrb[7].mxu1 }
 0x5f4   : > { %v4165_v14 = vpop.f32.mrb[8].mxu1 }
 0x5f5   : > { %v4167_v23 = vpop.f32.mrb[9].mxu1 }
 0x610   : > { %v4279_v47 = vpop.f32.mrb[10].mxu1 }
 0x611   : > { %v4280_v56 = vadd.f32 %v4279_v47, %v4206_v50  ;;  %v4281_v15 = vpop.f32.mrb[11].mxu1 }
 0x612   : > { %v4282_v13 = vadd.f32 %v4281_v15, %v4210_v9 }
 0x613   : > { %v4287_v18 = vrot.slane %v4280_v56, %v12795_v1 }
 0x614   : > { %v4291_v45 = vrot.slane %v4282_v13, %v12795_v1 }
 0x615   : > { %v4292_v39 = vadd.f32 %v4287_v18, %v4159_v28  ;;  %v4294_v24 = vadd.f32 %v4287_v18, %v4165_v14 }
 0x616   : > { %v10581_v26 = vadd.f32 %v4291_v45, %v4161_v57  ;;  %v10583_v2 = vadd.f32 %v4291_v45, %v4167_v23 }
 0x617   : > { %v4298_v16 = vcombine.high %v4292_v39, %v4292_v39  ;;  %v4305_v63 = vrot.slane %v4292_v39, %v12796_v49  ;;  %v4347_v55 = vcombine.high %v4294_v24, %v4294_v24  ;;  %v4354_v30 = vrot.slane %v4294_v24, %v12796_v49  ;;  %4610 = vrot.lane.b32.xlu1 %v4294_v24, %s12654_s29 }
 0x618   : > { %4608 = vrot.lane.b32.xlu0 %v4292_v39, %s12654_s29 }
 0x619   : > { %v4312_v10 = vrot.slane %v4298_v16, %v12796_v49  ;;  %v4321_v62 = vrot.slane %v4305_v63, %v12796_v49  ;;  %v4361_v28 = vrot.slane %v4347_v55, %v12796_v49  ;;  %v4362_v57 = vcombine.high %v4354_v30, %v4354_v30 }
 0x61a   : > { %v4370_v14 = vrot.slane %v4354_v30, %v12796_v49 }
 0x61b   : > { %v4314_v23 = vcombine.high %v4312_v10, %v4312_v10  ;;  %v4363_v4 = vcombine.high %v4361_v28, %v4361_v28  ;;  %v4377_v43 = vrot.slane %v4361_v28, %v12796_v49  ;;  %v4384_v6 = vrot.slane %v4362_v57, %v12796_v49 }
 0x61c   : > { %v4392_v48 = vcombine.high %v4370_v14, %v4370_v14  ;;  %v4499_v60 = vrot.slane %v4321_v62, %v12795_v1  ;;  %v4531_v15 = vrot.slane %v4370_v14, %v12795_v1 }
 0x61d   : > { %v4342_v50 = vrot.slane %v4314_v23, %v12796_v49  ;;  %v4391_v9 = vrot.slane %v4363_v4, %v12796_v49  ;;  %v4393_v47 = vcombine.high %v4377_v43, %v4377_v43  ;;  %v4394_v56 = vcombine.high %v4384_v6, %v4384_v6 }
 0x61e   : > { %v4535_v18 = vrot.slane %v4384_v6, %v12795_v1  ;;  %v4539_v45 = vrot.slane %v4392_v48, %v12795_v1  ;;  %v4547_v39 = vrot.slane %v4377_v43, %v12795_v1  ;;  %v10607_v57 = vadd.f32 %v10443_v51, %v4499_v60 }
 0x61f   : > { %v4346_v13 = vcombine.high %v4342_v50, %v4342_v50  ;;  %v4395_v24 = vcombine.high %v4391_v9, %v4391_v9  ;;  %v4543_v16 = vrot.slane %v4394_v56, %v12795_v1  ;;  %v4551_v55 = vrot.slane %v4391_v9, %v12795_v1 }
 0x620   : > { %v4555_v30 = vrot.slane %v4393_v47, %v12795_v1  ;;  %v10610_v14 = vadd.f32 %v4531_v15, %v10520_v33  ;;  %v10613_v23 = vadd.f32 %v10518_v19, %v4531_v15  ;;  %v10617_v43 = vadd.f32 %v4535_v18, %v10524_v31 }
 0x621   : > { %v4527_v28 = vrot.slane %v4346_v13, %v12795_v1  ;;  %v4559_v4 = vrot.slane %v4395_v24, %v12795_v1  ;;  %v10620_v6 = vadd.f32 %v10522_v22, %v4535_v18  ;;  %v10623_v48 = vadd.f32 %v4539_v45, %v10528_v46 }
 0x622   : > { %12797 = vst [vmem:[#allocation43_spill] sm:$0xff] %v10613_v23  ;;  %12798 = vst [vmem:[#allocation44_spill] sm:$0xff] %v10617_v43  ;;  %v10632_v19 = vadd.f32 %v10526_v38, %v4539_v45  ;;  %v10635_v9 = vadd.f32 %v4543_v16, %v10532_v61  ;;  %v10638_v31 = vadd.f32 %v10530_v5, %v4543_v16 }
 0x623   : > { %12799 = vst [vmem:[#allocation15_spill] sm:$0xff] %v10620_v6  ;;  %12800 = vst [vmem:[#allocation46_spill] sm:$0xff] %v10623_v48  ;;  %v10626_v51 = vadd.f32 %v4527_v28, %v10516_v58  ;;  %v10629_v33 = vadd.f32 %v10514_v0, %v4527_v28  ;;  %v10641_v22 = vadd.f32 %v4547_v39, %v10536_v25  ;;  %v12861_v6 = vld [vmem:[#allocation32_spill] sm:$0xff] }
 0x624   : > { %12803 = vst [vmem:[#allocation12_spill] sm:$0xff] %v10632_v19  ;;  %12804 = vst [vmem:[#allocation14_spill] sm:$0xff] %v10635_v9  ;;  %v10644_v46 = vadd.f32 %v10534_v37, %v4547_v39  ;;  %v10647_v58 = vadd.f32 %v4551_v55, %v10540_v54  ;;  %v10650_v0 = vadd.f32 %v10538_v41, %v4551_v55  ;;  %v12860_v19 = vld [vmem:[#allocation29_spill] sm:$0xff] }
 0x625   : > { %12801 = vst [vmem:[#allocation41_spill] sm:$0xff] %v10626_v51  ;;  %12802 = vst [vmem:[#allocation40_spill] sm:$0xff] %v10629_v33  ;;  %v10653_v38 = vadd.f32 %v4555_v30, %v10544_v11  ;;  %v10656_v61 = vadd.f32 %v10542_v32, %v4555_v30  ;;  %v10659_v5 = vadd.f32 %v4559_v4, %v10548_v35  ;;  %v7187_v33 = vld [vmem:[%s12372_s6 + $0x250] sm:$0xff] }
 0x626   : > { %12805 = vst [vmem:[#allocation47_spill] sm:$0xff] %v10638_v31  ;;  %12806 = vst [vmem:[#allocation48_spill] sm:$0xff] %v10641_v22  ;;  %v10662_v25 = vadd.f32 %v10546_v20, %v4559_v4  ;;  %v4313_v37 = vcombine.high %v4305_v63, %v4305_v63  ;;  %v4343_v54 = vcombine.high %v4321_v62, %v4321_v62  ;;  %v12859_v22 = vld [vmem:[#allocation30_spill] sm:$0xff] }
 0x627   : > { %12807 = vst [vmem:[#allocation49_spill] sm:$0xff] %v10644_v46  ;;  %12808 = vst [vmem:[#allocation50_spill] sm:$0xff] %v10647_v58  ;;  %v4328_v56 = vrot.slane %v4312_v10, %v12796_v49  ;;  %v10667_v15 = vadd.f32 %v4499_v60, %v10445_v52  ;;  %v12858_v58 = vld [vmem:[#allocation27_spill] sm:$0xff] }
 0x628   : > { %12809 = vst [vmem:[#allocation51_spill] sm:$0xff] %v10650_v0  ;;  %12810 = vst [vmem:[#allocation17_spill] sm:$0xff] %v10653_v38  ;;  %v4335_v47 = vrot.slane %v4313_v37, %v12796_v49  ;;  %v4507_v32 = vrot.slane %v4343_v54, %v12795_v1 }
 0x629   : > { %12811 = vst [vmem:[#allocation52_spill] sm:$0xff] %v10656_v61  ;;  %12812 = vst [vmem:[#allocation42_spill] sm:$0xff] %v10659_v5  ;;  %v4515_v13 = vrot.slane %v4328_v56, %v12795_v1  ;;  %v4344_v20 = vcombine.high %v4328_v56, %v4328_v56  ;;  %v12825_v61 = vld [vmem:[#allocation56_spill] sm:$0xff] }
 0x62a   : > { %12813 = vst [vmem:[#allocation6_spill] sm:$0xff] %v10662_v25  ;;  %v4345_v41 = vcombine.high %v4335_v47, %v4335_v47  ;;  %v4503_v11 = vrot.slane %v4335_v47, %v12795_v1  ;;  %v10680_v10 = vadd.f32 %v4507_v32, %v10477_v29  ;;  %v10683_v52 = vadd.f32 %v10475_v40, %v4507_v32  ;;  %v7177_v32 = vld [vmem:[%s12372_s6 + $0x200] sm:$0xff] }
 0x62b   : > { %v10692_v45 = vadd.f32 %v4515_v13, %v10503_v53  ;;  %v4523_v29 = vrot.slane %v4344_v20, %v12795_v1  ;;  %v12823_v25 = vld [vmem:[#allocation37_spill] sm:$0xff] }
 0x62c   : > { %v4511_v35 = vrot.slane %v4345_v41, %v12795_v1  ;;  %v10674_v63 = vadd.f32 %v4503_v11, %v10461_v44  ;;  %v10677_v62 = vadd.f32 %v10459_v7, %v4503_v11  ;;  %v10695_v44 = vadd.f32 %v10501_v42, %v4515_v13  ;;  %v7178_v41 = vld [vmem:[%s12372_s6 + $0x208] sm:$0xff]  ;;  %v7180_v11 = vld [vmem:[%s12372_s6 + $0x218] sm:$0xff] }
 0x62d   : > { %v4519_v7 = vrot.slane %v4342_v50, %v12795_v1  ;;  %v4398_v42 = vcombine.high %v10581_v26, %v10581_v26  ;;  %v4447_v50 = vcombine.high %v10583_v2, %v10583_v2 }
 0x62e   : > { %v10686_v60 = vadd.f32 %v4511_v35, %v10493_v34  ;;  %v10689_v18 = vadd.f32 %v10491_v3, %v4511_v35  ;;  %v10706_v34 = vadd.f32 %v4523_v29, %v10512_v36  ;;  %v10709_v3 = vadd.f32 %v10510_v27, %v4523_v29  ;;  %v7179_v29 = vld [vmem:[%s12372_s6 + $0x210] sm:$0xff] }
 0x62f   : > { %v10700_v39 = vadd.f32 %v4519_v7, %v10508_v21  ;;  %v10703_v40 = vadd.f32 %v10505_v12, %v4519_v7  ;;  %v4412_v53 = vrot.slane %v4398_v42, %v12796_v49  ;;  %v4454_v21 = vrot.slane %v10583_v2, %v12796_v49  ;;  %v7182_v42 = vld [vmem:[%s12372_s6 + $0x228] sm:$0xff] }
 0x630   : > { %v4461_v12 = vrot.slane %v4447_v50, %v12796_v49  ;;  %v4405_v36 = vrot.slane %v10581_v26, %v12796_v49  ;;  %v7842_v7 = vpack.c.bf16 %v7180_v11, %v7178_v41  ;;  %v7188_v11 = vld [vmem:[%s12372_s6 + $0x258] sm:$0xff] }
 0x631   : > { %v4414_v24 = vcombine.high %v4412_v53, %v4412_v53  ;;  %v4462_v16 = vcombine.high %v4454_v21, %v4454_v21  ;;  %v4470_v30 = vrot.slane %v4454_v21, %v12796_v49  ;;  %v10733_v26 = vrot.slane %v4412_v53, %v12796_v49  ;;  %v7184_v53 = vld [vmem:[%s12372_s6 + $0x238] sm:$0xff] }
 0x632   : > { %v4463_v55 = vcombine.high %v4461_v12, %v4461_v12  ;;  %v4413_v28 = vcombine.high %v4405_v36, %v4405_v36  ;;  %v10726_v4 = vrot.slane %v4405_v36, %v12796_v49  ;;  %v4477_v2 = vrot.slane %v4461_v12, %v12796_v49  ;;  %v7181_v36 = vld [vmem:[%s12372_s6 + $0x220] sm:$0xff]  ;;  %7843 = vmatprep.subr.bf16.mxu1 %v7842_v7 }
 0x633   : > { %v10722_v27 = vrot.slane %v4414_v24, %v12796_v49  ;;  %v4484_v37 = vrot.slane %v4462_v16, %v12796_v49  ;;  %v4492_v56 = vcombine.high %v4470_v30, %v4470_v30  ;;  %v4681_v21 = vrot.slane %v4470_v30, %v12795_v1  ;;  %v7183_v16 = vld [vmem:[%s12372_s6 + $0x230] sm:$0xff]  ;;  %v7185_v7 = vld [vmem:[%s12372_s6 + $0x240] sm:$0xff] }
 0x634   : > { %v4491_v54 = vrot.slane %v4463_v55, %v12796_v49  ;;  %v4435_v35 = vrot.slane %v4413_v28, %v12796_v49  ;;  %v10748_v20 = vrot.slane %v10726_v4, %v12795_v1  ;;  %v4493_v50 = vcombine.high %v4477_v2, %v4477_v2  ;;  %v7186_v55 = vld [vmem:[%s12372_s6 + $0x248] sm:$0xff] }
 0x635   : > { %v4446_v47 = vcombine.high %v10722_v27, %v10722_v27  ;;  %v4494_v13 = vcombine.high %v4484_v37, %v4484_v37  ;;  %v7844_v24 = vpack.c.bf16 %v7179_v29, %v7177_v32  ;;  %v7846_v12 = vpack.c.bf16 %v7184_v53, %v7182_v42 }
 0x636   : > { %v4443_v28 = vcombine.high %v10726_v4, %v10726_v4  ;;  %v4685_v30 = vrot.slane %v4484_v37, %v12795_v1  ;;  %v4444_v32 = vcombine.high %v10733_v26, %v10733_v26  ;;  %v4495_v29 = vcombine.high %v4491_v54, %v4491_v54 }
 0x637   : > { %v4677_v41 = vrot.slane %v4446_v47, %v12795_v1  ;;  %v4689_v42 = vrot.slane %v4492_v56, %v12795_v1  ;;  %7845 = vmatpush1.bf16.msra.mxu1 %v7844_v24  ;;  %v7848_v53 = vpack.c.bf16 %v7183_v16, %v7181_v36  ;;  %v4445_v49 = vcombine.high %v4435_v35, %v4435_v35  ;;  %v12815_v36 = vld [vmem:[#allocation34_spill] sm:$0xff] }
 0x638   : > { %v4693_v4 = vrot.slane %v4494_v13, %v12795_v1  ;;  %v10782_v47 = vmul.f32 %v10748_v20, %v12814_v8  ;;  %7847 = vmatprep.subr.bf16.mxu1 %v7846_v12  ;;  %v7850_v37 = vpack.c.bf16 %v7188_v11, %v7186_v55  ;;  %v4697_v56 = vrot.slane %v4477_v2, %v12795_v1  ;;  %v7190_v12 = vld [vmem:[%s12372_s6 + $0x268] sm:$0xff]  ;;  %v7192_v55 = vld [vmem:[%s12372_s6 + $0x278] sm:$0xff] }
 0x639   : > { %v4701_v24 = vrot.slane %v4491_v54, %v12795_v1  ;;  %v4705_v13 = vrot.slane %v4493_v50, %v12795_v1  ;;  %v10794_v16 = vmul.f32 %v4681_v21, %v12815_v36  ;;  %v10803_v11 = vmul.f32 %v4677_v41, %v12787_v59  ;;  %v12819_v54 = vld [vmem:[#allocation35_spill] sm:$0xff]  ;;  %v12821_v50 = vld [vmem:[#allocation36_spill] sm:$0xff] }
 0x63a   : > { %v10806_v2 = vmul.f32 %v4677_v41, %v12788_v17  ;;  %v10809_v51 = vmul.f32 %v4681_v21, %v12819_v54  ;;  %v10812_v36 = vmul.f32 %v4685_v30, %v12821_v50  ;;  %v10816_v5 = vmul.f32 %v4685_v30, %v12823_v25  ;;  %v12829_v41 = vld [vmem:[#allocation58_spill] sm:$0xff]  ;;  %v12831_v21 = vld [vmem:[#allocation57_spill] sm:$0xff] }
 0x63b   : > { %12816 = vst [vmem:[#allocation9_spill] sm:$0xff] %v10794_v16  ;;  %12817 = vst [vmem:[#allocation66_spill] sm:$0xff] %v10803_v11  ;;  %v4709_v16 = vrot.slane %v4495_v29, %v12795_v1  ;;  %v10819_v38 = vmul.f32 %v4689_v42, %v12825_v61  ;;  %7849 = vmatpush1.bf16.msra.mxu1 %v7848_v53  ;;  %v7852_v59 = vpack.c.bf16 %v7187_v33, %v7185_v7  ;;  %v12827_v11 = vld [vmem:[#allocation55_spill] sm:$0xff]  ;;  %v7189_v30 = vld [vmem:[%s12372_s6 + $0x260] sm:$0xff] }
 0x63c   : > { %12818 = vst [vmem:[#allocation67_spill] sm:$0xff] %v10806_v2  ;;  %12820 = vst [vmem:[#allocation68_spill] sm:$0xff] %v10809_v51  ;;  %v10822_v0 = vmul.f32 %v4689_v42, %v12827_v11  ;;  %v10825_v17 = vmul.f32 %v4693_v4, %v12829_v41  ;;  %v10828_v2 = vmul.f32 %v4693_v4, %v12831_v21  ;;  %7851 = vmatprep.subr.bf16.mxu1 %v7850_v37  ;;  %v7191_v29 = vld [vmem:[%s12372_s6 + $0x270] sm:$0xff]  ;;  %v12833_v33 = vld [vmem:[#allocation60_spill] sm:$0xff] }
 0x63d   : > { %12822 = vst [vmem:[#allocation69_spill] sm:$0xff] %v10812_v36  ;;  %12824 = vst [vmem:[#allocation70_spill] sm:$0xff] %v10816_v5  ;;  %v7854_v50 = vpack.c.bf16 %v7192_v55, %v7190_v12  ;;  %v10837_v53 = vmul.f32 %v4697_v56, %v12833_v33  ;;  %v12835_v42 = vld [vmem:[#allocation59_spill] sm:$0xff]  ;;  %v4653_v41 = vrot.slane %v4435_v35, %v12795_v1  ;;  %v7194_v37 = vld [vmem:[%s12372_s6 + $0x288] sm:$0xff] }
 0x63e   : > { %12826 = vst [vmem:[#allocation71_spill] sm:$0xff] %v10819_v38  ;;  %12828 = vst [vmem:[#allocation72_spill] sm:$0xff] %v10822_v0  ;;  %v10840_v7 = vmul.f32 %v4697_v56, %v12835_v42  ;;  %v4657_v4 = vrot.slane %v4443_v28, %v12795_v1  ;;  %v7196_v12 = vld [vmem:[%s12372_s6 + $0x298] sm:$0xff]  ;;  %v12837_v55 = vld [vmem:[#allocation62_spill] sm:$0xff]  ;;  %v4661_v56 = vrot.slane %v4445_v49, %v12795_v1 }
 0x63f   : > { %12830 = vst [vmem:[#allocation73_spill] sm:$0xff] %v10825_v17  ;;  %12832 = vst [vmem:[#allocation74_spill] sm:$0xff] %v10828_v2  ;;  %v10851_v21 = vmul.f32 %v4701_v24, %v12837_v55  ;;  %v12839_v33 = vld [vmem:[#allocation61_spill] sm:$0xff]  ;;  %v4665_v35 = vrot.slane %v10733_v26, %v12795_v1  ;;  %v7195_v42 = vld [vmem:[%s12372_s6 + $0x290] sm:$0xff]  ;;  %v4669_v49 = vrot.slane %v10722_v27, %v12795_v1  ;;  %7853 = vmatpush1.bf16.msra.mxu1 %v7852_v59 }
 0x640   : > { %12834 = vst [vmem:[#allocation75_spill] sm:$0xff] %v10837_v53  ;;  %12836 = vst [vmem:[#allocation76_spill] sm:$0xff] %v10840_v7  ;;  %v10854_v11 = vmul.f32 %v4701_v24, %v12839_v33  ;;  %v7193_v28 = vld [vmem:[%s12372_s6 + $0x280] sm:$0xff]  ;;  %v12841_v61 = vld [vmem:[#allocation64_spill] sm:$0xff]  ;;  %v7856_v24 = vpack.c.bf16 %v7191_v29, %v7189_v30  ;;  %v4673_v59 = vrot.slane %v4444_v32, %v12795_v1  ;;  %7855 = vmatprep.subr.bf16.mxu1 %v7854_v50 }
 0x641   : > { %12838 = vst [vmem:[#allocation77_spill] sm:$0xff] %v10851_v21  ;;  %v10866_v25 = vmul.f32 %v4705_v13, %v12841_v61  ;;  %v12843_v55 = vld [vmem:[#allocation63_spill] sm:$0xff]  ;;  %v7198_v26 = vld [vmem:[%s12372_s6 + $0x2a8] sm:$0xff]  ;;  %v7200_v33 = vld [vmem:[%s12372_s6 + $0x2b8] sm:$0xff]  ;;  %v7858_v30 = vpack.c.bf16 %v7196_v12, %v7194_v37  ;;  %v10947_v46 = vmul.f32 %v4669_v49, %v12858_v58  ;;  %v10950_v31 = vmul.f32 %v4669_v49, %v12859_v22 }
 0x642   : > { %12840 = vst [vmem:[#allocation16_spill] sm:$0xff] %v10854_v11  ;;  %v10869_v54 = vmul.f32 %v4705_v13, %v12843_v55  ;;  %v10882_v61 = vld [vmem:[%s12372_s6 + $0x2a0] sm:$0xff]  ;;  %v7199_v29 = vld [vmem:[%s12372_s6 + $0x2b0] sm:$0xff]  ;;  %v12852_v12 = vld [vmem:[#allocation22_spill] sm:$0xff]  ;;  %v7860_v9 = vpack.c.bf16 %v7195_v42, %v7193_v28  ;;  %v10953_v48 = vmul.f32 %v4673_v59, %v12860_v19  ;;  %v10956_v43 = vmul.f32 %v4673_v59, %v12861_v6 }
 0x643   : > { %12842 = vst [vmem:[#allocation45_spill] sm:$0xff] %v10866_v25  ;;  %v12845_v13 = vld [vmem:[#allocation65_spill] sm:$0xff]  ;;  %v10897_v25 = vld [vmem:[%s12372_s6 + $0x2c8] sm:$0xff]  ;;  %v4730_v1 = vmul.f32 %v4657_v4, %v12852_v12  ;;  %v10915_v11 = vld [vmem:[%s12372_s6 + $0x2d0] sm:$0xff]  ;;  %7857 = vmatpush1.bf16.msra.mxu1 %v7856_v24  ;;  %v7862_v23 = vpack.c.bf16 %v7200_v33, %v7198_v26 }
 0x644   : > { %12844 = vst [vmem:[#allocation53_spill] sm:$0xff] %v10869_v54  ;;  %v10885_v55 = vmul.f32 %v4709_v16, %v12845_v13  ;;  %v12847_v54 = vld [vmem:[#allocation39_spill] sm:$0xff]  ;;  %v7204_v13 = vld [vmem:[%s12372_s6 + $0x2d8] sm:$0xff]  ;;  %v12851_v50 = vld [vmem:[#allocation21_spill] sm:$0xff]  ;;  %7859 = vmatprep.subr.bf16.mxu1 %v7858_v30 }
 0x645   : > { %v10888_v27 = vmul.f32 %v4709_v16, %v12847_v54  ;;  %v12850_v54 = vld [vmem:[#allocation19_spill] sm:$0xff]  ;;  %v4729_v37 = vmul.f32 %v4653_v41, %v12851_v50  ;;  %v12853_v21 = vld [vmem:[#allocation24_spill] sm:$0xff]  ;;  %v12855_v2 = vld [vmem:[#allocation26_spill] sm:$0xff]  ;;  %v7866_v58 = vpack.c.bf16 %v7204_v13, %v10897_v25 }
 0x646   : > { %12846 = vst [vmem:[#allocation54_spill] sm:$0xff] %v10885_v55  ;;  %v12849_v55 = vld [vmem:[#allocation18_spill] sm:$0xff]  ;;  %v4728_v32 = vmul.f32 %v4653_v41, %v12850_v54  ;;  %v4731_v7 = vmul.f32 %v4657_v4, %v12853_v21  ;;  %v12854_v41 = vld [vmem:[#allocation23_spill] sm:$0xff]  ;;  %v4733_v17 = vmul.f32 %v4661_v56, %v12855_v2  ;;  %v12856_v0 = vld [vmem:[#allocation25_spill] sm:$0xff] }
 0x647   : > { %12848 = vst [vmem:[#allocation13_spill] sm:$0xff] %v10888_v27  ;;  %v4726_v16 = vmul.f32 %v10748_v20, %v12849_v55  ;;  %v10910_v27 = vld [vmem:[%s12372_s6 + $0x2c0] sm:$0xff]  ;;  %v10920_v20 = vld [vmem:[%s12372_s6 + $0x2e8] sm:$0xff]  ;;  %v4732_v53 = vmul.f32 %v4661_v56, %v12854_v41  ;;  %v10926_v38 = vmul.f32 %v4665_v35, %v12856_v0  ;;  %v10931_v5 = vld [vmem:[%s12372_s6 + $0x2f8] sm:$0xff]  ;;  %v7864_v0 = vpack.c.bf16 %v7199_v29, %v10882_v61 }
 0x648   : > { %v10936_v36 = vld [vmem:[%s12372_s6 + $0x2e0] sm:$0xff]  ;;  %v10941_v4 = vld [vmem:[%s12372_s6 + $0x2f0] sm:$0xff]  ;;  %v12857_v51 = vld [vmem:[#allocation28_spill] sm:$0xff]  ;;  %v7868_v49 = vpack.c.bf16 %v10915_v11, %v10910_v27  ;;  %v7870_v42 = vpack.c.bf16 %v10931_v5, %v10920_v20  ;;  %7861 = vmatpush1.bf16.msra.mxu1 %v7860_v9 }
 0x649   : > { %v10944_v56 = vmul.f32 %v4665_v35, %v12857_v51  ;;  %7863 = vmatprep.subr.bf16.mxu1 %v7862_v23 }
 0x64c   : > { %7865 = vmatpush1.bf16.msra.mxu1 %v7864_v0 }
 0x64d   : > { %7867 = vmatprep.subr.bf16.mxu1 %v7866_v58 }
 0x650   : > { %7869 = vmatpush1.bf16.msra.mxu1 %v7868_v49 }
 0x651   : > { %7871 = vmatprep.subr.bf16.mxu1 %v7870_v42 }
 0x689   : > { %v10959_v35 = vpop.permute.xlu1 %4610 }
 0x68a   : > { %v10968_v24 = vpop.permute.xlu0 %4608  ;;  %v4615_v33 = vadd.f32 %v10959_v35, %v10607_v57  ;;  %v4617_v61 = vadd.f32 %v10959_v35, %v10677_v62  ;;  %v4619_v25 = vadd.f32 %v10959_v35, %v10683_v52  ;;  %v4621_v11 = vadd.f32 %v10959_v35, %v10689_v18 }
 0x68b   : > { %v4614_v5 = vadd.f32 %v10968_v24, %v10667_v15  ;;  %v4616_v26 = vadd.f32 %v10968_v24, %v10674_v63  ;;  %v4618_v13 = vadd.f32 %v10968_v24, %v10680_v10  ;;  %v4620_v57 = vadd.f32 %v10968_v24, %v10686_v60 }
 0x68c   : > { %v4759_v62 = vadd.f32 %v10782_v47, %v4615_v33  ;;  %v4761_v27 = vadd.f32 %v4729_v37, %v4617_v61  ;;  %v4763_v52 = vadd.f32 %v4731_v7, %v4619_v25  ;;  %v4765_v59 = vadd.f32 %v4733_v17, %v4621_v11 }
 0x68d   : > { %v4758_v18 = vadd.f32 %v4726_v16, %v4614_v5  ;;  %v4760_v30 = vadd.f32 %v4728_v32, %v4616_v26  ;;  %v4762_v29 = vadd.f32 %v4730_v1, %v4618_v13  ;;  %v4764_v15 = vadd.f32 %v4732_v53, %v4620_v57 }
 0x68e   : > { %v4791_v20 = vmax.f32 %v4759_v62, 0.0  ;;  %v4793_v28 = vmax.f32 %v4761_v27, 0.0  ;;  %v4795_v63 = vmax.f32 %v4763_v52, 0.0  ;;  %v10987_v6 = vmax.f32 %v4765_v59, 0.0 }
 0x68f   : > { %v4790_v10 = vmax.f32 %v4758_v18, 0.0  ;;  %v4792_v19 = vmax.f32 %v4760_v30, 0.0  ;;  %v4794_v22 = vmax.f32 %v4762_v29, 0.0  ;;  %v4796_v60 = vmax.f32 %v4764_v15, 0.0 }
 0x690   : > { %v4823_v9 = vsel %vm1839_vm7, %v4791_v20, 0.0  ;;  %v4967_v47 = vmul.f32 %v4791_v20, %v12814_v8  ;;  %v4832_v17 = vsel %vm1839_vm7, %v4793_v28, 0.0  ;;  %v4969_v23 = vmul.f32 %v4793_v28, %v12851_v50 }
 0x691   : > { %v4822_v1 = vsel %vm1839_vm7, %v4790_v10, 0.0  ;;  %v4966_v53 = vmul.f32 %v4790_v10, %v12849_v55  ;;  %7548 = vmatprep.mubr.msk.f32.mxu0 %vm1839_vm7, %v4790_v10  ;;  %v4831_v7 = vsel %vm1839_vm7, %v4792_v19, 0.0  ;;  %v4968_v16 = vmul.f32 %v4792_v19, %v12850_v54 }
 0x692   : > { %v4824_v0 = vadd.f32 %v4823_v9, %v4822_v1  ;;  %v4999_v32 = vsel %vm1839_vm7, %v4967_v47, 0.0  ;;  %7549 = vmatmul.mubr.msk.f32.vlgmr.msra.gmra.mrb[70].mxu0 %vm1839_vm7, %v4791_v20  ;;  %v4833_v37 = vadd.f32 %v4832_v17, %v4831_v7  ;;  %v5008_v33 = vsel %vm1839_vm7, %v4969_v23, 0.0 }
 0x693   : > { %v4998_v58 = vsel %vm1839_vm7, %v4966_v53, 0.0  ;;  %v5007_v61 = vsel %vm1839_vm7, %v4968_v16, 0.0  ;;  %7551 = vmatprep.mubr.msk.f32.mxu0 %vm1839_vm7, %v4792_v19  ;;  %v4840_v25 = vsel %vm1839_vm7, %v4794_v22, 0.0  ;;  %v4970_v11 = vmul.f32 %v4794_v22, %v12852_v12 }
 0x694   : > { %v4825_v5 = vrot.slane %v4824_v0, 4  ;;  %v5000_v26 = vadd.f32 %v4999_v32, %v4998_v58  ;;  %v4834_v13 = vrot.slane %v4833_v37, 4  ;;  %v5009_v57 = vadd.f32 %v5008_v33, %v5007_v61 }
 0x695   : > { %v5016_v62 = vsel %vm1839_vm7, %v4970_v11, 0.0  ;;  %v4841_v27 = vsel %vm1839_vm7, %v4795_v63, 0.0  ;;  %v4971_v52 = vmul.f32 %v4795_v63, %v12853_v21  ;;  %v4849_v59 = vsel %vm1839_vm7, %v4796_v60, 0.0 }
 0x696   : > { %v4826_v18 = vadd.f32 %v4825_v5, %v4824_v0  ;;  %v5001_v19 = vrot.slane %v5000_v26, 4  ;;  %v4835_v30 = vadd.f32 %v4834_v13, %v4833_v37  ;;  %v5010_v29 = vrot.slane %v5009_v57, 4  ;;  %7552 = vmatmul.mubr.msk.f32.gmra.mrb[72].mxu0 %vm1839_vm7, %v4793_v28 }
 0x697   : > { %7554 = vmatprep.mubr.msk.f32.mxu0 %vm1839_vm7, %v4794_v22  ;;  %v4842_v49 = vadd.f32 %v4841_v27, %v4840_v25  ;;  %v5017_v15 = vsel %vm1839_vm7, %v4971_v52, 0.0  ;;  %v4972_v42 = vmul.f32 %v4796_v60, %v12854_v41  ;;  %v4850_v20 = vsel %vm1839_vm7, %v10987_v6, 0.0 }
 0x698   : > { %v12862_v10 = vpack.c.bf16 %v10941_v4, %v10936_v36  ;;  %v4827_v9 = vrot.slane %v4826_v18, 2  ;;  %v5002_v47 = vadd.f32 %v5001_v19, %v5000_v26  ;;  %v4836_v17 = vrot.slane %v4835_v30, 2 }
 0x699   : > { %v5011_v23 = vadd.f32 %v5010_v29, %v5009_v57  ;;  %v4843_v1 = vrot.slane %v4842_v49, 4  ;;  %v5018_v28 = vadd.f32 %v5017_v15, %v5016_v62  ;;  %v5025_v22 = vsel %vm1839_vm7, %v4972_v42, 0.0 }
 0x69a   : > { %7873 = vmatpush1.bf16.msra.mxu1 %v12862_v10  ;;  %v4851_v53 = vadd.f32 %v4850_v20, %v4849_v59  ;;  %v4828_v7 = vadd.f32 %v4827_v9, %v4826_v18  ;;  %v5003_v16 = vrot.slane %v5002_v47, 2  ;;  %v4837_v0 = vadd.f32 %v4836_v17, %v4835_v30  ;;  %7555 = vmatmul.mubr.msk.f32.gmra.mrb[74].mxu0 %vm1839_vm7, %v4795_v63 }
 0x69b   : > { %v5012_v32 = vrot.slane %v5011_v23, 2  ;;  %v4844_v37 = vadd.f32 %v4843_v1, %v4842_v49  ;;  %v5019_v33 = vrot.slane %v5018_v28, 4  ;;  %7557 = vmatprep.mubr.msk.f32.mxu0 %vm1839_vm7, %v4796_v60  ;;  %v4973_v4 = vmul.f32 %v10987_v6, %v12855_v2 }
 0x69c   : > { %v4852_v36 = vrot.slane %v4851_v53, 4  ;;  %v4829_v58 = vrot.slane %v4828_v7, 1  ;;  %v5004_v61 = vadd.f32 %v5003_v16, %v5002_v47  ;;  %v4838_v25 = vrot.slane %v4837_v0, 1 }
 0x69d   : > { %v5013_v11 = vadd.f32 %v5012_v32, %v5011_v23  ;;  %v4845_v5 = vrot.slane %v4844_v37, 2  ;;  %v5020_v26 = vadd.f32 %v5019_v33, %v5018_v28  ;;  %v5026_v57 = vsel %vm1839_vm7, %v4973_v4, 0.0  ;;  %v12863_v32 = vld [vmem:[#allocation25_spill] sm:$0xff] }
 0x69e   : > { %v4853_v13 = vadd.f32 %v4852_v36, %v4851_v53  ;;  %v11025_v62 = vadd.f32 %v4829_v58, %v4828_v7  ;;  %v5005_v63 = vrot.slane %v5004_v61, 1  ;;  %v11027_v27 = vadd.f32 %v4838_v25, %v4837_v0  ;;  %7558 = vmatmul.mubr.msk.f32.gmra.mrb[76].mxu0 %vm1839_vm7, %v10987_v6  ;;  %v12890_v7 = vld [vmem:[#allocation74_spill] sm:$0xff] }
 0x69f   : > { %v5014_v52 = vrot.slane %v5013_v11, 1  ;;  %v4846_v60 = vadd.f32 %v4845_v5, %v4844_v37  ;;  %v5021_v59 = vrot.slane %v5020_v26, 2  ;;  %v5027_v19 = vadd.f32 %v5026_v57, %v5025_v22 }
 0x6a0   : > { %v4854_v18 = vrot.slane %v4853_v13, 2  ;;  %v11031_v30 = vadd.f32 %v5005_v63, %v5004_v61  ;;  %v4622_v49 = vadd.f32 %v10968_v24, %v10692_v45  ;;  %v4623_v15 = vadd.f32 %v10959_v35, %v10695_v44  ;;  %v12864_v61 = vld [vmem:[#allocation43_spill] sm:$0xff] }
 0x6a1   : > { %v11033_v29 = vadd.f32 %v5014_v52, %v5013_v11  ;;  %v4847_v42 = vrot.slane %v4846_v60, 1  ;;  %v11039_v20 = vadd.f32 %v5021_v59, %v5020_v26  ;;  %v5028_v6 = vrot.slane %v5027_v19, 4 }
 0x6a2   : > { %v11041_v10 = vadd.f32 %v4854_v18, %v4853_v13  ;;  %v4766_v9 = vadd.f32 %v10926_v38, %v4622_v49  ;;  %v4767_v47 = vadd.f32 %v10944_v56, %v4623_v15  ;;  %v4624_v17 = vadd.f32 %v10968_v24, %v10700_v39  ;;  %v12865_v13 = vld [vmem:[#allocation27_spill] sm:$0xff] }
 0x6a3   : > { %v4625_v23 = vadd.f32 %v10959_v35, %v10703_v40  ;;  %v11049_v45 = vadd.f32 %v4847_v42, %v4846_v60  ;;  %v11053_v28 = vadd.f32 %v5028_v6, %v5027_v19  ;;  %v4626_v39 = vadd.f32 %v10968_v24, %v10706_v34 }
 0x6a4   : > { %v4798_v22 = vmax.f32 %v4766_v9, 0.0  ;;  %v4799_v53 = vmax.f32 %v4767_v47, 0.0  ;;  %v4768_v38 = vadd.f32 %v10947_v46, %v4624_v17  ;;  %v4627_v40 = vadd.f32 %v10959_v35, %v10709_v3  ;;  %v12867_v9 = vld [vmem:[#allocation29_spill] sm:$0xff] }
 0x6a5   : > { %v4769_v56 = vadd.f32 %v10950_v31, %v4625_v23  ;;  %v4630_v16 = vadd.f32 %v10968_v24, %v10610_v14  ;;  %v4770_v3 = vadd.f32 %v10953_v48, %v4626_v39  ;;  %v4631_v25 = vadd.f32 %v10959_v35, %v12864_v61  ;;  %v12866_v48 = vld [vmem:[#allocation30_spill] sm:$0xff]  ;;  %v12872_v61 = vld [vmem:[#allocation12_spill] sm:$0xff] }
 0x6a6   : > { %v4858_v0 = vsel %vm1839_vm7, %v4798_v22, 0.0  ;;  %v4974_v37 = vmul.f32 %v4798_v22, %v12863_v32  ;;  %7560 = vmatprep.mubr.msk.f32.mxu0 %vm1839_vm7, %v4798_v22  ;;  %v4859_v46 = vsel %vm1839_vm7, %v4799_v53, 0.0  ;;  %v4975_v31 = vmul.f32 %v4799_v53, %v12857_v51  ;;  %v12915_v51 = vld [vmem:[#allocation39_spill] sm:$0xff] }
 0x6a7   : > { %v4860_v33 = vadd.f32 %v4859_v46, %v4858_v0  ;;  %7561 = vmatmul.mubr.msk.f32.gmra.mrb[78].mxu0 %vm1839_vm7, %v4799_v53  ;;  %v4800_v34 = vmax.f32 %v4768_v38, 0.0  ;;  %v4801_v36 = vmax.f32 %v4769_v56, 0.0  ;;  %v4771_v58 = vadd.f32 %v10956_v43, %v4627_v40  ;;  %v12868_v56 = vld [vmem:[#allocation32_spill] sm:$0xff] }
 0x6a8   : > { %v5034_v4 = vsel %vm1839_vm7, %v4974_v37, 0.0  ;;  %v5035_v14 = vsel %vm1839_vm7, %v4975_v31, 0.0  ;;  %v4802_v60 = vmax.f32 %v4770_v3, 0.0  ;;  %v12869_v0 = vld [vmem:[#allocation44_spill] sm:$0xff] }
 0x6a9   : > { %v4861_v11 = vrot.slane %v4860_v33, 4  ;;  %v5036_v5 = vadd.f32 %v5035_v14, %v5034_v4  ;;  %v4867_v26 = vsel %vm1839_vm7, %v4800_v34, 0.0  ;;  %v4976_v57 = vmul.f32 %v4800_v34, %v12865_v13  ;;  %7563 = vmatprep.mubr.msk.f32.mxu0 %vm1839_vm7, %v4800_v34  ;;  %v12870_v34 = vld [vmem:[#allocation15_spill] sm:$0xff]  ;;  %v12871_v14 = vld [vmem:[#allocation46_spill] sm:$0xff]  ;;  %v12914_v13 = vld [vmem:[#allocation65_spill] sm:$0xff] }
 0x6aa   : > { %v4868_v63 = vsel %vm1839_vm7, %v4801_v36, 0.0  ;;  %v4977_v52 = vmul.f32 %v4801_v36, %v12866_v48  ;;  %v4803_v59 = vmax.f32 %v4771_v58, 0.0  ;;  %v4876_v42 = vsel %vm1839_vm7, %v4802_v60, 0.0  ;;  %v12893_v48 = vld [vmem:[#allocation77_spill] sm:$0xff] }
 0x6ab   : > { %v4862_v18 = vadd.f32 %v4861_v11, %v4860_v33  ;;  %v5037_v19 = vrot.slane %v5036_v5, 4  ;;  %v5043_v43 = vsel %vm1839_vm7, %v4976_v57, 0.0  ;;  %v4869_v49 = vadd.f32 %v4868_v63, %v4867_v26  ;;  %7564 = vmatmul.mubr.msk.f32.gmra.mrb[80].mxu0 %vm1839_vm7, %v4801_v36  ;;  %v12873_v26 = vld [vmem:[#allocation14_spill] sm:$0xff]  ;;  %v12874_v63 = vld [vmem:[#allocation47_spill] sm:$0xff]  ;;  %v12889_v33 = vld [vmem:[#allocation73_spill] sm:$0xff] }
 0x6ac   : > { %v5044_v15 = vsel %vm1839_vm7, %v4977_v52, 0.0  ;;  %v4877_v6 = vsel %vm1839_vm7, %v4803_v59, 0.0  ;;  %v4978_v47 = vmul.f32 %v4802_v60, %v12867_v9  ;;  %7566 = vmatprep.mubr.msk.f32.mxu0 %vm1839_vm7, %v4802_v60  ;;  %v4979_v39 = vmul.f32 %v4803_v59, %v12868_v56  ;;  %v12875_v60 = vld [vmem:[#allocation48_spill] sm:$0xff] }
 0x6ad   : > { %v4863_v17 = vrot.slane %v4862_v18, 2  ;;  %v11088_v23 = vadd.f32 %v5037_v19, %v5036_v5  ;;  %v4870_v22 = vrot.slane %v4869_v49, 4  ;;  %v11090_v53 = vadd.f32 %v5044_v15, %v5043_v43  ;;  %v12877_v43 = vld [vmem:[#allocation50_spill] sm:$0xff]  ;;  %v12878_v15 = vld [vmem:[#allocation51_spill] sm:$0xff]  ;;  %v12892_v9 = vld [vmem:[#allocation76_spill] sm:$0xff] }
 0x6ae   : > { %v11092_v38 = vadd.f32 %v4877_v6, %v4876_v42  ;;  %v5052_v40 = vsel %vm1839_vm7, %v4978_v47, 0.0  ;;  %v4632_v37 = vadd.f32 %v10968_v24, %v12869_v0  ;;  %v4633_v36 = vadd.f32 %v10959_v35, %v12870_v34  ;;  %v12879_v6 = vld [vmem:[#allocation17_spill] sm:$0xff]  ;;  %v12882_v0 = vld [vmem:[#allocation6_spill] sm:$0xff] }
 0x6af   : > { %v11098_v46 = vadd.f32 %v4863_v17, %v4862_v18  ;;  %v11100_v31 = vadd.f32 %v4870_v22, %v4869_v49  ;;  %7567 = vmatmul.mubr.msk.f32.gmra.mrb[82].mxu0 %vm1839_vm7, %v4803_v59  ;;  %v5053_v4 = vsel %vm1839_vm7, %v4979_v39, 0.0  ;;  %v4634_v58 = vadd.f32 %v10968_v24, %v12871_v14  ;;  %v12876_v18 = vld [vmem:[#allocation49_spill] sm:$0xff]  ;;  %v12880_v17 = vld [vmem:[#allocation52_spill] sm:$0xff]  ;;  %v12881_v39 = vld [vmem:[#allocation42_spill] sm:$0xff] }
 0x6b0   : > { %v4635_v11 = vadd.f32 %v10959_v35, %v12872_v61  ;;  %v11112_v5 = vadd.f32 %v5053_v4, %v5052_v40  ;;  %v4636_v57 = vadd.f32 %v10968_v24, %v12873_v26  ;;  %v4637_v52 = vadd.f32 %v10959_v35, %v12874_v63  ;;  %v12883_v4 = vld [vmem:[#allocation9_spill] sm:$0xff]  ;;  %v12884_v61 = vld [vmem:[#allocation68_spill] sm:$0xff] }
 0x6b1   : > { %v4638_v59 = vadd.f32 %v10968_v24, %v12875_v60  ;;  %v4639_v19 = vadd.f32 %v10959_v35, %v12876_v18  ;;  %v4640_v49 = vadd.f32 %v10968_v24, %v12877_v43  ;;  %v4641_v42 = vadd.f32 %v10959_v35, %v12878_v15  ;;  %v12885_v63 = vld [vmem:[#allocation69_spill] sm:$0xff]  ;;  %v12886_v18 = vld [vmem:[#allocation70_spill] sm:$0xff]  ;;  %v12887_v15 = vld [vmem:[#allocation71_spill] sm:$0xff] }
 0x6b2   : > { %v4642_v47 = vadd.f32 %v10968_v24, %v12879_v6  ;;  %v4643_v22 = vadd.f32 %v10959_v35, %v12880_v17  ;;  %v4644_v40 = vadd.f32 %v10968_v24, %v12881_v39  ;;  %v4645_v34 = vadd.f32 %v10959_v35, %v12882_v0  ;;  %v12888_v6 = vld [vmem:[#allocation72_spill] sm:$0xff]  ;;  %v12891_v39 = vld [vmem:[#allocation75_spill] sm:$0xff] }
 0x6b3   : > { %v4774_v14 = vadd.f32 %v12883_v4, %v4630_v16  ;;  %v4775_v26 = vadd.f32 %v12884_v61, %v4631_v25  ;;  %v4776_v60 = vadd.f32 %v12885_v63, %v4632_v37  ;;  %v4777_v43 = vadd.f32 %v12886_v18, %v4633_v36  ;;  %v12894_v4 = vld [vmem:[#allocation16_spill] sm:$0xff]  ;;  %v12895_v61 = vld [vmem:[#allocation45_spill] sm:$0xff]  ;;  %v12897_v18 = vld [vmem:[#allocation54_spill] sm:$0xff] }
 0x6b4   : > { %v4778_v3 = vadd.f32 %v12887_v15, %v4634_v58  ;;  %v4779_v1 = vadd.f32 %v12888_v6, %v4635_v11  ;;  %v4780_v17 = vadd.f32 %v12889_v33, %v4636_v57  ;;  %v4781_v44 = vadd.f32 %v12890_v7, %v4637_v52  ;;  %v12896_v63 = vld [vmem:[#allocation53_spill] sm:$0xff] }
 0x6b5   : > { %v4782_v56 = vadd.f32 %v12891_v39, %v4638_v59  ;;  %v4783_v0 = vadd.f32 %v12892_v9, %v4639_v19  ;;  %v4784_v16 = vadd.f32 %v12893_v48, %v4640_v49  ;;  %v4785_v25 = vadd.f32 %v12894_v4, %v4641_v42  ;;  %v12898_v15 = vld [vmem:[#allocation13_spill] sm:$0xff]  ;;  %v12904_v39 = vld [vmem:[#allocation56_spill] sm:$0xff] }
 0x6b6   : > { %v4786_v37 = vadd.f32 %v12895_v61, %v4642_v47  ;;  %v4787_v36 = vadd.f32 %v12896_v63, %v4643_v22  ;;  %v4788_v58 = vadd.f32 %v12897_v18, %v4644_v40  ;;  %v4789_v11 = vadd.f32 %v12898_v15, %v4645_v34  ;;  %v12900_v34 = vld [vmem:[#allocation34_spill] sm:$0xff] }
 0x6b7   : > { %v11150_v6 = vmax.f32 %v4774_v14, 0.0  ;;  %v11152_v33 = vmax.f32 %v4775_v26, 0.0  ;;  %v11154_v7 = vmax.f32 %v4776_v60, 0.0  ;;  %v11156_v57 = vmax.f32 %v4777_v43, 0.0  ;;  %v12901_v14 = vld [vmem:[#allocation35_spill] sm:$0xff]  ;;  %v12902_v26 = vld [vmem:[#allocation36_spill] sm:$0xff] }
 0x6b8   : > { %v11158_v9 = vmax.f32 %v4778_v3, 0.0  ;;  %v11160_v48 = vmax.f32 %v4779_v1, 0.0  ;;  %v11162_v52 = vmax.f32 %v4780_v17, 0.0  ;;  %v11164_v59 = vmax.f32 %v4781_v44, 0.0  ;;  %v12903_v43 = vld [vmem:[#allocation37_spill] sm:$0xff] }
 0x6b9   : > { %v11166_v19 = vmax.f32 %v4782_v56, 0.0  ;;  %v11168_v49 = vmax.f32 %v4783_v0, 0.0  ;;  %v11170_v42 = vmax.f32 %v4784_v16, 0.0  ;;  %v11172_v47 = vmax.f32 %v4785_v25, 0.0  ;;  %v12905_v16 = vld [vmem:[#allocation55_spill] sm:$0xff]  ;;  %v12906_v25 = vld [vmem:[#allocation58_spill] sm:$0xff] }
 0x6ba   : > { %v11174_v22 = vmax.f32 %v4786_v37, 0.0  ;;  %v11176_v40 = vmax.f32 %v4787_v36, 0.0  ;;  %v11178_v3 = vmax.f32 %v4788_v58, 0.0  ;;  %v11180_v1 = vmax.f32 %v4789_v11, 0.0  ;;  %v12907_v37 = vld [vmem:[#allocation57_spill] sm:$0xff]  ;;  %v12908_v36 = vld [vmem:[#allocation60_spill] sm:$0xff] }
 0x6bb   : > { %v4982_v44 = vmul.f32 %v11150_v6, %v12900_v34  ;;  %v4983_v56 = vmul.f32 %v11152_v33, %v12901_v14  ;;  %v4984_v60 = vmul.f32 %v11154_v7, %v12902_v26  ;;  %v4985_v17 = vmul.f32 %v11156_v57, %v12903_v43  ;;  %v12909_v58 = vld [vmem:[#allocation59_spill] sm:$0xff]  ;;  %v12910_v11 = vld [vmem:[#allocation62_spill] sm:$0xff]  ;;  %v12911_v26 = vld [vmem:[#allocation61_spill] sm:$0xff] }
 0x6bc   : > { %12899 = vst [vmem:[#allocation7_spill] sm:$0xff] %v11180_v1  ;;  %v4986_v0 = vmul.f32 %v11158_v9, %v12904_v39  ;;  %v4987_v4 = vmul.f32 %v11160_v48, %v12905_v16  ;;  %v4988_v61 = vmul.f32 %v11162_v52, %v12906_v25  ;;  %v4989_v63 = vmul.f32 %v11164_v59, %v12907_v37  ;;  %v12912_v14 = vld [vmem:[#allocation64_spill] sm:$0xff]  ;;  %v12913_v34 = vld [vmem:[#allocation63_spill] sm:$0xff] }
 0x6bd   : > { %v4990_v18 = vmul.f32 %v11166_v19, %v12908_v36  ;;  %v4991_v15 = vmul.f32 %v11168_v49, %v12909_v58  ;;  %v4992_v43 = vmul.f32 %v11170_v42, %v12910_v11  ;;  %v4993_v39 = vmul.f32 %v11172_v47, %v12911_v26 }
 0x6be   : > { %v4994_v16 = vmul.f32 %v11174_v22, %v12912_v14  ;;  %v4995_v25 = vmul.f32 %v11176_v40, %v12913_v34  ;;  %v4996_v37 = vmul.f32 %v11178_v3, %v12914_v13  ;;  %v4997_v36 = vmul.f32 %v11180_v1, %v12915_v51 }
 0x6bf   : > { %v5070_v58 = vsel %vm1839_vm7, %v4982_v44, 0.0  ;;  %v5071_v32 = vsel %vm1839_vm7, %v4983_v56, 0.0  ;;  %v5079_v11 = vsel %vm1839_vm7, %v4984_v60, 0.0  ;;  %v5080_v26 = vsel %vm1839_vm7, %v4985_v17, 0.0 }
 0x6c0   : > { %v5088_v2 = vsel %vm1839_vm7, %v4986_v0, 0.0  ;;  %v5072_v14 = vadd.f32 %v5071_v32, %v5070_v58  ;;  %v5081_v41 = vadd.f32 %v5080_v26, %v5079_v11  ;;  %v5089_v34 = vsel %vm1839_vm7, %v4987_v4, 0.0 }
 0x6c1   : > { %v5097_v21 = vsel %vm1839_vm7, %v4988_v61, 0.0  ;;  %v5090_v13 = vadd.f32 %v5089_v34, %v5088_v2  ;;  %v5098_v12 = vsel %vm1839_vm7, %v4989_v63, 0.0  ;;  %v5106_v51 = vsel %vm1839_vm7, %v4990_v18, 0.0 }
 0x6c2   : > { %v5107_v44 = vsel %vm1839_vm7, %v4991_v15, 0.0  ;;  %v5073_v56 = vrot.slane %v5072_v14, 4  ;;  %v5082_v50 = vrot.slane %v5081_v41, 4  ;;  %v5099_v60 = vadd.f32 %v5098_v12, %v5097_v21 }
 0x6c3   : > { %v5108_v54 = vadd.f32 %v5107_v44, %v5106_v51  ;;  %v5091_v17 = vrot.slane %v5090_v13, 4  ;;  %v5115_v0 = vsel %vm1839_vm7, %v4992_v43, 0.0  ;;  %v5116_v32 = vsel %vm1839_vm7, %v4993_v39, 0.0 }
 0x6c4   : > { %v5124_v26 = vsel %vm1839_vm7, %v4994_v16, 0.0  ;;  %v5074_v4 = vadd.f32 %v5073_v56, %v5072_v14  ;;  %v5083_v61 = vadd.f32 %v5082_v50, %v5081_v41  ;;  %v5100_v2 = vrot.slane %v5099_v60, 4 }
 0x6c5   : > { %v5109_v34 = vrot.slane %v5108_v54, 4  ;;  %v5092_v63 = vadd.f32 %v5091_v17, %v5090_v13  ;;  %v5117_v58 = vadd.f32 %v5116_v32, %v5115_v0  ;;  %v5125_v18 = vsel %vm1839_vm7, %v4995_v25, 0.0 }
 0x6c6   : > { %v5133_v15 = vsel %vm1839_vm7, %v4996_v37, 0.0  ;;  %v5075_v11 = vrot.slane %v5074_v4, 2  ;;  %v5084_v21 = vrot.slane %v5083_v61, 2  ;;  %v5101_v51 = vadd.f32 %v5100_v2, %v5099_v60 }
 0x6c7   : > { %v5110_v12 = vadd.f32 %v5109_v34, %v5108_v54  ;;  %v5093_v44 = vrot.slane %v5092_v63, 2  ;;  %v5118_v43 = vrot.slane %v5117_v58, 4  ;;  %v5126_v8 = vadd.f32 %v5125_v18, %v5124_v26 }
 0x6c8   : > { %v5134_v39 = vsel %vm1839_vm7, %v4997_v36, 0.0  ;;  %v5076_v16 = vadd.f32 %v5075_v11, %v5074_v4  ;;  %v5085_v14 = vadd.f32 %v5084_v21, %v5083_v61  ;;  %v5102_v50 = vrot.slane %v5101_v51, 2 }
 0x6c9   : > { %v5111_v41 = vrot.slane %v5110_v12, 2  ;;  %v5094_v56 = vadd.f32 %v5093_v44, %v5092_v63  ;;  %v5119_v13 = vadd.f32 %v5118_v43, %v5117_v58  ;;  %v5127_v17 = vrot.slane %v5126_v8, 4  ;;  %v12916_v44 = vld [vmem:[#allocation41_spill] sm:$0xff] }
 0x6ca   : > { %v5135_v0 = vadd.f32 %v5134_v39, %v5133_v15  ;;  %v5077_v25 = vrot.slane %v5076_v16, 1  ;;  %v5086_v32 = vrot.slane %v5085_v14, 1  ;;  %v5103_v37 = vadd.f32 %v5102_v50, %v5101_v51  ;;  %v12918_v50 = vld [vmem:[#allocation66_spill] sm:$0xff] }
 0x6cb   : > { %v5112_v55 = vadd.f32 %v5111_v41, %v5110_v12  ;;  %v5095_v1 = vrot.slane %v5094_v56, 1  ;;  %v5120_v60 = vrot.slane %v5119_v13, 2  ;;  %v5128_v54 = vadd.f32 %v5127_v17, %v5126_v8 }
 0x6cc   : > { %v5136_v2 = vrot.slane %v5135_v0, 4  ;;  %v5078_v34 = vadd.f32 %v5077_v25, %v5076_v16  ;;  %v5087_v26 = vadd.f32 %v5086_v32, %v5085_v14  ;;  %v5104_v18 = vrot.slane %v5103_v37, 1  ;;  %v12917_v14 = vld [vmem:[#allocation40_spill] sm:$0xff]  ;;  %v12920_v25 = vld [vmem:[#allocation67_spill] sm:$0xff] }
 0x6cd   : > { %v5113_v36 = vrot.slane %v5112_v55, 1  ;;  %v5096_v4 = vadd.f32 %v5095_v1, %v5094_v56  ;;  %v5121_v61 = vadd.f32 %v5120_v60, %v5119_v13  ;;  %v5129_v11 = vrot.slane %v5128_v54, 2 }
 0x6ce   : > { %v5137_v21 = vadd.f32 %v5136_v2, %v5135_v0  ;;  %v5105_v63 = vadd.f32 %v5104_v18, %v5103_v37  ;;  %v5197_v15 = vsel %vm2176_vm8, %v5087_v26, %v5078_v34  ;;  %v4628_v51 = vadd.f32 %v10968_v24, %v12916_v44  ;;  %v12924_v44 = vld [vmem:[#allocation33_spill] sm:$0xff] }
 0x6cf   : > { %v5114_v58 = vadd.f32 %v5113_v36, %v5112_v55  ;;  %v5122_v12 = vrot.slane %v5121_v61, 1  ;;  %v5130_v43 = vadd.f32 %v5129_v11, %v5128_v54  ;;  %v5198_v8 = vsel %vm2178_vm9, %v5096_v4, %v5197_v15  ;;  %v12923_v4 = vld [vmem:[#allocation31_spill] sm:$0xff] }
 0x6d0   : > { %v5138_v39 = vrot.slane %v5137_v21, 2  ;;  %v5199_v16 = vsel %vm2180_vm10, %v5105_v63, %v5198_v8  ;;  %v4629_v1 = vadd.f32 %v10959_v35, %v12917_v14  ;;  %v4772_v41 = vadd.f32 %v12918_v50, %v4628_v51 }
 0x6d1   : > { %v12919_v55 = vrot.slane %v11039_v20, 1  ;;  %v5123_v13 = vadd.f32 %v5122_v12, %v5121_v61  ;;  %v5131_v17 = vrot.slane %v5130_v43, 1  ;;  %v5200_v24 = vsel %vm2182_vm11, %v5114_v58, %v5199_v16 }
 0x6d2   : > { %v5139_v0 = vadd.f32 %v5138_v39, %v5137_v21  ;;  %v4773_v32 = vadd.f32 %v12920_v25, %v4629_v1  ;;  %v4804_v37 = vmax.f32 %v4772_v41, 0.0  ;;  %v12921_v60 = vrot.slane %v11053_v28, 2 }
 0x6d3   : > { %v5024_v56 = vadd.f32 %v12919_v55, %v11039_v20  ;;  %v5039_v35 = vrot.slane %v11088_v23, 2  ;;  %v5132_v2 = vadd.f32 %v5131_v17, %v5130_v43  ;;  %v5201_v26 = vsel %vm2184_vm12, %v5123_v13, %v5200_v24 }
 0x6d4   : > { %v5031_v54 = vadd.f32 %v12921_v60, %v11053_v28  ;;  %v5140_v34 = vrot.slane %v5139_v0, 1  ;;  %v12922_v20 = vrot.slane %v11090_v53, 4  ;;  %v4805_v36 = vmax.f32 %v4773_v32, 0.0  ;;  %7569 = vmatprep.mubr.msk.f32.mxu0 %vm1839_vm7, %v4804_v37 }
 0x6d5   : > { %v4980_v61 = vmul.f32 %v4804_v37, %v12923_v4  ;;  %v5040_v21 = vadd.f32 %v5039_v35, %v11088_v23  ;;  %v5202_v28 = vsel %vm2186_vm13, %v5132_v2, %v5201_v26  ;;  %v5055_v15 = vrot.slane %v11112_v5, 4 }
 0x6d6   : > { %v5047_v18 = vadd.f32 %v12922_v20, %v11090_v53  ;;  %v5032_v11 = vrot.slane %v5031_v54, 1  ;;  %v5141_v63 = vadd.f32 %v5140_v34, %v5139_v0  ;;  %v4981_v51 = vmul.f32 %v4805_v36, %v12924_v44  ;;  %7570 = vmatmul.mubr.msk.f32.gmra.mrb[84].mxu0 %vm1839_vm7, %v4805_v36 }
 0x6d7   : > { %v5041_v43 = vrot.slane %v5040_v21, 1  ;;  %v5061_v53 = vsel %vm1839_vm7, %v4980_v61, 0.0  ;;  %v5056_v23 = vadd.f32 %v5055_v15, %v11112_v5  ;;  %v5190_v16 = vsel %vm2176_vm8, %v11033_v29, %v11031_v30  ;;  %7572 = vmatprep.mubr.msk.f32.mxu0 %vm1839_vm7, %v11150_v6 }
 0x6d8   : > { %v5048_v58 = vrot.slane %v5047_v18, 2  ;;  %v5033_v12 = vadd.f32 %v5032_v11, %v5031_v54  ;;  %v5203_v39 = vsel %vm2188_vm14, %v5141_v63, %v5202_v28  ;;  %v5062_v1 = vsel %vm1839_vm7, %v4981_v51, 0.0 }
 0x6d9   : > { %5206 = vrot.lane.b32.xlu1 %v5203_v39, %s12654_s29  ;;  %v5042_v14 = vadd.f32 %v5041_v43, %v5040_v21  ;;  %v5191_v50 = vsel %vm2178_vm9, %v5024_v56, %v5190_v16  ;;  %v12925_v41 = vrot.slane %v11041_v10, 1  ;;  %v5057_v5 = vrot.slane %v5056_v23, 2 }
 0x6da   : > { %v5049_v8 = vadd.f32 %v5048_v58, %v5047_v18  ;;  %v5063_v17 = vadd.f32 %v5062_v1, %v5061_v53  ;;  %v5192_v0 = vsel %vm2180_vm10, %v5033_v12, %v5191_v50  ;;  %7573 = vmatmul.mubr.msk.f32.gmra.mrb[86].mxu0 %vm1839_vm7, %v11152_v33  ;;  %v4865_v29 = vrot.slane %v11098_v46, 1 }
 0x6db   : > { %v4857_v55 = vadd.f32 %v12925_v41, %v11041_v10  ;;  %v5193_v30 = vsel %vm2182_vm11, %v5042_v14, %v5192_v0  ;;  %v4872_v24 = vrot.slane %v11100_v31, 2  ;;  %v12926_v56 = vrot.slane %v11092_v38, 4  ;;  %7575 = vmatprep.mubr.msk.f32.mxu0 %vm1839_vm7, %v11154_v7 }
 0x6dc   : > { %v5050_v13 = vrot.slane %v5049_v8, 1  ;;  %v5058_v10 = vadd.f32 %v5057_v5, %v5056_v23  ;;  %v5064_v60 = vrot.slane %v5063_v17, 4  ;;  %v4886_v54 = vsel %vm1839_vm7, %v4805_v36, 0.0  ;;  %v7210_v36 = vld [vmem:[%s12373_s7 + $0x208] sm:$0xff] }
 0x6dd   : > { %v4880_v25 = vadd.f32 %v12926_v56, %v11092_v38  ;;  %v4866_v35 = vadd.f32 %v4865_v29, %v11098_v46  ;;  %v4873_v2 = vadd.f32 %v4872_v24, %v11100_v31  ;;  %v5158_v26 = vsel %vm2176_vm8, %v11027_v27, %v11025_v62  ;;  %v7212_v46 = vld [vmem:[%s12373_s7 + $0x218] sm:$0xff] }
 0x6de   : > { %v5051_v32 = vadd.f32 %v5050_v13, %v5049_v8  ;;  %v5059_v20 = vrot.slane %v5058_v10, 1  ;;  %v5065_v18 = vadd.f32 %v5064_v60, %v5063_v17  ;;  %v5159_v61 = vsel %vm2178_vm9, %v11049_v45, %v5158_v26  ;;  %7576 = vmatmul.mubr.msk.f32.gmra.mrb[88].mxu0 %vm1839_vm7, %v11156_v57 }
 0x6df   : > { %v4881_v34 = vrot.slane %v4880_v25, 2  ;;  %v4874_v31 = vrot.slane %v4873_v2, 1  ;;  %v5160_v27 = vsel %vm2180_vm10, %v4857_v55, %v5159_v61  ;;  %v4885_v11 = vsel %vm1839_vm7, %v4804_v37, 0.0  ;;  %7578 = vmatprep.mubr.msk.f32.mxu0 %vm1839_vm7, %v11158_v9 }
 0x6e0   : > { %v5194_v38 = vsel %vm2184_vm12, %v5051_v32, %v5193_v30  ;;  %v5060_v21 = vadd.f32 %v5059_v20, %v5058_v10  ;;  %v5066_v63 = vrot.slane %v5065_v18, 2  ;;  %v5161_v45 = vsel %vm2182_vm11, %v4866_v35, %v5160_v27 }
 0x6e1   : > { %v4882_v62 = vadd.f32 %v4881_v34, %v4880_v25  ;;  %v4887_v28 = vadd.f32 %v4886_v54, %v4885_v11  ;;  %v4875_v58 = vadd.f32 %v4874_v31, %v4873_v2  ;;  %v7874_v51 = vpack.c.bf16 %v7212_v46, %v7210_v36 }
 0x6e2   : > { %v5067_v12 = vadd.f32 %v5066_v63, %v5065_v18  ;;  %v5195_v43 = vsel %vm2186_vm13, %v5060_v21, %v5194_v38  ;;  %7579 = vmatmul.mubr.msk.f32.gmra.mrb[90].mxu0 %vm1839_vm7, %v11160_v48  ;;  %v4894_v8 = vsel %vm1839_vm7, %v11150_v6, 0.0  ;;  %v4895_v23 = vsel %vm1839_vm7, %v11152_v33, 0.0 }
 0x6e3   : > { %v4883_v15 = vrot.slane %v4882_v62, 1  ;;  %v4888_v53 = vrot.slane %v4887_v28, 4  ;;  %v5162_v37 = vsel %vm2184_vm12, %v4875_v58, %v5161_v45  ;;  %7875 = vmatprep.subr.bf16.mxu1 %v7874_v51  ;;  %7581 = vmatprep.mubr.msk.f32.mxu0 %vm1839_vm7, %v11162_v52  ;;  %v4896_v1 = vadd.f32 %v4895_v23, %v4894_v8 }
 0x6e4   : > { %v5068_v16 = vrot.slane %v5067_v12, 1  ;;  %v4903_v50 = vsel %vm1839_vm7, %v11154_v7, 0.0  ;;  %v4904_v55 = vsel %vm1839_vm7, %v11156_v57, 0.0  ;;  %v4912_v6 = vsel %vm1839_vm7, %v11158_v9, 0.0 }
 0x6e5   : > { %v4884_v39 = vadd.f32 %v4883_v15, %v4882_v62  ;;  %v4889_v14 = vadd.f32 %v4888_v53, %v4887_v28  ;;  %v4913_v33 = vsel %vm1839_vm7, %v11160_v48, 0.0  ;;  %v4897_v17 = vrot.slane %v4896_v1, 4 }
 0x6e6   : > { %v5069_v13 = vadd.f32 %v5068_v16, %v5067_v12  ;;  %v4905_v0 = vadd.f32 %v4904_v55, %v4903_v50  ;;  %7582 = vmatmul.mubr.msk.f32.gmra.mrb[92].mxu0 %vm1839_vm7, %v11164_v59  ;;  %v4914_v30 = vadd.f32 %v4913_v33, %v4912_v6  ;;  %v4921_v7 = vsel %vm1839_vm7, %v11162_v52, 0.0 }
 0x6e7   : > { %v5163_v41 = vsel %vm2186_vm13, %v4884_v39, %v5162_v37  ;;  %v4890_v5 = vrot.slane %v4889_v14, 2  ;;  %v4922_v57 = vsel %vm1839_vm7, %v11164_v59, 0.0  ;;  %v4930_v9 = vsel %vm1839_vm7, %v11166_v19, 0.0  ;;  %7584 = vmatprep.mubr.msk.f32.mxu0 %vm1839_vm7, %v11166_v19 }
 0x6e8   : > { %v5196_v29 = vsel %vm2188_vm14, %v5069_v13, %v5195_v43  ;;  %v4898_v24 = vadd.f32 %v4897_v17, %v4896_v1  ;;  %v4906_v56 = vrot.slane %v4905_v0, 4  ;;  %v4915_v25 = vrot.slane %v4914_v30, 4 }
 0x6e9   : > { %v4891_v48 = vadd.f32 %v4890_v5, %v4889_v14  ;;  %5204 = vrot.lane.b32.xlu0 %v5196_v29, %s12654_s29  ;;  %v4923_v32 = vadd.f32 %v4922_v57, %v4921_v7  ;;  %v4931_v52 = vsel %vm1839_vm7, %v11168_v49, 0.0  ;;  %v4939_v59 = vsel %vm1839_vm7, %v11170_v42, 0.0 }
 0x6ea   : > { %v4899_v60 = vrot.slane %v4898_v24, 2  ;;  %v4907_v54 = vadd.f32 %v4906_v56, %v4905_v0  ;;  %v4932_v35 = vadd.f32 %v4931_v52, %v4930_v9  ;;  %7585 = vmatmul.mubr.msk.f32.gmra.mrb[94].mxu0 %vm1839_vm7, %v11168_v49  ;;  %v4916_v19 = vadd.f32 %v4915_v25, %v4914_v30 }
 0x6eb   : > { %v4892_v10 = vrot.slane %v4891_v48, 1  ;;  %v4924_v2 = vrot.slane %v4923_v32, 4  ;;  %v4940_v34 = vsel %vm1839_vm7, %v11172_v47, 0.0  ;;  %v4948_v26 = vsel %vm1839_vm7, %v11174_v22, 0.0  ;;  %7587 = vmatprep.mubr.msk.f32.mxu0 %vm1839_vm7, %v11170_v42 }
 0x6ec   : > { %v4900_v18 = vadd.f32 %v4899_v60, %v4898_v24  ;;  %v4908_v38 = vrot.slane %v4907_v54, 2  ;;  %v4933_v61 = vrot.slane %v4932_v35, 4  ;;  %v4917_v36 = vrot.slane %v4916_v19, 2 }
 0x6ed   : > { %v4893_v20 = vadd.f32 %v4892_v10, %v4891_v48  ;;  %v4925_v46 = vadd.f32 %v4924_v2, %v4923_v32  ;;  %v4941_v31 = vadd.f32 %v4940_v34, %v4939_v59  ;;  %v4949_v49 = vsel %vm1839_vm7, %v11176_v40, 0.0  ;;  %v7214_v2 = vld [vmem:[%s12373_s7 + $0x228] sm:$0xff]  ;;  %v7216_v34 = vld [vmem:[%s12373_s7 + $0x238] sm:$0xff] }
 0x6ee   : > { %v4901_v27 = vrot.slane %v4900_v18, 1  ;;  %v4909_v11 = vadd.f32 %v4908_v38, %v4907_v54  ;;  %v4934_v21 = vadd.f32 %v4933_v61, %v4932_v35  ;;  %7588 = vmatmul.mubr.msk.f32.gmra.mrb[96].mxu0 %vm1839_vm7, %v11172_v47  ;;  %v4918_v42 = vadd.f32 %v4917_v36, %v4916_v19  ;;  %v12927_v47 = vld [vmem:[#allocation7_spill] sm:$0xff]  ;;  %v7209_v35 = vld [vmem:[%s12373_s7 + $0x200] sm:$0xff] }
 0x6ef   : > { %v11351_v62 = vsel %vm2188_vm14, %v4893_v20, %v5163_v41  ;;  %v4926_v63 = vrot.slane %v4925_v46, 2  ;;  %v4942_v45 = vrot.slane %v4941_v31, 4  ;;  %v4950_v28 = vadd.f32 %v4949_v49, %v4948_v26  ;;  %7590 = vmatprep.mubr.msk.f32.mxu0 %vm1839_vm7, %v11174_v22  ;;  %v7211_v19 = vld [vmem:[%s12373_s7 + $0x210] sm:$0xff]  ;;  %v7213_v61 = vld [vmem:[%s12373_s7 + $0x220] sm:$0xff]  ;;  %v7220_v49 = vld [vmem:[%s12373_s7 + $0x258] sm:$0xff] }
 0x6f0   : > { %v4902_v58 = vadd.f32 %v4901_v27, %v4900_v18  ;;  %v4910_v15 = vrot.slane %v4909_v11, 1  ;;  %v4935_v51 = vrot.slane %v4934_v21, 2  ;;  %v4957_v12 = vsel %vm1839_vm7, %v11178_v3, 0.0  ;;  %v7215_v36 = vld [vmem:[%s12373_s7 + $0x230] sm:$0xff] }
 0x6f1   : > { %v4919_v43 = vrot.slane %v4918_v42, 1  ;;  %v4927_v53 = vadd.f32 %v4926_v63, %v4925_v46  ;;  %v4943_v39 = vadd.f32 %v4942_v45, %v4941_v31  ;;  %v4951_v37 = vrot.slane %v4950_v28, 4  ;;  %v7218_v31 = vld [vmem:[%s12373_s7 + $0x248] sm:$0xff]  ;;  %v7219_v63 = vld [vmem:[%s12373_s7 + $0x250] sm:$0xff] }
 0x6f2   : > { %v4911_v8 = vadd.f32 %v4910_v15, %v4909_v11  ;;  %v4936_v23 = vadd.f32 %v4935_v51, %v4934_v21  ;;  %v4958_v16 = vsel %vm1839_vm7, %v12927_v47, 0.0  ;;  %7591 = vmatmul.mubr.msk.f32.gmra.mrb[98].mxu0 %vm1839_vm7, %v11176_v40  ;;  %v7876_v26 = vpack.c.bf16 %v7211_v19, %v7209_v35  ;;  %v7222_v45 = vld [vmem:[%s12373_s7 + $0x268] sm:$0xff]  ;;  %v7221_v51 = vld [vmem:[%s12373_s7 + $0x260] sm:$0xff] }
 0x6f3   : > { %v4920_v14 = vadd.f32 %v4919_v43, %v4918_v42  ;;  %v4928_v22 = vrot.slane %v4927_v53, 1  ;;  %v4944_v1 = vrot.slane %v4943_v39, 2  ;;  %v4952_v50 = vadd.f32 %v4951_v37, %v4950_v28  ;;  %7593 = vmatprep.mubr.msk.f32.mxu0 %vm1839_vm7, %v11178_v3  ;;  %v7224_v28 = vld [vmem:[%s12373_s7 + $0x278] sm:$0xff]  ;;  %v7226_v43 = vld [vmem:[%s12373_s7 + $0x288] sm:$0xff] }
 0x6f4   : > { %v4937_v41 = vrot.slane %v4936_v23, 1  ;;  %v4959_v55 = vadd.f32 %v4958_v16, %v4957_v12  ;;  %v5165_v6 = vsel %vm2176_vm8, %v4911_v8, %v4902_v58  ;;  %v7878_v38 = vpack.c.bf16 %v7216_v34, %v7214_v2  ;;  %v7223_v12 = vld [vmem:[%s12373_s7 + $0x270] sm:$0xff]  ;;  %v7225_v16 = vld [vmem:[%s12373_s7 + $0x280] sm:$0xff] }
 0x6f5   : > { %v4929_v33 = vadd.f32 %v4928_v22, %v4927_v53  ;;  %v4945_v13 = vadd.f32 %v4944_v1, %v4943_v39  ;;  %v4953_v5 = vrot.slane %v4952_v50, 2  ;;  %v5166_v17 = vsel %vm2178_vm9, %v4920_v14, %v5165_v6  ;;  %v7228_v53 = vld [vmem:[%s12373_s7 + $0x298] sm:$0xff]  ;;  %v7227_v14 = vld [vmem:[%s12373_s7 + $0x290] sm:$0xff]  ;;  %v7230_v22 = vld [vmem:[%s12373_s7 + $0x2a8] sm:$0xff] }
 0x6f6   : > { %v4938_v0 = vadd.f32 %v4937_v41, %v4936_v23  ;;  %v4960_v30 = vrot.slane %v4959_v55, 4  ;;  %7594 = vmatmul.mubr.msk.f32.gmra.mrb[100].mxu0 %vm1839_vm7, %v12927_v47  ;;  %v12928_v11 = vmov 0.0   ;;  %v7880_v21 = vpack.c.bf16 %v7215_v36, %v7213_v61  ;;  %v7232_v1 = vld [vmem:[%s12373_s7 + $0x2b8] sm:$0xff] }
 0x6f7   : > { %v4946_v40 = vrot.slane %v4945_v13, 1  ;;  %v4954_v7 = vadd.f32 %v4953_v5, %v4952_v50  ;;  %v5167_v57 = vsel %vm2180_vm10, %v4929_v33, %v5166_v17  ;;  %v7882_v42 = vpack.c.bf16 %v7220_v49, %v7218_v31  ;;  %v7231_v5 = vld [vmem:[%s12373_s7 + $0x2b0] sm:$0xff]  ;;  %v7234_v17 = vld [vmem:[%s12373_s7 + $0x2c8] sm:$0xff] }
 0x6f8   : > { %v4961_v9 = vadd.f32 %v4960_v30, %v4959_v55  ;;  %v5168_v3 = vsel %vm2182_vm11, %v4938_v0, %v5167_v57  ;;  %v7886_v15 = vpack.c.bf16 %v7224_v28, %v7222_v45  ;;  %v7888_v37 = vpack.c.bf16 %v7223_v12, %v7221_v51  ;;  %v7236_v0 = vld [vmem:[%s12373_s7 + $0x2d8] sm:$0xff] }
 0x6f9   : > { %v4947_v29 = vadd.f32 %v4946_v40, %v4945_v13  ;;  %v4955_v48 = vrot.slane %v4954_v7, 1  ;;  %v7890_v47 = vpack.c.bf16 %v7228_v53, %v7226_v43  ;;  %v7892_v41 = vpack.c.bf16 %v7227_v14, %v7225_v16  ;;  %v7229_v13 = vld [vmem:[%s12373_s7 + $0x2a0] sm:$0xff] }
 0x6fa   : > { %v4962_v24 = vrot.slane %v4961_v9, 2  ;;  %v7894_v33 = vpack.c.bf16 %v7232_v1, %v7230_v22  ;;  %v7896_v40 = vpack.c.bf16 %v7231_v5, %v7229_v13  ;;  %v8012_v14 = vld [vmem:[%s12374_s8] sm:$0xff]  ;;  %v12929_v22 = vld [vmem:[#allocation8_spill] sm:$0xff] }
 0x6fb   : > { %v4956_v56 = vadd.f32 %v4955_v48, %v4954_v7  ;;  %v5169_v25 = vsel %vm2184_vm12, %v4947_v29, %v5168_v3  ;;  %v7233_v3 = vld [vmem:[%s12373_s7 + $0x2c0] sm:$0xff]  ;;  %v7235_v29 = vld [vmem:[%s12373_s7 + $0x2d0] sm:$0xff]  ;;  %v7238_v48 = vld [vmem:[%s12373_s7 + $0x2e8] sm:$0xff]  ;;  %v5695_v1 = vrot.slane %v8012_v14, %v12929_v22 }
 0x6fc   : > { %v4963_v32 = vadd.f32 %v4962_v24, %v4961_v9  ;;  %v7898_v9 = vpack.c.bf16 %v7236_v0, %v7234_v17  ;;  %v7240_v24 = vld [vmem:[%s12373_s7 + $0x2f8] sm:$0xff]  ;;  %v12931_v0 = vld [vmem:[#allocation5_spill] sm:$0xff] }
 0x6fd   : > { %v5170_v52 = vsel %vm2186_vm13, %v4956_v56, %v5169_v25  ;;  %v7900_v25 = vpack.c.bf16 %v7235_v29, %v7233_v3 }
 0x6fe   : > { %v4964_v59 = vrot.slane %v4963_v32, 1 }
 0x700   : > { %v4965_v10 = vadd.f32 %v4964_v59, %v4963_v32  ;;  %v7902_v59 = vpack.c.bf16 %v7240_v24, %v7238_v48 }
 0x702   : > { %v5171_v60 = vsel %vm2188_vm14, %v4965_v10, %v5170_v52  ;;  %v7237_v10 = vld [vmem:[%s12373_s7 + $0x2e0] sm:$0xff] }
 0x74b   : > { %v5207_v54 = vpop.permute.xlu1 %5206 }
 0x74c   : > { %v5211_v20 = vsel %vm1839_vm7, %v5171_v60, %v5207_v54  ;;  %v7239_v60 = vld [vmem:[%s12373_s7 + $0x2f0] sm:$0xff] }
 0x74d   : > { %v7904_v54 = vpack.c.bf16 %v7239_v60, %v7237_v10 }
 0x75b   : > { %v5205_v18 = vpop.permute.xlu0 %5204 }
 0x75c   : > { %v5210_v46 = vsel %vm1839_vm7, %v11351_v62, %v5205_v18  ;;  %v7217_v62 = vld [vmem:[%s12373_s7 + $0x240] sm:$0xff] }
 0x75d   : > { %5647 = vmatmul.mubr.f32.vlgmr.msra.gmra.mrb[12].mxu1 %v5210_v46  ;;  %v5212_v27 = vadd.f32 %v5211_v20, %v5210_v46  ;;  %v7884_v58 = vpack.c.bf16 %v7219_v63, %v7217_v62 }
 0x75e   : > { %7877 = vmatpush1.bf16.msra.mxu1 %v7876_v26  ;;  %5652 = vmatprep.mubr.f32.mxu1 %v12928_v11 }
 0x75f   : > { %7879 = vmatprep.subr.bf16.mxu1 %v7878_v38  ;;  %v5213_v23 = vrot.slane %v5212_v27, 4 }
 0x761   : > { %5653 = vmatmul.mubr.f32.gmra.mrb[14].mxu1 %v5211_v20  ;;  %v5214_v6 = vadd.f32 %v5213_v23, %v5212_v27 }
 0x762   : > { %7881 = vmatpush1.bf16.msra.mxu1 %v7880_v21  ;;  %5766 = vmatprep.mubr.f32.mxu1 %v12928_v11 }
 0x763   : > { %7883 = vmatprep.subr.bf16.mxu1 %v7882_v42  ;;  %v5215_v57 = vrot.slane %v5214_v6, 2 }
 0x765   : > { %v11427_v39 = vpop.f32.mrb[70].mxu0  ;;  %v5216_v52 = vadd.f32 %v5215_v57, %v5214_v6 }
 0x766   : > { %7885 = vmatpush1.bf16.msra.mxu1 %v7884_v58  ;;  %v11429_v8 = vpop.f32.mrb[71].mxu0 }
 0x767   : > { %7887 = vmatprep.subr.bf16.mxu1 %v7886_v15  ;;  %v5217_v35 = vrot.slane %v5216_v52, 1 }
 0x769   : > { %v11443_v50 = vpop.f32.mrb[72].mxu0  ;;  %v5218_v2 = vadd.f32 %v5217_v35, %v5216_v52 }
 0x76a   : > { %7889 = vmatpush1.bf16.msra.mxu1 %v7888_v37  ;;  %v11445_v55 = vpop.f32.mrb[73].mxu0 }
 0x76b   : > { %7891 = vmatprep.subr.bf16.mxu1 %v7890_v47 }
 0x76d   : > { %v11459_v30 = vpop.f32.mrb[74].mxu0 }
 0x76e   : > { %7893 = vmatpush1.bf16.msra.mxu1 %v7892_v41  ;;  %v11461_v7 = vpop.f32.mrb[75].mxu0  ;;  %v12930_v41 = vld [vmem:[#allocation11_spill] sm:$0xff] }
 0x76f   : > { %7895 = vmatprep.subr.bf16.mxu1 %v7894_v33  ;;  %v5699_v6 = vrot.slane %v8012_v14, %v12930_v41 }
 0x771   : > { %v11475_v56 = vpop.f32.mrb[76].mxu0 }
 0x772   : > { %7897 = vmatpush1.bf16.msra.mxu1 %v7896_v40  ;;  %v11477_v32 = vpop.f32.mrb[77].mxu0 }
 0x773   : > { %7899 = vmatprep.subr.bf16.mxu1 %v7898_v9 }
 0x776   : > { %7901 = vmatpush1.bf16.msra.mxu1 %v7900_v25  ;;  %v12932_v25 = vld [vmem:[#allocation38_spill] sm:$0xff] }
 0x777   : > { %7903 = vmatprep.subr.bf16.mxu1 %v7902_v59 }
 0x77a   : > { %7905 = vmatpush1.bf16.msra.mxu1 %v7904_v54  ;;  %v11485_v19 = vpop.f32.mrb[78].mxu0 }
 0x77b   : > { %v11487_v34 = vpop.f32.mrb[79].mxu0 }
 0x77d   : > { %5767 = vmatmul.mubr.f32.vlgmr.msra.gmra.mrb[16].mxu1 %v5218_v2 }
 0x77e   : > { %v11489_v26 = vpop.f32.mrb[80].mxu0 }
 0x77f   : > { %v11491_v20 = vpop.f32.mrb[81].mxu0 }
 0x782   : > { %v11493_v18 = vpop.f32.mrb[82].mxu0 }
 0x783   : > { %v11495_v38 = vpop.f32.mrb[83].mxu0 }
 0x7a9   : > { %v11497_v61 = vpop.f32.mrb[84].mxu0 }
 0x7aa   : > { %v11499_v36 = vpop.f32.mrb[85].mxu0 }
 0x7ad   : > { %v11501_v46 = vpop.f32.mrb[86].mxu0 }
 0x7ae   : > { %v11503_v31 = vpop.f32.mrb[87].mxu0 }
 0x7b1   : > { %v11505_v49 = vpop.f32.mrb[88].mxu0 }
 0x7b2   : > { %v11507_v27 = vpop.f32.mrb[89].mxu0 }
 0x7b5   : > { %v11509_v21 = vpop.f32.mrb[90].mxu0 }
 0x7b6   : > { %v11511_v42 = vpop.f32.mrb[91].mxu0 }
 0x7b9   : > { %v11513_v62 = vpop.f32.mrb[92].mxu0 }
 0x7ba   : > { %v11515_v63 = vpop.f32.mrb[93].mxu0 }
 0x7bd   : > { %v11517_v45 = vpop.f32.mrb[94].mxu0 }
 0x7be   : > { %v11519_v28 = vpop.f32.mrb[95].mxu0 }
 0x7c1   : > { %v11521_v58 = vpop.f32.mrb[96].mxu0 }
 0x7c2   : > { %v11523_v15 = vpop.f32.mrb[97].mxu0 }
 0x7c5   : > { %v11525_v51 = vpop.f32.mrb[98].mxu0 }
 0x7c6   : > { %v11527_v12 = vpop.f32.mrb[99].mxu0 }
 0x7c9   : > { %v11529_v43 = vpop.f32.mrb[100].mxu0 }
 0x7ca   : > { %v11531_v53 = vpop.f32.mrb[101].mxu0 }
 0x830   : > { %v5648_v37 = vpop.f32.mrb[12].mxu1 }
 0x831   : > { %v5650_v23 = vpop.f32.mrb[13].mxu1 }
 0x834   : > { %v5654_v47 = vpop.f32.mrb[14].mxu1 }
 0x835   : > { %v5656_v16 = vpop.f32.mrb[15].mxu1 }
 0x850   : > { %v5768_v33 = vpop.f32.mrb[16].mxu1 }
 0x851   : > { %v5769_v13 = vadd.f32 %v5768_v33, %v5695_v1  ;;  %v5770_v5 = vpop.f32.mrb[17].mxu1 }
 0x852   : > { %v5771_v17 = vadd.f32 %v5770_v5, %v5699_v6 }
 0x853   : > { %v5776_v40 = vrot.slane %v5769_v13, %v12931_v0 }
 0x854   : > { %v5780_v57 = vrot.slane %v5771_v17, %v12931_v0 }
 0x855   : > { %v5781_v9 = vadd.f32 %v5776_v40, %v5648_v37  ;;  %v5783_v3 = vadd.f32 %v5776_v40, %v5654_v47 }
 0x856   : > { %v11540_v29 = vadd.f32 %v5780_v57, %v5650_v23  ;;  %v11542_v48 = vadd.f32 %v5780_v57, %v5656_v16 }
 0x857   : > { %v5787_v24 = vcombine.high %v5781_v9, %v5781_v9  ;;  %v5794_v52 = vrot.slane %v5781_v9, %v12932_v25  ;;  %v5836_v59 = vcombine.high %v5783_v3, %v5783_v3  ;;  %v5843_v10 = vrot.slane %v5783_v3, %v12932_v25  ;;  %6099 = vrot.lane.b32.xlu1 %v5783_v3, %s12654_s29 }
 0x858   : > { %6097 = vrot.lane.b32.xlu0 %v5781_v9, %s12654_s29 }
 0x859   : > { %v5801_v60 = vrot.slane %v5787_v24, %v12932_v25  ;;  %v5802_v54 = vcombine.high %v5794_v52, %v5794_v52  ;;  %v5810_v35 = vrot.slane %v5794_v52, %v12932_v25  ;;  %v5850_v2 = vrot.slane %v5836_v59, %v12932_v25 }
 0x85a   : > { %v5851_v37 = vcombine.high %v5843_v10, %v5843_v10  ;;  %v5859_v23 = vrot.slane %v5843_v10, %v12932_v25 }
 0x85b   : > { %v5803_v47 = vcombine.high %v5801_v60, %v5801_v60  ;;  %v5817_v16 = vrot.slane %v5801_v60, %v12932_v25  ;;  %v5824_v14 = vrot.slane %v5802_v54, %v12932_v25  ;;  %v5832_v22 = vcombine.high %v5810_v35, %v5810_v35 }
 0x85c   : > { %v5852_v1 = vcombine.high %v5850_v2, %v5850_v2  ;;  %v5866_v41 = vrot.slane %v5850_v2, %v12932_v25  ;;  %v5873_v6 = vrot.slane %v5851_v37, %v12932_v25  ;;  %v5881_v33 = vcombine.high %v5859_v23, %v5859_v23 }
 0x85d   : > { %v5831_v13 = vrot.slane %v5803_v47, %v12932_v25  ;;  %v5833_v5 = vcombine.high %v5817_v16, %v5817_v16  ;;  %v5834_v17 = vcombine.high %v5824_v14, %v5824_v14  ;;  %v5988_v40 = vrot.slane %v5810_v35, %v12931_v0 }
 0x85e   : > { %v5880_v57 = vrot.slane %v5852_v1, %v12932_v25  ;;  %v5882_v9 = vcombine.high %v5866_v41, %v5866_v41  ;;  %v5883_v3 = vcombine.high %v5873_v6, %v5873_v6  ;;  %v5992_v24 = vrot.slane %v5824_v14, %v12931_v0 }
 0x85f   : > { %v5835_v52 = vcombine.high %v5831_v13, %v5831_v13  ;;  %v5996_v59 = vrot.slane %v5832_v22, %v12931_v0  ;;  %v6000_v10 = vrot.slane %v5834_v17, %v12931_v0  ;;  %v6004_v60 = vrot.slane %v5817_v16, %v12931_v0 }
 0x860   : > { %v5884_v54 = vcombine.high %v5880_v57, %v5880_v57  ;;  %v6008_v2 = vrot.slane %v5831_v13, %v12931_v0  ;;  %v6012_v37 = vrot.slane %v5833_v5, %v12931_v0  ;;  %v6020_v35 = vrot.slane %v5859_v23, %v12931_v0 }
 0x861   : > { %v6016_v47 = vrot.slane %v5835_v52, %v12931_v0  ;;  %v6024_v1 = vrot.slane %v5873_v6, %v12931_v0  ;;  %v6028_v14 = vrot.slane %v5881_v33, %v12931_v0  ;;  %v6032_v11 = vrot.slane %v5883_v3, %v12931_v0  ;;  %v6799_v3 = vld [vmem:[%s12376_s10] sm:$0xff] }
 0x862   : > { %v6036_v22 = vrot.slane %v5866_v41, %v12931_v0  ;;  %v6040_v17 = vrot.slane %v5880_v57, %v12931_v0  ;;  %v6044_v16 = vrot.slane %v5882_v9, %v12931_v0  ;;  %v6048_v13 = vrot.slane %v5884_v54, %v12931_v0  ;;  %v6714_v54 = vld [vmem:[%s12375_s9 + $0x30] sm:$0xff] }
 0x863   : > { %v11575_v5 = vadd.f32 %v5988_v40, %v11429_v8  ;;  %v11578_v23 = vadd.f32 %v11427_v39, %v5988_v40  ;;  %v11581_v6 = vadd.f32 %v5992_v24, %v11445_v55  ;;  %v11584_v33 = vadd.f32 %v11443_v50, %v5992_v24  ;;  %v6713_v40 = vld [vmem:[%s12375_s9 + $0x28] sm:$0xff] }
 0x864   : > { %v11587_v41 = vadd.f32 %v5996_v59, %v11461_v7  ;;  %v11590_v57 = vadd.f32 %v11459_v30, %v5996_v59  ;;  %v11593_v9 = vadd.f32 %v6000_v10, %v11477_v32  ;;  %v11596_v8 = vadd.f32 %v11475_v56, %v6000_v10  ;;  %v6800_v24 = vld [vmem:[%s12376_s10 + $0x8] sm:$0xff]  ;;  %v6801_v59 = vld [vmem:[%s12376_s10 + $0x10] sm:$0xff]  ;;  %v6802_v10 = vld [vmem:[%s12376_s10 + $0x18] sm:$0xff] }
 0x865   : > { %12933 = vst [vmem:[#allocation10_spill] sm:$0xff] %v11584_v33  ;;  %v11599_v39 = vadd.f32 %v6004_v60, %v11487_v34  ;;  %v11602_v55 = vadd.f32 %v11485_v19, %v6004_v60  ;;  %v11605_v50 = vadd.f32 %v6008_v2, %v11491_v20  ;;  %v11608_v7 = vadd.f32 %v11489_v26, %v6008_v2  ;;  %v6715_v2 = vld [vmem:[%s12375_s9 + $0x38] sm:$0xff] }
 0x866   : > { %12934 = vst [vmem:[#allocation43_spill] sm:$0xff] %v11587_v41  ;;  %12935 = vst [vmem:[#allocation44_spill] sm:$0xff] %v11590_v57  ;;  %v11611_v30 = vadd.f32 %v6012_v37, %v11495_v38  ;;  %v11614_v32 = vadd.f32 %v11493_v18, %v6012_v37  ;;  %v11617_v56 = vadd.f32 %v6016_v47, %v11499_v36 }
 0x867   : > { %12936 = vst [vmem:[#allocation15_spill] sm:$0xff] %v11593_v9  ;;  %12937 = vst [vmem:[#allocation46_spill] sm:$0xff] %v11596_v8  ;;  %v11620_v34 = vadd.f32 %v11497_v61, %v6016_v47  ;;  %v11623_v19 = vadd.f32 %v6020_v35, %v11503_v31  ;;  %v11626_v20 = vadd.f32 %v11501_v46, %v6020_v35  ;;  %v6803_v35 = vld [vmem:[%s12376_s10 + $0x20] sm:$0xff]  ;;  %v6804_v47 = vld [vmem:[%s12376_s10 + $0x28] sm:$0xff] }
 0x868   : > { %12938 = vst [vmem:[#allocation12_spill] sm:$0xff] %v11599_v39  ;;  %12939 = vst [vmem:[#allocation14_spill] sm:$0xff] %v11602_v55  ;;  %v11629_v26 = vadd.f32 %v6024_v1, %v11507_v27  ;;  %v11632_v38 = vadd.f32 %v11505_v49, %v6024_v1  ;;  %v11635_v18 = vadd.f32 %v6028_v14, %v11511_v42 }
 0x869   : > { %12940 = vst [vmem:[#allocation47_spill] sm:$0xff] %v11605_v50  ;;  %12941 = vst [vmem:[#allocation48_spill] sm:$0xff] %v11608_v7  ;;  %v11638_v36 = vadd.f32 %v11509_v21, %v6028_v14  ;;  %v11641_v61 = vadd.f32 %v6032_v11, %v11515_v63  ;;  %v11644_v31 = vadd.f32 %v11513_v62, %v6032_v11  ;;  %v6716_v14 = vld [vmem:[%s12375_s9 + $0x40] sm:$0xff]  ;;  %v12991_v7 = vld [vmem:[#allocation39_spill] sm:$0xff] }
 0x86a   : > { %12942 = vst [vmem:[#allocation49_spill] sm:$0xff] %v11611_v30  ;;  %12943 = vst [vmem:[#allocation50_spill] sm:$0xff] %v11614_v32  ;;  %v11647_v46 = vadd.f32 %v6036_v22, %v11519_v28  ;;  %v11650_v27 = vadd.f32 %v11517_v45, %v6036_v22  ;;  %v11653_v49 = vadd.f32 %v6040_v17, %v11523_v15  ;;  %v6708_v45 = vld [vmem:[%s12375_s9] sm:$0xff]  ;;  %v6709_v28 = vld [vmem:[%s12375_s9 + $0x8] sm:$0xff] }
 0x86b   : > { %12944 = vst [vmem:[#allocation51_spill] sm:$0xff] %v11617_v56  ;;  %12945 = vst [vmem:[#allocation17_spill] sm:$0xff] %v11620_v34  ;;  %v11656_v42 = vadd.f32 %v11521_v58, %v6040_v17  ;;  %v11659_v21 = vadd.f32 %v6044_v16, %v11527_v12  ;;  %v11662_v63 = vadd.f32 %v11525_v51, %v6044_v16  ;;  %v6710_v58 = vld [vmem:[%s12375_s9 + $0x10] sm:$0xff]  ;;  %v6711_v51 = vld [vmem:[%s12375_s9 + $0x18] sm:$0xff]  ;;  %v12482_v12 = vmov 0.0|0.0  }
 0x86c   : > { %v11665_v11 = vadd.f32 %v6048_v13, %v11531_v53  ;;  %v11668_v62 = vadd.f32 %v11529_v43, %v6048_v13  ;;  %v7906_v15 = vpack.c.bf16 %v6709_v28, %v6708_v45  ;;  %7938 = vmatprep.subr.bf16.mxu1 %v12482_v12  ;;  %v7910_v43 = vpack.c.bf16 %v6711_v51, %v6710_v58  ;;  %v6712_v53 = vld [vmem:[%s12375_s9 + $0x20] sm:$0xff]  ;;  %v6717_v22 = vld [vmem:[%s12375_s9 + $0x48] sm:$0xff]  ;;  %v6805_v16 = vld [vmem:[%s12376_s10 + $0x30] sm:$0xff] }
 0x86d   : > { %v7939_v52 = vpack.c.bf16 %v6800_v24, %v6799_v3  ;;  %v7914_v60 = vpack.c.bf16 %v6713_v40, %v6712_v53  ;;  %v7942_v37 = vpack.c.bf16 %v6802_v10, %v6801_v59  ;;  %v7918_v1 = vpack.c.bf16 %v6715_v2, %v6714_v54  ;;  %v6806_v13 = vld [vmem:[%s12376_s10 + $0x38] sm:$0xff]  ;;  %v6718_v28 = vld [vmem:[%s12375_s9 + $0x50] sm:$0xff]  ;;  %v6721_v53 = vld [vmem:[%s12375_s9 + $0x68] sm:$0xff] }
 0x86e   : > { %7907 = vmatprep.subr.bf16.mxu0 %v7906_v15  ;;  %v7945_v17 = vpack.c.bf16 %v6804_v47, %v6803_v35  ;;  %v7922_v45 = vpack.c.bf16 %v6717_v22, %v6716_v14  ;;  %v6719_v58 = vld [vmem:[%s12375_s9 + $0x58] sm:$0xff]  ;;  %v5887_v40 = vcombine.high %v11540_v29, %v11540_v29  ;;  %v5936_v24 = vcombine.high %v11542_v48, %v11542_v48  ;;  %v12989_v56 = vld [vmem:[#allocation63_spill] sm:$0xff]  ;;  %v12990_v32 = vld [vmem:[#allocation65_spill] sm:$0xff] }
 0x86f   : > { %7909 = vmatpush3.bf16.msra.mxu0 %v7906_v15  ;;  %7940 = vmatpush3.bf16.msra.mxu1 %v7939_v52  ;;  %v7948_v15 = vpack.c.bf16 %v6806_v13, %v6805_v16  ;;  %v7926_v51 = vpack.c.bf16 %v6719_v58, %v6718_v28  ;;  %v6722_v52 = vld [vmem:[%s12375_s9 + $0x70] sm:$0xff]  ;;  %v6723_v59 = vld [vmem:[%s12375_s9 + $0x78] sm:$0xff]  ;;  %v5894_v10 = vrot.slane %v11540_v29, %v12932_v25 }
 0x870   : > { %7911 = vmatprep.subr.bf16.mxu0 %v7910_v43  ;;  %7941 = vmatprep.subr.bf16.mxu1 %v12482_v12  ;;  %v5943_v54 = vrot.slane %v11542_v48, %v12932_v25  ;;  %v7934_v2 = vpack.c.bf16 %v6723_v59, %v6722_v52 }
 0x871   : > { %v5902_v35 = vcombine.high %v5894_v10, %v5894_v10  ;;  %v5910_v22 = vrot.slane %v5894_v10, %v12932_v25 }
 0x872   : > { %v5959_v48 = vrot.slane %v5943_v54, %v12932_v25 }
 0x873   : > { %7913 = vmatpush3.bf16.msra.mxu0 %v7910_v43  ;;  %7943 = vmatpush3.bf16.msra.mxu1 %v7942_v37  ;;  %v6720_v43 = vld [vmem:[%s12375_s9 + $0x60] sm:$0xff]  ;;  %v5950_v37 = vrot.slane %v5936_v24, %v12932_v25  ;;  %v5924_v29 = vrot.slane %v5902_v35, %v12932_v25  ;;  %v5932_v58 = vcombine.high %v5910_v22, %v5910_v22 }
 0x874   : > { %7915 = vmatprep.subr.bf16.mxu0 %v7914_v60  ;;  %7944 = vmatprep.subr.bf16.mxu1 %v12482_v12  ;;  %v7930_v3 = vpack.c.bf16 %v6721_v53, %v6720_v43  ;;  %v5981_v53 = vcombine.high %v5959_v48, %v5959_v48  ;;  %v6138_v52 = vrot.slane %v5910_v22, %v12931_v0 }
 0x875   : > { %v5952_v14 = vcombine.high %v5950_v37, %v5950_v37  ;;  %v6142_v59 = vrot.slane %v5924_v29, %v12931_v0  ;;  %v6146_v10 = vrot.slane %v5932_v58, %v12931_v0  ;;  %v6170_v35 = vrot.slane %v5959_v48, %v12931_v0  ;;  %v12946_v58 = vld [vmem:[#allocation18_spill] sm:$0xff]  ;;  %v12950_v48 = vld [vmem:[#allocation19_spill] sm:$0xff] }
 0x877   : > { %7917 = vmatpush3.bf16.msra.mxu0 %v7914_v60  ;;  %7946 = vmatpush3.bf16.msra.mxu1 %v7945_v17  ;;  %v5901_v60 = vrot.slane %v5887_v40, %v12932_v25  ;;  %v5980_v28 = vrot.slane %v5952_v14, %v12932_v25 }
 0x878   : > { %7919 = vmatprep.subr.bf16.mxu0 %v7918_v1  ;;  %7947 = vmatprep.subr.bf16.mxu1 %v12482_v12 }
 0x879   : > { %v5903_v47 = vcombine.high %v5901_v60, %v5901_v60  ;;  %v5917_v17 = vrot.slane %v5901_v60, %v12932_v25  ;;  %v5984_v24 = vcombine.high %v5980_v28, %v5980_v28 }
 0x87b   : > { %7921 = vmatpush3.bf16.msra.mxu0 %v7918_v1  ;;  %7949 = vmatpush3.bf16.msra.mxu1 %v7948_v15  ;;  %v5951_v1 = vcombine.high %v5943_v54, %v5943_v54  ;;  %v5931_v16 = vrot.slane %v5903_v47, %v12932_v25  ;;  %v5934_v15 = vcombine.high %v5924_v29, %v5924_v29 }
 0x87c   : > { %7923 = vmatprep.subr.bf16.mxu0 %v7922_v45  ;;  %7950 = vmatprep.subr.bf16.mxu1 %v12482_v12  ;;  %v6154_v54 = vrot.slane %v5917_v17, %v12931_v0  ;;  %v6190_v29 = vrot.slane %v5980_v28, %v12931_v0  ;;  %v12956_v28 = vld [vmem:[#allocation24_spill] sm:$0xff] }
 0x87d   : > { %v5973_v13 = vrot.slane %v5951_v1, %v12932_v25  ;;  %v5935_v43 = vcombine.high %v5931_v16, %v5931_v16  ;;  %v6150_v60 = vrot.slane %v5934_v15, %v12931_v0  ;;  %v6178_v1 = vrot.slane %v5981_v53, %v12931_v0  ;;  %v12952_v53 = vld [vmem:[#allocation21_spill] sm:$0xff] }
 0x87e   : > { %v11782_v15 = vmul.f32 %v6138_v52, %v12946_v58  ;;  %v11791_v12 = vmul.f32 %v6142_v59, %v12952_v53  ;;  %v11797_v34 = vmul.f32 %v6146_v10, %v12956_v28 }
 0x87f   : > { %7925 = vmatpush3.bf16.msra.mxu0 %v7922_v45  ;;  %v5966_v45 = vrot.slane %v5950_v37, %v12932_v25  ;;  %v5983_v40 = vcombine.high %v5973_v13, %v5973_v13  ;;  %v6158_v25 = vrot.slane %v5931_v16, %v12931_v0  ;;  %v6166_v37 = vrot.slane %v5935_v43, %v12931_v0 }
 0x880   : > { %7927 = vmatprep.subr.bf16.mxu0 %v7926_v51  ;;  %v6174_v47 = vrot.slane %v5973_v13, %v12931_v0  ;;  %v6198_v16 = vrot.slane %v5984_v24, %v12931_v0  ;;  %12947 = vst [vmem:[#allocation52_spill] sm:$0xff] %v11782_v15  ;;  %v11788_v13 = vmul.f32 %v6142_v59, %v12950_v48  ;;  %12953 = vst [vmem:[#allocation9_spill] sm:$0xff] %v11791_v12  ;;  %v12964_v48 = vld [vmem:[#allocation28_spill] sm:$0xff]  ;;  %v12966_v59 = vld [vmem:[#allocation27_spill] sm:$0xff] }
 0x881   : > { %v6182_v14 = vrot.slane %v5983_v40, %v12931_v0  ;;  %v6186_v22 = vrot.slane %v5966_v45, %v12931_v0  ;;  %v12954_v40 = vld [vmem:[#allocation22_spill] sm:$0xff]  ;;  %12957 = vst [vmem:[#allocation69_spill] sm:$0xff] %v11797_v34  ;;  %v11812_v53 = vmul.f32 %v6158_v25, %v12966_v59  ;;  %v12987_v12 = vld [vmem:[#allocation61_spill] sm:$0xff] }
 0x882   : > { %12951 = vst [vmem:[#allocation6_spill] sm:$0xff] %v11788_v13  ;;  %v11809_v13 = vmul.f32 %v6154_v54, %v12964_v48  ;;  %v6245_v30 = vmul.f32 %v6198_v16, %v12990_v32 }
 0x883   : > { %7929 = vmatpush3.bf16.msra.mxu0 %v7926_v51  ;;  %v5933_v51 = vcombine.high %v5917_v17, %v5917_v17  ;;  %12967 = vst [vmem:[#allocation74_spill] sm:$0xff] %v11812_v53  ;;  %v12978_v53 = vld [vmem:[#allocation36_spill] sm:$0xff] }
 0x884   : > { %7931 = vmatprep.subr.bf16.mxu0 %v7930_v3  ;;  %12965 = vst [vmem:[#allocation73_spill] sm:$0xff] %v11809_v13  ;;  %v6233_v13 = vmul.f32 %v6174_v47, %v12978_v53 }
 0x887   : > { %7933 = vmatpush3.bf16.msra.mxu0 %v7930_v3  ;;  %v5982_v3 = vcombine.high %v5966_v45, %v5966_v45  ;;  %v11794_v45 = vmul.f32 %v6146_v10, %v12954_v40  ;;  %v12968_v40 = vld [vmem:[#allocation30_spill] sm:$0xff]  ;;  %v12970_v10 = vld [vmem:[#allocation29_spill] sm:$0xff] }
 0x888   : > { %7935 = vmatprep.subr.bf16.mxu0 %v7934_v2 }
 0x889   : > { %v6194_v17 = vrot.slane %v5982_v3, %v12931_v0  ;;  %12955 = vst [vmem:[#allocation68_spill] sm:$0xff] %v11794_v45  ;;  %v12958_v3 = vld [vmem:[#allocation23_spill] sm:$0xff]  ;;  %v11815_v45 = vmul.f32 %v6158_v25, %v12968_v40  ;;  %v12979_v25 = vld [vmem:[#allocation37_spill] sm:$0xff] }
 0x88a   : > { %v11800_v24 = vmul.f32 %v6150_v60, %v12958_v3  ;;  %v12972_v3 = vld [vmem:[#allocation32_spill] sm:$0xff]  ;;  %v6234_v40 = vmul.f32 %v6174_v47, %v12979_v25 }
 0x88b   : > { %7937 = vmatpush3.bf16.msra.mxu0 %v7934_v2  ;;  %v6162_v2 = vrot.slane %v5933_v51, %v12931_v0  ;;  %v12948_v51 = vld [vmem:[#allocation20_spill] sm:$0xff]  ;;  %v12960_v0 = vld [vmem:[#allocation26_spill] sm:$0xff]  ;;  %12969 = vst [vmem:[#allocation75_spill] sm:$0xff] %v11815_v45  ;;  %v6244_v47 = vmul.f32 %v6194_v17, %v12989_v56 }
 0x88c   : > { %v11785_v43 = vmul.f32 %v6138_v52, %v12948_v51  ;;  %12959 = vst [vmem:[#allocation70_spill] sm:$0xff] %v11800_v24  ;;  %v11803_v58 = vmul.f32 %v6150_v60, %v12960_v0  ;;  %v12962_v52 = vld [vmem:[#allocation25_spill] sm:$0xff]  ;;  %v11824_v60 = vmul.f32 %v6166_v37, %v12923_v4  ;;  %v12977_v0 = vld [vmem:[#allocation35_spill] sm:$0xff]  ;;  %v12980_v45 = vld [vmem:[#allocation56_spill] sm:$0xff] }
 0x88d   : > { %v11806_v51 = vmul.f32 %v6154_v54, %v12962_v52  ;;  %v11818_v28 = vmul.f32 %v6162_v2, %v12970_v10  ;;  %v11821_v24 = vmul.f32 %v6162_v2, %v12972_v3  ;;  %v11827_v52 = vmul.f32 %v6166_v37, %v12924_v44  ;;  %v12976_v54 = vld [vmem:[#allocation34_spill] sm:$0xff]  ;;  %v12985_v37 = vld [vmem:[#allocation59_spill] sm:$0xff] }
 0x88e   : > { %12949 = vst [vmem:[#allocation42_spill] sm:$0xff] %v11785_v43  ;;  %12961 = vst [vmem:[#allocation71_spill] sm:$0xff] %v11803_v58  ;;  %v6231_v48 = vmul.f32 %v6170_v35, %v12976_v54  ;;  %v6232_v59 = vmul.f32 %v6170_v35, %v12977_v0  ;;  %v6235_v10 = vmul.f32 %v6178_v1, %v12980_v45  ;;  %v12982_v2 = vld [vmem:[#allocation58_spill] sm:$0xff]  ;;  %v12988_v43 = vld [vmem:[#allocation64_spill] sm:$0xff] }
 0x88f   : > { %12963 = vst [vmem:[#allocation72_spill] sm:$0xff] %v11806_v51  ;;  %12971 = vst [vmem:[#allocation76_spill] sm:$0xff] %v11818_v28  ;;  %v12981_v28 = vld [vmem:[#allocation55_spill] sm:$0xff]  ;;  %v6237_v3 = vmul.f32 %v6182_v14, %v12982_v2  ;;  %v6240_v44 = vmul.f32 %v6186_v22, %v12985_v37  ;;  %v6242_v35 = vmul.f32 %v6190_v29, %v12987_v12 }
 0x890   : > { %12973 = vst [vmem:[#allocation77_spill] sm:$0xff] %v11821_v24  ;;  %12974 = vst [vmem:[#allocation16_spill] sm:$0xff] %v11824_v60  ;;  %v6236_v51 = vmul.f32 %v6178_v1, %v12981_v28  ;;  %v12983_v24 = vld [vmem:[#allocation57_spill] sm:$0xff]  ;;  %v12984_v60 = vld [vmem:[#allocation60_spill] sm:$0xff]  ;;  %v6243_v15 = vmul.f32 %v6194_v17, %v12988_v43  ;;  %v6246_v1 = vmul.f32 %v6198_v16, %v12991_v7 }
 0x891   : > { %12975 = vst [vmem:[#allocation45_spill] sm:$0xff] %v11827_v52  ;;  %v6238_v4 = vmul.f32 %v6182_v14, %v12983_v24  ;;  %v6239_v58 = vmul.f32 %v6186_v22, %v12984_v60  ;;  %v12986_v52 = vld [vmem:[#allocation62_spill] sm:$0xff] }
 0x892   : > { %v6241_v34 = vmul.f32 %v6190_v29, %v12986_v52 }
 0x8c9   : > { %v11845_v50 = vpop.permute.xlu1 %6099 }
 0x8ca   : > { %v11847_v55 = vpop.permute.xlu0 %6097  ;;  %v6120_v14 = vadd.f32 %v11845_v50, %v11626_v20  ;;  %v6122_v22 = vadd.f32 %v11845_v50, %v11632_v38  ;;  %v6124_v29 = vadd.f32 %v11845_v50, %v11638_v36  ;;  %v6126_v17 = vadd.f32 %v11845_v50, %v11644_v31 }
 0x8cb   : > { %v6119_v39 = vadd.f32 %v11847_v55, %v11623_v19  ;;  %v6121_v16 = vadd.f32 %v11847_v55, %v11629_v26  ;;  %v6123_v8 = vadd.f32 %v11847_v55, %v11635_v18  ;;  %v6125_v20 = vadd.f32 %v11847_v55, %v11641_v61 }
 0x8cc   : > { %v6127_v38 = vadd.f32 %v11847_v55, %v11647_v46  ;;  %v6128_v36 = vadd.f32 %v11845_v50, %v11650_v27  ;;  %v6129_v31 = vadd.f32 %v11847_v55, %v11653_v49  ;;  %v6130_v19 = vadd.f32 %v11845_v50, %v11656_v42 }
 0x8cd   : > { %v6131_v26 = vadd.f32 %v11847_v55, %v11659_v21  ;;  %v6132_v18 = vadd.f32 %v11845_v50, %v11662_v63  ;;  %v6133_v61 = vadd.f32 %v11847_v55, %v11665_v11  ;;  %v6134_v46 = vadd.f32 %v11845_v50, %v11668_v62 }
 0x8ce   : > { %v11881_v9 = vadd.f32 %v6231_v48, %v6119_v39  ;;  %v11883_v27 = vadd.f32 %v6232_v59, %v6120_v14  ;;  %v11885_v49 = vadd.f32 %v6233_v13, %v6121_v16  ;;  %v11887_v57 = vadd.f32 %v6234_v40, %v6122_v22 }
 0x8cf   : > { %v11889_v42 = vadd.f32 %v6235_v10, %v6123_v8  ;;  %v11891_v21 = vadd.f32 %v6236_v51, %v6124_v29  ;;  %v11893_v41 = vadd.f32 %v6237_v3, %v6125_v20  ;;  %v11895_v63 = vadd.f32 %v6238_v4, %v6126_v17 }
 0x8d0   : > { %v11897_v11 = vadd.f32 %v6239_v58, %v6127_v38  ;;  %v11899_v33 = vadd.f32 %v6240_v44, %v6128_v36  ;;  %v11901_v39 = vadd.f32 %v6241_v34, %v6129_v31  ;;  %v11903_v62 = vadd.f32 %v6242_v35, %v6130_v19 }
 0x8d1   : > { %v11905_v48 = vadd.f32 %v6243_v15, %v6131_v26  ;;  %v11907_v13 = vadd.f32 %v6244_v47, %v6132_v18  ;;  %v11909_v8 = vadd.f32 %v6245_v30, %v6133_v61  ;;  %v11911_v51 = vadd.f32 %v6246_v1, %v6134_v46 }
 0x8d2   : > { %v12487_v40 = vmax.f32 %v11881_v9, 0.0  ;;  %v12518_v4 = vmax.f32 %v11883_v27, 0.0  ;;  %v12517_v58 = vmax.f32 %v11885_v49, 0.0  ;;  %v12516_v44 = vmax.f32 %v11887_v57, 0.0 }
 0x8d3   : > { %v12514_v34 = vmax.f32 %v11889_v42, 0.0  ;;  %v12511_v3 = vmax.f32 %v11891_v21, 0.0  ;;  %v12497_v15 = vmax.f32 %v11893_v41, 0.0  ;;  %v12496_v59 = vmax.f32 %v11895_v63, 0.0 }
 0x8d4   : > { %v12495_v30 = vmax.f32 %v11897_v11, 0.0  ;;  %v12494_v10 = vmax.f32 %v11899_v33, 0.0  ;;  %v12493_v35 = vmax.f32 %v11901_v39, 0.0  ;;  %v12492_v47 = vmax.f32 %v11903_v62, 0.0 }
 0x8d5   : > { %v12491_v1 = vmax.f32 %v11905_v48, 0.0  ;;  %v12490_v14 = vmax.f32 %v11907_v13, 0.0  ;;  %v12489_v22 = vmax.f32 %v11909_v8, 0.0  ;;  %v12488_v29 = vmax.f32 %v11911_v51, 0.0 }
 0x8d6   : > { %v6471_v17 = vmul.f32 %v12487_v40, %v12976_v54  ;;  %v6472_v16 = vmul.f32 %v12518_v4, %v12977_v0  ;;  %v6473_v20 = vmul.f32 %v12517_v58, %v12978_v53  ;;  %v6474_v38 = vmul.f32 %v12516_v44, %v12979_v25 }
 0x8d7   : > { %v6475_v36 = vmul.f32 %v12514_v34, %v12980_v45  ;;  %v6476_v54 = vmul.f32 %v12511_v3, %v12981_v28  ;;  %v6477_v0 = vmul.f32 %v12497_v15, %v12982_v2  ;;  %v6478_v53 = vmul.f32 %v12496_v59, %v12983_v24  ;;  %v13027_v15 = vld [vmem:[#allocation24_spill] sm:$0xff] }
 0x8d8   : > { %v6479_v25 = vmul.f32 %v12495_v30, %v12984_v60  ;;  %v6480_v45 = vmul.f32 %v12494_v10, %v12985_v37  ;;  %v6481_v28 = vmul.f32 %v12493_v35, %v12986_v52  ;;  %v6482_v2 = vmul.f32 %v12492_v47, %v12987_v12  ;;  %v13025_v35 = vld [vmem:[#allocation21_spill] sm:$0xff]  ;;  %v13026_v30 = vld [vmem:[#allocation22_spill] sm:$0xff] }
 0x8d9   : > { %v6483_v24 = vmul.f32 %v12491_v1, %v12988_v43  ;;  %v6484_v60 = vmul.f32 %v12490_v14, %v12989_v56  ;;  %v6485_v37 = vmul.f32 %v12489_v22, %v12990_v32  ;;  %v6486_v52 = vmul.f32 %v12488_v29, %v12991_v7 }
 0x8da   : > { %v6559_v31 = vsel %vm1839_vm7, %v6471_v17, 0.0  ;;  %v6560_v12 = vsel %vm1839_vm7, %v6472_v16, 0.0  ;;  %v6568_v19 = vsel %vm1839_vm7, %v6473_v20, 0.0  ;;  %v6569_v43 = vsel %vm1839_vm7, %v6474_v38, 0.0 }
 0x8db   : > { %v6561_v26 = vadd.f32 %v6560_v12, %v6559_v31  ;;  %v6570_v18 = vadd.f32 %v6569_v43, %v6568_v19  ;;  %v6577_v56 = vsel %vm1839_vm7, %v6475_v36, 0.0  ;;  %v6578_v61 = vsel %vm1839_vm7, %v6476_v54, 0.0 }
 0x8dc   : > { %v6579_v46 = vadd.f32 %v6578_v61, %v6577_v56  ;;  %v6586_v32 = vsel %vm1839_vm7, %v6477_v0, 0.0  ;;  %v6587_v40 = vsel %vm1839_vm7, %v6478_v53, 0.0  ;;  %v6595_v7 = vsel %vm1839_vm7, %v6479_v25, 0.0 }
 0x8dd   : > { %v6562_v17 = vrot.slane %v6561_v26, 4  ;;  %v6571_v29 = vrot.slane %v6570_v18, 4  ;;  %v6588_v16 = vadd.f32 %v6587_v40, %v6586_v32  ;;  %v6596_v20 = vsel %vm1839_vm7, %v6480_v45, 0.0 }
 0x8de   : > { %v6580_v22 = vrot.slane %v6579_v46, 4  ;;  %v6597_v38 = vadd.f32 %v6596_v20, %v6595_v7  ;;  %v6604_v31 = vsel %vm1839_vm7, %v6481_v28, 0.0  ;;  %v6605_v36 = vsel %vm1839_vm7, %v6482_v2, 0.0 }
 0x8df   : > { %v6563_v12 = vadd.f32 %v6562_v17, %v6561_v26  ;;  %v6572_v54 = vadd.f32 %v6571_v29, %v6570_v18  ;;  %v6589_v19 = vrot.slane %v6588_v16, 4  ;;  %v6606_v43 = vadd.f32 %v6605_v36, %v6604_v31 }
 0x8e0   : > { %v6581_v0 = vadd.f32 %v6580_v22, %v6579_v46  ;;  %v6598_v56 = vrot.slane %v6597_v38, 4  ;;  %v6613_v53 = vsel %vm1839_vm7, %v6483_v24, 0.0  ;;  %v6614_v25 = vsel %vm1839_vm7, %v6484_v60, 0.0 }
 0x8e1   : > { %v6564_v61 = vrot.slane %v6563_v12, 2  ;;  %v6573_v40 = vrot.slane %v6572_v54, 2  ;;  %v6590_v32 = vadd.f32 %v6589_v19, %v6588_v16  ;;  %v6607_v45 = vrot.slane %v6606_v43, 4 }
 0x8e2   : > { %v6582_v14 = vrot.slane %v6581_v0, 2  ;;  %v6599_v7 = vadd.f32 %v6598_v56, %v6597_v38  ;;  %v6615_v20 = vadd.f32 %v6614_v25, %v6613_v53  ;;  %v6622_v28 = vsel %vm1839_vm7, %v6485_v37, 0.0 }
 0x8e3   : > { %v6565_v2 = vadd.f32 %v6564_v61, %v6563_v12  ;;  %v6574_v26 = vadd.f32 %v6573_v40, %v6572_v54  ;;  %v6591_v29 = vrot.slane %v6590_v32, 2  ;;  %v6608_v18 = vadd.f32 %v6607_v45, %v6606_v43 }
 0x8e4   : > { %v6583_v17 = vadd.f32 %v6582_v14, %v6581_v0  ;;  %v6600_v22 = vrot.slane %v6599_v7, 2  ;;  %v6616_v46 = vrot.slane %v6615_v20, 4  ;;  %v6623_v24 = vsel %vm1839_vm7, %v6486_v52, 0.0 }
 0x8e5   : > { %v6566_v31 = vrot.slane %v6565_v2, 1  ;;  %v6575_v60 = vrot.slane %v6574_v26, 1  ;;  %v6592_v36 = vadd.f32 %v6591_v29, %v6590_v32  ;;  %v6609_v1 = vrot.slane %v6608_v18, 2 }
 0x8e6   : > { %v6584_v16 = vrot.slane %v6583_v17, 1  ;;  %v6601_v19 = vadd.f32 %v6600_v22, %v6599_v7  ;;  %v6617_v47 = vadd.f32 %v6616_v46, %v6615_v20  ;;  %v6624_v38 = vadd.f32 %v6623_v24, %v6622_v28  ;;  %v12992_v22 = vld [vmem:[#allocation10_spill] sm:$0xff]  ;;  %v12993_v46 = vld [vmem:[#allocation43_spill] sm:$0xff] }
 0x8e7   : > { %v6567_v56 = vadd.f32 %v6566_v31, %v6565_v2  ;;  %v6576_v53 = vadd.f32 %v6575_v60, %v6574_v26  ;;  %v6593_v37 = vrot.slane %v6592_v36, 1  ;;  %v6610_v12 = vadd.f32 %v6609_v1, %v6608_v18  ;;  %v12994_v31 = vld [vmem:[#allocation44_spill] sm:$0xff] }
 0x8e8   : > { %v6585_v54 = vadd.f32 %v6584_v16, %v6583_v17  ;;  %v6602_v25 = vrot.slane %v6601_v19, 1  ;;  %v6618_v43 = vrot.slane %v6617_v47, 2  ;;  %v6625_v14 = vrot.slane %v6624_v38, 4 }
 0x8e9   : > { %v6594_v0 = vadd.f32 %v6593_v37, %v6592_v36  ;;  %v6611_v61 = vrot.slane %v6610_v12, 1  ;;  %v6686_v52 = vsel %vm2176_vm8, %v6576_v53, %v6567_v56  ;;  %v6103_v40 = vadd.f32 %v11847_v55, %v11575_v5  ;;  %v12995_v36 = vld [vmem:[#allocation15_spill] sm:$0xff]  ;;  %v12997_v56 = vld [vmem:[#allocation12_spill] sm:$0xff]  ;;  %v12998_v37 = vld [vmem:[#allocation14_spill] sm:$0xff] }
 0x8ea   : > { %v6603_v32 = vadd.f32 %v6602_v25, %v6601_v19  ;;  %v6619_v45 = vadd.f32 %v6618_v43, %v6617_v47  ;;  %v6626_v7 = vadd.f32 %v6625_v14, %v6624_v38  ;;  %v6687_v20 = vsel %vm2178_vm9, %v6585_v54, %v6686_v52  ;;  %v12996_v19 = vld [vmem:[#allocation46_spill] sm:$0xff]  ;;  %v12999_v54 = vld [vmem:[#allocation47_spill] sm:$0xff]  ;;  %v13000_v43 = vld [vmem:[#allocation48_spill] sm:$0xff] }
 0x8eb   : > { %v6612_v28 = vadd.f32 %v6611_v61, %v6610_v12  ;;  %v6688_v2 = vsel %vm2180_vm10, %v6594_v0, %v6687_v20  ;;  %v6104_v1 = vadd.f32 %v11845_v50, %v11578_v23  ;;  %v6105_v26 = vadd.f32 %v11847_v55, %v11581_v6  ;;  %v13001_v0 = vld [vmem:[#allocation49_spill] sm:$0xff]  ;;  %v13003_v20 = vld [vmem:[#allocation51_spill] sm:$0xff] }
 0x8ec   : > { %v6620_v29 = vrot.slane %v6619_v45, 1  ;;  %v6627_v18 = vrot.slane %v6626_v7, 2  ;;  %v6689_v17 = vsel %vm2182_vm11, %v6603_v32, %v6688_v2  ;;  %v6106_v5 = vadd.f32 %v11845_v50, %v12992_v22  ;;  %v13004_v2 = vld [vmem:[#allocation17_spill] sm:$0xff]  ;;  %v13006_v22 = vld [vmem:[#allocation42_spill] sm:$0xff] }
 0x8ed   : > { %v6690_v47 = vsel %vm2184_vm12, %v6612_v28, %v6689_v17  ;;  %v6107_v24 = vadd.f32 %v11847_v55, %v12993_v46  ;;  %v6108_v60 = vadd.f32 %v11845_v50, %v12994_v31  ;;  %v6109_v23 = vadd.f32 %v11847_v55, %v12995_v36  ;;  %v13007_v31 = vld [vmem:[#allocation6_spill] sm:$0xff] }
 0x8ee   : > { %v6621_v16 = vadd.f32 %v6620_v29, %v6619_v45  ;;  %v6628_v6 = vadd.f32 %v6627_v18, %v6626_v7  ;;  %v6110_v38 = vadd.f32 %v11845_v50, %v12996_v19  ;;  %v6111_v53 = vadd.f32 %v11847_v55, %v12997_v56  ;;  %v13002_v45 = vld [vmem:[#allocation50_spill] sm:$0xff]  ;;  %v13005_v18 = vld [vmem:[#allocation52_spill] sm:$0xff] }
 0x8ef   : > { %v6112_v12 = vadd.f32 %v11845_v50, %v12998_v37  ;;  %v6113_v25 = vadd.f32 %v11847_v55, %v12999_v54  ;;  %v6114_v14 = vadd.f32 %v11845_v50, %v13000_v43  ;;  %v6115_v61 = vadd.f32 %v11847_v55, %v13001_v0  ;;  %v13009_v56 = vld [vmem:[#allocation68_spill] sm:$0xff] }
 0x8f0   : > { %v6629_v52 = vrot.slane %v6628_v6, 1  ;;  %v6691_v32 = vsel %vm2186_vm13, %v6621_v16, %v6690_v47  ;;  %v6116_v7 = vadd.f32 %v11845_v50, %v13002_v45  ;;  %v6117_v28 = vadd.f32 %v11847_v55, %v13003_v20  ;;  %v13008_v47 = vld [vmem:[#allocation9_spill] sm:$0xff]  ;;  %v13016_v20 = vld [vmem:[#allocation75_spill] sm:$0xff] }
 0x8f1   : > { %v6118_v29 = vadd.f32 %v11845_v50, %v13004_v2  ;;  %v12032_v17 = vadd.f32 %v13005_v18, %v6103_v40  ;;  %v12035_v46 = vadd.f32 %v13006_v22, %v6104_v1  ;;  %v12038_v36 = vadd.f32 %v13007_v31, %v6105_v26  ;;  %v13010_v55 = vld [vmem:[#allocation69_spill] sm:$0xff]  ;;  %v13011_v50 = vld [vmem:[#allocation70_spill] sm:$0xff]  ;;  %v13012_v40 = vld [vmem:[#allocation71_spill] sm:$0xff] }
 0x8f2   : > { %v6630_v19 = vadd.f32 %v6629_v52, %v6628_v6  ;;  %v12041_v16 = vadd.f32 %v13008_v47, %v6106_v5  ;;  %v12044_v37 = vadd.f32 %v13009_v56, %v6107_v24  ;;  %v12047_v54 = vadd.f32 %v13010_v55, %v6108_v60  ;;  %v13013_v1 = vld [vmem:[#allocation72_spill] sm:$0xff]  ;;  %v13014_v26 = vld [vmem:[#allocation73_spill] sm:$0xff]  ;;  %v13015_v52 = vld [vmem:[#allocation74_spill] sm:$0xff] }
 0x8f3   : > { %v12050_v43 = vadd.f32 %v13011_v50, %v6109_v23  ;;  %v12053_v0 = vadd.f32 %v13012_v40, %v6110_v38  ;;  %v12056_v45 = vadd.f32 %v13013_v1, %v6111_v53  ;;  %v12059_v6 = vadd.f32 %v13014_v26, %v6112_v12  ;;  %v13017_v2 = vld [vmem:[#allocation76_spill] sm:$0xff]  ;;  %v13018_v38 = vld [vmem:[#allocation77_spill] sm:$0xff] }
 0x8f4   : > { %v6692_v5 = vsel %vm2188_vm14, %v6630_v19, %v6691_v32  ;;  %v12063_v24 = vadd.f32 %v13015_v52, %v6113_v25  ;;  %v12066_v60 = vadd.f32 %v13016_v20, %v6114_v14  ;;  %v12069_v23 = vadd.f32 %v13017_v2, %v6115_v61  ;;  %v13019_v53 = vld [vmem:[#allocation16_spill] sm:$0xff]  ;;  %v13020_v12 = vld [vmem:[#allocation45_spill] sm:$0xff]  ;;  %v13022_v52 = vld [vmem:[#allocation18_spill] sm:$0xff] }
 0x8f5   : > { %6695 = vrot.lane.b32.xlu1 %v6692_v5, %s12654_s29  ;;  %v12073_v18 = vadd.f32 %v13018_v38, %v6116_v7  ;;  %v12076_v22 = vadd.f32 %v13019_v53, %v6117_v28  ;;  %v12079_v31 = vadd.f32 %v13020_v12, %v6118_v29  ;;  %v12498_v25 = vmax.f32 %v12032_v17, 0.0  ;;  %v13023_v2 = vld [vmem:[#allocation20_spill] sm:$0xff]  ;;  %v13024_v53 = vld [vmem:[#allocation19_spill] sm:$0xff] }
 0x8f6   : > { %v12499_v32 = vmax.f32 %v12035_v46, 0.0  ;;  %v12500_v14 = vmax.f32 %v12038_v36, 0.0  ;;  %v12501_v61 = vmax.f32 %v12041_v16, 0.0  ;;  %v12502_v19 = vmax.f32 %v12044_v37, 0.0 }
 0x8f7   : > { %13021 = vst [vmem:[#allocation53_spill] sm:$0xff] %v12079_v31  ;;  %v12503_v47 = vmax.f32 %v12047_v54, 0.0  ;;  %v12504_v7 = vmax.f32 %v12050_v43, 0.0  ;;  %v12505_v28 = vmax.f32 %v12053_v0, 0.0  ;;  %v12506_v56 = vmax.f32 %v12056_v45, 0.0 }
 0x8f8   : > { %v12507_v29 = vmax.f32 %v12059_v6, 0.0  ;;  %v12508_v55 = vmax.f32 %v12063_v24, 0.0  ;;  %v12509_v50 = vmax.f32 %v12066_v60, 0.0  ;;  %v12510_v40 = vmax.f32 %v12069_v23, 0.0 }
 0x8f9   : > { %v12512_v1 = vmax.f32 %v12073_v18, 0.0  ;;  %v12513_v26 = vmax.f32 %v12076_v22, 0.0  ;;  %v12515_v5 = vmax.f32 %v12079_v31, 0.0  ;;  %v6455_v20 = vmul.f32 %v12498_v25, %v13022_v52  ;;  %v13028_v25 = vld [vmem:[#allocation23_spill] sm:$0xff] }
 0x8fa   : > { %v6456_v38 = vmul.f32 %v12499_v32, %v13023_v2  ;;  %v6457_v12 = vmul.f32 %v12500_v14, %v13024_v53  ;;  %v6458_v10 = vmul.f32 %v12501_v61, %v13025_v35  ;;  %v6459_v59 = vmul.f32 %v12502_v19, %v13026_v30  ;;  %v13029_v32 = vld [vmem:[#allocation26_spill] sm:$0xff]  ;;  %v13030_v14 = vld [vmem:[#allocation25_spill] sm:$0xff]  ;;  %v13031_v61 = vld [vmem:[#allocation28_spill] sm:$0xff] }
 0x8fb   : > { %v6460_v52 = vmul.f32 %v12503_v47, %v13027_v15  ;;  %v6461_v2 = vmul.f32 %v12504_v7, %v13028_v25  ;;  %v6462_v53 = vmul.f32 %v12505_v28, %v13029_v32  ;;  %v6463_v35 = vmul.f32 %v12506_v56, %v13030_v14  ;;  %v13032_v19 = vld [vmem:[#allocation27_spill] sm:$0xff]  ;;  %v13033_v47 = vld [vmem:[#allocation30_spill] sm:$0xff]  ;;  %v13034_v7 = vld [vmem:[#allocation29_spill] sm:$0xff] }
 0x8fc   : > { %v6464_v30 = vmul.f32 %v12507_v29, %v13031_v61  ;;  %v6465_v15 = vmul.f32 %v12508_v55, %v13032_v19  ;;  %v6466_v25 = vmul.f32 %v12509_v50, %v13033_v47  ;;  %v6467_v32 = vmul.f32 %v12510_v40, %v13034_v7  ;;  %v13035_v28 = vld [vmem:[#allocation32_spill] sm:$0xff]  ;;  %v13036_v56 = vld [vmem:[#allocation31_spill] sm:$0xff]  ;;  %v13037_v29 = vld [vmem:[#allocation33_spill] sm:$0xff] }
 0x8fd   : > { %v6468_v14 = vmul.f32 %v12512_v1, %v13035_v28  ;;  %v6469_v61 = vmul.f32 %v12513_v26, %v13036_v56  ;;  %v6470_v19 = vmul.f32 %v12515_v5, %v13037_v29  ;;  %v6487_v55 = vsel %vm1839_vm7, %v6455_v20, 0.0 }
 0x8fe   : > { %v6488_v47 = vsel %vm1839_vm7, %v6456_v38, 0.0  ;;  %v6496_v50 = vsel %vm1839_vm7, %v6457_v12, 0.0  ;;  %v6497_v7 = vsel %vm1839_vm7, %v6458_v10, 0.0  ;;  %v6505_v40 = vsel %vm1839_vm7, %v6459_v59, 0.0 }
 0x8ff   : > { %v6489_v3 = vadd.f32 %v6488_v47, %v6487_v55  ;;  %v6498_v28 = vadd.f32 %v6497_v7, %v6496_v50  ;;  %v6506_v1 = vsel %vm1839_vm7, %v6460_v52, 0.0  ;;  %v6514_v56 = vsel %vm1839_vm7, %v6461_v2, 0.0 }
 0x900   : > { %v6507_v26 = vadd.f32 %v6506_v1, %v6505_v40  ;;  %v6515_v34 = vsel %vm1839_vm7, %v6462_v53, 0.0  ;;  %v6523_v29 = vsel %vm1839_vm7, %v6463_v35, 0.0  ;;  %v6524_v20 = vsel %vm1839_vm7, %v6464_v30, 0.0 }
 0x901   : > { %v6490_v38 = vrot.slane %v6489_v3, 4  ;;  %v6499_v5 = vrot.slane %v6498_v28, 4  ;;  %v6516_v12 = vadd.f32 %v6515_v34, %v6514_v56  ;;  %v6525_v44 = vadd.f32 %v6524_v20, %v6523_v29 }
 0x902   : > { %v6508_v10 = vrot.slane %v6507_v26, 4  ;;  %v6532_v59 = vsel %vm1839_vm7, %v6465_v15, 0.0  ;;  %v6533_v55 = vsel %vm1839_vm7, %v6466_v25, 0.0  ;;  %v6541_v50 = vsel %vm1839_vm7, %v6467_v32, 0.0 }
 0x903   : > { %v6491_v52 = vadd.f32 %v6490_v38, %v6489_v3  ;;  %v6500_v2 = vadd.f32 %v6499_v5, %v6498_v28  ;;  %v6517_v40 = vrot.slane %v6516_v12, 4  ;;  %v6526_v1 = vrot.slane %v6525_v44, 4 }
 0x904   : > { %v6509_v53 = vadd.f32 %v6508_v10, %v6507_v26  ;;  %v6534_v47 = vadd.f32 %v6533_v55, %v6532_v59  ;;  %v6542_v35 = vsel %vm1839_vm7, %v6468_v14, 0.0  ;;  %v6550_v30 = vsel %vm1839_vm7, %v6469_v61, 0.0 }
 0x905   : > { %v6492_v7 = vrot.slane %v6491_v52, 2  ;;  %v6501_v34 = vrot.slane %v6500_v2, 2  ;;  %v6518_v56 = vadd.f32 %v6517_v40, %v6516_v12  ;;  %v6527_v29 = vadd.f32 %v6526_v1, %v6525_v44 }
 0x906   : > { %v6510_v20 = vrot.slane %v6509_v53, 2  ;;  %v6535_v15 = vrot.slane %v6534_v47, 4  ;;  %v6543_v58 = vadd.f32 %v6542_v35, %v6541_v50  ;;  %v6551_v25 = vsel %vm1839_vm7, %v6470_v19, 0.0 }
 0x907   : > { %v6493_v32 = vadd.f32 %v6492_v7, %v6491_v52  ;;  %v6502_v3 = vadd.f32 %v6501_v34, %v6500_v2  ;;  %v6519_v5 = vrot.slane %v6518_v56, 2  ;;  %v6528_v28 = vrot.slane %v6527_v29, 2 }
 0x908   : > { %v6511_v38 = vadd.f32 %v6510_v20, %v6509_v53  ;;  %v6536_v26 = vadd.f32 %v6535_v15, %v6534_v47  ;;  %v6544_v10 = vrot.slane %v6543_v58, 4  ;;  %v6552_v59 = vadd.f32 %v6551_v25, %v6550_v30 }
 0x909   : > { %v6494_v14 = vrot.slane %v6493_v32, 1  ;;  %v6503_v55 = vrot.slane %v6502_v3, 1  ;;  %v6520_v61 = vadd.f32 %v6519_v5, %v6518_v56  ;;  %v6529_v4 = vadd.f32 %v6528_v28, %v6527_v29 }
 0x90a   : > { %v6512_v31 = vrot.slane %v6511_v38, 1  ;;  %v6537_v12 = vrot.slane %v6536_v26, 2  ;;  %v6545_v44 = vadd.f32 %v6544_v10, %v6543_v58  ;;  %v6553_v40 = vrot.slane %v6552_v59, 4 }
 0x90b   : > { %v6495_v1 = vadd.f32 %v6494_v14, %v6493_v32  ;;  %v6504_v50 = vadd.f32 %v6503_v55, %v6502_v3  ;;  %v6521_v35 = vrot.slane %v6520_v61, 1  ;;  %v6530_v19 = vrot.slane %v6529_v4, 1 }
 0x90c   : > { %v6513_v52 = vadd.f32 %v6512_v31, %v6511_v38  ;;  %v6538_v2 = vadd.f32 %v6537_v12, %v6536_v26  ;;  %v6546_v7 = vrot.slane %v6545_v44, 2  ;;  %v6554_v34 = vadd.f32 %v6553_v40, %v6552_v59 }
 0x90d   : > { %v6522_v53 = vadd.f32 %v6521_v35, %v6520_v61  ;;  %v6531_v47 = vadd.f32 %v6530_v19, %v6529_v4  ;;  %v6679_v30 = vsel %vm2176_vm8, %v6504_v50, %v6495_v1  ;;  %v13038_v20 = vmax.f32 %v11883_v27, 0.0 }
 0x90e   : > { %v6539_v29 = vrot.slane %v6538_v2, 1  ;;  %v6547_v58 = vadd.f32 %v6546_v7, %v6545_v44  ;;  %v6555_v15 = vrot.slane %v6554_v34, 2  ;;  %v6680_v25 = vsel %vm2178_vm9, %v6513_v52, %v6679_v30 }
 0x90f   : > { %v12165_v56 = vsel %vm1839_vm7, %v13038_v20, 0.0  ;;  %v6681_v32 = vsel %vm2180_vm10, %v6522_v53, %v6680_v25  ;;  %v13039_v31 = vmax.f32 %v11885_v49, 0.0  ;;  %v13040_v4 = vmax.f32 %v11887_v57, 0.0 }
 0x910   : > { %v13041_v27 = vmax.f32 %v11889_v42, 0.0  ;;  %v6540_v38 = vadd.f32 %v6539_v29, %v6538_v2  ;;  %v6548_v26 = vrot.slane %v6547_v58, 1  ;;  %v6556_v10 = vadd.f32 %v6555_v15, %v6554_v34 }
 0x911   : > { %v6392_v3 = vsel %vm1839_vm7, %v13039_v31, 0.0  ;;  %v6393_v5 = vsel %vm1839_vm7, %v13040_v4, 0.0  ;;  %v6682_v59 = vsel %vm2182_vm11, %v6531_v47, %v6681_v32  ;;  %v13042_v55 = vmax.f32 %v11891_v21, 0.0 }
 0x912   : > { %v6401_v28 = vsel %vm1839_vm7, %v13041_v27, 0.0  ;;  %v6394_v14 = vadd.f32 %v6393_v5, %v6392_v3  ;;  %v13043_v61 = vmax.f32 %v11893_v41, 0.0  ;;  %v13044_v12 = vmax.f32 %v11895_v63, 0.0 }
 0x913   : > { %v6402_v49 = vsel %vm1839_vm7, %v13042_v55, 0.0  ;;  %v6549_v44 = vadd.f32 %v6548_v26, %v6547_v58  ;;  %v6557_v40 = vrot.slane %v6556_v10, 1  ;;  %v6683_v1 = vsel %vm2184_vm12, %v6540_v38, %v6682_v59 }
 0x914   : > { %v6410_v57 = vsel %vm1839_vm7, %v13043_v61, 0.0  ;;  %v6411_v42 = vsel %vm1839_vm7, %v13044_v12, 0.0  ;;  %v6403_v50 = vadd.f32 %v6402_v49, %v6401_v28  ;;  %v6395_v35 = vrot.slane %v6394_v14, 4 }
 0x915   : > { %v6412_v19 = vadd.f32 %v6411_v42, %v6410_v57  ;;  %v13045_v52 = vmax.f32 %v11897_v11, 0.0  ;;  %v13046_v2 = vmax.f32 %v11899_v33, 0.0  ;;  %v6558_v7 = vadd.f32 %v6557_v40, %v6556_v10 }
 0x916   : > { %v6684_v63 = vsel %vm2186_vm13, %v6549_v44, %v6683_v1  ;;  %v6404_v34 = vrot.slane %v6403_v50, 4  ;;  %v6396_v47 = vadd.f32 %v6395_v35, %v6394_v14  ;;  %v13047_v20 = vmax.f32 %v11901_v39, 0.0 }
 0x917   : > { %v6419_v21 = vsel %vm1839_vm7, %v13045_v52, 0.0  ;;  %v6420_v41 = vsel %vm1839_vm7, %v13046_v2, 0.0  ;;  %v6413_v30 = vrot.slane %v6412_v19, 4  ;;  %v13048_v58 = vmax.f32 %v11903_v62, 0.0 }
 0x918   : > { %v6421_v53 = vadd.f32 %v6420_v41, %v6419_v21  ;;  %v6428_v29 = vsel %vm1839_vm7, %v13047_v20, 0.0  ;;  %v6685_v15 = vsel %vm2188_vm14, %v6558_v7, %v6684_v63  ;;  %v6405_v33 = vadd.f32 %v6404_v34, %v6403_v50  ;;  %v6808_v21 = vld [vmem:[%s12376_s10 + $0x48] sm:$0xff] }
 0x919   : > { %v6429_v11 = vsel %vm1839_vm7, %v13048_v58, 0.0  ;;  %6693 = vrot.lane.b32.xlu0 %v6685_v15, %s12654_s29  ;;  %v6397_v31 = vrot.slane %v6396_v47, 2  ;;  %v6414_v3 = vadd.f32 %v6413_v30, %v6412_v19  ;;  %v13049_v4 = vmax.f32 %v11905_v48, 0.0  ;;  %s6909_s29 = sshll.u32 %s421_s19, 4  ;;  %s12323_s29 = int_to_ptr.vmem [resolvable:$true] %s6909_s29 }
 0x91a   : > { %v6422_v25 = vrot.slane %v6421_v53, 4  ;;  %v6430_v32 = vadd.f32 %v6429_v11, %v6428_v29  ;;  %v13050_v39 = vmax.f32 %v11907_v13, 0.0  ;;  %v6406_v62 = vrot.slane %v6405_v33, 2  ;;  %s8013_s15 = scalar_lea.vmem %s12323_s29, 256  ;;  %p8020_p0 = scmp.lt.s32.totalorder %s12323_s29, %s8018_s16 }
 0x91b   : > { %v6437_v5 = vsel %vm1839_vm7, %v13049_v4, 0.0  ;;  %v6398_v10 = vadd.f32 %v6397_v31, %v6396_v47  ;;  %v6415_v59 = vrot.slane %v6414_v3, 2  ;;  %v13051_v14 = vmax.f32 %v11909_v8, 0.0  ;;  %p8014_p11 = scmp.ne.s32.totalorder %s12323_s29, %s8013_s15  ;;  %p8021_p1 = scmp.lt.s32.totalorder %s8019_s17, %s8013_s15 }
 0x91c   : > { %v6438_v27 = vsel %vm1839_vm7, %v13050_v39, 0.0  ;;  %v6423_v28 = vadd.f32 %v6422_v25, %v6421_v53  ;;  %v6431_v38 = vrot.slane %v6430_v32, 4  ;;  %v13052_v49 = vmax.f32 %v11911_v51, 0.0  ;;  %v6807_v51 = vld [vmem:[%s12376_s10 + $0x40] sm:$0xff] }
 0x91d   : > { %v6439_v26 = vadd.f32 %v6438_v27, %v6437_v5  ;;  %v6446_v55 = vsel %vm1839_vm7, %v13051_v14, 0.0  ;;  %v6407_v61 = vadd.f32 %v6406_v62, %v6405_v33  ;;  %v6399_v42 = vrot.slane %v6398_v10, 1  ;;  %p8015_p12 = pnand %p8014_p11, %p8188_p5  ;;  %p8022_p2 = por %p8021_p1, %p8020_p0 }
 0x91e   : > { %v6447_v48 = vsel %vm1839_vm7, %v13052_v49, 0.0  ;;  %v6424_v57 = vrot.slane %v6423_v28, 2  ;;  %v6432_v12 = vadd.f32 %v6431_v38, %v6430_v32  ;;  %v6416_v44 = vadd.f32 %v6415_v59, %v6414_v3 }
 0x91f   : > { %v6440_v13 = vrot.slane %v6439_v26, 4  ;;  %v6448_v40 = vadd.f32 %v6447_v48, %v6446_v55  ;;  %v13053_v1 = vmax.f32 %v11881_v9, 0.0  ;;  %v6408_v35 = vrot.slane %v6407_v61, 1  ;;  %p8016_p13 = pneg %p8015_p12 }
 0x920   : > { %v6425_v19 = vadd.f32 %v6424_v57, %v6423_v28  ;;  %v6433_v8 = vrot.slane %v6432_v12, 2  ;;  %v6400_v2 = vadd.f32 %v6399_v42, %v6398_v10  ;;  %v6417_v41 = vrot.slane %v6416_v44, 1 }
 0x921   : > { %v6383_v50 = vsel %vm1839_vm7, %v13053_v1, 0.0  ;;  %v6441_v52 = vadd.f32 %v6440_v13, %v6439_v26  ;;  %v6449_v7 = vrot.slane %v6448_v40, 4  ;;  %v6409_v9 = vadd.f32 %v6408_v35, %v6407_v61  ;;  %p8023_p3 = pnand %p8022_p2, %p8016_p13 }
 0x922   : > { %v6385_v63 = vadd.f32 %v12165_v56, %v6383_v50  ;;  %v6426_v34 = vrot.slane %v6425_v19, 1  ;;  %v6434_v53 = vadd.f32 %v6433_v8, %v6432_v12  ;;  %v6418_v30 = vadd.f32 %v6417_v41, %v6416_v44 }
 0x923   : > { %v6442_v47 = vrot.slane %v6441_v52, 2  ;;  %v6450_v20 = vadd.f32 %v6449_v7, %v6448_v40  ;;  %v7951_v58 = vpack.c.bf16 %v6808_v21, %v6807_v51  ;;  %v13054_v25 = vmax.f32 %v12032_v17, 0.0 }
 0x924   : > { %v6386_v29 = vrot.slane %v6385_v63, 4  ;;  %v6427_v11 = vadd.f32 %v6426_v34, %v6425_v19  ;;  %v6435_v15 = vrot.slane %v6434_v53, 1  ;;  %v13055_v56 = vmax.f32 %v12035_v46, 0.0 }
 0x925   : > { %v6443_v33 = vadd.f32 %v6442_v47, %v6441_v52  ;;  %v6311_v32 = vsel %vm1839_vm7, %v13054_v25, 0.0  ;;  %v6451_v31 = vrot.slane %v6450_v20, 2  ;;  %7952 = vmatpush3.bf16.msra.mxu1 %v7951_v58  ;;  %v13056_v5 = vmax.f32 %v12038_v36, 0.0 }
 0x926   : > { %v6387_v3 = vadd.f32 %v6386_v29, %v6385_v63  ;;  %v6312_v4 = vsel %vm1839_vm7, %v13055_v56, 0.0  ;;  %v6436_v27 = vadd.f32 %v6435_v15, %v6434_v53  ;;  %v13057_v38 = vmax.f32 %v12041_v16, 0.0 }
 0x927   : > { %v6320_v39 = vsel %vm1839_vm7, %v13056_v5, 0.0  ;;  %v6444_v62 = vrot.slane %v6443_v33, 1  ;;  %v6313_v28 = vadd.f32 %v6312_v4, %v6311_v32  ;;  %v13058_v26 = vmov 0.0|0.0  }
 0x928   : > { %v6321_v17 = vsel %vm1839_vm7, %v13057_v38, 0.0  ;;  %7953 = vmatprep.subr.bf16.mxu1 %v13058_v26  ;;  %v6452_v10 = vadd.f32 %v6451_v31, %v6450_v20  ;;  %v6388_v59 = vrot.slane %v6387_v3, 2  ;;  %v13059_v46 = vmax.f32 %v12044_v37, 0.0 }
 0x929   : > { %v6322_v14 = vadd.f32 %v6321_v17, %v6320_v39  ;;  %v6445_v49 = vadd.f32 %v6444_v62, %v6443_v33  ;;  %v6314_v36 = vrot.slane %v6313_v28, 4  ;;  %v13060_v48 = vmax.f32 %v12047_v54, 0.0 }
 0x92a   : > { %v6329_v55 = vsel %vm1839_vm7, %v13059_v46, 0.0  ;;  %v13061_v57 = vmax.f32 %v12050_v43, 0.0  ;;  %v6453_v12 = vrot.slane %v6452_v10, 1  ;;  %v6389_v13 = vadd.f32 %v6388_v59, %v6387_v3 }
 0x92b   : > { %v6330_v61 = vsel %vm1839_vm7, %v13060_v48, 0.0  ;;  %v6323_v42 = vrot.slane %v6322_v14, 4  ;;  %v6315_v40 = vadd.f32 %v6314_v36, %v6313_v28  ;;  %v13062_v1 = vmax.f32 %v12053_v0, 0.0 }
 0x92c   : > { %v6338_v16 = vsel %vm1839_vm7, %v13061_v57, 0.0  ;;  %v6331_v44 = vadd.f32 %v6330_v61, %v6329_v55  ;;  %v13063_v50 = vmax.f32 %v12056_v45, 0.0  ;;  %v13064_v54 = vmax.f32 %v12059_v6, 0.0 }
 0x92d   : > { %v6339_v37 = vsel %vm1839_vm7, %v13062_v1, 0.0  ;;  %v6454_v43 = vadd.f32 %v6453_v12, %v6452_v10  ;;  %v6390_v8 = vrot.slane %v6389_v13, 1  ;;  %v6324_v52 = vadd.f32 %v6323_v42, %v6322_v14  ;;  %v6810_v12 = vld [vmem:[%s12376_s10 + $0x58] sm:$0xff] }
 0x92e   : > { %v6347_v35 = vsel %vm1839_vm7, %v13063_v50, 0.0  ;;  %v6348_v19 = vsel %vm1839_vm7, %v13064_v54, 0.0  ;;  %v6332_v51 = vrot.slane %v6331_v44, 4  ;;  %v6316_v21 = vrot.slane %v6315_v40, 2 }
 0x92f   : > { %v6340_v41 = vadd.f32 %v6339_v37, %v6338_v16  ;;  %v6349_v7 = vadd.f32 %v6348_v19, %v6347_v35  ;;  %v13065_v63 = vmax.f32 %v12063_v24, 0.0  ;;  %v6391_v34 = vadd.f32 %v6390_v8, %v6389_v13  ;;  %v6811_v19 = vld [vmem:[%s12376_s10 + $0x60] sm:$0xff] }
 0x930   : > { %v6325_v53 = vrot.slane %v6324_v52, 2  ;;  %v6333_v45 = vadd.f32 %v6332_v51, %v6331_v44  ;;  %v13066_v47 = vmax.f32 %v12066_v60, 0.0  ;;  %v6317_v20 = vadd.f32 %v6316_v21, %v6315_v40  ;;  %v13070_v44 = vld [vmem:[#allocation53_spill] sm:$0xff] }
 0x931   : > { %v6356_v0 = vsel %vm1839_vm7, %v13065_v63, 0.0  ;;  %v6341_v29 = vrot.slane %v6340_v41, 4  ;;  %v6350_v58 = vrot.slane %v6349_v7, 4  ;;  %v6654_v33 = vsel %vm2176_vm8, %v6400_v2, %v6391_v34 }
 0x932   : > { %v6357_v6 = vsel %vm1839_vm7, %v13066_v47, 0.0  ;;  %v6326_v25 = vadd.f32 %v6325_v53, %v6324_v52  ;;  %v6334_v32 = vrot.slane %v6333_v45, 2  ;;  %v13067_v31 = vmax.f32 %v12069_v23, 0.0 }
 0x933   : > { %v6358_v15 = vadd.f32 %v6357_v6, %v6356_v0  ;;  %v6655_v3 = vsel %vm2178_vm9, %v6409_v9, %v6654_v33  ;;  %v6318_v56 = vrot.slane %v6317_v20, 1  ;;  %v6342_v4 = vadd.f32 %v6341_v29, %v6340_v41  ;;  %v6813_v6 = vld [vmem:[%s12376_s10 + $0x70] sm:$0xff] }
 0x934   : > { %v6365_v24 = vsel %vm1839_vm7, %v13067_v31, 0.0  ;;  %v6351_v5 = vadd.f32 %v6350_v58, %v6349_v7  ;;  %v6656_v60 = vsel %vm2180_vm10, %v6418_v30, %v6655_v3  ;;  %v6327_v39 = vrot.slane %v6326_v25, 1 }
 0x935   : > { %v6335_v62 = vadd.f32 %v6334_v32, %v6333_v45  ;;  %v6359_v28 = vrot.slane %v6358_v15, 4  ;;  %v6657_v38 = vsel %vm2182_vm11, %v6427_v11, %v6656_v60  ;;  %v6319_v17 = vadd.f32 %v6318_v56, %v6317_v20  ;;  %v6814_v20 = vld [vmem:[%s12376_s10 + $0x78] sm:$0xff] }
 0x936   : > { %v6343_v2 = vrot.slane %v6342_v4, 2  ;;  %v6352_v10 = vrot.slane %v6351_v5, 2  ;;  %v6658_v59 = vsel %vm2184_vm12, %v6436_v27, %v6657_v38  ;;  %v6328_v23 = vadd.f32 %v6327_v39, %v6326_v25  ;;  %v6809_v27 = vld [vmem:[%s12376_s10 + $0x50] sm:$0xff] }
 0x937   : > { %v6336_v14 = vrot.slane %v6335_v62, 1  ;;  %v6360_v46 = vadd.f32 %v6359_v28, %v6358_v15  ;;  %v6659_v9 = vsel %vm2186_vm13, %v6445_v49, %v6658_v59  ;;  %v13068_v48 = vmax.f32 %v12073_v18, 0.0 }
 0x938   : > { %v6344_v55 = vadd.f32 %v6343_v2, %v6342_v4  ;;  %v6353_v36 = vadd.f32 %v6352_v10, %v6351_v5  ;;  %v6660_v61 = vsel %vm2188_vm14, %v6454_v43, %v6659_v9  ;;  %v13069_v42 = vmax.f32 %v12076_v22, 0.0  ;;  %v6812_v43 = vld [vmem:[%s12376_s10 + $0x68] sm:$0xff]  ;;  %v6815_v9 = vld [vmem:[%s12377_s11] sm:$0x1] }
 0x939   : > { %v6366_v30 = vsel %vm1839_vm7, %v13068_v48, 0.0  ;;  %v6337_v57 = vadd.f32 %v6336_v14, %v6335_v62  ;;  %v6361_v11 = vrot.slane %v6360_v46, 2  ;;  %v13071_v40 = vmax.f32 %v13070_v44, 0.0 }
 0x93a   : > { %v6367_v16 = vadd.f32 %v6366_v30, %v6365_v24  ;;  %v6345_v49 = vrot.slane %v6344_v55, 1  ;;  %v6354_v13 = vrot.slane %v6353_v36, 1  ;;  %v6374_v18 = vsel %vm1839_vm7, %v13069_v42, 0.0  ;;  %v13073_v30 = vld [vmem:[#allocation5_spill] sm:$0xff] }
 0x93b   : > { %v6375_v1 = vsel %vm1839_vm7, %v13071_v40, 0.0  ;;  %v6362_v37 = vadd.f32 %v6361_v11, %v6360_v46  ;;  %v6647_v54 = vsel %vm2176_vm8, %v6328_v23, %v6319_v17  ;;  %v7954_v52 = vpack.c.bf16 %v6810_v12, %v6809_v27 }
 0x93c   : > { %v6368_v50 = vrot.slane %v6367_v16, 4  ;;  %v6376_v35 = vadd.f32 %v6375_v1, %v6374_v18  ;;  %v6346_v22 = vadd.f32 %v6345_v49, %v6344_v55  ;;  %v6648_v8 = vsel %vm2178_vm9, %v6337_v57, %v6647_v54 }
 0x93d   : > { %v6355_v51 = vadd.f32 %v6354_v13, %v6353_v36  ;;  %v6363_v21 = vrot.slane %v6362_v37, 1  ;;  %7955 = vmatpush3.bf16.msra.mxu1 %v7954_v52  ;;  %v7957_v0 = vpack.c.bf16 %v6812_v43, %v6811_v19  ;;  %v13072_v29 = vmov 0.0  }
 0x93e   : > { %v6369_v41 = vadd.f32 %v6368_v50, %v6367_v16  ;;  %v6377_v7 = vrot.slane %v6376_v35, 4  ;;  %v6649_v63 = vsel %vm2180_vm10, %v6346_v22, %v6648_v8  ;;  %7956 = vmatprep.subr.bf16.mxu1 %v13058_v26  ;;  %7663 = vmatprep.mubr.msk.f32.mxu1 %vm8081_vm15, %v13072_v29  ;;  %v7960_v25 = vpack.c.bf16 %v6814_v20, %v6813_v6 }
 0x93f   : > { %v6364_v34 = vadd.f32 %v6363_v21, %v6362_v37  ;;  %v6650_v47 = vsel %vm2182_vm11, %v6355_v51, %v6649_v63 }
 0x940   : > { %v6370_v53 = vrot.slane %v6369_v41, 2  ;;  %v6378_v45 = vadd.f32 %v6377_v7, %v6376_v35 }
 0x941   : > { %v6651_v33 = vsel %vm2184_vm12, %v6364_v34, %v6650_v47  ;;  %7958 = vmatpush3.bf16.msra.mxu1 %v7957_v0 }
 0x942   : > { %v6371_v58 = vadd.f32 %v6370_v53, %v6369_v41  ;;  %v6379_v15 = vrot.slane %v6378_v45, 2  ;;  %7959 = vmatprep.subr.bf16.mxu1 %v13058_v26 }
 0x944   : > { %v6372_v32 = vrot.slane %v6371_v58, 1  ;;  %v6380_v31 = vadd.f32 %v6379_v15, %v6378_v45 }
 0x945   : > { %7961 = vmatpush3.bf16.msra.mxu1 %v7960_v25 }
 0x946   : > { %v6373_v24 = vadd.f32 %v6372_v32, %v6371_v58  ;;  %v6381_v3 = vrot.slane %v6380_v31, 1 }
 0x948   : > { %v6382_v56 = vadd.f32 %v6381_v3, %v6380_v31  ;;  %v6652_v4 = vsel %vm2186_vm13, %v6373_v24, %v6651_v33 }
 0x94a   : > { %v6653_v5 = vsel %vm2188_vm14, %v6382_v56, %v6652_v4 }
 0x967   : > { %v6696_v60 = vpop.permute.xlu1 %6695 }
 0x968   : > { %v6700_v39 = vsel %vm1839_vm7, %v6660_v61, %v6696_v60 }
 0x98b   : > { %v6694_v62 = vpop.permute.xlu0 %6693 }
 0x98c   : > { %v6699_v28 = vsel %vm1839_vm7, %v6653_v5, %v6694_v62 }
 0x98d   : > { %v6701_v38 = vadd.f32 %v6700_v39, %v6699_v28  ;;  %7628 = vmatprep.mubr.f32.mxu0 %v6699_v28 }
 0x98e   : > { %7629 = vmatmul.mubr.f32.vlgmr.msra.gmra.mrb[102].mxu0 %v6700_v39 }
 0x98f   : > { %v6702_v26 = vrot.slane %v6701_v38, 4 }
 0x991   : > { %v6703_v17 = vadd.f32 %v6702_v26, %v6701_v38 }
 0x993   : > { %v6704_v2 = vrot.slane %v6703_v17, 2 }
 0x995   : > { %v6705_v10 = vadd.f32 %v6704_v2, %v6703_v17 }
 0x997   : > { %v6706_v59 = vrot.slane %v6705_v10, 1 }
 0x999   : > { %v6707_v23 = vadd.f32 %v6706_v59, %v6705_v10 }
 0x99b   : > { %7664 = vmatmul.mubr.f32.vlgmr.msra.gmra.mrb[18].mxu1 %v6707_v23 }
 0xa61   : > { %v7630_v14 = vpop.f32.mrb[102].mxu0 }
 0xa62   : > { %v6790_v46 = vpop.f32.mrb[103].mxu0 }
 0xa6e   : > { %v6882_v55 = vpop.f32.mrb[18].mxu1 }
 0xa6f   : > { %v6883_v36 = vadd.f32 %v6882_v55, %v6815_v9  ;;  %v7665_v48 = vpop.f32.mrb[19].mxu1 }
 0xa71   : > { %v6889_v61 = vrot.slane %v6883_v36, %v13073_v30 }
 0xa73   : > { %v6890_v57 = vadd.f32 %v6889_v61, %v6790_v46  ;;  %v6891_v11 = vadd.f32 %v7630_v14, %v6889_v61 }
 0xa75   : > { %6893 = vst.msk [vmem:[%s421_s19] sm:$0xff] %vm6892_vm0, %v6890_v57  ;;  %6894 = vst.msk [vmem:[%s421_s19 + $0x8] sm:$0xff] %vm6892_vm0, %v6891_v11 }
 0xa76   : > { %8026 = shalt.err (!%p8023_p3)
}
 0xa77   : > { %s8027_s0 = scalar_lea.hbm %s12321_s20, 256  ;;  %s8031_s26 = scalar_lea.hbm %s12378_s12, 512 }
 0xa78   : > { %p8028_p4 = scmp.ne.s32.totalorder %s12321_s20, %s8027_s0  ;;  %p8032_p9 = scmp.lt.u32.totalorder %s12321_s20, %s12378_s12 }
 0xa79   : > { %p8033_p10 = scmp.lt.u32.totalorder %s8031_s26, %s8027_s0  ;;  %p8035_p12 = scmp.lt.u32.totalorder %s8027_s0, %s12321_s20 }
 0xa7a   : > { %p8029_p7 = pnand %p8028_p4, %p8188_p5 }
 0xa7b   : > { %p8034_p11 = por %p8033_p10, %p8032_p9 }
 0xa7c   : > { %p8030_p8 = pneg %p8029_p7 }
 0xa7d   : > { %p8036_p13 = por %p8035_p12, %p8034_p11 }
 0xa7f   : > { %p8037_p0 = pnand %p8036_p13, %p8030_p8 }
 0xa81   : > { %8040 = shalt.err (!%p8037_p0)
}
 0xa82   : > { %s8083_s15 = smov 128   ;;  %s8084_s16 = smov 8  }
 0xa83   : > { %7962 = dma.vmem_to_hbm [thread:$0]  (%p8188_p5), %s12323_s29, 256, %s12321_s20, %s12325_s25, %s8083_s15, %s8083_s15, %s8084_s16  }
 0xa84 PF: > { %p7968_p1 = scmp.ge.s32.totalorder %s8075_s24, 2  ;;  %s6924_s17 = sand.u32 1, %s8063_s21  }
 0xa85   : > { %s6925_s0 = scalar_lea.sflag [#allocation3], %s6924_s17 }
 0xa86   : > { %p7965_p2 = pnand %p7968_p1, %p8192_p6 }
 0xa88   : > { %8058 = dma.done.wait (!%p7965_p2), %s6925_s0, 256  }
 0xa89   : > { %8060 = vsyncadd (!%p7965_p2), %s6925_s0, 4294967040  ;;  %p22_p3 = scmp.ge.s32.totalorder %s8175_s27, 4   ;;  %s13074_s21 = smov %s8067_s22 }
 0xa8a   : > { %s13075_s22 = smov %s8071_s23  ;;  %s13076_s23 = smov %s8186_s30 }
 0xa8b   : > { %s13077_s24 = smov %s8175_s27  ;;  %24 = sbr.rel (!%p22_p3) target bundleno = 6 (0x6), region = 112 }
 0xa92   :  { %6930 = vsyncpa [#allocation3], 1 }
 0xa93   :  { %6932 = vsyncpa [#allocation3 + $0x1], 1 }

</bundles_post_ra>
